<compile_context>
chip_gen: v7x
topology: tpu7x:2x2x1
jax: 0.10.0
libtpu: 0.0.40
codegen_flags: <defaults>
</compile_context>

<pallas_src>
import math

import jax
import jax.numpy as jnp
from jax import lax
from jax.experimental import pallas as pl
from jax.experimental.pallas import tpu as pltpu

LATENT_DIM = 64          # latent_dim constructor arg (kept small)
TIME_EMBED_DIM = 64      # fixed in the module
NUM_LAYERS = 20          # fixed in the module
NUM_HID = 2048           # fixed in the module
NUM_MID = NUM_LAYERS - 2 # 18 identical hidden layers (indices 1..18)
CONDITION_BIAS = 1.0
LN_EPS = 1e-5

TK = 1024                # K-tile over the 2048-wide hidden contraction dim
KT = NUM_HID // TK       # 2 K-steps per hidden layer
VMEM_LIMIT = 32 * 1024 * 1024   # safe on v7x (64 MiB physical VMEM per TC)


def _silu(x):
    return x * jax.nn.sigmoid(x)


def _layernorm(h, gamma, beta):
    mean = jnp.mean(h, axis=-1, keepdims=True)
    var = jnp.mean(jnp.square(h - mean), axis=-1, keepdims=True)
    return (h - mean) * lax.rsqrt(var + LN_EPS) * gamma + beta


def _const_spec(shape):
    nd = len(shape)
    return pl.BlockSpec(shape, lambda *_: (0,) * nd)


# ----------------------------------------------------------------------------
# time_embed:  Linear(64 -> D) -> SiLU -> Linear(D -> D)   (one tiny kernel)
# ----------------------------------------------------------------------------
def _time_embed_kernel(t_ref, w1_ref, b1_ref, w2_ref, b2_ref, o_ref):
    h = jnp.dot(t_ref[...], w1_ref[...], preferred_element_type=jnp.float32) + b1_ref[...]
    h = _silu(h)
    h = jnp.dot(h, w2_ref[...], preferred_element_type=jnp.float32) + b2_ref[...]
    o_ref[...] = h.astype(o_ref.dtype)


def time_embed_mlp(t_emb, w1, b1, w2, b2):
    n, d = t_emb.shape[0], w2.shape[1]
    args = (t_emb, w1, b1, w2, b2)
    return pl.pallas_call(
        _time_embed_kernel,
        grid=(1,),
        in_specs=[_const_spec(a.shape) for a in args],
        out_specs=_const_spec((n, d)),
        out_shape=jax.ShapeDtypeStruct((n, d), t_emb.dtype),
        compiler_params=pltpu.CompilerParams(
            dimension_semantics=("arbitrary",), vmem_limit_bytes=VMEM_LIMIT),
    )(*args)


# ----------------------------------------------------------------------------
# Fused trunk: layer0 prologue -> 18 streamed hidden layers -> final linear.
# grid = (NUM_MID, KT); activations are resident in VMEM scratch.
# ----------------------------------------------------------------------------
def _fused_kernel(x_ref, c_ref,
                  w0_ref, b0_ref, we0_ref, be0_ref, g0_ref, bt0_ref,
                  wh_ref, ws_ref, we_ref, b_ref, bemb_ref, g_ref, bt_ref,
                  wfh_ref, wfs_ref, bf_ref,
                  out_ref,
                  h_ref, acc_ref):
    l = pl.program_id(0)           # hidden-layer index 0..17  (network layers 1..18)
    k = pl.program_id(1)           # K-tile index over the 2048 contraction dim
    nl = pl.num_programs(0)
    nk = pl.num_programs(1)

    # ---- layer 0 (latent -> hidden): cond-scale, LayerNorm, SiLU.  Runs once. ----
    @pl.when((l == 0) & (k == 0))
    def _():
        x = x_ref[...]
        h = jnp.dot(x, w0_ref[...], preferred_element_type=jnp.float32) + b0_ref[...]
        cemb = jnp.dot(c_ref[...], we0_ref[...],
                       preferred_element_type=jnp.float32) + be0_ref[...]
        h = h * (CONDITION_BIAS + cemb)
        h = _silu(_layernorm(h, g0_ref[...], bt0_ref[...]))
        for kk in range(KT):                       # store activation chunk-wise
            h_ref[kk] = h[:, kk * TK:(kk + 1) * TK]

    # ---- K-tiled main matmul of hidden layer l (bf16 weights, f32 accumulate) ----
    @pl.when(k == 0)
    def _():
        acc_ref[...] = jnp.zeros_like(acc_ref)

    acc_ref[...] += jnp.dot(h_ref[k].astype(jnp.bfloat16), wh_ref[0],
                            preferred_element_type=jnp.float32)

    # ---- layer epilogue: skip matmul, bias, cond-scale, LayerNorm, SiLU ----
    @pl.when(k == nk - 1)
    def _():
        x = x_ref[...]
        h = acc_ref[...]
        h = h + jnp.dot(x, ws_ref[0], preferred_element_type=jnp.float32)  # skip (x) part
        h = h + b_ref[0]
        cemb = jnp.dot(c_ref[...], we_ref[0],
                       preferred_element_type=jnp.float32) + bemb_ref[0]
        h = h * (CONDITION_BIAS + cemb)
        h = _silu(_layernorm(h, g_ref[0], bt_ref[0]))
        for kk in range(KT):
            h_ref[kk] = h[:, kk * TK:(kk + 1) * TK]

        # ---- final layer (hidden + latent -> latent): plain linear, no act/norm ----
        @pl.when(l == nl - 1)
        def _():
            o = jnp.dot(h, wfh_ref[...], preferred_element_type=jnp.float32)
            o = o + jnp.dot(x, wfs_ref[...], preferred_element_type=jnp.float32)
            o = o + bf_ref[...]
            out_ref[...] = o.astype(out_ref.dtype)


def mlp_skip_net_fused(x, c_act, p):
    batch, latent = x.shape

    in_specs = [
        _const_spec((batch, latent)),                                 # x
        _const_spec((batch, latent)),                                 # silu(cond)
        _const_spec((latent, NUM_HID)),                               # w0
        _const_spec((1, NUM_HID)),                                    # b0
        _const_spec((latent, NUM_HID)),                               # we0
        _const_spec((1, NUM_HID)),                                    # be0
        _const_spec((1, NUM_HID)),                                    # gamma0
        _const_spec((1, NUM_HID)),                                    # beta0
        pl.BlockSpec((1, TK, NUM_HID), lambda l, k: (l, k, 0)),       # W_h  (streamed, bf16)
        pl.BlockSpec((1, latent, NUM_HID), lambda l, k: (l, 0, 0)),   # W_skip
        pl.BlockSpec((1, latent, NUM_HID), lambda l, k: (l, 0, 0)),   # W_emb
        pl.BlockSpec((1, 1, NUM_HID), lambda l, k: (l, 0, 0)),        # b
        pl.BlockSpec((1, 1, NUM_HID), lambda l, k: (l, 0, 0)),        # b_emb
        pl.BlockSpec((1, 1, NUM_HID), lambda l, k: (l, 0, 0)),        # gamma
        pl.BlockSpec((1, 1, NUM_HID), lambda l, k: (l, 0, 0)),        # beta
        _const_spec((NUM_HID, latent)),                               # W_final_h
        _const_spec((latent, latent)),                                # W_final_skip
        _const_spec((1, latent)),                                     # b_final
    ]

    return pl.pallas_call(
        _fused_kernel,
        grid=(NUM_MID, KT),
        in_specs=in_specs,
        out_specs=_const_spec((batch, latent)),
        out_shape=jax.ShapeDtypeStruct((batch, latent), x.dtype),
        scratch_shapes=[
            pltpu.VMEM((KT, batch, TK), jnp.float32),    # resident activation (chunked)
            pltpu.VMEM((batch, NUM_HID), jnp.float32),   # f32 matmul accumulator
        ],
        compiler_params=pltpu.CompilerParams(
            dimension_semantics=("arbitrary", "arbitrary"),
            vmem_limit_bytes=VMEM_LIMIT),
    )(x, c_act,
      p["w0"], p["b0"], p["we0"], p["be0"], p["g0"], p["bt0"],
      p["wh"], p["wskip"], p["wemb"], p["b"], p["bemb"], p["gamma"], p["beta"],
      p["wfh"], p["wfs"], p["bf"])


# ----------------------------------------------------------------------------
# glue: sinusoidal timestep embedding (matches the PyTorch helper exactly)
# ----------------------------------------------------------------------------
def timestep_embedding(timesteps, dim, max_period=10000):
    half = dim // 2
    freqs = jnp.exp(-math.log(max_period) * jnp.arange(half, dtype=jnp.float32) / half)
    args = timesteps[:, None].astype(jnp.float32) * freqs[None]
    emb = jnp.concatenate([jnp.cos(args), jnp.sin(args)], axis=-1)
    if dim % 2:
        emb = jnp.concatenate([emb, jnp.zeros_like(emb[:, :1])], axis=-1)
    return emb


# ----------------------------------------------------------------------------
# parameter construction (mirrors the PyTorch init style; skip weights pre-split,
# hidden layers stacked, big hidden weights stored in bf16 for HBM streaming)
# ----------------------------------------------------------------------------
def init_params(key, latent_dim=LATENT_DIM):
    kit = iter(jax.random.split(key, 32))

    def kaiming(shape, fan_in):                    # kaiming_normal_, gain sqrt(2)
        return math.sqrt(2.0 / fan_in) * jax.random.normal(next(kit), shape, jnp.float32)

    def uniform(shape, fan_in):                    # PyTorch default Linear init
        bound = 1.0 / math.sqrt(fan_in)
        return jax.random.uniform(next(kit), shape, jnp.float32, -bound, bound)

    a_mid = NUM_HID + latent_dim                   # fan_in of skip layers (cat([h, x]))

    p = {}
    # time_embed MLP (default init — defined outside MLPLNAct)
    p["te_w1"] = uniform((TIME_EMBED_DIM, latent_dim), TIME_EMBED_DIM)
    p["te_b1"] = uniform((1, latent_dim), TIME_EMBED_DIM)
    p["te_w2"] = uniform((latent_dim, latent_dim), latent_dim)
    p["te_b2"] = uniform((1, latent_dim), latent_dim)

    # layer 0: latent -> hidden, cond + LayerNorm + SiLU (kaiming weights)
    p["w0"] = kaiming((latent_dim, NUM_HID), latent_dim)
    p["b0"] = uniform((1, NUM_HID), latent_dim)
    p["we0"] = kaiming((latent_dim, NUM_HID), latent_dim)
    p["be0"] = uniform((1, NUM_HID), latent_dim)
    p["g0"] = jnp.ones((1, NUM_HID), jnp.float32)
    p["bt0"] = jnp.zeros((1, NUM_HID), jnp.float32)

    # layers 1..18 (stacked): (hidden + latent) -> hidden.  The skip-concat weight
    # is split into the hidden part (streamed in bf16) and the latent part (f32).
    p["wh"] = kaiming((NUM_MID, NUM_HID, NUM_HID), a_mid).astype(jnp.bfloat16)
    p["wskip"] = kaiming((NUM_MID, latent_dim, NUM_HID), a_mid)
    p["b"] = uniform((NUM_MID, 1, NUM_HID), a_mid)
    p["wemb"] = kaiming((NUM_MID, latent_dim, NUM_HID), latent_dim)
    p["bemb"] = uniform((NUM_MID, 1, NUM_HID), latent_dim)
    p["gamma"] = jnp.ones((NUM_MID, 1, NUM_HID), jnp.float32)
    p["beta"] = jnp.zeros((NUM_MID, 1, NUM_HID), jnp.float32)

    # layer 19: (hidden + latent) -> latent, plain linear (default init)
    p["wfh"] = uniform((NUM_HID, latent_dim), a_mid)
    p["wfs"] = uniform((latent_dim, latent_dim), a_mid)
    p["bf"] = uniform((1, latent_dim), a_mid)
    return p


# ----------------------------------------------------------------------------
# full forward pass (matches MLPSkipNet.forward)
# ----------------------------------------------------------------------------
def mlp_skip_net_forward(params, x, t, z_sem=None):
    t_emb = timestep_embedding(t, TIME_EMBED_DIM).astype(x.dtype)
    cond = time_embed_mlp(t_emb, params["te_w1"], params["te_b1"],
                          params["te_w2"], params["te_b2"])
    if z_sem is not None:
        cond = cond + z_sem
    c_act = _silu(cond)          # cond_layers = Sequential(SiLU, linear_emb); SiLU hoisted
    return mlp_skip_net_fused(x, c_act, params)   # last_act = Identity


# ----------------------------------------------------------------------------
# pure-JAX reference (same parameters) for a numerical sanity check
# ----------------------------------------------------------------------------
def mlp_skip_net_reference(p, x, t, z_sem=None):
    t_emb = timestep_embedding(t, TIME_EMBED_DIM).astype(x.dtype)
    h = _silu(jnp.dot(t_emb, p["te_w1"]) + p["te_b1"])
    cond = jnp.dot(h, p["te_w2"]) + p["te_b2"]
    if z_sem is not None:
        cond = cond + z_sem
    c = _silu(cond)

    h = jnp.dot(x, p["w0"]) + p["b0"]
    h = h * (CONDITION_BIAS + jnp.dot(c, p["we0"]) + p["be0"])
    h = _silu(_layernorm(h, p["g0"], p["bt0"]))
    for i in range(NUM_MID):
        v = (jnp.dot(h, p["wh"][i].astype(jnp.float32))
             + jnp.dot(x, p["wskip"][i]) + p["b"][i])
        v = v * (CONDITION_BIAS + jnp.dot(c, p["wemb"][i]) + p["bemb"][i])
        h = _silu(_layernorm(v, p["gamma"][i], p["beta"][i]))
    return jnp.dot(h, p["wfh"]) + jnp.dot(x, p["wfs"]) + p["bf"]


if __name__ == "__main__":
    key = jax.random.PRNGKey(0)
    pkey, xkey, tkey = jax.random.split(key, 3)

    params = init_params(pkey)

    batch = 2
    x = jax.random.normal(xkey, (batch, LATENT_DIM), jnp.float32)
    t = jax.random.uniform(tkey, (batch,), jnp.float32, minval=0.0, maxval=1000.0)

    fwd = jax.jit(lambda p, xx, tt: mlp_skip_net_forward(p, xx, tt))
    out = jax.block_until_ready(fwd(params, x, t))

    assert out.shape == (batch, LATENT_DIM), out.shape
    assert out.dtype == jnp.float32
    assert bool(jnp.all(jnp.isfinite(out)))

    # sanity check against a pure-JAX reference using the same (bf16-rounded) weights
    ref = jax.block_until_ready(jax.jit(mlp_skip_net_reference)(params, x, t))
    err = float(jnp.max(jnp.abs(out - ref)))
    scale = float(jnp.max(jnp.abs(ref)))
    assert err <= 5e-2 + 5e-2 * scale, (err, scale)

    print("KERNEL_OK")
</pallas_src>

<mosaic_0001>
module attributes {stable_mosaic.version = 11 : i64} {
  func.func @_time_embed_kernel(%arg0: i32, %arg1: memref<2x64xf32, #tpu.memory_space<vmem>>, %arg2: memref<64x64xf32, #tpu.memory_space<vmem>>, %arg3: memref<1x64xf32, #tpu.memory_space<vmem>>, %arg4: memref<64x64xf32, #tpu.memory_space<vmem>>, %arg5: memref<1x64xf32, #tpu.memory_space<vmem>>, %arg6: memref<2x64xf32, #tpu.memory_space<vmem>>) attributes {dimension_semantics = [#tpu.dimension_semantics<arbitrary>], iteration_bounds = array<i64: 1>, scalar_prefetch = 0 : i64, scratch_operands = 0 : i64, tpu.core_type = #tpu.core_type<tc>, window_params = [{pipeline_mode = #tpu.pipeline_mode<synchronous>, transform_indices = @transform_0, window_bounds = array<i64: 2, 64>}, {pipeline_mode = #tpu.pipeline_mode<synchronous>, transform_indices = @transform_1, window_bounds = array<i64: 64, 64>}, {pipeline_mode = #tpu.pipeline_mode<synchronous>, transform_indices = @transform_2, window_bounds = array<i64: 1, 64>}, {pipeline_mode = #tpu.pipeline_mode<synchronous>, transform_indices = @transform_3, window_bounds = array<i64: 64, 64>}, {pipeline_mode = #tpu.pipeline_mode<synchronous>, transform_indices = @transform_4, window_bounds = array<i64: 1, 64>}, {pipeline_mode = #tpu.pipeline_mode<synchronous>, transform_indices = @transform_5, window_bounds = array<i64: 2, 64>}]} {
    %c0 = arith.constant 0 : index
    %c0_0 = arith.constant 0 : index
    %0 = vector.load %arg1[%c0, %c0_0] : memref<2x64xf32, #tpu.memory_space<vmem>>, vector<2x64xf32>
    %c0_1 = arith.constant 0 : index
    %c0_2 = arith.constant 0 : index
    %1 = vector.load %arg2[%c0_1, %c0_2] : memref<64x64xf32, #tpu.memory_space<vmem>>, vector<64x64xf32>
    %cst = arith.constant dense<0.000000e+00> : vector<2x64xf32>
    %2 = tpu.matmul %0, %1, %cst {dimension_numbers = #tpu.dot_dimension_numbers<[1], [0], [0], [1], [0, 0, 1, 1], [], []>} : vector<2x64xf32>, vector<64x64xf32>, vector<2x64xf32> -> vector<2x64xf32>
    %c0_3 = arith.constant 0 : index
    %c0_4 = arith.constant 0 : index
    %3 = vector.load %arg3[%c0_3, %c0_4] : memref<1x64xf32, #tpu.memory_space<vmem>>, vector<1x64xf32>
    %4 = vector.broadcast %3 : vector<1x64xf32> to vector<2x64xf32>
    %5 = arith.addf %2, %4 : vector<2x64xf32>
    %6 = arith.negf %5 : vector<2x64xf32>
    %7 = math.exp %6 : vector<2x64xf32>
    %cst_5 = arith.constant 1.000000e+00 : f32
    %8 = vector.broadcast %cst_5 : f32 to vector<2x64xf32>
    %9 = arith.addf %8, %7 : vector<2x64xf32>
    %10 = arith.divf %8, %9 : vector<2x64xf32>
    %11 = arith.mulf %5, %10 : vector<2x64xf32>
    %c0_6 = arith.constant 0 : index
    %c0_7 = arith.constant 0 : index
    %12 = vector.load %arg4[%c0_6, %c0_7] : memref<64x64xf32, #tpu.memory_space<vmem>>, vector<64x64xf32>
    %cst_8 = arith.constant dense<0.000000e+00> : vector<2x64xf32>
    %13 = tpu.matmul %11, %12, %cst_8 {dimension_numbers = #tpu.dot_dimension_numbers<[1], [0], [0], [1], [0, 0, 1, 1], [], []>} : vector<2x64xf32>, vector<64x64xf32>, vector<2x64xf32> -> vector<2x64xf32>
    %c0_9 = arith.constant 0 : index
    %c0_10 = arith.constant 0 : index
    %14 = vector.load %arg5[%c0_9, %c0_10] : memref<1x64xf32, #tpu.memory_space<vmem>>, vector<1x64xf32>
    %15 = vector.broadcast %14 : vector<1x64xf32> to vector<2x64xf32>
    %16 = arith.addf %13, %15 : vector<2x64xf32>
    %c0_11 = arith.constant 0 : index
    %c0_12 = arith.constant 0 : index
    %17 = vector.load %arg6[%c0_11, %c0_12] : memref<2x64xf32, #tpu.memory_space<vmem>>, vector<2x64xf32>
    tpu.vector_store %arg6[%c0_11, %c0_12], %16 {strides = array<i32>} : memref<2x64xf32, #tpu.memory_space<vmem>>, vector<2x64xf32>,
    return
  }
  func.func @transform_0(%arg0: i32) -> (i32, i32) {
    %c0_i32 = arith.constant 0 : i32
    %c0_i32_0 = arith.constant 0 : i32
    %c0_i32_1 = arith.constant 0 : i32
    return %c0_i32, %c0_i32_0 : i32, i32
  }
  func.func @transform_1(%arg0: i32) -> (i32, i32) {
    %c0_i32 = arith.constant 0 : i32
    %c0_i32_0 = arith.constant 0 : i32
    %c0_i32_1 = arith.constant 0 : i32
    return %c0_i32, %c0_i32_0 : i32, i32
  }
  func.func @transform_2(%arg0: i32) -> (i32, i32) {
    %c0_i32 = arith.constant 0 : i32
    %c0_i32_0 = arith.constant 0 : i32
    %c0_i32_1 = arith.constant 0 : i32
    return %c0_i32, %c0_i32_0 : i32, i32
  }
  func.func @transform_3(%arg0: i32) -> (i32, i32) {
    %c0_i32 = arith.constant 0 : i32
    %c0_i32_0 = arith.constant 0 : i32
    %c0_i32_1 = arith.constant 0 : i32
    return %c0_i32, %c0_i32_0 : i32, i32
  }
  func.func @transform_4(%arg0: i32) -> (i32, i32) {
    %c0_i32 = arith.constant 0 : i32
    %c0_i32_0 = arith.constant 0 : i32
    %c0_i32_1 = arith.constant 0 : i32
    return %c0_i32, %c0_i32_0 : i32, i32
  }
  func.func @transform_5(%arg0: i32) -> (i32, i32) {
    %c0_i32 = arith.constant 0 : i32
    %c0_i32_0 = arith.constant 0 : i32
    %c0_i32_1 = arith.constant 0 : i32
    return %c0_i32, %c0_i32_0 : i32, i32
  }
}

module attributes {stable_mosaic.version = 11 : i64} {
  func.func @_fused_kernel(%arg0: i32, %arg1: i32, %arg2: memref<2x64xf32, #tpu.memory_space<vmem>>, %arg3: memref<2x64xf32, #tpu.memory_space<vmem>>, %arg4: memref<64x2048xf32, #tpu.memory_space<vmem>>, %arg5: memref<1x2048xf32, #tpu.memory_space<vmem>>, %arg6: memref<64x2048xf32, #tpu.memory_space<vmem>>, %arg7: memref<1x2048xf32, #tpu.memory_space<vmem>>, %arg8: memref<1x2048xf32, #tpu.memory_space<vmem>>, %arg9: memref<1x2048xf32, #tpu.memory_space<vmem>>, %arg10: memref<1x1024x2048xbf16, #tpu.memory_space<vmem>>, %arg11: memref<1x64x2048xf32, #tpu.memory_space<vmem>>, %arg12: memref<1x64x2048xf32, #tpu.memory_space<vmem>>, %arg13: memref<1x1x2048xf32, #tpu.memory_space<vmem>>, %arg14: memref<1x1x2048xf32, #tpu.memory_space<vmem>>, %arg15: memref<1x1x2048xf32, #tpu.memory_space<vmem>>, %arg16: memref<1x1x2048xf32, #tpu.memory_space<vmem>>, %arg17: memref<2048x64xf32, #tpu.memory_space<vmem>>, %arg18: memref<64x64xf32, #tpu.memory_space<vmem>>, %arg19: memref<1x64xf32, #tpu.memory_space<vmem>>, %arg20: memref<2x64xf32, #tpu.memory_space<vmem>>, %arg21: memref<2x2x1024xf32, #tpu.memory_space<vmem>>, %arg22: memref<2x2048xf32, #tpu.memory_space<vmem>>) attributes {dimension_semantics = [#tpu.dimension_semantics<arbitrary>, #tpu.dimension_semantics<arbitrary>], iteration_bounds = array<i64: 18, 2>, scalar_prefetch = 0 : i64, scratch_operands = 2 : i64, tpu.core_type = #tpu.core_type<tc>, window_params = [{pipeline_mode = #tpu.pipeline_mode<synchronous>, transform_indices = @transform_0, window_bounds = array<i64: 2, 64>}, {pipeline_mode = #tpu.pipeline_mode<synchronous>, transform_indices = @transform_1, window_bounds = array<i64: 2, 64>}, {pipeline_mode = #tpu.pipeline_mode<synchronous>, transform_indices = @transform_2, window_bounds = array<i64: 64, 2048>}, {pipeline_mode = #tpu.pipeline_mode<synchronous>, transform_indices = @transform_3, window_bounds = array<i64: 1, 2048>}, {pipeline_mode = #tpu.pipeline_mode<synchronous>, transform_indices = @transform_4, window_bounds = array<i64: 64, 2048>}, {pipeline_mode = #tpu.pipeline_mode<synchronous>, transform_indices = @transform_5, window_bounds = array<i64: 1, 2048>}, {pipeline_mode = #tpu.pipeline_mode<synchronous>, transform_indices = @transform_6, window_bounds = array<i64: 1, 2048>}, {pipeline_mode = #tpu.pipeline_mode<synchronous>, transform_indices = @transform_7, window_bounds = array<i64: 1, 2048>}, {transform_indices = @transform_8, window_bounds = array<i64: 1, 1024, 2048>}, {transform_indices = @transform_9, window_bounds = array<i64: 1, 64, 2048>}, {transform_indices = @transform_10, window_bounds = array<i64: 1, 64, 2048>}, {transform_indices = @transform_11, window_bounds = array<i64: 1, 1, 2048>}, {transform_indices = @transform_12, window_bounds = array<i64: 1, 1, 2048>}, {transform_indices = @transform_13, window_bounds = array<i64: 1, 1, 2048>}, {transform_indices = @transform_14, window_bounds = array<i64: 1, 1, 2048>}, {pipeline_mode = #tpu.pipeline_mode<synchronous>, transform_indices = @transform_15, window_bounds = array<i64: 2048, 64>}, {pipeline_mode = #tpu.pipeline_mode<synchronous>, transform_indices = @transform_16, window_bounds = array<i64: 64, 64>}, {pipeline_mode = #tpu.pipeline_mode<synchronous>, transform_indices = @transform_17, window_bounds = array<i64: 1, 64>}, {pipeline_mode = #tpu.pipeline_mode<synchronous>, transform_indices = @transform_18, window_bounds = array<i64: 2, 64>}]} {
    %c0_i32 = arith.constant 0 : i32
    %0 = arith.cmpi eq, %arg0, %c0_i32 : i32
    %c0_i32_0 = arith.constant 0 : i32
    %1 = arith.cmpi eq, %arg1, %c0_i32_0 : i32
    %2 = arith.andi %0, %1 : i1
    %3 = arith.extui %2 : i1 to i32
    %c0_i32_1 = arith.constant 0 : i32
    %4 = arith.cmpi ne, %3, %c0_i32_1 : i32
    scf.if %4 {
      %c0_13 = arith.constant 0 : index
      %c0_14 = arith.constant 0 : index
      %21 = vector.load %arg2[%c0_13, %c0_14] : memref<2x64xf32, #tpu.memory_space<vmem>>, vector<2x64xf32>
      %c0_15 = arith.constant 0 : index
      %c0_16 = arith.constant 0 : index
      %22 = vector.load %arg4[%c0_15, %c0_16] : memref<64x2048xf32, #tpu.memory_space<vmem>>, vector<64x2048xf32>
      %cst_17 = arith.constant dense<0.000000e+00> : vector<2x2048xf32>
      %23 = tpu.matmul %21, %22, %cst_17 {dimension_numbers = #tpu.dot_dimension_numbers<[1], [0], [0], [1], [0, 0, 1, 1], [], []>} : vector<2x64xf32>, vector<64x2048xf32>, vector<2x2048xf32> -> vector<2x2048xf32>
      %c0_18 = arith.constant 0 : index
      %c0_19 = arith.constant 0 : index
      %24 = vector.load %arg5[%c0_18, %c0_19] : memref<1x2048xf32, #tpu.memory_space<vmem>>, vector<1x2048xf32>
      %25 = vector.broadcast %24 : vector<1x2048xf32> to vector<2x2048xf32>
      %26 = arith.addf %23, %25 : vector<2x2048xf32>
      %c0_20 = arith.constant 0 : index
      %c0_21 = arith.constant 0 : index
      %27 = vector.load %arg3[%c0_20, %c0_21] : memref<2x64xf32, #tpu.memory_space<vmem>>, vector<2x64xf32>
      %c0_22 = arith.constant 0 : index
      %c0_23 = arith.constant 0 : index
      %28 = vector.load %arg6[%c0_22, %c0_23] : memref<64x2048xf32, #tpu.memory_space<vmem>>, vector<64x2048xf32>
      %cst_24 = arith.constant dense<0.000000e+00> : vector<2x2048xf32>
      %29 = tpu.matmul %27, %28, %cst_24 {dimension_numbers = #tpu.dot_dimension_numbers<[1], [0], [0], [1], [0, 0, 1, 1], [], []>} : vector<2x64xf32>, vector<64x2048xf32>, vector<2x2048xf32> -> vector<2x2048xf32>
      %c0_25 = arith.constant 0 : index
      %c0_26 = arith.constant 0 : index
      %30 = vector.load %arg7[%c0_25, %c0_26] : memref<1x2048xf32, #tpu.memory_space<vmem>>, vector<1x2048xf32>
      %31 = vector.broadcast %30 : vector<1x2048xf32> to vector<2x2048xf32>
      %32 = arith.addf %29, %31 : vector<2x2048xf32>
      %cst_27 = arith.constant 1.000000e+00 : f32
      %33 = vector.broadcast %cst_27 : f32 to vector<2x2048xf32>
      %34 = arith.addf %33, %32 : vector<2x2048xf32>
      %35 = arith.mulf %26, %34 : vector<2x2048xf32>
      %c0_28 = arith.constant 0 : index
      %c0_29 = arith.constant 0 : index
      %36 = vector.load %arg8[%c0_28, %c0_29] : memref<1x2048xf32, #tpu.memory_space<vmem>>, vector<1x2048xf32>
      %c0_30 = arith.constant 0 : index
      %c0_31 = arith.constant 0 : index
      %37 = vector.load %arg9[%c0_30, %c0_31] : memref<1x2048xf32, #tpu.memory_space<vmem>>, vector<1x2048xf32>
      %cst_32 = arith.constant dense<0.000000e+00> : vector<2xf32>
      %38 = vector.multi_reduction <add>, %35, %cst_32 [1] : vector<2x2048xf32> to vector<2xf32>
      %39 = vector.shape_cast %38 : vector<2xf32> to vector<2x1xf32>
      %cst_33 = arith.constant 2.048000e+03 : f32
      %40 = vector.broadcast %cst_33 : f32 to vector<2x1xf32>
      %41 = arith.divf %39, %40 : vector<2x1xf32>
      %42 = vector.broadcast %41 : vector<2x1xf32> to vector<2x2048xf32>
      %43 = arith.subf %35, %42 : vector<2x2048xf32>
      %44 = arith.mulf %43, %43 : vector<2x2048xf32>
      %cst_34 = arith.constant dense<0.000000e+00> : vector<2xf32>
      %45 = vector.multi_reduction <add>, %44, %cst_34 [1] : vector<2x2048xf32> to vector<2xf32>
      %46 = vector.shape_cast %45 : vector<2xf32> to vector<2x1xf32>
      %cst_35 = arith.constant 2.048000e+03 : f32
      %47 = vector.broadcast %cst_35 : f32 to vector<2x1xf32>
      %48 = arith.divf %46, %47 : vector<2x1xf32>
      %49 = vector.broadcast %41 : vector<2x1xf32> to vector<2x2048xf32>
      %50 = arith.subf %35, %49 : vector<2x2048xf32>
      %cst_36 = arith.constant 9.99999974E-6 : f32
      %51 = vector.broadcast %cst_36 : f32 to vector<2x1xf32>
      %52 = arith.addf %48, %51 : vector<2x1xf32>
      %53 = math.rsqrt %52 : vector<2x1xf32>
      %54 = vector.broadcast %53 : vector<2x1xf32> to vector<2x2048xf32>
      %55 = arith.mulf %50, %54 : vector<2x2048xf32>
      %56 = vector.broadcast %36 : vector<1x2048xf32> to vector<2x2048xf32>
      %57 = arith.mulf %55, %56 : vector<2x2048xf32>
      %58 = vector.broadcast %37 : vector<1x2048xf32> to vector<2x2048xf32>
      %59 = arith.addf %57, %58 : vector<2x2048xf32>
      %60 = arith.negf %59 : vector<2x2048xf32>
      %61 = math.exp %60 : vector<2x2048xf32>
      %cst_37 = arith.constant 1.000000e+00 : f32
      %62 = vector.broadcast %cst_37 : f32 to vector<2x2048xf32>
      %63 = arith.addf %62, %61 : vector<2x2048xf32>
      %64 = arith.divf %62, %63 : vector<2x2048xf32>
      %65 = arith.mulf %59, %64 : vector<2x2048xf32>
      %66 = vector.extract_strided_slice %65 {offsets = [0, 0], sizes = [2, 1024], strides = [1, 1]} : vector<2x2048xf32> to vector<2x1024xf32>
      %c0_38 = arith.constant 0 : index
      %c0_39 = arith.constant 0 : index
      %c0_40 = arith.constant 0 : index
      %67 = vector.load %arg21[%c0_38, %c0_39, %c0_40] : memref<2x2x1024xf32, #tpu.memory_space<vmem>>, vector<1x2x1024xf32>
      %68 = vector.shape_cast %67 : vector<1x2x1024xf32> to vector<2x1024xf32>
      %69 = vector.shape_cast %66 : vector<2x1024xf32> to vector<1x2x1024xf32>
      tpu.vector_store %arg21[%c0_38, %c0_39, %c0_40], %69 {strides = array<i32>} : memref<2x2x1024xf32, #tpu.memory_space<vmem>>, vector<1x2x1024xf32>,
      %70 = vector.extract_strided_slice %65 {offsets = [0, 1024], sizes = [2, 1024], strides = [1, 1]} : vector<2x2048xf32> to vector<2x1024xf32>
      %c1 = arith.constant 1 : index
      %c0_41 = arith.constant 0 : index
      %c0_42 = arith.constant 0 : index
      %71 = vector.load %arg21[%c1, %c0_41, %c0_42] : memref<2x2x1024xf32, #tpu.memory_space<vmem>>, vector<1x2x1024xf32>
      %72 = vector.shape_cast %71 : vector<1x2x1024xf32> to vector<2x1024xf32>
      %73 = vector.shape_cast %70 : vector<2x1024xf32> to vector<1x2x1024xf32>
      tpu.vector_store %arg21[%c1, %c0_41, %c0_42], %73 {strides = array<i32>} : memref<2x2x1024xf32, #tpu.memory_space<vmem>>, vector<1x2x1024xf32>,
    } else {
    }
    %c0_i32_2 = arith.constant 0 : i32
    %5 = arith.cmpi eq, %arg1, %c0_i32_2 : i32
    %6 = arith.extui %5 : i1 to i32
    %c0_i32_3 = arith.constant 0 : i32
    %7 = arith.cmpi ne, %6, %c0_i32_3 : i32
    scf.if %7 {
      %cst_13 = arith.constant 0.000000e+00 : f32
      %21 = vector.broadcast %cst_13 : f32 to vector<2x2048xf32>
      %c0_14 = arith.constant 0 : index
      %c0_15 = arith.constant 0 : index
      %22 = vector.load %arg22[%c0_14, %c0_15] : memref<2x2048xf32, #tpu.memory_space<vmem>>, vector<2x2048xf32>
      tpu.vector_store %arg22[%c0_14, %c0_15], %21 {strides = array<i32>} : memref<2x2048xf32, #tpu.memory_space<vmem>>, vector<2x2048xf32>,
    } else {
    }
    %c0 = arith.constant 0 : index
    %c0_4 = arith.constant 0 : index
    %8 = vector.load %arg22[%c0, %c0_4] : memref<2x2048xf32, #tpu.memory_space<vmem>>, vector<2x2048xf32>
    %9 = arith.index_cast %arg1 : i32 to index
    %c0_5 = arith.constant 0 : index
    %c0_6 = arith.constant 0 : index
    %10 = vector.load %arg21[%9, %c0_5, %c0_6] : memref<2x2x1024xf32, #tpu.memory_space<vmem>>, vector<1x2x1024xf32>
    %11 = vector.shape_cast %10 : vector<1x2x1024xf32> to vector<2x1024xf32>
    %12 = arith.truncf %11 : vector<2x1024xf32> to vector<2x1024xbf16>
    %c0_7 = arith.constant 0 : index
    %c0_8 = arith.constant 0 : index
    %c0_9 = arith.constant 0 : index
    %13 = vector.load %arg10[%c0_7, %c0_8, %c0_9] : memref<1x1024x2048xbf16, #tpu.memory_space<vmem>>, vector<1x1024x2048xbf16>
    %14 = vector.shape_cast %13 : vector<1x1024x2048xbf16> to vector<1024x2048xbf16>
    %cst = arith.constant dense<0.000000e+00> : vector<2x2048xf32>
    %15 = tpu.matmul %12, %14, %cst {dimension_numbers = #tpu.dot_dimension_numbers<[1], [0], [0], [1], [0, 0, 1, 1], [], []>} : vector<2x1024xbf16>, vector<1024x2048xbf16>, vector<2x2048xf32> -> vector<2x2048xf32>
    %16 = arith.addf %8, %15 : vector<2x2048xf32>
    %c0_10 = arith.constant 0 : index
    %c0_11 = arith.constant 0 : index
    %17 = vector.load %arg22[%c0_10, %c0_11] : memref<2x2048xf32, #tpu.memory_space<vmem>>, vector<2x2048xf32>
    tpu.vector_store %arg22[%c0_10, %c0_11], %16 {strides = array<i32>} : memref<2x2048xf32, #tpu.memory_space<vmem>>, vector<2x2048xf32>,
    %c1_i32 = arith.constant 1 : i32
    %18 = arith.cmpi eq, %arg1, %c1_i32 : i32
    %19 = arith.extui %18 : i1 to i32
    %c0_i32_12 = arith.constant 0 : i32
    %20 = arith.cmpi ne, %19, %c0_i32_12 : i32
    scf.if %20 {
      %c0_13 = arith.constant 0 : index
      %c0_14 = arith.constant 0 : index
      %21 = vector.load %arg2[%c0_13, %c0_14] : memref<2x64xf32, #tpu.memory_space<vmem>>, vector<2x64xf32>
      %c0_15 = arith.constant 0 : index
      %c0_16 = arith.constant 0 : index
      %22 = vector.load %arg22[%c0_15, %c0_16] : memref<2x2048xf32, #tpu.memory_space<vmem>>, vector<2x2048xf32>
      %c0_17 = arith.constant 0 : index
      %c0_18 = arith.constant 0 : index
      %c0_19 = arith.constant 0 : index
      %23 = vector.load %arg11[%c0_17, %c0_18, %c0_19] : memref<1x64x2048xf32, #tpu.memory_space<vmem>>, vector<1x64x2048xf32>
      %24 = vector.shape_cast %23 : vector<1x64x2048xf32> to vector<64x2048xf32>
      %cst_20 = arith.constant dense<0.000000e+00> : vector<2x2048xf32>
      %25 = tpu.matmul %21, %24, %cst_20 {dimension_numbers = #tpu.dot_dimension_numbers<[1], [0], [0], [1], [0, 0, 1, 1], [], []>} : vector<2x64xf32>, vector<64x2048xf32>, vector<2x2048xf32> -> vector<2x2048xf32>
      %26 = arith.addf %22, %25 : vector<2x2048xf32>
      %c0_21 = arith.constant 0 : index
      %c0_22 = arith.constant 0 : index
      %c0_23 = arith.constant 0 : index
      %27 = vector.load %arg13[%c0_21, %c0_22, %c0_23] : memref<1x1x2048xf32, #tpu.memory_space<vmem>>, vector<1x1x2048xf32>
      %28 = vector.shape_cast %27 : vector<1x1x2048xf32> to vector<1x2048xf32>
      %29 = vector.broadcast %28 : vector<1x2048xf32> to vector<2x2048xf32>
      %30 = arith.addf %26, %29 : vector<2x2048xf32>
      %c0_24 = arith.constant 0 : index
      %c0_25 = arith.constant 0 : index
      %31 = vector.load %arg3[%c0_24, %c0_25] : memref<2x64xf32, #tpu.memory_space<vmem>>, vector<2x64xf32>
      %c0_26 = arith.constant 0 : index
      %c0_27 = arith.constant 0 : index
      %c0_28 = arith.constant 0 : index
      %32 = vector.load %arg12[%c0_26, %c0_27, %c0_28] : memref<1x64x2048xf32, #tpu.memory_space<vmem>>, vector<1x64x2048xf32>
      %33 = vector.shape_cast %32 : vector<1x64x2048xf32> to vector<64x2048xf32>
      %cst_29 = arith.constant dense<0.000000e+00> : vector<2x2048xf32>
      %34 = tpu.matmul %31, %33, %cst_29 {dimension_numbers = #tpu.dot_dimension_numbers<[1], [0], [0], [1], [0, 0, 1, 1], [], []>} : vector<2x64xf32>, vector<64x2048xf32>, vector<2x2048xf32> -> vector<2x2048xf32>
      %c0_30 = arith.constant 0 : index
      %c0_31 = arith.constant 0 : index
      %c0_32 = arith.constant 0 : index
      %35 = vector.load %arg14[%c0_30, %c0_31, %c0_32] : memref<1x1x2048xf32, #tpu.memory_space<vmem>>, vector<1x1x2048xf32>
      %36 = vector.shape_cast %35 : vector<1x1x2048xf32> to vector<1x2048xf32>
      %37 = vector.broadcast %36 : vector<1x2048xf32> to vector<2x2048xf32>
      %38 = arith.addf %34, %37 : vector<2x2048xf32>
      %cst_33 = arith.constant 1.000000e+00 : f32
      %39 = vector.broadcast %cst_33 : f32 to vector<2x2048xf32>
      %40 = arith.addf %39, %38 : vector<2x2048xf32>
      %41 = arith.mulf %30, %40 : vector<2x2048xf32>
      %c0_34 = arith.constant 0 : index
      %c0_35 = arith.constant 0 : index
      %c0_36 = arith.constant 0 : index
      %42 = vector.load %arg15[%c0_34, %c0_35, %c0_36] : memref<1x1x2048xf32, #tpu.memory_space<vmem>>, vector<1x1x2048xf32>
      %43 = vector.shape_cast %42 : vector<1x1x2048xf32> to vector<1x2048xf32>
      %c0_37 = arith.constant 0 : index
      %c0_38 = arith.constant 0 : index
      %c0_39 = arith.constant 0 : index
      %44 = vector.load %arg16[%c0_37, %c0_38, %c0_39] : memref<1x1x2048xf32, #tpu.memory_space<vmem>>, vector<1x1x2048xf32>
      %45 = vector.shape_cast %44 : vector<1x1x2048xf32> to vector<1x2048xf32>
      %cst_40 = arith.constant dense<0.000000e+00> : vector<2xf32>
      %46 = vector.multi_reduction <add>, %41, %cst_40 [1] : vector<2x2048xf32> to vector<2xf32>
      %47 = vector.shape_cast %46 : vector<2xf32> to vector<2x1xf32>
      %cst_41 = arith.constant 2.048000e+03 : f32
      %48 = vector.broadcast %cst_41 : f32 to vector<2x1xf32>
      %49 = arith.divf %47, %48 : vector<2x1xf32>
      %50 = vector.broadcast %49 : vector<2x1xf32> to vector<2x2048xf32>
      %51 = arith.subf %41, %50 : vector<2x2048xf32>
      %52 = arith.mulf %51, %51 : vector<2x2048xf32>
      %cst_42 = arith.constant dense<0.000000e+00> : vector<2xf32>
      %53 = vector.multi_reduction <add>, %52, %cst_42 [1] : vector<2x2048xf32> to vector<2xf32>
      %54 = vector.shape_cast %53 : vector<2xf32> to vector<2x1xf32>
      %cst_43 = arith.constant 2.048000e+03 : f32
      %55 = vector.broadcast %cst_43 : f32 to vector<2x1xf32>
      %56 = arith.divf %54, %55 : vector<2x1xf32>
      %57 = vector.broadcast %49 : vector<2x1xf32> to vector<2x2048xf32>
      %58 = arith.subf %41, %57 : vector<2x2048xf32>
      %cst_44 = arith.constant 9.99999974E-6 : f32
      %59 = vector.broadcast %cst_44 : f32 to vector<2x1xf32>
      %60 = arith.addf %56, %59 : vector<2x1xf32>
      %61 = math.rsqrt %60 : vector<2x1xf32>
      %62 = vector.broadcast %61 : vector<2x1xf32> to vector<2x2048xf32>
      %63 = arith.mulf %58, %62 : vector<2x2048xf32>
      %64 = vector.broadcast %43 : vector<1x2048xf32> to vector<2x2048xf32>
      %65 = arith.mulf %63, %64 : vector<2x2048xf32>
      %66 = vector.broadcast %45 : vector<1x2048xf32> to vector<2x2048xf32>
      %67 = arith.addf %65, %66 : vector<2x2048xf32>
      %68 = arith.negf %67 : vector<2x2048xf32>
      %69 = math.exp %68 : vector<2x2048xf32>
      %cst_45 = arith.constant 1.000000e+00 : f32
      %70 = vector.broadcast %cst_45 : f32 to vector<2x2048xf32>
      %71 = arith.addf %70, %69 : vector<2x2048xf32>
      %72 = arith.divf %70, %71 : vector<2x2048xf32>
      %73 = arith.mulf %67, %72 : vector<2x2048xf32>
      %74 = vector.extract_strided_slice %73 {offsets = [0, 0], sizes = [2, 1024], strides = [1, 1]} : vector<2x2048xf32> to vector<2x1024xf32>
      %c0_46 = arith.constant 0 : index
      %c0_47 = arith.constant 0 : index
      %c0_48 = arith.constant 0 : index
      %75 = vector.load %arg21[%c0_46, %c0_47, %c0_48] : memref<2x2x1024xf32, #tpu.memory_space<vmem>>, vector<1x2x1024xf32>
      %76 = vector.shape_cast %75 : vector<1x2x1024xf32> to vector<2x1024xf32>
      %77 = vector.shape_cast %74 : vector<2x1024xf32> to vector<1x2x1024xf32>
      tpu.vector_store %arg21[%c0_46, %c0_47, %c0_48], %77 {strides = array<i32>} : memref<2x2x1024xf32, #tpu.memory_space<vmem>>, vector<1x2x1024xf32>,
      %78 = vector.extract_strided_slice %73 {offsets = [0, 1024], sizes = [2, 1024], strides = [1, 1]} : vector<2x2048xf32> to vector<2x1024xf32>
      %c1 = arith.constant 1 : index
      %c0_49 = arith.constant 0 : index
      %c0_50 = arith.constant 0 : index
      %79 = vector.load %arg21[%c1, %c0_49, %c0_50] : memref<2x2x1024xf32, #tpu.memory_space<vmem>>, vector<1x2x1024xf32>
      %80 = vector.shape_cast %79 : vector<1x2x1024xf32> to vector<2x1024xf32>
      %81 = vector.shape_cast %78 : vector<2x1024xf32> to vector<1x2x1024xf32>
      tpu.vector_store %arg21[%c1, %c0_49, %c0_50], %81 {strides = array<i32>} : memref<2x2x1024xf32, #tpu.memory_space<vmem>>, vector<1x2x1024xf32>,
      %c17_i32 = arith.constant 17 : i32
      %82 = arith.cmpi eq, %arg0, %c17_i32 : i32
      %83 = arith.extui %82 : i1 to i32
      %c0_i32_51 = arith.constant 0 : i32
      %84 = arith.cmpi ne, %83, %c0_i32_51 : i32
      scf.if %84 {
        %c0_52 = arith.constant 0 : index
        %c0_53 = arith.constant 0 : index
        %85 = vector.load %arg17[%c0_52, %c0_53] : memref<2048x64xf32, #tpu.memory_space<vmem>>, vector<2048x64xf32>
        %cst_54 = arith.constant dense<0.000000e+00> : vector<2x64xf32>
        %86 = tpu.matmul %73, %85, %cst_54 {dimension_numbers = #tpu.dot_dimension_numbers<[1], [0], [0], [1], [0, 0, 1, 1], [], []>} : vector<2x2048xf32>, vector<2048x64xf32>, vector<2x64xf32> -> vector<2x64xf32>
        %c0_55 = arith.constant 0 : index
        %c0_56 = arith.constant 0 : index
        %87 = vector.load %arg18[%c0_55, %c0_56] : memref<64x64xf32, #tpu.memory_space<vmem>>, vector<64x64xf32>
        %cst_57 = arith.constant dense<0.000000e+00> : vector<2x64xf32>
        %88 = tpu.matmul %21, %87, %cst_57 {dimension_numbers = #tpu.dot_dimension_numbers<[1], [0], [0], [1], [0, 0, 1, 1], [], []>} : vector<2x64xf32>, vector<64x64xf32>, vector<2x64xf32> -> vector<2x64xf32>
        %89 = arith.addf %86, %88 : vector<2x64xf32>
        %c0_58 = arith.constant 0 : index
        %c0_59 = arith.constant 0 : index
        %90 = vector.load %arg19[%c0_58, %c0_59] : memref<1x64xf32, #tpu.memory_space<vmem>>, vector<1x64xf32>
        %91 = vector.broadcast %90 : vector<1x64xf32> to vector<2x64xf32>
        %92 = arith.addf %89, %91 : vector<2x64xf32>
        %c0_60 = arith.constant 0 : index
        %c0_61 = arith.constant 0 : index
        %93 = vector.load %arg20[%c0_60, %c0_61] : memref<2x64xf32, #tpu.memory_space<vmem>>, vector<2x64xf32>
        tpu.vector_store %arg20[%c0_60, %c0_61], %92 {strides = array<i32>} : memref<2x64xf32, #tpu.memory_space<vmem>>, vector<2x64xf32>,
      } else {
      }
    } else {
    }
    return
  }
  func.func @transform_0(%arg0: i32, %arg1: i32) -> (i32, i32) {
    %c0_i32 = arith.constant 0 : i32
    %c0_i32_0 = arith.constant 0 : i32
    %c0_i32_1 = arith.constant 0 : i32
    return %c0_i32, %c0_i32_0 : i32, i32
  }
  func.func @transform_1(%arg0: i32, %arg1: i32) -> (i32, i32) {
    %c0_i32 = arith.constant 0 : i32
    %c0_i32_0 = arith.constant 0 : i32
    %c0_i32_1 = arith.constant 0 : i32
    return %c0_i32, %c0_i32_0 : i32, i32
  }
  func.func @transform_2(%arg0: i32, %arg1: i32) -> (i32, i32) {
    %c0_i32 = arith.constant 0 : i32
    %c0_i32_0 = arith.constant 0 : i32
    %c0_i32_1 = arith.constant 0 : i32
    return %c0_i32, %c0_i32_0 : i32, i32
  }
  func.func @transform_3(%arg0: i32, %arg1: i32) -> (i32, i32) {
    %c0_i32 = arith.constant 0 : i32
    %c0_i32_0 = arith.constant 0 : i32
    %c0_i32_1 = arith.constant 0 : i32
    return %c0_i32, %c0_i32_0 : i32, i32
  }
  func.func @transform_4(%arg0: i32, %arg1: i32) -> (i32, i32) {
    %c0_i32 = arith.constant 0 : i32
    %c0_i32_0 = arith.constant 0 : i32
    %c0_i32_1 = arith.constant 0 : i32
    return %c0_i32, %c0_i32_0 : i32, i32
  }
  func.func @transform_5(%arg0: i32, %arg1: i32) -> (i32, i32) {
    %c0_i32 = arith.constant 0 : i32
    %c0_i32_0 = arith.constant 0 : i32
    %c0_i32_1 = arith.constant 0 : i32
    return %c0_i32, %c0_i32_0 : i32, i32
  }
  func.func @transform_6(%arg0: i32, %arg1: i32) -> (i32, i32) {
    %c0_i32 = arith.constant 0 : i32
    %c0_i32_0 = arith.constant 0 : i32
    %c0_i32_1 = arith.constant 0 : i32
    return %c0_i32, %c0_i32_0 : i32, i32
  }
  func.func @transform_7(%arg0: i32, %arg1: i32) -> (i32, i32) {
    %c0_i32 = arith.constant 0 : i32
    %c0_i32_0 = arith.constant 0 : i32
    %c0_i32_1 = arith.constant 0 : i32
    return %c0_i32, %c0_i32_0 : i32, i32
  }
  func.func @transform_8(%arg0: i32, %arg1: i32) -> (i32, i32, i32) {
    %c0_i32 = arith.constant 0 : i32
    %c0_i32_0 = arith.constant 0 : i32
    return %arg0, %arg1, %c0_i32 : i32, i32, i32
  }
  func.func @transform_9(%arg0: i32, %arg1: i32) -> (i32, i32, i32) {
    %c0_i32 = arith.constant 0 : i32
    %c0_i32_0 = arith.constant 0 : i32
    %c0_i32_1 = arith.constant 0 : i32
    return %arg0, %c0_i32, %c0_i32_0 : i32, i32, i32
  }
  func.func @transform_10(%arg0: i32, %arg1: i32) -> (i32, i32, i32) {
    %c0_i32 = arith.constant 0 : i32
    %c0_i32_0 = arith.constant 0 : i32
    %c0_i32_1 = arith.constant 0 : i32
    return %arg0, %c0_i32, %c0_i32_0 : i32, i32, i32
  }
  func.func @transform_11(%arg0: i32, %arg1: i32) -> (i32, i32, i32) {
    %c0_i32 = arith.constant 0 : i32
    %c0_i32_0 = arith.constant 0 : i32
    %c0_i32_1 = arith.constant 0 : i32
    return %arg0, %c0_i32, %c0_i32_0 : i32, i32, i32
  }
  func.func @transform_12(%arg0: i32, %arg1: i32) -> (i32, i32, i32) {
    %c0_i32 = arith.constant 0 : i32
    %c0_i32_0 = arith.constant 0 : i32
    %c0_i32_1 = arith.constant 0 : i32
    return %arg0, %c0_i32, %c0_i32_0 : i32, i32, i32
  }
  func.func @transform_13(%arg0: i32, %arg1: i32) -> (i32, i32, i32) {
    %c0_i32 = arith.constant 0 : i32
    %c0_i32_0 = arith.constant 0 : i32
    %c0_i32_1 = arith.constant 0 : i32
    return %arg0, %c0_i32, %c0_i32_0 : i32, i32, i32
  }
  func.func @transform_14(%arg0: i32, %arg1: i32) -> (i32, i32, i32) {
    %c0_i32 = arith.constant 0 : i32
    %c0_i32_0 = arith.constant 0 : i32
    %c0_i32_1 = arith.constant 0 : i32
    return %arg0, %c0_i32, %c0_i32_0 : i32, i32, i32
  }
  func.func @transform_15(%arg0: i32, %arg1: i32) -> (i32, i32) {
    %c0_i32 = arith.constant 0 : i32
    %c0_i32_0 = arith.constant 0 : i32
    %c0_i32_1 = arith.constant 0 : i32
    return %c0_i32, %c0_i32_0 : i32, i32
  }
  func.func @transform_16(%arg0: i32, %arg1: i32) -> (i32, i32) {
    %c0_i32 = arith.constant 0 : i32
    %c0_i32_0 = arith.constant 0 : i32
    %c0_i32_1 = arith.constant 0 : i32
    return %c0_i32, %c0_i32_0 : i32, i32
  }
  func.func @transform_17(%arg0: i32, %arg1: i32) -> (i32, i32) {
    %c0_i32 = arith.constant 0 : i32
    %c0_i32_0 = arith.constant 0 : i32
    %c0_i32_1 = arith.constant 0 : i32
    return %c0_i32, %c0_i32_0 : i32, i32
  }
  func.func @transform_18(%arg0: i32, %arg1: i32) -> (i32, i32) {
    %c0_i32 = arith.constant 0 : i32
    %c0_i32_0 = arith.constant 0 : i32
    %c0_i32_1 = arith.constant 0 : i32
    return %c0_i32, %c0_i32_0 : i32, i32
  }
}

</mosaic_0001>

<bundles_post_ra>
// kernel: _lambda_.2
= control target key start
LH: loop header
LB: loop body
LE: loop exit
PB: predicated region body
PF: predicated region fallthrough
CT: control target
= control target key end

     0   :  { %10 = vsyncpa [#allocation3], 0  ;;  %s559_s0 = inlined_call_operand.vmem [shape: f32[2,64], index: 0, kind: input, shape index: {}]   ;;  %s560_s1 = inlined_call_operand.hbm [shape: f32[64,64], index: 1, kind: input, shape index: {}]   ;;  %s561_s2 = inlined_call_operand.hbm [shape: f32[1,64], index: 2, kind: input, shape index: {}]   ;;  %s562_s3 = inlined_call_operand.hbm [shape: f32[64,64], index: 3, kind: input, shape index: {}]   ;;  %s563_s4 = inlined_call_operand.hbm [shape: f32[1,64], index: 4, kind: input, shape index: {}]   ;;  %s564_s5 = inlined_call_operand.vmem [shape: f32[2,64], index: 5, kind: output, shape index: {}]  }
   0x1   :  { %11 = vsyncpa [#allocation5], 0 }
   0x2   :  { %12 = vsyncpa [#allocation8], 0  ;;  %s457_s18 = smov [#allocation4]   ;;  %s458_s20 = smov [#allocation2]  }
   0x3   :  { %s33_s19 = sshll.u32 %s457_s18, 4  ;;  %s20_s21 = sshll.u32 %s458_s20, 4  ;;  %s34_s19 = int_to_ptr.vmem [resolvable:$true] %s33_s19  ;;  %s496_s21 = int_to_ptr.vmem [resolvable:$true] %s20_s21 }
   0x4   :  { %s363_s24 = scalar_lea.hbm %s561_s2, 16 }
   0x5   :  { %p364_p0 = scmp.ne.s32.totalorder %s561_s2, %s363_s24  ;;  %p367_p1 = scmp.lt.u32.totalorder %s363_s24, %s561_s2 }
   0x7   :  { %p369_p2 = pnand %p367_p1, %p364_p0 }
   0x9   :  { %372 = shalt.err (!%p369_p2)
}
   0xa   :  { %s373_s29 = scalar_lea.vmem %s34_s19, 16  ;;  %s377_s30 = scalar_lea.vmem %s34_s19, 32 }
   0xb   :  { %p374_p3 = scmp.ne.s32.totalorder %s34_s19, %s373_s29  ;;  %p378_p4 = scmp.lt.s32.totalorder %s34_s19, %s34_s19 }
   0xc   :  { %p379_p5 = scmp.lt.s32.totalorder %s377_s30, %s373_s29 }
   0xe   :  { %p380_p6 = por %p379_p5, %p378_p4 }
  0x10   :  { %p381_p7 = pnand %p380_p6, %p374_p3 }
  0x12   :  { %384 = shalt.err (!%p381_p7)
}
  0x13   :  { %36 = dma.hbm_to_vmem [thread:$0]  %s561_s2, 16, %s34_s19, [#allocation5]  }
  0x14   :  { %s385_s10 = scalar_lea.hbm %s560_s1, 1024 }
  0x15   :  { %p386_p8 = scmp.ne.s32.totalorder %s560_s1, %s385_s10  ;;  %p389_p9 = scmp.lt.u32.totalorder %s385_s10, %s560_s1 }
  0x17   :  { %p391_p10 = pnand %p389_p9, %p386_p8 }
  0x19   :  { %394 = shalt.err (!%p391_p10)
}
  0x1a   :  { %s395_s15 = scalar_lea.vmem %s496_s21, 1024  ;;  %p400_p12 = scmp.lt.s32.totalorder %s496_s21, %s496_s21 }
  0x1b   :  { %p396_p11 = scmp.ne.s32.totalorder %s496_s21, %s395_s15  ;;  %p401_p13 = scmp.lt.s32.totalorder %s395_s15, %s395_s15 }
  0x1d   :  { %p402_p0 = por %p401_p13, %p400_p12 }
  0x1f   :  { %p403_p1 = pnand %p402_p0, %p396_p11 }
  0x21   :  { %406 = shalt.err (!%p403_p1)
}
  0x22   :  { %s459_s2 = smov 128   ;;  %s460_s16 = smov 8  }
  0x23   :  { %26 = dma.hbm_to_vmem [thread:$0]  %s560_s1, 1024, %s496_s21, [#allocation3], %s459_s2, %s459_s2, %s460_s16  }
  0x24   :  { %s461_s19 = smov [#allocation6]   ;;  %s462_s22 = smov [#allocation7]  }
  0x25   :  { %s42_s20 = sshll.u32 %s461_s19, 4  ;;  %s55_s23 = sshll.u32 %s462_s22, 4  ;;  %s43_s20 = int_to_ptr.vmem [resolvable:$true] %s42_s20  ;;  %s56_s23 = int_to_ptr.vmem [resolvable:$true] %s55_s23 }
  0x26   :  { %s407_s26 = scalar_lea.hbm %s562_s3, 1024 }
  0x27   :  { %p408_p2 = scmp.ne.s32.totalorder %s562_s3, %s407_s26  ;;  %p411_p3 = scmp.lt.u32.totalorder %s407_s26, %s562_s3 }
  0x29   :  { %p413_p4 = pnand %p411_p3, %p408_p2 }
  0x2b   :  { %416 = shalt.err (!%p413_p4)
}
  0x2c   :  { %s417_s1 = scalar_lea.vmem %s43_s20, 1024  ;;  %p422_p6 = scmp.lt.s32.totalorder %s43_s20, %s43_s20 }
  0x2d   :  { %p418_p5 = scmp.ne.s32.totalorder %s43_s20, %s417_s1  ;;  %p423_p7 = scmp.lt.s32.totalorder %s417_s1, %s417_s1 }
  0x2f   :  { %p424_p8 = por %p423_p7, %p422_p6 }
  0x31   :  { %p425_p9 = pnand %p424_p8, %p418_p5 }
  0x33   :  { %428 = shalt.err (!%p425_p9)
}
  0x34   :  { %48 = dma.hbm_to_vmem [thread:$0]  %s562_s3, 1024, %s43_s20, [#allocation5], %s459_s2, %s459_s2, %s460_s16  }
  0x35   :  { %s429_s9 = scalar_lea.hbm %s563_s4, 16 }
  0x36   :  { %p430_p10 = scmp.ne.s32.totalorder %s563_s4, %s429_s9  ;;  %p433_p11 = scmp.lt.u32.totalorder %s429_s9, %s563_s4 }
  0x38   :  { %p435_p12 = pnand %p433_p11, %p430_p10 }
  0x3a   :  { %438 = shalt.err (!%p435_p12)
}
  0x3b   :  { %s439_s14 = scalar_lea.vmem %s56_s23, 16  ;;  %s443_s15 = scalar_lea.vmem %s56_s23, 32 }
  0x3c   :  { %p440_p13 = scmp.ne.s32.totalorder %s56_s23, %s439_s14  ;;  %p444_p0 = scmp.lt.s32.totalorder %s56_s23, %s56_s23 }
  0x3d   :  { %p445_p1 = scmp.lt.s32.totalorder %s443_s15, %s439_s14 }
  0x3f   :  { %p446_p2 = por %p445_p1, %p444_p0 }
  0x41   :  { %p447_p3 = pnand %p446_p2, %p440_p13 }
  0x43   :  { %450 = shalt.err (!%p447_p3)
}
  0x44   :  { %58 = dma.hbm_to_vmem [thread:$0]  %s563_s4, 16, %s56_s23, [#allocation8]  }
  0x45   :  { %451 = dma.done.wait [#allocation3], 1024  }
  0x46   :  { %452 = vsyncadd [#allocation3], 4294966272 }
  0x47   :  { %453 = dma.done.wait [#allocation5], 1040  }
  0x48   :  { %454 = vsyncadd [#allocation5], 4294966256 }
  0x49   :  { %455 = dma.done.wait [#allocation8], 16  }
  0x4a   :  { %456 = vsyncadd [#allocation8], 4294967280  ;;  %v463_v0 = vmov 0.0|0.0   ;;  %vm464_vm0 = vmmov 0   ;;  %v465_v1 = vmov 0.0   ;;  %v72_v2 = vld [vmem:[#allocation2] sm:$0xff] }
  0x4b   :  { %326 = vmatprep.subr.bf16.mxu0 %v463_v0  ;;  %304 = vmatprep.mubr.msk.f32.mxu0 %vm464_vm0, %v465_v1  ;;  %v73_v3 = vld [vmem:[#allocation2 + $0x8] sm:$0xff]  ;;  %v74_v4 = vld [vmem:[#allocation2 + $0x10] sm:$0xff]  ;;  %v75_v6 = vld [vmem:[#allocation2 + $0x18] sm:$0xff]  ;;  %vm87_vm1 = vcmask 523264   ;;  %vm256_vm2 = vcmask 517120  }
  0x4c   :  { %338 = vmatprep.subr.bf16.mxu1 %v463_v0  ;;  %323 = vmatprep.mubr.msk.f32.mxu1 %vm464_vm0, %v465_v1  ;;  %v327_v5 = vpack.c.bf16 %v73_v3, %v72_v2  ;;  %v330_v7 = vpack.c.bf16 %v75_v6, %v74_v4  ;;  %v76_v8 = vld [vmem:[#allocation2 + $0x20] sm:$0xff]  ;;  %v77_v9 = vld [vmem:[#allocation2 + $0x28] sm:$0xff]  ;;  %v78_v11 = vld [vmem:[#allocation2 + $0x30] sm:$0xff] }
  0x4d   :  { %v333_v10 = vpack.c.bf16 %v77_v9, %v76_v8  ;;  %v79_v12 = vld [vmem:[#allocation2 + $0x38] sm:$0xff]  ;;  %v71_v14 = vld [vmem:[%s559_s0] sm:$0x3]  ;;  %v168_v15 = vld [vmem:[#allocation6] sm:$0xff] }
  0x4e   :  { %328 = vmatpush3.bf16.msra.mxu0 %v327_v5  ;;  %v336_v13 = vpack.c.bf16 %v79_v12, %v78_v11  ;;  %v169_v16 = vld [vmem:[#allocation6 + $0x8] sm:$0xff]  ;;  %v170_v18 = vld [vmem:[#allocation6 + $0x10] sm:$0xff]  ;;  %v171_v19 = vld [vmem:[#allocation6 + $0x18] sm:$0xff] }
  0x4f   :  { %329 = vmatprep.subr.bf16.mxu0 %v463_v0  ;;  %v339_v17 = vpack.c.bf16 %v169_v16, %v168_v15  ;;  %v342_v20 = vpack.c.bf16 %v171_v19, %v170_v18  ;;  %v172_v21 = vld [vmem:[#allocation6 + $0x20] sm:$0xff]  ;;  %v173_v22 = vld [vmem:[#allocation6 + $0x28] sm:$0xff]  ;;  %v174_v24 = vld [vmem:[#allocation6 + $0x30] sm:$0xff] }
  0x50   :  { %v345_v23 = vpack.c.bf16 %v173_v22, %v172_v21  ;;  %v175_v25 = vld [vmem:[#allocation6 + $0x38] sm:$0xff]  ;;  %v268_v36 = vld [vmem:[#allocation7] ss:$0 sm:$0xff] }
  0x51   :  { %340 = vmatpush3.bf16.msra.mxu1 %v339_v17  ;;  %v348_v26 = vpack.c.bf16 %v175_v25, %v174_v24  ;;  %v265_v27 = vld [vmem:[#allocation4] ss:$0 sm:$0xff] }
  0x52   :  { %331 = vmatpush3.bf16.msra.mxu0 %v330_v7  ;;  %341 = vmatprep.subr.bf16.mxu1 %v463_v0 }
  0x53   :  { %332 = vmatprep.subr.bf16.mxu0 %v463_v0 }
  0x55   :  { %343 = vmatpush3.bf16.msra.mxu1 %v342_v20 }
  0x56   :  { %334 = vmatpush3.bf16.msra.mxu0 %v333_v10  ;;  %344 = vmatprep.subr.bf16.mxu1 %v463_v0 }
  0x57   :  { %335 = vmatprep.subr.bf16.mxu0 %v463_v0 }
  0x59   :  { %346 = vmatpush3.bf16.msra.mxu1 %v345_v23 }
  0x5a   :  { %337 = vmatpush3.bf16.msra.mxu0 %v336_v13  ;;  %347 = vmatprep.subr.bf16.mxu1 %v463_v0 }
  0x5d   :  { %305 = vmatmul.mubr.msk.f32.vlgmr.msra.gmra.mrb[0].mxu0 %vm87_vm1, %v71_v14  ;;  %349 = vmatpush3.bf16.msra.mxu1 %v348_v26 }
 0x130   :  { %v157_v28 = vpop.f32.mrb[0].mxu0 }
 0x131   :  { %v158_v29 = vadd.f32 %v265_v27, %v157_v28  ;;  %v306_v30 = vpop.f32.mrb[1].mxu0 }
 0x133   :  { %v267_v31 = vmul.f32 -1.442695, %v158_v29 }
 0x135   :  { %359 = vpow2.f32 %v267_v31 }
 0x13f   :  { %v360_v32 = vpop.eup %359 }
 0x140   :  { %v164_v33 = vadd.f32 1.0, %v360_v32 }
 0x142   :  { %361 = vrcp.f32 %v164_v33 }
 0x14c   :  { %v362_v34 = vpop.eup %361 }
 0x14d   :  { %v167_v35 = vmul.f32 %v362_v34, %v158_v29 }
 0x14f   :  { %324 = vmatmul.mubr.msk.f32.vlgmr.msra.gmra.mrb[0].mxu1 %vm87_vm1, %v167_v35 }
 0x222   :  { %v252_v37 = vpop.f32.mrb[0].mxu1 }
 0x223   :  { %v253_v38 = vadd.f32 %v268_v36, %v252_v37  ;;  %v325_v39 = vpop.f32.mrb[1].mxu1 }
 0x225   :  { %257 = vst.msk [vmem:[%s564_s5] sm:$0x3] %vm256_vm2, %v253_v38 }
 0x226   :  { %262 = vsyncpa [#allocation3], 1 }
 0x227   :  { %263 = vsyncpa [#allocation5], 1 }
 0x228   :  { %264 = vsyncpa [#allocation8], 1 }

// kernel: _lambda_.3
= control target key start
LH: loop header
LB: loop body
LE: loop exit
PB: predicated region body
PF: predicated region fallthrough
CT: control target
= control target key end

     0   :  { %s21585_s0 = inlined_call_operand.hbm [shape: f32[2,64], index: 0, kind: input, shape index: {}]   ;;  %s21586_s1 = inlined_call_operand.vmem [shape: f32[2,64], index: 1, kind: input, shape index: {}]   ;;  %s21587_s2 = inlined_call_operand.hbm [shape: f32[64,2048], index: 2, kind: input, shape index: {}]   ;;  %s21588_s3 = inlined_call_operand.hbm [shape: f32[1,2048], index: 3, kind: input, shape index: {}]   ;;  %s21589_s4 = inlined_call_operand.hbm [shape: f32[64,2048], index: 4, kind: input, shape index: {}]   ;;  %s21590_s5 = inlined_call_operand.hbm [shape: f32[1,2048], index: 5, kind: input, shape index: {}]   ;;  %s21591_s6 = inlined_call_operand.hbm [shape: f32[1,2048], index: 6, kind: input, shape index: {}]   ;;  %s21592_s7 = inlined_call_operand.hbm [shape: f32[1,2048], index: 7, kind: input, shape index: {}]   ;;  %s21593_s8 = inlined_call_operand.hbm [shape: bf16[18,2048,2048], index: 8, kind: input, shape index: {}]   ;;  %s21594_s9 = inlined_call_operand.hbm [shape: f32[18,64,2048], index: 9, kind: input, shape index: {}]   ;;  %s21595_s10 = inlined_call_operand.hbm [shape: f32[18,64,2048], index: 10, kind: input, shape index: {}]   ;;  %s21596_s11 = inlined_call_operand.hbm [shape: f32[18,1,2048], index: 11, kind: input, shape index: {}]   ;;  %s21597_s12 = inlined_call_operand.hbm [shape: f32[18,1,2048], index: 12, kind: input, shape index: {}]   ;;  %s21598_s13 = inlined_call_operand.hbm [shape: f32[18,1,2048], index: 13, kind: input, shape index: {}]   ;;  %s21599_s14 = inlined_call_operand.hbm [shape: f32[18,1,2048], index: 14, kind: input, shape index: {}]   ;;  %s21600_s15 = inlined_call_operand.vmem [shape: f32[2048,64], index: 15, kind: input, shape index: {}]   ;;  %s21601_s16 = inlined_call_operand.hbm [shape: f32[64,64], index: 16, kind: input, shape index: {}]   ;;  %s21602_s17 = inlined_call_operand.hbm [shape: f32[1,64], index: 17, kind: input, shape index: {}]   ;;  %s21603_s18 = inlined_call_operand.hbm [shape: f32[2,64], index: 18, kind: output, shape index: {}]  }
   0x1   :  { %21656 = sst [smem:[#allocation57_spill]] %s21585_s0 }
   0x2   :  { %21657 = sst [smem:[#allocation58_spill]] %s21586_s1 }
   0x3   :  { %21658 = sst [smem:[#allocation59_spill]] %s21587_s2 }
   0x4   :  { %21659 = sst [smem:[#allocation60_spill]] %s21588_s3 }
   0x5   :  { %21660 = sst [smem:[#allocation61_spill]] %s21589_s4 }
   0x6   :  { %21661 = sst [smem:[#allocation62_spill]] %s21590_s5 }
   0x7   :  { %21662 = sst [smem:[#allocation63_spill]] %s21591_s6 }
   0x8   :  { %21663 = sst [smem:[#allocation64_spill]] %s21592_s7 }
   0x9   :  { %21664 = sst [smem:[#allocation65_spill]] %s21593_s8 }
   0xa   :  { %21665 = sst [smem:[#allocation66_spill]] %s21594_s9 }
   0xb   :  { %21666 = sst [smem:[#allocation67_spill]] %s21595_s10 }
   0xc   :  { %21667 = sst [smem:[#allocation68_spill]] %s21596_s11 }
   0xd   :  { %21668 = sst [smem:[#allocation69_spill]] %s21597_s12 }
   0xe   :  { %21669 = sst [smem:[#allocation70_spill]] %s21598_s13 }
   0xf   :  { %21670 = sst [smem:[#allocation71_spill]] %s21599_s14 }
  0x10   :  { %21671 = sst [smem:[#allocation72_spill]] %s21600_s15 }
  0x11   :  { %21672 = sst [smem:[#allocation73_spill]] %s21601_s16 }
  0x12   :  { %21673 = sst [smem:[#allocation74_spill]] %s21602_s17 }
  0x13   :  { %21674 = sst [smem:[#allocation75_spill]] %s21603_s18 }
  0x14   :  { %23 = vsyncpa [#allocation5], 0 }
  0x15   :  { %24 = vsyncpa [#allocation8], 0 }
  0x16   :  { %25 = vsyncpa [#allocation11], 0 }
  0x17   :  { %26 = vsyncpa [#allocation14], 0 }
  0x18   :  { %27 = vsyncpa [#allocation17], 0 }
  0x19   :  { %29 = vsyncpa [#allocation17 + $0x1], 0 }
  0x1a   :  { %30 = vsyncpa [#allocation20], 0 }
  0x1b   :  { %32 = vsyncpa [#allocation20 + $0x1], 0 }
  0x1c   :  { %33 = vsyncpa [#allocation23], 0 }
  0x1d   :  { %35 = vsyncpa [#allocation23 + $0x1], 0 }
  0x1e   :  { %36 = vsyncpa [#allocation26], 0 }
  0x1f   :  { %38 = vsyncpa [#allocation26 + $0x1], 0 }
  0x20   :  { %39 = vsyncpa [#allocation29], 0 }
  0x21   :  { %40 = vsyncpa [#allocation6], 0  ;;  %s17821_s27 = smov 0   ;;  %s17823_s28 = smov 0  }
  0x22   :  { %s17825_s29 = smov 0   ;;  %s17827_s30 = smov 0  }
  0x23   :  { %s17829_s0 = smov 0   ;;  %s17831_s19 = smov 0  }
  0x24   :  { %21675 = sst [smem:[#allocation43_spill]] %s17831_s19  ;;  %s17833_s1 = smov 0  }
  0x25   :  { %s17835_s20 = smov 0   ;;  %s17837_s21 = smov 0  }
  0x26   :  { %s17839_s22 = smov 0   ;;  %s17841_s2 = smov 0  }
  0x27 LB: > { %s21677_s19 = sld [smem:[#allocation43_spill]]  ;;  %21679 = sst [smem:[#allocation44_spill]] %s17661_s29  ;;  %s17693_s2 = sphi %s17841_s2, %s46_s2   ;;  %s17689_s22 = sphi %s17839_s22, %s21779_s22   ;;  %s17685_s21 = sphi %s17837_s21, %s21778_s21   ;;  %s17681_s20 = sphi %s17835_s20, %s21777_s20   ;;  %s17677_s1 = sphi %s17833_s1, %s21776_s1   ;;  %s17669_s0 = sphi %s17829_s0, %s21781_s0   ;;  %s17665_s30 = sphi %s17827_s30, %s21780_s30   ;;  %s17661_s29 = sphi %s17825_s29, %s21773_s29   ;;  %s17657_s28 = sphi %s17823_s28, %s21772_s28   ;;  %s17653_s27 = sphi %s17821_s27, %s21771_s27  }
  0x28   : > { %21678 = sst [smem:[#allocation43_spill]] %s17657_s28  ;;  %s17695_s23 = smov [#allocation7]  }
  0x29   : > { %21681 = sst [smem:[#allocation46_spill]] %s17677_s1  ;;  %s525_s24 = sshll.u32 %s17695_s23, 4  ;;  %s17882_s24 = int_to_ptr.vmem [resolvable:$true] %s525_s24 }
  0x2a   : > { %21682 = sst [smem:[#allocation47_spill]] %s17681_s20  ;;  %s17877_s25 = sadd.s32 4294967295, %s17693_s2  }
  0x2b   : > { %21683 = sst [smem:[#allocation48_spill]] %s17685_s21  ;;  %p14418_p0 = scmp.ge.s32.totalorder %s17693_s2, 1 }
  0x2c   : > { %21684 = sst [smem:[#allocation49_spill]] %s17689_s22  ;;  %p21620_p1 = scmp.eq.s32.totalorder %s17877_s25, 0 }
  0x2d   : > { %21680 = sst [smem:[#allocation45_spill]] %s21677_s19  ;;  %p499_p2 = scmp.lt.s32.totalorder %s17693_s2, 37 }
  0x2e   : > { %21685 = sst [smem:[#allocation50_spill]] %s17693_s2  ;;  %s17696_s18 = smov [#allocation10]  }
  0x2f   : > { %p17884_p3 = pnand %p14418_p0, %p499_p2  ;;  %s549_s15 = sshll.u32 %s17696_s18, 4  ;;  %s17896_s15 = int_to_ptr.vmem [resolvable:$true] %s549_s15 }
  0x30   : > { %s17697_s1 = smov [#allocation13]   ;;  %s21689_s17 = sld [smem:[#allocation59_spill]] }
  0x31   : > { %s21686_s26 = scalar_select %p17884_p3, 1, 0 }
  0x32   : > { %p16802_p4 = pneg %p17884_p3  ;;  %s574_s20 = sshll.u32 %s17697_s1, 4  ;;  %s17898_s20 = int_to_ptr.vmem [resolvable:$true] %s574_s20 }
  0x33   : > { %21687 = sst [smem:[#allocation51_spill]] %s21686_s26 }
  0x34   : > { %p17892_p5 = pnand %p16802_p4, %p21620_p1 }
  0x36   : > { %s21688_s23 = scalar_select %p17892_p5, 1, 0 }
  0x37   : > { %s17071_s11 = scalar_lea.hbm %s21689_s17, 16384  ;;  %p17908_p7 = pneg %p17892_p5 }
  0x38   : > { %p17072_p6 = scmp.ne.s32.totalorder %s21689_s17, %s17071_s11  ;;  %p17078_p10 = scmp.lt.u32.totalorder %s17071_s11, %s21689_s17 }
  0x39   : > { %s21690_s18 = scalar_select %p17908_p7, 1, 0 }
  0x3a   : > { %p17074_p8 = pnand %p17908_p7, %p17072_p6 }
  0x3c   : > { %p17075_p9 = pneg %p17074_p8 }
  0x3e   : > { %p17080_p11 = pnand %p17078_p10, %p17075_p9 }
  0x40   : > { %17083 = shalt.err (!%p17080_p11)
}
  0x41   : > { %s17084_s7 = scalar_lea.vmem %s17882_s24, 16384  ;;  %p17092_p2 = scmp.lt.s32.totalorder %s17882_s24, %s17882_s24 }
  0x42   : > { %p17085_p12 = scmp.ne.s32.totalorder %s17882_s24, %s17084_s7  ;;  %p17093_p4 = scmp.lt.s32.totalorder %s17084_s7, %s17084_s7 }
  0x44   : > { %p17087_p13 = pnand %p17085_p12, %p17908_p7  ;;  %p17094_p6 = por %p17093_p4, %p17092_p2 }
  0x46   : > { %p17088_p0 = pneg %p17087_p13 }
  0x48   : > { %p17095_p8 = pnand %p17094_p6, %p17088_p0 }
  0x4a   : > { %17098 = shalt.err (!%p17095_p8)
}
  0x4b   : > { %s21622_s13 = smov 2048   ;;  %s21624_s5 = smov 128  }
  0x4c   : > { %16808 = dma.hbm_to_vmem [thread:$0]  (!%p17892_p5), %s21689_s17, 16384, %s17882_s24, [#allocation8], %s21622_s13, %s21622_s13, %s21624_s5  }
  0x4d   : > { %s21691_s4 = sld [smem:[#allocation61_spill]] }
  0x53   : > { %s17099_s7 = scalar_lea.hbm %s21691_s4, 16384 }
  0x54   : > { %p17100_p9 = scmp.ne.s32.totalorder %s21691_s4, %s17099_s7  ;;  %p17106_p12 = scmp.lt.u32.totalorder %s17099_s7, %s21691_s4 }
  0x56   : > { %p17102_p10 = pnand %p17100_p9, %p17908_p7 }
  0x58   : > { %p17103_p11 = pneg %p17102_p10 }
  0x5a   : > { %p17108_p13 = pnand %p17106_p12, %p17103_p11 }
  0x5c   : > { %17111 = shalt.err (!%p17108_p13)
}
  0x5d   : > { %s17112_s24 = scalar_lea.vmem %s17896_s15, 16384  ;;  %p17120_p6 = scmp.lt.s32.totalorder %s17896_s15, %s17896_s15 }
  0x5e   : > { %p17113_p0 = scmp.ne.s32.totalorder %s17896_s15, %s17112_s24  ;;  %p17121_p8 = scmp.lt.s32.totalorder %s17112_s24, %s17112_s24 }
  0x60   : > { %p17115_p2 = pnand %p17113_p0, %p17908_p7  ;;  %p17122_p9 = por %p17121_p8, %p17120_p6 }
  0x62   : > { %p17116_p4 = pneg %p17115_p2 }
  0x64   : > { %p17123_p10 = pnand %p17122_p9, %p17116_p4 }
  0x66   : > { %17126 = shalt.err (!%p17123_p10)
}
  0x67   : > { %16814 = dma.hbm_to_vmem [thread:$0]  (!%p17892_p5), %s21691_s4, 16384, %s17896_s15, [#allocation11], %s21622_s13, %s21622_s13, %s21624_s5  }
  0x68   : > { %s21692_s6 = sld [smem:[#allocation63_spill]] }
  0x6e   : > { %s17127_s11 = scalar_lea.hbm %s21692_s6, 256 }
  0x6f   : > { %p17128_p11 = scmp.ne.s32.totalorder %s21692_s6, %s17127_s11  ;;  %p17134_p0 = scmp.lt.u32.totalorder %s17127_s11, %s21692_s6 }
  0x71   : > { %p17130_p12 = pnand %p17128_p11, %p17908_p7 }
  0x73   : > { %p17131_p13 = pneg %p17130_p12 }
  0x75   : > { %p17136_p2 = pnand %p17134_p0, %p17131_p13 }
  0x77   : > { %17139 = shalt.err (!%p17136_p2)
}
  0x78   : > { %s17140_s15 = scalar_lea.vmem %s17898_s20, 256  ;;  %p17148_p9 = scmp.lt.s32.totalorder %s17898_s20, %s17898_s20 }
  0x79   : > { %p17141_p4 = scmp.ne.s32.totalorder %s17898_s20, %s17140_s15  ;;  %p17149_p10 = scmp.lt.s32.totalorder %s17140_s15, %s17140_s15 }
  0x7b   : > { %p17143_p6 = pnand %p17141_p4, %p17908_p7  ;;  %p17150_p11 = por %p17149_p10, %p17148_p9 }
  0x7d   : > { %p17144_p8 = pneg %p17143_p6 }
  0x7f   : > { %p17151_p12 = pnand %p17150_p11, %p17144_p8 }
  0x81   : > { %17154 = shalt.err (!%p17151_p12)
}
  0x82   : > { %16820 = dma.hbm_to_vmem [thread:$0]  (!%p17892_p5), %s21692_s6, 256, %s17898_s20, [#allocation14]  }
  0x83   : > { %s17700_s9 = smov [#allocation27]   ;;  %s21693_s16 = sld [smem:[#allocation73_spill]] }
  0x84   : > { %s598_s10 = sshll.u32 %s17700_s9, 4  ;;  %s599_s10 = int_to_ptr.vmem [resolvable:$true] %s598_s10 }
  0x89   : > { %s17155_s14 = scalar_lea.hbm %s21693_s16, 1024 }
  0x8a   : > { %p17156_p13 = scmp.ne.s32.totalorder %s21693_s16, %s17155_s14  ;;  %p17162_p4 = scmp.lt.u32.totalorder %s17155_s14, %s21693_s16 }
  0x8c   : > { %p17158_p0 = pnand %p17156_p13, %p17908_p7 }
  0x8e   : > { %p17159_p2 = pneg %p17158_p0 }
  0x90   : > { %p17164_p6 = pnand %p17162_p4, %p17159_p2 }
  0x92   : > { %17167 = shalt.err (!%p17164_p6)
}
  0x93   : > { %s17168_s20 = scalar_lea.vmem %s599_s10, 1024  ;;  %p17176_p11 = scmp.lt.s32.totalorder %s599_s10, %s599_s10 }
  0x94   : > { %p17169_p8 = scmp.ne.s32.totalorder %s599_s10, %s17168_s20  ;;  %p17177_p12 = scmp.lt.s32.totalorder %s17168_s20, %s17168_s20 }
  0x96   : > { %p17171_p9 = pnand %p17169_p8, %p17908_p7  ;;  %p17178_p1 = por %p17177_p12, %p17176_p11 }
  0x98   : > { %p17172_p10 = pneg %p17171_p9 }
  0x9a   : > { %p17179_p3 = pnand %p17178_p1, %p17172_p10 }
  0x9c   : > { %17182 = shalt.err (!%p17179_p3)
}
  0x9d   : > { %s17701_s24 = smov 8   ;;  %s55_s12 = sadd.s32 1, %s17685_s21 }
  0x9e   : > { %16826 = dma.hbm_to_vmem [thread:$0]  (!%p17892_p5), %s21693_s16, 1024, %s599_s10, [#allocation26], %s21624_s5, %s21624_s5, %s17701_s24  }
  0x9f   : > { %p56_p1 = scmp.ge.s32.totalorder %s55_s12, 2  ;;  %s58_s11 = sadd.s32 1, %s17689_s22 }
  0xa0   : > { %s235_s14 = sadd.s32 1, %s21677_s19  ;;  %p242_p3 = scmp.ne.s32.totalorder %s21677_s19, %s17669_s0 }
  0xa1   : > { %s21784_s12 = smov (%p56_p1, %s55_s12), 0  ;;  %s21786_s11 = smov (!%p56_p1, %s58_s11), %s17689_s22 }
  0xa2   : > { %21694 = sst [smem:[#allocation52_spill]] %s21784_s12  ;;  %s231_s26 = ssub.s32 %s17685_s21, %s21784_s12 }
  0xa3   : > { %p21630_p13 = scmp.eq.s32.totalorder %s17693_s2, 0  ;;  %p60_p0 = scmp.ge.s32.totalorder %s21786_s11, 18 }
  0xa4   : > { %p248_p2 = scmp.ne.s32.totalorder %s17669_s0, %s17665_s30  ;;  %p21629_p6 = scmp.lt.s32.totalorder %s17693_s2, 36 }
  0xa5   : > { %p18016_p4 = por %p21630_p13, %p242_p3  ;;  %s21788_s11 = smov (%p60_p0, %s21786_s11), 0 }
  0xa6   : > { %21696 = sst [smem:[#allocation53_spill]] %s21788_s11  ;;  %p21697_p8 = scmp.eq.s32.totalorder %s17877_s25, 0 }
  0xa7   : > { %s18030_s7 = sand.u32 1, %s17693_s2   ;;  %s18034_s15 = ssub.s32 %s17689_s22, %s21788_s11 }
  0xa8   : > { %p18025_p9 = por %p21697_p8, %p248_p2  ;;  %s232_s30 = sor.u32 %s231_s26, %s18034_s15 }
  0xa9   : > { %p233_p11 = scmp.eq.s32.totalorder %s232_s30, 0  ;;  %s625_s20 = sand.u32 1, %s21677_s19  }
  0xaa   : > { %s21698_s1 = scalar_select %p18025_p9, 1, 0 }
  0xab   : > { %s14429_s24 = sshll.u32 %s625_s20, 13  ;;  %s15556_s3 = sshll.u32 %s17685_s21, 11 }
  0xac   : > { %s18041_s9 = scalar_select %p233_p11, %s21677_s19, %s235_s14  }
  0xad   : > { %s14432_s13 = sshll.u32 %s17689_s22, 12  ;;  %s627_s4 = scalar_lea.vmem [#allocation16], %s14429_s24 }
  0xae   : > { %21699 = sst [smem:[#allocation54_spill]] %s18041_s9  ;;  %s634_s5 = sadd.s32 %s15556_s3, %s14432_s13 }
  0xaf   : > { %s637_s6 = sshll.u32 %s627_s4, 4  ;;  %s14433_s16 = sshll.u32 %s634_s5, 6  ;;  %s18044_s6 = int_to_ptr.vmem [resolvable:$true] %s637_s6 }
  0xb0   : > { %s21700_s8 = sld [smem:[#allocation65_spill]]  ;;  %p18055_p12 = pnand %p21629_p6, %p18016_p4 }
  0xb1   : > { %s21634_s4 = scalar_lea.sflag [#allocation17], %s18030_s7 }
  0xb2   : > { %p17185_p3 = pneg %p18055_p12 }
  0xb6   : > { %s18049_s12 = scalar_lea.hbm %s21700_s8, %s14433_s16  ;;  %s17188_s5 = scalar_lea.hbm %s21700_s8, 4718592 }
  0xb7   : > { %s17183_s13 = scalar_lea.hbm %s18049_s12, 131072  ;;  %p17189_p4 = scmp.lt.u32.totalorder %s18049_s12, %s21700_s8 }
  0xb8   : > { %p17184_p1 = scmp.ne.s32.totalorder %s18049_s12, %s17183_s13  ;;  %p17190_p8 = scmp.lt.u32.totalorder %s17188_s5, %s17183_s13 }
  0xb9   : > { %p17192_p6 = scmp.lt.u32.totalorder %s17183_s13, %s18049_s12 }
  0xba   : > { %p17186_p0 = pnand %p17185_p3, %p17184_p1  ;;  %p17191_p11 = por %p17190_p8, %p17189_p4 }
  0xbc   : > { %p17187_p2 = pneg %p17186_p0  ;;  %p17193_p13 = por %p17192_p6, %p17191_p11 }
  0xbe   : > { %p17194_p10 = pnand %p17193_p13, %p17187_p2 }
  0xc0   : > { %17197 = shalt.err (!%p17194_p10)
}
  0xc1   : > { %s17198_s10 = scalar_lea.vmem %s18044_s6, 131072  ;;  %s17702_s30 = smov [#allocation16]  }
  0xc2   : > { %p17199_p1 = scmp.ne.s32.totalorder %s18044_s6, %s17198_s10  ;;  %s17203_s20 = sshll.u32 %s17702_s30, 4  ;;  %s17204_s20 = int_to_ptr.vmem [resolvable:$false] %s17203_s20 }
  0xc3   : > { %s17205_s24 = scalar_lea.vmem %s17204_s20, 262144  ;;  %p17206_p5 = scmp.lt.s32.totalorder %s18044_s6, %s17204_s20 }
  0xc4   : > { %p17201_p0 = pnand %p17199_p1, %p17185_p3  ;;  %p17207_p4 = scmp.lt.s32.totalorder %s17205_s24, %s17198_s10 }
  0xc6   : > { %p17202_p9 = pneg %p17201_p0  ;;  %p17208_p8 = por %p17207_p4, %p17206_p5 }
  0xc8   : > { %p17209_p6 = pnand %p17208_p8, %p17202_p9 }
  0xca   : > { %17212 = shalt.err (!%p17209_p6)
}
  0xcb   : > { %s17703_s3 = smov 1024   ;;  %s17704_s13 = smov 64  }
  0xcc   : > { %16833 = dma.hbm_to_vmem [thread:$0]  (!%p18055_p12), %s18049_s12, 131072, %s18044_s6, %s21634_s4, %s17703_s3, %s17703_s3, %s17704_s13  }
  0xcd   : > { %s261_s16 = sadd.s32 1, %s17661_s29  ;;  %p21702_p5 = scmp.eq.s32.totalorder %s18034_s15, 0 }
  0xce   : > { %p268_p13 = scmp.ne.s32.totalorder %s17661_s29, %s17657_s28  ;;  %p274_p9 = scmp.ne.s32.totalorder %s17657_s28, %s17653_s27 }
  0xcf   : > { %s18091_s17 = scalar_select %p21702_p5, %s17661_s29, %s261_s16  }
  0xd0   : > { %s649_s5 = sand.u32 1, %s17661_s29   ;;  %s15557_s11 = sshll.u32 %s17689_s22, 14 }
  0xd1   : > { %21703 = sst [smem:[#allocation55_spill]] %s18091_s17  ;;  %p21704_p10 = scmp.eq.s32.totalorder %s17693_s2, 0 }
  0xd2   : > { %p21705_p2 = scmp.eq.s32.totalorder %s17877_s25, 0  ;;  %s14434_s14 = sshll.u32 %s649_s5, 10 }
  0xd3   : > { %p270_p3 = por %p268_p13, %p21704_p10  ;;  %s21708_s12 = sld [smem:[#allocation66_spill]] }
  0xd4   : > { %p18103_p11 = por %p274_p9, %p21705_p2  ;;  %p21709_p12 = scmp.lt.s32.totalorder %s17693_s2, 36 }
  0xd5   : > { %s651_s30 = scalar_lea.vmem [#allocation18], %s14434_s14  ;;  %s21711_s13 = sld [smem:[#allocation67_spill]] }
  0xd6   : > { %s21706_s26 = scalar_select %p18103_p11, 1, 0 }
  0xd7   : > { %p18114_p1 = pnand %p21709_p12, %p270_p3  ;;  %s658_s20 = sshll.u32 %s651_s30, 4  ;;  %s18118_s20 = int_to_ptr.vmem [resolvable:$true] %s658_s20 }
  0xd8   : > { %21707 = sst [smem:[#allocation56_spill]] %s21706_s26  ;;  %s672_s10 = scalar_lea.vmem [#allocation19], %s14434_s14 }
  0xd9   : > { %s18110_s15 = scalar_lea.hbm %s21708_s12, %s15557_s11  ;;  %s679_s6 = sshll.u32 %s672_s10, 4  ;;  %s18127_s6 = int_to_ptr.vmem [resolvable:$true] %s679_s6 }
  0xda   : > { %s21710_s27 = scalar_select %p18114_p1, 1, 0 }
  0xdb   : > { %s18123_s16 = scalar_lea.hbm %s21711_s13, %s15557_s11  ;;  %s18125_s4 = sshll.u32 %s649_s5, 4 }
  0xdc   : > { %s18130_s8 = sshll.u32 %s17689_s22, 8  ;;  %s17213_s21 = scalar_lea.hbm %s18123_s16, 16384 }
  0xdd   : > { %p17214_p0 = scmp.ne.s32.totalorder %s18123_s16, %s17213_s21  ;;  %p18137_p4 = pneg %p18114_p1 }
  0xde   : > { %s17218_s5 = scalar_lea.hbm %s21711_s13, 294912  ;;  %p17219_p5 = scmp.lt.u32.totalorder %s18123_s16, %s21711_s13 }
  0xdf   : > { %s21712_s24 = scalar_select %p18137_p4, 1, 0 }
  0xe0   : > { %p17216_p8 = pnand %p18137_p4, %p17214_p0  ;;  %p17220_p13 = scmp.lt.u32.totalorder %s17218_s5, %s17213_s21 }
  0xe1   : > { %p17222_p10 = scmp.lt.u32.totalorder %s17213_s21, %s18123_s16 }
  0xe2   : > { %p17217_p6 = pneg %p17216_p8  ;;  %p17221_p9 = por %p17220_p13, %p17219_p5 }
  0xe4   : > { %p17223_p3 = por %p17222_p10, %p17221_p9 }
  0xe6   : > { %p17224_p2 = pnand %p17223_p3, %p17217_p6 }
  0xe8   : > { %17227 = shalt.err (!%p17224_p2)
}
  0xe9   : > { %s17228_s30 = scalar_lea.vmem %s18127_s6, 16384  ;;  %s17705_s11 = smov [#allocation19]  }
  0xea   : > { %p17229_p12 = scmp.ne.s32.totalorder %s18127_s6, %s17228_s30  ;;  %s17233_s14 = sshll.u32 %s17705_s11, 4  ;;  %s17234_s14 = int_to_ptr.vmem [resolvable:$false] %s17233_s14 }
  0xeb   : > { %s17235_s3 = scalar_lea.vmem %s17234_s14, 32768  ;;  %p17236_p11 = scmp.lt.s32.totalorder %s18127_s6, %s17234_s14 }
  0xec   : > { %p17231_p0 = pnand %p17229_p12, %p18137_p4  ;;  %p17237_p7 = scmp.lt.s32.totalorder %s17235_s3, %s17228_s30 }
  0xee   : > { %p17232_p8 = pneg %p17231_p0  ;;  %p17238_p5 = por %p17237_p7, %p17236_p11 }
  0xf0   : > { %p17239_p13 = pnand %p17238_p5, %p17232_p8 }
  0xf2   : > { %17242 = shalt.err (!%p17239_p13)
}
  0xf3   : > { %s21713_s21 = smov 128   ;;  %s21714_s5 = smov 2048  }
  0xf4   : > { %s21715_s10 = scalar_lea.sflag [#allocation20], %s18030_s7  ;;  %s21716_s30 = sld [smem:[#allocation69_spill]] }
  0xf5   : > { %16839 = dma.hbm_to_vmem [thread:$0]  (!%p18114_p1), %s18123_s16, 16384, %s18127_s6, %s21715_s10, %s21714_s5, %s21714_s5, %s21713_s21  }
  0xf6   : > { %s712_s22 = scalar_lea.vmem [#allocation22], %s18125_s4  ;;  %s21651_s19 = scalar_lea.sflag [#allocation23], %s18030_s7 }
  0xf7   : > { %s720_s9 = sshll.u32 %s712_s22, 4  ;;  %s721_s9 = int_to_ptr.vmem [resolvable:$true] %s720_s9 }
  0xfa   : > { %s21717_s3 = smov %s21716_s30  ;;  %s18169_s13 = scalar_lea.hbm %s21716_s30, %s18130_s8 }
  0xfb   : > { %s17243_s17 = scalar_lea.hbm %s18169_s13, 256  ;;  %s17248_s6 = scalar_lea.hbm %s21717_s3, 4608 }
  0xfc   : > { %p17244_p7 = scmp.ne.s32.totalorder %s18169_s13, %s17243_s17  ;;  %p17249_p9 = scmp.lt.u32.totalorder %s18169_s13, %s21717_s3 }
  0xfd   : > { %p17250_p10 = scmp.lt.u32.totalorder %s17248_s6, %s17243_s17  ;;  %p17252_p2 = scmp.lt.u32.totalorder %s17243_s17, %s18169_s13 }
  0xfe   : > { %p17246_p11 = pnand %p17244_p7, %p18137_p4 }
  0xff   : > { %p17251_p3 = por %p17250_p10, %p17249_p9 }
 0x100   : > { %p17247_p6 = pneg %p17246_p11 }
 0x101   : > { %p17253_p12 = por %p17252_p2, %p17251_p3 }
 0x103   : > { %p17254_p0 = pnand %p17253_p12, %p17247_p6 }
 0x105   : > { %17257 = shalt.err (!%p17254_p0)
}
 0x106   : > { %s17258_s22 = scalar_lea.vmem %s721_s9, 256  ;;  %s17706_s14 = smov [#allocation22]  }
 0x107   : > { %p17259_p8 = scmp.ne.s32.totalorder %s721_s9, %s17258_s22  ;;  %s17263_s30 = sshll.u32 %s17706_s14, 4  ;;  %s17264_s30 = int_to_ptr.vmem [resolvable:$false] %s17263_s30 }
 0x108   : > { %s17265_s29 = scalar_lea.vmem %s17264_s30, 512  ;;  %p17266_p7 = scmp.lt.s32.totalorder %s721_s9, %s17264_s30 }
 0x109   : > { %p17261_p5 = pnand %p17259_p8, %p18137_p4  ;;  %p17267_p11 = scmp.lt.s32.totalorder %s17265_s29, %s17258_s22 }
 0x10b   : > { %p17262_p13 = pneg %p17261_p5  ;;  %p17268_p1 = por %p17267_p11, %p17266_p7 }
 0x10d   : > { %p17269_p9 = pnand %p17268_p1, %p17262_p13 }
 0x10f   : > { %17272 = shalt.err (!%p17269_p9)
}
 0x110   : > { %p21718_p10 = scmp.ne.s32.totalorder %s21710_s27, 0  ;;  %s17707_s17 = smov [#allocation4]  }
 0x111   : > { %s512_s16 = sshll.u32 %s17707_s17, 4  ;;  %s17708_s6 = smov [#allocation9]   ;;  %s513_s16 = int_to_ptr.vmem [resolvable:$true] %s512_s16 }
 0x112   : > { %16845 = dma.hbm_to_vmem [thread:$0]  (!%p21718_p10), %s18169_s13, 256, %s721_s9, %s21651_s19  }
 0x113   : > { %s539_s10 = sshll.u32 %s17708_s6, 4  ;;  %s21719_s3 = sld [smem:[#allocation57_spill]]  ;;  %s540_s10 = int_to_ptr.vmem [resolvable:$true] %s539_s10 }
 0x114   : > { %p21720_p6 = scmp.ne.s32.totalorder %s21690_s18, 0 }
 0x119   : > { %s17273_s30 = scalar_lea.hbm %s21719_s3, 32 }
 0x11a   : > { %p17274_p1 = scmp.ne.s32.totalorder %s21719_s3, %s17273_s30  ;;  %p17280_p12 = scmp.lt.u32.totalorder %s17273_s30, %s21719_s3 }
 0x11c   : > { %p17276_p3 = pnand %p17274_p1, %p21720_p6 }
 0x11e   : > { %p17277_p2 = pneg %p17276_p3 }
 0x120   : > { %p17282_p0 = pnand %p17280_p12, %p17277_p2 }
 0x122   : > { %17285 = shalt.err (!%p17282_p0)
}
 0x123   : > { %s17286_s9 = scalar_lea.vmem %s513_s16, 32  ;;  %p17294_p7 = scmp.lt.s32.totalorder %s513_s16, %s513_s16 }
 0x124   : > { %p17287_p8 = scmp.ne.s32.totalorder %s513_s16, %s17286_s9  ;;  %p17295_p11 = scmp.lt.s32.totalorder %s17286_s9, %s17286_s9 }
 0x126   : > { %p17289_p5 = pnand %p17287_p8, %p21720_p6  ;;  %p17296_p9 = por %p17295_p11, %p17294_p7 }
 0x128   : > { %p17290_p13 = pneg %p17289_p5 }
 0x12a   : > { %p17297_p10 = pnand %p17296_p9, %p17290_p13 }
 0x12c   : > { %17300 = shalt.err (!%p17297_p10)
}
 0x12d   : > { %p21721_p1 = scmp.ne.s32.totalorder %s21688_s23, 0  ;;  %s21722_s6 = sld [smem:[#allocation60_spill]] }
 0x12f   : > { %16805 = dma.hbm_to_vmem [thread:$0]  (!%p21721_p1), %s21719_s3, 32, %s513_s16, [#allocation5]  }
 0x133   : > { %s17301_s11 = scalar_lea.hbm %s21722_s6, 256 }
 0x134   : > { %p17302_p3 = scmp.ne.s32.totalorder %s21722_s6, %s17301_s11  ;;  %p17308_p10 = scmp.lt.u32.totalorder %s17301_s11, %s21722_s6 }
 0x136   : > { %p17304_p2 = pnand %p17302_p3, %p21720_p6 }
 0x138   : > { %p17305_p12 = pneg %p17304_p2 }
 0x13a   : > { %p17310_p0 = pnand %p17308_p10, %p17305_p12 }
 0x13c   : > { %17313 = shalt.err (!%p17310_p0)
}
 0x13d   : > { %s17314_s9 = scalar_lea.vmem %s540_s10, 256  ;;  %p17322_p7 = scmp.lt.s32.totalorder %s540_s10, %s540_s10 }
 0x13e   : > { %p17315_p8 = scmp.ne.s32.totalorder %s540_s10, %s17314_s9  ;;  %p17323_p11 = scmp.lt.s32.totalorder %s17314_s9, %s17314_s9 }
 0x140   : > { %p17317_p5 = pnand %p17315_p8, %p21720_p6  ;;  %p17324_p9 = por %p17323_p11, %p17322_p7 }
 0x142   : > { %p17318_p13 = pneg %p17317_p5 }
 0x144   : > { %p17325_p4 = pnand %p17324_p9, %p17318_p13 }
 0x146   : > { %17328 = shalt.err (!%p17325_p4)
}
 0x147   : > { %16811 = dma.hbm_to_vmem [thread:$0]  (!%p21721_p1), %s21722_s6, 256, %s540_s10, [#allocation8]  }
 0x148   : > { %s17709_s17 = smov [#allocation12]   ;;  %s17710_s26 = smov [#allocation15]  }
 0x149   : > { %s563_s2 = sshll.u32 %s17709_s17, 4  ;;  %s585_s11 = sshll.u32 %s17710_s26, 4  ;;  %s564_s2 = int_to_ptr.vmem [resolvable:$true] %s563_s2  ;;  %s586_s11 = int_to_ptr.vmem [resolvable:$true] %s585_s11 }
 0x14a   : > { %s21723_s22 = sld [smem:[#allocation62_spill]] }
 0x150   : > { %s21724_s19 = smov %s21723_s22  ;;  %s17329_s29 = scalar_lea.hbm %s21723_s22, 256 }
 0x151   : > { %p17330_p4 = scmp.ne.s32.totalorder %s21724_s19, %s17329_s29  ;;  %p17336_p12 = scmp.lt.u32.totalorder %s17329_s29, %s21724_s19 }
 0x153   : > { %p17332_p3 = pnand %p17330_p4, %p21720_p6 }
 0x155   : > { %p17333_p2 = pneg %p17332_p3 }
 0x157   : > { %p17338_p10 = pnand %p17336_p12, %p17333_p2 }
 0x159   : > { %17341 = shalt.err (!%p17338_p10)
}
 0x15a   : > { %s17342_s10 = scalar_lea.vmem %s564_s2, 256  ;;  %p17350_p13 = scmp.lt.s32.totalorder %s564_s2, %s564_s2 }
 0x15b   : > { %p17343_p0 = scmp.ne.s32.totalorder %s564_s2, %s17342_s10  ;;  %p17351_p7 = scmp.lt.s32.totalorder %s17342_s10, %s17342_s10 }
 0x15d   : > { %p17345_p8 = pnand %p17343_p0, %p21720_p6  ;;  %p17352_p11 = por %p17351_p7, %p17350_p13 }
 0x15f   : > { %p17346_p5 = pneg %p17345_p8 }
 0x161   : > { %p17353_p9 = pnand %p17352_p11, %p17346_p5 }
 0x163   : > { %17356 = shalt.err (!%p17353_p9)
}
 0x164   : > { %16817 = dma.hbm_to_vmem [thread:$0]  (!%p21721_p1), %s21724_s19, 256, %s564_s2, [#allocation11]  }
 0x165   : > { %s21725_s26 = sld [smem:[#allocation64_spill]] }
 0x16b   : > { %s17357_s14 = scalar_lea.hbm %s21725_s26, 256 }
 0x16c   : > { %p17358_p4 = scmp.ne.s32.totalorder %s21725_s26, %s17357_s14  ;;  %p17364_p12 = scmp.lt.u32.totalorder %s17357_s14, %s21725_s26 }
 0x16e   : > { %p17360_p3 = pnand %p17358_p4, %p21720_p6 }
 0x170   : > { %p17361_p2 = pneg %p17360_p3 }
 0x172   : > { %p17366_p10 = pnand %p17364_p12, %p17361_p2 }
 0x174   : > { %17369 = shalt.err (!%p17366_p10)
}
 0x175   : > { %s17370_s16 = scalar_lea.vmem %s586_s11, 256  ;;  %p17378_p13 = scmp.lt.s32.totalorder %s586_s11, %s586_s11 }
 0x176   : > { %p17371_p0 = scmp.ne.s32.totalorder %s586_s11, %s17370_s16  ;;  %p17379_p7 = scmp.lt.s32.totalorder %s17370_s16, %s17370_s16 }
 0x178   : > { %p17373_p8 = pnand %p17371_p0, %p21720_p6  ;;  %p17380_p11 = por %p17379_p7, %p17378_p13 }
 0x17a   : > { %p17374_p5 = pneg %p17373_p8 }
 0x17c   : > { %p17381_p9 = pnand %p17380_p11, %p17374_p5 }
 0x17e   : > { %17384 = shalt.err (!%p17381_p9)
}
 0x17f   : > { %16823 = dma.hbm_to_vmem [thread:$0]  (!%p21721_p1), %s21725_s26, 256, %s586_s11, [#allocation14]  }
 0x180   : > { %s17711_s3 = smov [#allocation28]   ;;  %s21726_s14 = sld [smem:[#allocation68_spill]] }
 0x181   : > { %s612_s13 = sshll.u32 %s17711_s3, 4  ;;  %s21727_s9 = sld [smem:[#allocation74_spill]]  ;;  %s613_s13 = int_to_ptr.vmem [resolvable:$true] %s612_s13 }
 0x186   : > { %s18268_s30 = scalar_lea.hbm %s21726_s14, %s18130_s8 }
 0x187   : > { %s17385_s16 = scalar_lea.hbm %s21727_s9, 16 }
 0x188   : > { %p17386_p4 = scmp.ne.s32.totalorder %s21727_s9, %s17385_s16  ;;  %p17392_p12 = scmp.lt.u32.totalorder %s17385_s16, %s21727_s9 }
 0x18a   : > { %p17388_p3 = pnand %p17386_p4, %p21720_p6 }
 0x18c   : > { %p17389_p2 = pneg %p17388_p3 }
 0x18e   : > { %p17394_p10 = pnand %p17392_p12, %p17389_p2 }
 0x190   : > { %17397 = shalt.err (!%p17394_p10)
}
 0x191   : > { %s17398_s10 = scalar_lea.vmem %s613_s13, 16  ;;  %s17405_s3 = scalar_lea.vmem %s613_s13, 32 }
 0x192   : > { %p17399_p0 = scmp.ne.s32.totalorder %s613_s13, %s17398_s10  ;;  %p17406_p13 = scmp.lt.s32.totalorder %s613_s13, %s613_s13 }
 0x193   : > { %p17407_p7 = scmp.lt.s32.totalorder %s17405_s3, %s17398_s10 }
 0x194   : > { %p17401_p8 = pnand %p17399_p0, %p21720_p6 }
 0x195   : > { %p17408_p11 = por %p17407_p7, %p17406_p13 }
 0x196   : > { %p17402_p5 = pneg %p17401_p8 }
 0x198   : > { %p17409_p9 = pnand %p17408_p11, %p17402_p5 }
 0x19a   : > { %17412 = shalt.err (!%p17409_p9)
}
 0x19b   : > { %16829 = dma.hbm_to_vmem [thread:$0]  (!%p21721_p1), %s21727_s9, 16, %s613_s13, [#allocation29]  }
 0x19c   : > { %s17413_s18 = scalar_lea.hbm %s18110_s15, 16384  ;;  %p21728_p4 = scmp.ne.s32.totalorder %s21712_s24, 0 }
 0x19d   : > { %p17414_p6 = scmp.ne.s32.totalorder %s18110_s15, %s17413_s18  ;;  %s17418_s22 = scalar_lea.hbm %s21708_s12, 294912 }
 0x19e   : > { %p17419_p12 = scmp.lt.u32.totalorder %s18110_s15, %s21708_s12  ;;  %p17420_p10 = scmp.lt.u32.totalorder %s17418_s22, %s17413_s18 }
 0x19f   : > { %p17416_p3 = pnand %p17414_p6, %p21728_p4  ;;  %p17422_p8 = scmp.lt.u32.totalorder %s17413_s18, %s18110_s15 }
 0x1a0   : > { %p17421_p0 = por %p17420_p10, %p17419_p12 }
 0x1a1   : > { %p17417_p2 = pneg %p17416_p3 }
 0x1a2   : > { %p17423_p5 = por %p17422_p8, %p17421_p0 }
 0x1a4   : > { %p17424_p13 = pnand %p17423_p5, %p17417_p2 }
 0x1a6   : > { %17427 = shalt.err (!%p17424_p13)
}
 0x1a7   : > { %s17428_s13 = scalar_lea.vmem %s18118_s20, 16384  ;;  %s17712_s16 = smov [#allocation18]  }
 0x1a8   : > { %p17429_p1 = scmp.ne.s32.totalorder %s18118_s20, %s17428_s13  ;;  %s17433_s11 = sshll.u32 %s17712_s16, 4  ;;  %s17434_s11 = int_to_ptr.vmem [resolvable:$false] %s17433_s11 }
 0x1a9   : > { %s17435_s2 = scalar_lea.vmem %s17434_s11, 32768  ;;  %p17436_p9 = scmp.lt.s32.totalorder %s18118_s20, %s17434_s11 }
 0x1aa   : > { %p17431_p7 = pnand %p17429_p1, %p21728_p4  ;;  %p17437_p6 = scmp.lt.s32.totalorder %s17435_s2, %s17428_s13 }
 0x1ac   : > { %p17432_p11 = pneg %p17431_p7  ;;  %p17438_p3 = por %p17437_p6, %p17436_p9 }
 0x1ae   : > { %p17439_p12 = pnand %p17438_p3, %p17432_p11 }
 0x1b0   : > { %17442 = shalt.err (!%p17439_p12)
}
 0x1b1   : > { %p21729_p2 = scmp.ne.s32.totalorder %s21710_s27, 0  ;;  %s21730_s10 = scalar_lea.sflag [#allocation17], %s18030_s7 }
 0x1b2   : > { %s693_s3 = scalar_lea.vmem [#allocation21], %s18125_s4  ;;  %s21731_s28 = sld [smem:[#allocation70_spill]] }
 0x1b3   : > { %16836 = dma.hbm_to_vmem [thread:$0]  (!%p21729_p2), %s18110_s15, 16384, %s18118_s20, %s21730_s10, %s21714_s5, %s21714_s5, %s21713_s21  }
 0x1b4   : > { %s701_s19 = sshll.u32 %s693_s3, 4  ;;  %s17443_s29 = scalar_lea.hbm %s18268_s30, 256  ;;  %s702_s19 = int_to_ptr.vmem [resolvable:$true] %s701_s19 }
 0x1b5   : > { %p17444_p10 = scmp.ne.s32.totalorder %s18268_s30, %s17443_s29  ;;  %s17448_s16 = scalar_lea.hbm %s21726_s14, 4608 }
 0x1b6   : > { %p17449_p5 = scmp.lt.u32.totalorder %s18268_s30, %s21726_s14  ;;  %p17450_p13 = scmp.lt.u32.totalorder %s17448_s16, %s17443_s29 }
 0x1b7   : > { %p17446_p0 = pnand %p17444_p10, %p21728_p4  ;;  %p17452_p7 = scmp.lt.u32.totalorder %s17443_s29, %s18268_s30 }
 0x1b8   : > { %s21732_s17 = smov %s21731_s28  ;;  %s18319_s22 = scalar_lea.hbm %s21731_s28, %s18130_s8 }
 0x1b9   : > { %p17447_p8 = pneg %p17446_p0  ;;  %p17451_p1 = por %p17450_p13, %p17449_p5 }
 0x1bb   : > { %p17453_p11 = por %p17452_p7, %p17451_p1 }
 0x1bd   : > { %p17454_p9 = pnand %p17453_p11, %p17447_p8 }
 0x1bf   : > { %17457 = shalt.err (!%p17454_p9)
}
 0x1c0   : > { %s17458_s15 = scalar_lea.vmem %s702_s19, 256  ;;  %s17713_s20 = smov [#allocation21]  }
 0x1c1   : > { %p17459_p6 = scmp.ne.s32.totalorder %s702_s19, %s17458_s15  ;;  %s17463_s21 = sshll.u32 %s17713_s20, 4  ;;  %s17464_s21 = int_to_ptr.vmem [resolvable:$false] %s17463_s21 }
 0x1c2   : > { %s17465_s5 = scalar_lea.vmem %s17464_s21, 512  ;;  %p17466_p10 = scmp.lt.s32.totalorder %s702_s19, %s17464_s21 }
 0x1c3   : > { %p17461_p3 = pnand %p17459_p6, %p21728_p4  ;;  %p17467_p0 = scmp.lt.s32.totalorder %s17465_s5, %s17458_s15 }
 0x1c5   : > { %p17462_p12 = pneg %p17461_p3  ;;  %p17468_p2 = por %p17467_p0, %p17466_p10 }
 0x1c7   : > { %p17469_p5 = pnand %p17468_p2, %p17462_p12 }
 0x1c9   : > { %17472 = shalt.err (!%p17469_p5)
}
 0x1ca   : > { %p21733_p13 = scmp.ne.s32.totalorder %s21710_s27, 0  ;;  %s21734_s10 = scalar_lea.sflag [#allocation20], %s18030_s7 }
 0x1cb   : > { %s731_s3 = scalar_lea.vmem [#allocation24], %s18125_s4  ;;  %s17473_s18 = scalar_lea.hbm %s18319_s22, 256 }
 0x1cc   : > { %16842 = dma.hbm_to_vmem [thread:$0]  (!%p21733_p13), %s18268_s30, 256, %s702_s19, %s21734_s10  }
 0x1cd   : > { %s739_s6 = sshll.u32 %s731_s3, 4  ;;  %p17474_p8 = scmp.ne.s32.totalorder %s18319_s22, %s17473_s18  ;;  %s740_s6 = int_to_ptr.vmem [resolvable:$true] %s739_s6 }
 0x1ce   : > { %s17478_s23 = scalar_lea.hbm %s21732_s17, 4608  ;;  %p17479_p7 = scmp.lt.u32.totalorder %s18319_s22, %s21732_s17 }
 0x1cf   : > { %p17476_p2 = pnand %p17474_p8, %p21728_p4  ;;  %p17480_p11 = scmp.lt.u32.totalorder %s17478_s23, %s17473_s18 }
 0x1d0   : > { %p17482_p6 = scmp.lt.u32.totalorder %s17473_s18, %s18319_s22 }
 0x1d1   : > { %p17477_p1 = pneg %p17476_p2  ;;  %p17481_p9 = por %p17480_p11, %p17479_p7 }
 0x1d3   : > { %p17483_p3 = por %p17482_p6, %p17481_p9 }
 0x1d5   : > { %p17484_p12 = pnand %p17483_p3, %p17477_p1 }
 0x1d7   : > { %17487 = shalt.err (!%p17484_p12)
}
 0x1d8   : > { %s17488_s30 = scalar_lea.vmem %s740_s6, 256  ;;  %s17714_s19 = smov [#allocation24]  }
 0x1d9   : > { %p17489_p10 = scmp.ne.s32.totalorder %s740_s6, %s17488_s30  ;;  %s17493_s11 = sshll.u32 %s17714_s19, 4  ;;  %s17494_s11 = int_to_ptr.vmem [resolvable:$false] %s17493_s11 }
 0x1da   : > { %s17495_s2 = scalar_lea.vmem %s17494_s11, 512  ;;  %p17496_p8 = scmp.lt.s32.totalorder %s740_s6, %s17494_s11 }
 0x1db   : > { %p17491_p0 = pnand %p17489_p10, %p21728_p4  ;;  %p17497_p2 = scmp.lt.s32.totalorder %s17495_s2, %s17488_s30 }
 0x1dd   : > { %p17492_p5 = pneg %p17491_p0  ;;  %p17498_p13 = por %p17497_p2, %p17496_p8 }
 0x1df   : > { %p17499_p7 = pnand %p17498_p13, %p17492_p5 }
 0x1e1   : > { %17502 = shalt.err (!%p17499_p7)
}
 0x1e2   : > { %p21735_p11 = scmp.ne.s32.totalorder %s21710_s27, 0  ;;  %s21736_s15 = scalar_lea.sflag [#allocation23], %s18030_s7 }
 0x1e3   : > { %s21737_s5 = sld [smem:[#allocation71_spill]]  ;;  %s750_s3 = scalar_lea.vmem [#allocation25], %s18125_s4 }
 0x1e4   : > { %16848 = dma.hbm_to_vmem [thread:$0]  (!%p21735_p11), %s18319_s22, 256, %s740_s6, %s21736_s15  }
 0x1e5   : > { %s758_s18 = sshll.u32 %s750_s3, 4  ;;  %s747_s28 = scalar_lea.sflag [#allocation26], %s18030_s7  ;;  %s759_s18 = int_to_ptr.vmem [resolvable:$true] %s758_s18 }
 0x1e9   : > { %s18364_s10 = scalar_lea.hbm %s21737_s5, %s18130_s8  ;;  %s17508_s6 = scalar_lea.hbm %s21737_s5, 4608 }
 0x1ea   : > { %s17503_s29 = scalar_lea.hbm %s18364_s10, 256  ;;  %p17509_p6 = scmp.lt.u32.totalorder %s18364_s10, %s21737_s5 }
 0x1eb   : > { %p17504_p13 = scmp.ne.s32.totalorder %s18364_s10, %s17503_s29  ;;  %p17510_p3 = scmp.lt.u32.totalorder %s17508_s6, %s17503_s29 }
 0x1ec   : > { %p17512_p10 = scmp.lt.u32.totalorder %s17503_s29, %s18364_s10 }
 0x1ed   : > { %p17506_p1 = pnand %p17504_p13, %p21728_p4  ;;  %p17511_p12 = por %p17510_p3, %p17509_p6 }
 0x1ef   : > { %p17507_p9 = pneg %p17506_p1  ;;  %p17513_p0 = por %p17512_p10, %p17511_p12 }
 0x1f1   : > { %p17514_p5 = pnand %p17513_p0, %p17507_p9 }
 0x1f3   : > { %17517 = shalt.err (!%p17514_p5)
}
 0x1f4   : > { %s17518_s7 = scalar_lea.vmem %s759_s18, 256  ;;  %s17715_s4 = smov [#allocation25]  }
 0x1f5   : > { %p17519_p8 = scmp.ne.s32.totalorder %s759_s18, %s17518_s7  ;;  %s17523_s16 = sshll.u32 %s17715_s4, 4  ;;  %s17524_s16 = int_to_ptr.vmem [resolvable:$false] %s17523_s16 }
 0x1f6   : > { %s17525_s30 = scalar_lea.vmem %s17524_s16, 512  ;;  %p17526_p13 = scmp.lt.s32.totalorder %s759_s18, %s17524_s16 }
 0x1f7   : > { %p17521_p2 = pnand %p17519_p8, %p21728_p4  ;;  %p17527_p1 = scmp.lt.s32.totalorder %s17525_s30, %s17518_s7 }
 0x1f9   : > { %p17522_p7 = pneg %p17521_p2  ;;  %p17528_p11 = por %p17527_p1, %p17526_p13 }
 0x1fb   : > { %p17529_p3 = pnand %p17528_p11, %p17522_p7 }
 0x1fd   : > { %17532 = shalt.err (!%p17529_p3)
}
 0x1fe   : > { %p21738_p6 = scmp.ne.s32.totalorder %s21710_s27, 0  ;;  %s21739_s19 = sld [smem:[#allocation51_spill]] }
 0x200   : > { %16851 = dma.hbm_to_vmem [thread:$0]  (!%p21738_p6), %s18364_s10, 256, %s759_s18, %s747_s28  }
 0x204   : > { %p21740_p9 = scmp.ne.s32.totalorder %s21739_s19, 0 }
 0x205   : > { %p21741_p12 = scmp.eq.s32.totalorder (!%p21740_p9), %s17877_s25, 0 }
 0x206   : > { %767 = sbr.rel (%p21740_p9) target bundleno = 3705 (0xe79), region = 92 }
 0x20d   : > { %17604 = dma.done.wait (%p21741_p12), [#allocation5], 32   ;;  %p21742_p4 = pmov %p21741_p12 }
 0x20f   : > { %17606 = vsyncadd (%p21742_p4), [#allocation5], 4294967264  ;;  %p21743_p10 = pmov %p21742_p4 }
 0x210   : > { %p21744_p0 = pmov %p21742_p4 }
 0x211   : > { %17608 = dma.done.wait (%p21743_p10), [#allocation8], 16640  }
 0x212   : > { %17610 = vsyncadd (%p21744_p0), [#allocation8], 4294950656  ;;  %p21745_p11 = pmov %p21744_p0 }
 0x213   : > { %p21746_p5 = pmov %p21744_p0 }
 0x214   : > { %17612 = dma.done.wait (%p21745_p11), [#allocation11], 16640  }
 0x215   : > { %17614 = vsyncadd (%p21746_p5), [#allocation11], 4294950656  ;;  %p21747_p8 = pmov %p21744_p0 }
 0x216   : > { %p21748_p2 = pmov %p21744_p0 }
 0x217   : > { %17616 = dma.done.wait (%p21747_p8), [#allocation14], 512  }
 0x218   : > { %17618 = vsyncadd (%p21748_p2), [#allocation14], 4294966784  ;;  %s797_s27 = sand.u32 1, %s17877_s25   ;;  %s799_s24 = sand.u32 1, %s17669_s0  }
 0x219   : > { %s14460_s11 = sshll.u32 %s799_s24, 13  ;;  %s798_s2 = scalar_lea.sflag [#allocation17], %s797_s27 }
 0x21a   : > { %s18405_s15 = scalar_lea.vmem [#allocation16], %s14460_s11  ;;  %p21749_p7 = scmp.ne.s32.totalorder %s21698_s1, 0 }
 0x21c   : > { %17620 = dma.done.wait (%p21749_p7), %s798_s2, 131072  }
 0x21d   : > { %17622 = vsyncadd (%p21749_p7), %s798_s2, 4294836224  ;;  %s21750_s20 = sld [smem:[#allocation43_spill]]  ;;  %s21751_s21 = sld [smem:[#allocation56_spill]] }
 0x223   : > { %s808_s10 = sand.u32 1, %s21750_s20   ;;  %p21752_p13 = scmp.ne.s32.totalorder %s21751_s21, 0 }
 0x224   : > { %s14461_s3 = sshll.u32 %s808_s10, 10 }
 0x225   : > { %s18412_s18 = scalar_lea.vmem [#allocation18], %s14461_s3 }
 0x226   : > { %17624 = dma.done.wait (%p21752_p13), %s798_s2, 16384  }
 0x227   : > { %17626 = vsyncadd (%p21752_p13), %s798_s2, 4294950912  ;;  %s816_s28 = scalar_lea.sflag [#allocation20], %s797_s27  ;;  %s18418_s29 = scalar_lea.vmem [#allocation19], %s14461_s3 }
 0x228   : > { %17628 = dma.done.wait (%p21752_p13), %s816_s28, 16640  }
 0x229   : > { %17630 = vsyncadd (%p21752_p13), %s816_s28, 4294950656  ;;  %s18424_s1 = sshll.u32 %s808_s10, 4  ;;  %s834_s22 = scalar_lea.sflag [#allocation23], %s797_s27 }
 0x22a   : > { %s828_s23 = scalar_lea.vmem [#allocation21], %s18424_s1  ;;  %s837_s6 = scalar_lea.vmem [#allocation22], %s18424_s1 }
 0x22b   : > { %17632 = dma.done.wait (%p21752_p13), %s834_s22, 512  }
 0x22c   : > { %17634 = vsyncadd (%p21752_p13), %s834_s22, 4294966784  ;;  %s846_s13 = scalar_lea.vmem [#allocation24], %s18424_s1  ;;  %s852_s8 = scalar_lea.sflag [#allocation26], %s797_s27 }
 0x22d   : > { %s855_s7 = scalar_lea.vmem [#allocation25], %s18424_s1 }
 0x22e   : > { %17636 = dma.done.wait (%p21752_p13), %s852_s8, 256  }
 0x22f   : > { %17638 = vsyncadd (%p21752_p13), %s852_s8, 4294967040  ;;  %p21753_p1 = pmov %p21744_p0 }
 0x230   : > { %p21754_p3 = pmov %p21744_p0 }
 0x231   : > { %17640 = dma.done.wait (%p21753_p1), [#allocation26], 1024  }
 0x232   : > { %17642 = vsyncadd (%p21754_p3), [#allocation26], 4294966272  ;;  %p21755_p6 = pmov %p21744_p0 }
 0x233   : > { %p21756_p9 = pmov %p21744_p0 }
 0x234   : > { %17644 = dma.done.wait (%p21755_p6), [#allocation29], 16  }
 0x235   : > { %17646 = vsyncadd (%p21756_p9), [#allocation29], 4294967280  ;;  %s21757_s4 = sld [smem:[#allocation47_spill]]  ;;  %s21758_s16 = sld [smem:[#allocation46_spill]] }
 0x23b   : > { %p942_p12 = scmp.eq.s32.totalorder %s21757_s4, 0  ;;  %p943_p4 = scmp.eq.s32.totalorder %s21758_s16, 0 }
 0x23d   : > { %p944_p10 = pnand %p943_p4, %p942_p12 }
 0x23e   : > { %v950_v0 = vld [vmem:[#allocation7 + $0x8] sm:$0xff] (!%p944_p10)  ;;  %v952_v2 = vld [vmem:[#allocation7 + $0x18] sm:$0xff] (!%p944_p10)  ;;  %v949_v5 = vld [vmem:[#allocation7] sm:$0xff] (!%p944_p10)  ;;  %v17716_v7 = vmov (!%p944_p10), 0.0   ;;  %vm1161_vm0 = vcmask (!%p944_p10), 523264   ;;  %s21759_s27 = sld [smem:[#allocation58_spill]] (!%p944_p10) }
 0x23f   : > { %947 = sbr.rel (%p944_p10) target bundleno = 1331 (0x533), region = 160  ;;  %v966_v1 = vld [vmem:[#allocation7 + $0x88] sm:$0xff] (!%p944_p10)  ;;  %v968_v4 = vld [vmem:[#allocation7 + $0x98] sm:$0xff] (!%p944_p10)  ;;  %v965_v6 = vld [vmem:[#allocation7 + $0x80] sm:$0xff] (!%p944_p10)  ;;  %1229 = vmatprep.mubr.f32.mxu0 (!%p944_p10), %v17716_v7  ;;  %1300 = vmatprep.mubr.f32.mxu1 (!%p944_p10), %v17716_v7  ;;  %vm2553_vm1 = vcmask (!%p944_p10), 1041408  }
 0x240   : > { %v15872_v3 = vpack.c.bf16 (!%p944_p10), %v966_v1, %v950_v0  ;;  %v15888_v8 = vpack.c.bf16 (!%p944_p10), %v968_v4, %v952_v2  ;;  %v15874_v9 = vpack.c.bf16 (!%p944_p10), %v965_v6, %v949_v5  ;;  %v951_v10 = vld [vmem:[#allocation7 + $0x10] sm:$0xff] (!%p944_p10)  ;;  %v982_v12 = vld [vmem:[#allocation7 + $0x108] sm:$0xff] (!%p944_p10)  ;;  %v984_v15 = vld [vmem:[#allocation7 + $0x118] sm:$0xff] (!%p944_p10) }
 0x241   : > { %v967_v11 = vld [vmem:[#allocation7 + $0x90] sm:$0xff] (!%p944_p10)  ;;  %v998_v14 = vld [vmem:[#allocation7 + $0x188] sm:$0xff] (!%p944_p10)  ;;  %v1000_v16 = vld [vmem:[#allocation7 + $0x198] sm:$0xff] (!%p944_p10) }
 0x242   : > { %15873 = vmatprep.subr.bf16.mxu0 (!%p944_p10), %v15872_v3  ;;  %v15890_v13 = vpack.c.bf16 (!%p944_p10), %v967_v11, %v951_v10  ;;  %15889 = vmatprep.subr.bf16.mxu1 (!%p944_p10), %v15888_v8  ;;  %v15876_v17 = vpack.c.bf16 (!%p944_p10), %v998_v14, %v982_v12  ;;  %v15892_v18 = vpack.c.bf16 (!%p944_p10), %v1000_v16, %v984_v15  ;;  %v981_v19 = vld [vmem:[#allocation7 + $0x100] sm:$0xff] (!%p944_p10)  ;;  %v983_v21 = vld [vmem:[#allocation7 + $0x110] sm:$0xff] (!%p944_p10)  ;;  %v1014_v24 = vld [vmem:[#allocation7 + $0x208] sm:$0xff] (!%p944_p10) }
 0x243   : > { %15875 = vmatpush1.bf16.msra.mxu0 (!%p944_p10), %v15874_v9  ;;  %v997_v20 = vld [vmem:[#allocation7 + $0x180] sm:$0xff] (!%p944_p10)  ;;  %v999_v23 = vld [vmem:[#allocation7 + $0x190] sm:$0xff] (!%p944_p10)  ;;  %v1030_v25 = vld [vmem:[#allocation7 + $0x288] sm:$0xff] (!%p944_p10) }
 0x244   : > { %15891 = vmatpush1.bf16.msra.mxu1 (!%p944_p10), %v15890_v13  ;;  %v15878_v22 = vpack.c.bf16 (!%p944_p10), %v997_v20, %v981_v19  ;;  %15877 = vmatprep.subr.bf16.mxu0 (!%p944_p10), %v15876_v17  ;;  %v15894_v26 = vpack.c.bf16 (!%p944_p10), %v999_v23, %v983_v21  ;;  %v15880_v27 = vpack.c.bf16 (!%p944_p10), %v1030_v25, %v1014_v24  ;;  %v1016_v28 = vld [vmem:[#allocation7 + $0x218] sm:$0xff] (!%p944_p10)  ;;  %v1013_v30 = vld [vmem:[#allocation7 + $0x200] sm:$0xff] (!%p944_p10)  ;;  %v1015_v33 = vld [vmem:[#allocation7 + $0x210] sm:$0xff] (!%p944_p10) }
 0x245   : > { %15893 = vmatprep.subr.bf16.mxu1 (!%p944_p10), %v15892_v18  ;;  %v1032_v29 = vld [vmem:[#allocation7 + $0x298] sm:$0xff] (!%p944_p10)  ;;  %v1029_v32 = vld [vmem:[#allocation7 + $0x280] sm:$0xff] (!%p944_p10)  ;;  %v1031_v34 = vld [vmem:[#allocation7 + $0x290] sm:$0xff] (!%p944_p10) }
 0x246   : > { %v15896_v31 = vpack.c.bf16 %v1032_v29, %v1016_v28  ;;  %v15882_v35 = vpack.c.bf16 %v1029_v32, %v1013_v30  ;;  %v1046_v36 = vld [vmem:[#allocation7 + $0x308] sm:$0xff]  ;;  %v1048_v38 = vld [vmem:[#allocation7 + $0x318] sm:$0xff]  ;;  %v15898_v39 = vpack.c.bf16 %v1031_v34, %v1015_v33  ;;  %v1045_v42 = vld [vmem:[#allocation7 + $0x300] sm:$0xff] }
 0x247   : > { %15879 = vmatpush1.bf16.msra.mxu0 %v15878_v22  ;;  %v1062_v37 = vld [vmem:[#allocation7 + $0x388] sm:$0xff]  ;;  %v1064_v41 = vld [vmem:[#allocation7 + $0x398] sm:$0xff]  ;;  %v1061_v43 = vld [vmem:[#allocation7 + $0x380] sm:$0xff] }
 0x248   : > { %15895 = vmatpush1.bf16.msra.mxu1 %v15894_v26  ;;  %15881 = vmatprep.subr.bf16.mxu0 %v15880_v27  ;;  %v15884_v40 = vpack.c.bf16 %v1062_v37, %v1046_v36  ;;  %v15900_v44 = vpack.c.bf16 %v1064_v41, %v1048_v38  ;;  %v1047_v45 = vld [vmem:[#allocation7 + $0x310] sm:$0xff]  ;;  %v954_v47 = vld [vmem:[#allocation7 + $0x28] sm:$0xff]  ;;  %v956_v49 = vld [vmem:[#allocation7 + $0x38] sm:$0xff]  ;;  %v15886_v50 = vpack.c.bf16 %v1061_v43, %v1045_v42 }
 0x249   : > { %15897 = vmatprep.subr.bf16.mxu1 %v15896_v31  ;;  %v1063_v46 = vld [vmem:[#allocation7 + $0x390] sm:$0xff]  ;;  %v970_v48 = vld [vmem:[#allocation7 + $0xa8] sm:$0xff]  ;;  %v972_v51 = vld [vmem:[#allocation7 + $0xb8] sm:$0xff] }
 0x24a   : > { %v15902_v52 = vpack.c.bf16 %v1063_v46, %v1047_v45  ;;  %v15904_v53 = vpack.c.bf16 %v970_v48, %v954_v47  ;;  %v953_v54 = vld [vmem:[#allocation7 + $0x20] sm:$0xff]  ;;  %v955_v56 = vld [vmem:[#allocation7 + $0x30] sm:$0xff]  ;;  %v15920_v57 = vpack.c.bf16 %v972_v51, %v956_v49  ;;  %v986_v59 = vld [vmem:[#allocation7 + $0x128] sm:$0xff] }
 0x24b   : > { %15883 = vmatpush1.bf16.msra.mxu0 %v15882_v35  ;;  %v969_v55 = vld [vmem:[#allocation7 + $0xa0] sm:$0xff]  ;;  %v971_v58 = vld [vmem:[#allocation7 + $0xb0] sm:$0xff]  ;;  %v1002_v60 = vld [vmem:[#allocation7 + $0x1a8] sm:$0xff] }
 0x24c   : > { %15899 = vmatpush1.bf16.msra.mxu1 %v15898_v39  ;;  %15885 = vmatprep.subr.bf16.mxu0 %v15884_v40  ;;  %v988_v61 = vld [vmem:[#allocation7 + $0x138] sm:$0xff]  ;;  %v15906_v0 = vpack.c.bf16 %v969_v55, %v953_v54  ;;  %v15922_v1 = vpack.c.bf16 %v971_v58, %v955_v56  ;;  %v15908_v2 = vpack.c.bf16 %v1002_v60, %v986_v59  ;;  %v985_v3 = vld [vmem:[#allocation7 + $0x120] sm:$0xff]  ;;  %v987_v5 = vld [vmem:[#allocation7 + $0x130] sm:$0xff] }
 0x24d   : > { %15901 = vmatprep.subr.bf16.mxu1 %v15900_v44  ;;  %v1004_v62 = vld [vmem:[#allocation7 + $0x1b8] sm:$0xff]  ;;  %v1001_v4 = vld [vmem:[#allocation7 + $0x1a0] sm:$0xff]  ;;  %v1003_v8 = vld [vmem:[#allocation7 + $0x1b0] sm:$0xff] }
 0x24e   : > { %v18450_v63 = vld [vmem:[#allocation4] sm:$0x3]  ;;  %v15924_v6 = vpack.c.bf16 %v1004_v62, %v988_v61  ;;  %v1018_v9 = vld [vmem:[#allocation7 + $0x228] sm:$0xff]  ;;  %v15910_v13 = vpack.c.bf16 %v1001_v4, %v985_v3  ;;  %v15926_v14 = vpack.c.bf16 %v1003_v8, %v987_v5  ;;  %v1017_v16 = vld [vmem:[#allocation7 + $0x220] sm:$0xff] }
 0x24f   : > { %15887 = vmatpush1.bf16.msra.mxu0 %v15886_v50  ;;  %v1034_v10 = vld [vmem:[#allocation7 + $0x2a8] sm:$0xff]  ;;  %v1020_v11 = vld [vmem:[#allocation7 + $0x238] sm:$0xff]  ;;  %v1033_v17 = vld [vmem:[#allocation7 + $0x2a0] sm:$0xff] }
 0x250   : > { %15903 = vmatpush1.bf16.msra.mxu1 %v15902_v52  ;;  %15905 = vmatprep.subr.bf16.mxu0 %v15904_v53  ;;  %v1036_v12 = vld [vmem:[#allocation7 + $0x2b8] sm:$0xff]  ;;  %v15912_v15 = vpack.c.bf16 %v1034_v10, %v1018_v9  ;;  %v1019_v18 = vld [vmem:[#allocation7 + $0x230] sm:$0xff]  ;;  %v1050_v21 = vld [vmem:[#allocation7 + $0x328] sm:$0xff]  ;;  %v15914_v25 = vpack.c.bf16 %v1033_v17, %v1017_v16 }
 0x251   : > { %15921 = vmatprep.subr.bf16.mxu1 %v15920_v57  ;;  %v15928_v19 = vpack.c.bf16 %v1036_v12, %v1020_v11  ;;  %v1035_v20 = vld [vmem:[#allocation7 + $0x2b0] sm:$0xff]  ;;  %v1066_v22 = vld [vmem:[#allocation7 + $0x3a8] sm:$0xff]  ;;  %v1052_v23 = vld [vmem:[#allocation7 + $0x338] sm:$0xff] }
 0x252   : > { %14469 = vmatmul.mubr.msk.f32.vlgmr.msra.gmra.mrb[0].mxu0 %vm1161_vm0, %v18450_v63  ;;  %v1068_v24 = vld [vmem:[#allocation7 + $0x3b8] sm:$0xff]  ;;  %v15930_v26 = vpack.c.bf16 %v1035_v20, %v1019_v18  ;;  %v15916_v27 = vpack.c.bf16 %v1066_v22, %v1050_v21  ;;  %v1049_v28 = vld [vmem:[#allocation7 + $0x320] sm:$0xff]  ;;  %v1051_v30 = vld [vmem:[#allocation7 + $0x330] sm:$0xff] }
 0x253   : > { %14470 = vmatmul.mubr.msk.f32.vlgmr.msra.gmra.mrb[0].mxu1 %vm1161_vm0, %v18450_v63  ;;  %15907 = vmatpush1.bf16.msra.mxu0 %v15906_v0  ;;  %v1065_v29 = vld [vmem:[#allocation7 + $0x3a0] sm:$0xff]  ;;  %v15932_v31 = vpack.c.bf16 %v1068_v24, %v1052_v23  ;;  %v1067_v32 = vld [vmem:[#allocation7 + $0x3b0] sm:$0xff]  ;;  %v958_v33 = vld [vmem:[#allocation7 + $0x48] sm:$0xff] }
 0x254   : > { %15923 = vmatpush1.bf16.msra.mxu1 %v15922_v1  ;;  %15909 = vmatprep.subr.bf16.mxu0 %v15908_v2  ;;  %v974_v34 = vld [vmem:[#allocation7 + $0xc8] sm:$0xff]  ;;  %v960_v35 = vld [vmem:[#allocation7 + $0x58] sm:$0xff]  ;;  %v15918_v37 = vpack.c.bf16 %v1065_v29, %v1049_v28  ;;  %v15934_v38 = vpack.c.bf16 %v1067_v32, %v1051_v30  ;;  %v957_v40 = vld [vmem:[#allocation7 + $0x40] sm:$0xff] }
 0x255   : > { %15925 = vmatprep.subr.bf16.mxu1 %v15924_v6  ;;  %1371 = vmatprep.mubr.f32.mxu0 %v17716_v7  ;;  %v976_v36 = vld [vmem:[#allocation7 + $0xd8] sm:$0xff]  ;;  %v15936_v39 = vpack.c.bf16 %v974_v34, %v958_v33  ;;  %v973_v41 = vld [vmem:[#allocation7 + $0xc0] sm:$0xff]  ;;  %v959_v42 = vld [vmem:[#allocation7 + $0x50] sm:$0xff] }
 0x256   : > { %1442 = vmatprep.mubr.f32.mxu1 %v17716_v7  ;;  %v15952_v43 = vpack.c.bf16 %v976_v36, %v960_v35  ;;  %v975_v44 = vld [vmem:[#allocation7 + $0xd0] sm:$0xff]  ;;  %v990_v45 = vld [vmem:[#allocation7 + $0x148] sm:$0xff]  ;;  %v992_v47 = vld [vmem:[#allocation7 + $0x158] sm:$0xff]  ;;  %v15938_v49 = vpack.c.bf16 %v973_v41, %v957_v40 }
 0x257   : > { %15911 = vmatpush1.bf16.msra.mxu0 %v15910_v13  ;;  %v1006_v46 = vld [vmem:[#allocation7 + $0x1c8] sm:$0xff]  ;;  %v1008_v48 = vld [vmem:[#allocation7 + $0x1d8] sm:$0xff]  ;;  %v15954_v50 = vpack.c.bf16 %v975_v44, %v959_v42  ;;  %v989_v52 = vld [vmem:[#allocation7 + $0x140] sm:$0xff] }
 0x258   : > { %15927 = vmatpush1.bf16.msra.mxu1 %v15926_v14  ;;  %15913 = vmatprep.subr.bf16.mxu0 %v15912_v15  ;;  %v15940_v51 = vpack.c.bf16 %v1006_v46, %v990_v45  ;;  %v1005_v53 = vld [vmem:[#allocation7 + $0x1c0] sm:$0xff]  ;;  %v991_v54 = vld [vmem:[#allocation7 + $0x150] sm:$0xff]  ;;  %v15956_v55 = vpack.c.bf16 %v1008_v48, %v992_v47  ;;  %v1022_v57 = vld [vmem:[#allocation7 + $0x248] sm:$0xff] }
 0x259   : > { %15929 = vmatprep.subr.bf16.mxu1 %v15928_v19  ;;  %v1007_v56 = vld [vmem:[#allocation7 + $0x1d0] sm:$0xff]  ;;  %v1038_v58 = vld [vmem:[#allocation7 + $0x2c8] sm:$0xff]  ;;  %v1024_v59 = vld [vmem:[#allocation7 + $0x258] sm:$0xff]  ;;  %v15942_v61 = vpack.c.bf16 %v1005_v53, %v989_v52 }
 0x25a   : > { %v1040_v60 = vld [vmem:[#allocation7 + $0x2d8] sm:$0xff]  ;;  %v15958_v62 = vpack.c.bf16 %v1007_v56, %v991_v54  ;;  %v15944_v0 = vpack.c.bf16 %v1038_v58, %v1022_v57  ;;  %v1021_v1 = vld [vmem:[#allocation7 + $0x240] sm:$0xff]  ;;  %v1023_v3 = vld [vmem:[#allocation7 + $0x250] sm:$0xff] }
 0x25b   : > { %15915 = vmatpush1.bf16.msra.mxu0 %v15914_v25  ;;  %v1037_v2 = vld [vmem:[#allocation7 + $0x2c0] sm:$0xff]  ;;  %v15960_v4 = vpack.c.bf16 %v1040_v60, %v1024_v59  ;;  %v1039_v5 = vld [vmem:[#allocation7 + $0x2d0] sm:$0xff]  ;;  %v1054_v6 = vld [vmem:[#allocation7 + $0x348] sm:$0xff] }
 0x25c   : > { %15931 = vmatpush1.bf16.msra.mxu1 %v15930_v26  ;;  %15917 = vmatprep.subr.bf16.mxu0 %v15916_v27  ;;  %v1070_v8 = vld [vmem:[#allocation7 + $0x3c8] sm:$0xff]  ;;  %v1056_v9 = vld [vmem:[#allocation7 + $0x358] sm:$0xff]  ;;  %v15946_v11 = vpack.c.bf16 %v1037_v2, %v1021_v1  ;;  %v15962_v12 = vpack.c.bf16 %v1039_v5, %v1023_v3  ;;  %v1053_v14 = vld [vmem:[#allocation7 + $0x340] sm:$0xff] }
 0x25d   : > { %15933 = vmatprep.subr.bf16.mxu1 %v15932_v31  ;;  %v1072_v10 = vld [vmem:[#allocation7 + $0x3d8] sm:$0xff]  ;;  %v15948_v13 = vpack.c.bf16 %v1070_v8, %v1054_v6  ;;  %v1069_v15 = vld [vmem:[#allocation7 + $0x3c0] sm:$0xff]  ;;  %v1055_v16 = vld [vmem:[#allocation7 + $0x350] sm:$0xff] }
 0x25e   : > { %v15964_v17 = vpack.c.bf16 %v1072_v10, %v1056_v9  ;;  %v1071_v18 = vld [vmem:[#allocation7 + $0x3d0] sm:$0xff]  ;;  %v962_v19 = vld [vmem:[#allocation7 + $0x68] sm:$0xff]  ;;  %v964_v21 = vld [vmem:[#allocation7 + $0x78] sm:$0xff]  ;;  %v15950_v23 = vpack.c.bf16 %v1069_v15, %v1053_v14 }
 0x25f   : > { %15919 = vmatpush1.bf16.msra.mxu0 %v15918_v37  ;;  %v978_v20 = vld [vmem:[#allocation7 + $0xe8] sm:$0xff]  ;;  %v980_v22 = vld [vmem:[#allocation7 + $0xf8] sm:$0xff]  ;;  %v15966_v24 = vpack.c.bf16 %v1071_v18, %v1055_v16  ;;  %v961_v26 = vld [vmem:[#allocation7 + $0x60] sm:$0xff] }
 0x260   : > { %15935 = vmatpush1.bf16.msra.mxu1 %v15934_v38  ;;  %15937 = vmatprep.subr.bf16.mxu0 %v15936_v39  ;;  %v15968_v25 = vpack.c.bf16 %v978_v20, %v962_v19  ;;  %v977_v27 = vld [vmem:[#allocation7 + $0xe0] sm:$0xff]  ;;  %v963_v28 = vld [vmem:[#allocation7 + $0x70] sm:$0xff]  ;;  %v15984_v29 = vpack.c.bf16 %v980_v22, %v964_v21  ;;  %v994_v31 = vld [vmem:[#allocation7 + $0x168] sm:$0xff] }
 0x261   : > { %15953 = vmatprep.subr.bf16.mxu1 %v15952_v43  ;;  %v979_v30 = vld [vmem:[#allocation7 + $0xf0] sm:$0xff]  ;;  %v1010_v32 = vld [vmem:[#allocation7 + $0x1e8] sm:$0xff]  ;;  %v996_v33 = vld [vmem:[#allocation7 + $0x178] sm:$0xff]  ;;  %v15970_v35 = vpack.c.bf16 %v977_v27, %v961_v26 }
 0x262   : > { %14471 = vmatmul.mubr.msk.f32.vlgmr.msra.gmra.mrb[2].mxu0 %vm1161_vm0, %v18450_v63  ;;  %v1012_v34 = vld [vmem:[#allocation7 + $0x1f8] sm:$0xff]  ;;  %v15986_v36 = vpack.c.bf16 %v979_v30, %v963_v28  ;;  %v15972_v37 = vpack.c.bf16 %v1010_v32, %v994_v31  ;;  %v993_v38 = vld [vmem:[#allocation7 + $0x160] sm:$0xff]  ;;  %v995_v40 = vld [vmem:[#allocation7 + $0x170] sm:$0xff] }
 0x263   : > { %14472 = vmatmul.mubr.msk.f32.vlgmr.msra.gmra.mrb[2].mxu1 %vm1161_vm0, %v18450_v63  ;;  %15939 = vmatpush1.bf16.msra.mxu0 %v15938_v49  ;;  %v1009_v39 = vld [vmem:[#allocation7 + $0x1e0] sm:$0xff]  ;;  %v15988_v41 = vpack.c.bf16 %v1012_v34, %v996_v33  ;;  %v1011_v42 = vld [vmem:[#allocation7 + $0x1f0] sm:$0xff]  ;;  %v1026_v43 = vld [vmem:[#allocation7 + $0x268] sm:$0xff] }
 0x264   : > { %15955 = vmatpush1.bf16.msra.mxu1 %v15954_v50  ;;  %15941 = vmatprep.subr.bf16.mxu0 %v15940_v51  ;;  %v1042_v44 = vld [vmem:[#allocation7 + $0x2e8] sm:$0xff]  ;;  %v1028_v45 = vld [vmem:[#allocation7 + $0x278] sm:$0xff]  ;;  %v15974_v47 = vpack.c.bf16 %v1009_v39, %v993_v38  ;;  %v15990_v48 = vpack.c.bf16 %v1011_v42, %v995_v40  ;;  %v1025_v50 = vld [vmem:[#allocation7 + $0x260] sm:$0xff] }
 0x265   : > { %15957 = vmatprep.subr.bf16.mxu1 %v15956_v55  ;;  %1513 = vmatprep.mubr.f32.mxu0 %v17716_v7  ;;  %v1044_v46 = vld [vmem:[#allocation7 + $0x2f8] sm:$0xff]  ;;  %v15976_v49 = vpack.c.bf16 %v1042_v44, %v1026_v43  ;;  %v1041_v51 = vld [vmem:[#allocation7 + $0x2e0] sm:$0xff]  ;;  %v1027_v52 = vld [vmem:[#allocation7 + $0x270] sm:$0xff] }
 0x266   : > { %1584 = vmatprep.mubr.f32.mxu1 %v17716_v7  ;;  %v15992_v53 = vpack.c.bf16 %v1044_v46, %v1028_v45  ;;  %v1043_v54 = vld [vmem:[#allocation7 + $0x2f0] sm:$0xff]  ;;  %v1058_v55 = vld [vmem:[#allocation7 + $0x368] sm:$0xff]  ;;  %v1060_v57 = vld [vmem:[#allocation7 + $0x378] sm:$0xff]  ;;  %v15978_v59 = vpack.c.bf16 %v1041_v51, %v1025_v50 }
 0x267   : > { %15943 = vmatpush1.bf16.msra.mxu0 %v15942_v61  ;;  %v1074_v56 = vld [vmem:[#allocation7 + $0x3e8] sm:$0xff]  ;;  %v1076_v58 = vld [vmem:[#allocation7 + $0x3f8] sm:$0xff]  ;;  %v15994_v60 = vpack.c.bf16 %v1043_v54, %v1027_v52  ;;  %v1059_v1 = vld [vmem:[#allocation7 + $0x370] sm:$0xff] }
 0x268   : > { %15959 = vmatpush1.bf16.msra.mxu1 %v15958_v62  ;;  %15945 = vmatprep.subr.bf16.mxu0 %v15944_v0  ;;  %v15980_v61 = vpack.c.bf16 %v1074_v56, %v1058_v55  ;;  %v1057_v62 = vld [vmem:[#allocation7 + $0x360] sm:$0xff]  ;;  %v15996_v2 = vpack.c.bf16 %v1076_v58, %v1060_v57  ;;  %v1075_v3 = vld [vmem:[#allocation7 + $0x3f0] sm:$0xff]  ;;  %v1751_v5 = vld [vmem:[#allocation10 + $0x88] sm:$0xff] }
 0x269   : > { %15961 = vmatprep.subr.bf16.mxu1 %v15960_v4  ;;  %v1073_v0 = vld [vmem:[#allocation7 + $0x3e0] sm:$0xff]  ;;  %v1735_v4 = vld [vmem:[#allocation10 + $0x8] sm:$0xff]  ;;  %v1737_v6 = vld [vmem:[#allocation10 + $0x18] sm:$0xff]  ;;  %v15998_v10 = vpack.c.bf16 %v1075_v3, %v1059_v1 }
 0x26a   : > { %v1753_v8 = vld [vmem:[#allocation10 + $0x98] sm:$0xff]  ;;  %v15982_v9 = vpack.c.bf16 %v1073_v0, %v1057_v62  ;;  %v1736_v14 = vld [vmem:[#allocation10 + $0x10] sm:$0xff]  ;;  %v1783_v18 = vld [vmem:[#allocation10 + $0x188] sm:$0xff] }
 0x26b   : > { %15947 = vmatpush1.bf16.msra.mxu0 %v15946_v11  ;;  %v16000_v11 = vpack.c.bf16 %v1751_v5, %v1735_v4  ;;  %v16016_v15 = vpack.c.bf16 %v1753_v8, %v1737_v6  ;;  %v1752_v16 = vld [vmem:[#allocation10 + $0x90] sm:$0xff]  ;;  %v1769_v19 = vld [vmem:[#allocation10 + $0x118] sm:$0xff]  ;;  %v1815_v30 = vld [vmem:[#allocation10 + $0x288] sm:$0xff] }
 0x26c   : > { %15963 = vmatpush1.bf16.msra.mxu1 %v15962_v12  ;;  %15949 = vmatprep.subr.bf16.mxu0 %v15948_v13  ;;  %v1734_v12 = vld [vmem:[#allocation10] sm:$0xff]  ;;  %v1785_v20 = vld [vmem:[#allocation10 + $0x198] sm:$0xff]  ;;  %v16018_v22 = vpack.c.bf16 %v1752_v16, %v1736_v14  ;;  %v1768_v26 = vld [vmem:[#allocation10 + $0x110] sm:$0xff] }
 0x26d   : > { %15965 = vmatprep.subr.bf16.mxu1 %v15964_v17  ;;  %v1750_v13 = vld [vmem:[#allocation10 + $0x80] sm:$0xff]  ;;  %v1767_v17 = vld [vmem:[#allocation10 + $0x108] sm:$0xff]  ;;  %v16020_v27 = vpack.c.bf16 %v1785_v20, %v1769_v19  ;;  %v1784_v28 = vld [vmem:[#allocation10 + $0x190] sm:$0xff] }
 0x26e   : > { %v16002_v21 = vpack.c.bf16 %v1750_v13, %v1734_v12  ;;  %v1801_v31 = vld [vmem:[#allocation10 + $0x218] sm:$0xff]  ;;  %v16022_v34 = vpack.c.bf16 %v1784_v28, %v1768_v26  ;;  %v1800_v38 = vld [vmem:[#allocation10 + $0x210] sm:$0xff]  ;;  %v1847_v42 = vld [vmem:[#allocation10 + $0x388] sm:$0xff] }
 0x26f   : > { %15951 = vmatpush1.bf16.msra.mxu0 %v15950_v23  ;;  %v16004_v23 = vpack.c.bf16 %v1783_v18, %v1767_v17  ;;  %v1817_v32 = vld [vmem:[#allocation10 + $0x298] sm:$0xff]  ;;  %v1816_v40 = vld [vmem:[#allocation10 + $0x290] sm:$0xff]  ;;  %v1739_v52 = vld [vmem:[#allocation10 + $0x28] sm:$0xff] }
 0x270   : > { %15967 = vmatpush1.bf16.msra.mxu1 %v15966_v24  ;;  %15969 = vmatprep.subr.bf16.mxu0 %v15968_v25  ;;  %v1766_v24 = vld [vmem:[#allocation10 + $0x100] sm:$0xff]  ;;  %v16024_v39 = vpack.c.bf16 %v1817_v32, %v1801_v31  ;;  %v1833_v43 = vld [vmem:[#allocation10 + $0x318] sm:$0xff]  ;;  %v16026_v45 = vpack.c.bf16 %v1816_v40, %v1800_v38  ;;  %v1848_v51 = vld [vmem:[#allocation10 + $0x390] sm:$0xff] }
 0x271   : > { %15985 = vmatprep.subr.bf16.mxu1 %v15984_v29  ;;  %v1782_v25 = vld [vmem:[#allocation10 + $0x180] sm:$0xff]  ;;  %v1799_v29 = vld [vmem:[#allocation10 + $0x208] sm:$0xff]  ;;  %v1849_v44 = vld [vmem:[#allocation10 + $0x398] sm:$0xff] }
 0x272   : > { %14473 = vmatmul.mubr.msk.f32.vlgmr.msra.gmra.mrb[4].mxu0 %vm1161_vm0, %v18450_v63  ;;  %v16006_v33 = vpack.c.bf16 %v1782_v25, %v1766_v24  ;;  %v16028_v50 = vpack.c.bf16 %v1849_v44, %v1833_v43  ;;  %v1741_v54 = vld [vmem:[#allocation10 + $0x38] sm:$0xff]  ;;  %v1756_v0 = vld [vmem:[#allocation10 + $0xb0] sm:$0xff]  ;;  %v1771_v1 = vld [vmem:[#allocation10 + $0x128] sm:$0xff] }
 0x273   : > { %14474 = vmatmul.mubr.msk.f32.vlgmr.msra.gmra.mrb[4].mxu1 %vm1161_vm0, %v18450_v63  ;;  %15971 = vmatpush1.bf16.msra.mxu0 %v15970_v35  ;;  %v16008_v35 = vpack.c.bf16 %v1815_v30, %v1799_v29  ;;  %v1757_v55 = vld [vmem:[#allocation10 + $0xb8] sm:$0xff]  ;;  %v18479_v5 = vld [vmem:[%s21759_s27] sm:$0x3]  ;;  %v1772_v12 = vld [vmem:[#allocation10 + $0x130] sm:$0xff] }
 0x274   : > { %15987 = vmatpush1.bf16.msra.mxu1 %v15986_v36  ;;  %15973 = vmatprep.subr.bf16.mxu0 %v15972_v37  ;;  %v1798_v36 = vld [vmem:[#allocation10 + $0x200] sm:$0xff]  ;;  %v16048_v62 = vpack.c.bf16 %v1757_v55, %v1741_v54  ;;  %v1773_v3 = vld [vmem:[#allocation10 + $0x138] sm:$0xff]  ;;  %v1788_v14 = vld [vmem:[#allocation10 + $0x1b0] sm:$0xff] }
 0x275   : > { %15989 = vmatprep.subr.bf16.mxu1 %v15988_v41  ;;  %1655 = vmatprep.mubr.f32.mxu0 %v17716_v7  ;;  %v1814_v37 = vld [vmem:[#allocation10 + $0x280] sm:$0xff]  ;;  %v1831_v41 = vld [vmem:[#allocation10 + $0x308] sm:$0xff]  ;;  %v1789_v4 = vld [vmem:[#allocation10 + $0x1b8] sm:$0xff]  ;;  %v16054_v20 = vpack.c.bf16 %v1788_v14, %v1772_v12 }
 0x276   : > { %1726 = vmatprep.mubr.f32.mxu1 %v17716_v7  ;;  %v16012_v46 = vpack.c.bf16 %v1847_v42, %v1831_v41  ;;  %v16052_v13 = vpack.c.bf16 %v1789_v4, %v1773_v3  ;;  %v1819_v16 = vld [vmem:[#allocation10 + $0x2a8] sm:$0xff]  ;;  %v1805_v17 = vld [vmem:[#allocation10 + $0x238] sm:$0xff]  ;;  %v1804_v24 = vld [vmem:[#allocation10 + $0x230] sm:$0xff] }
 0x277   : > { %15975 = vmatpush1.bf16.msra.mxu0 %v15974_v47  ;;  %v1830_v47 = vld [vmem:[#allocation10 + $0x300] sm:$0xff]  ;;  %v1821_v18 = vld [vmem:[#allocation10 + $0x2b8] sm:$0xff]  ;;  %v1820_v26 = vld [vmem:[#allocation10 + $0x2b0] sm:$0xff] }
 0x278   : > { %15991 = vmatpush1.bf16.msra.mxu1 %v15990_v48  ;;  %15977 = vmatprep.subr.bf16.mxu0 %v15976_v49  ;;  %v1846_v48 = vld [vmem:[#allocation10 + $0x380] sm:$0xff]  ;;  %v1832_v49 = vld [vmem:[#allocation10 + $0x310] sm:$0xff]  ;;  %v16056_v25 = vpack.c.bf16 %v1821_v18, %v1805_v17  ;;  %v1851_v28 = vld [vmem:[#allocation10 + $0x3a8] sm:$0xff]  ;;  %v16058_v32 = vpack.c.bf16 %v1820_v26, %v1804_v24 }
 0x279   : > { %15993 = vmatprep.subr.bf16.mxu1 %v15992_v53  ;;  %v1755_v53 = vld [vmem:[#allocation10 + $0xa8] sm:$0xff]  ;;  %v16014_v56 = vpack.c.bf16 %v1846_v48, %v1830_v47  ;;  %v16030_v57 = vpack.c.bf16 %v1848_v51, %v1832_v49  ;;  %v1837_v29 = vld [vmem:[#allocation10 + $0x338] sm:$0xff]  ;;  %v1852_v38 = vld [vmem:[#allocation10 + $0x3b0] sm:$0xff] }
 0x27a   : > { %v16032_v58 = vpack.c.bf16 %v1755_v53, %v1739_v52  ;;  %v1853_v30 = vld [vmem:[#allocation10 + $0x3b8] sm:$0xff]  ;;  %v1759_v40 = vld [vmem:[#allocation10 + $0xc8] sm:$0xff]  ;;  %v1744_v47 = vld [vmem:[#allocation10 + $0x50] sm:$0xff] }
 0x27b   : > { %15979 = vmatpush1.bf16.msra.mxu0 %v15978_v59  ;;  %v1738_v59 = vld [vmem:[#allocation10 + $0x20] sm:$0xff]  ;;  %v1745_v41 = vld [vmem:[#allocation10 + $0x58] sm:$0xff]  ;;  %v1760_v49 = vld [vmem:[#allocation10 + $0xd0] sm:$0xff] }
 0x27c   : > { %15995 = vmatpush1.bf16.msra.mxu1 %v15994_v60  ;;  %15981 = vmatprep.subr.bf16.mxu0 %v15980_v61  ;;  %v1754_v60 = vld [vmem:[#allocation10 + $0xa0] sm:$0xff]  ;;  %v1740_v61 = vld [vmem:[#allocation10 + $0x30] sm:$0xff]  ;;  %v1761_v42 = vld [vmem:[#allocation10 + $0xd8] sm:$0xff]  ;;  %v16082_v55 = vpack.c.bf16 %v1760_v49, %v1744_v47 }
 0x27d   : > { %15997 = vmatprep.subr.bf16.mxu1 %v15996_v2  ;;  %v1787_v2 = vld [vmem:[#allocation10 + $0x1a8] sm:$0xff]  ;;  %v16034_v6 = vpack.c.bf16 %v1754_v60, %v1738_v59  ;;  %v16050_v8 = vpack.c.bf16 %v1756_v0, %v1740_v61  ;;  %v16080_v48 = vpack.c.bf16 %v1761_v42, %v1745_v41  ;;  %v1777_v52 = vld [vmem:[#allocation10 + $0x158] sm:$0xff]  ;;  %v1776_v59 = vld [vmem:[#allocation10 + $0x150] sm:$0xff] }
 0x27e   : > { %v1791_v51 = vld [vmem:[#allocation10 + $0x1c8] sm:$0xff]  ;;  %v1793_v53 = vld [vmem:[#allocation10 + $0x1d8] sm:$0xff]  ;;  %v1792_v61 = vld [vmem:[#allocation10 + $0x1d0] sm:$0xff] }
 0x27f   : > { %15983 = vmatpush1.bf16.msra.mxu0 %v15982_v9  ;;  %v16036_v9 = vpack.c.bf16 %v1787_v2, %v1771_v1  ;;  %v16084_v60 = vpack.c.bf16 %v1793_v53, %v1777_v52  ;;  %v1823_v0 = vld [vmem:[#allocation10 + $0x2c8] sm:$0xff]  ;;  %v1809_v1 = vld [vmem:[#allocation10 + $0x258] sm:$0xff]  ;;  %v16086_v4 = vpack.c.bf16 %v1792_v61, %v1776_v59  ;;  %v1824_v12 = vld [vmem:[#allocation10 + $0x2d0] sm:$0xff] }
 0x280   : > { %15999 = vmatpush1.bf16.msra.mxu1 %v15998_v10  ;;  %16001 = vmatprep.subr.bf16.mxu0 %v16000_v11  ;;  %v1770_v10 = vld [vmem:[#allocation10 + $0x120] sm:$0xff]  ;;  %v1825_v2 = vld [vmem:[#allocation10 + $0x2d8] sm:$0xff]  ;;  %v1855_v14 = vld [vmem:[#allocation10 + $0x3c8] sm:$0xff] }
 0x281   : > { %16017 = vmatprep.subr.bf16.mxu1 %v16016_v15  ;;  %v1786_v11 = vld [vmem:[#allocation10 + $0x1a0] sm:$0xff]  ;;  %v1803_v15 = vld [vmem:[#allocation10 + $0x228] sm:$0xff]  ;;  %v1856_v24 = vld [vmem:[#allocation10 + $0x3d0] sm:$0xff] }
 0x282   : > { %14475 = vmatmul.mubr.msk.f32.vlgmr.msra.gmra.mrb[6].mxu0 %vm1161_vm0, %v18450_v63  ;;  %v16038_v19 = vpack.c.bf16 %v1786_v11, %v1770_v10  ;;  %v1808_v10 = vld [vmem:[#allocation10 + $0x250] sm:$0xff]  ;;  %v16088_v11 = vpack.c.bf16 %v1825_v2, %v1809_v1  ;;  %v1763_v26 = vld [vmem:[#allocation10 + $0xe8] sm:$0xff] }
 0x283   : > { %14476 = vmatmul.mubr.msk.f32.vlgmr.msra.gmra.mrb[6].mxu1 %vm1161_vm0, %v18450_v63  ;;  %16003 = vmatpush1.bf16.msra.mxu0 %v16002_v21  ;;  %v16010_v63 = vpack.c.bf16 %v1814_v37, %v1798_v36  ;;  %v16040_v21 = vpack.c.bf16 %v1819_v16, %v1803_v15  ;;  %v1836_v36 = vld [vmem:[#allocation10 + $0x330] sm:$0xff]  ;;  %v16060_v37 = vpack.c.bf16 %v1853_v30, %v1837_v29  ;;  %v1841_v15 = vld [vmem:[#allocation10 + $0x358] sm:$0xff]  ;;  %v1827_v49 = vld [vmem:[#allocation10 + $0x2e8] sm:$0xff] }
 0x284   : > { %16019 = vmatpush1.bf16.msra.mxu1 %v16018_v22  ;;  %16005 = vmatprep.subr.bf16.mxu0 %v16004_v23  ;;  %v1802_v22 = vld [vmem:[#allocation10 + $0x220] sm:$0xff]  ;;  %v16062_v44 = vpack.c.bf16 %v1852_v38, %v1836_v36  ;;  %v1857_v16 = vld [vmem:[#allocation10 + $0x3d8] sm:$0xff]  ;;  %v16090_v18 = vpack.c.bf16 %v1824_v12, %v1808_v10  ;;  %v1764_v36 = vld [vmem:[#allocation10 + $0xf0] sm:$0xff] }
 0x285   : > { %16021 = vmatprep.subr.bf16.mxu1 %v16020_v27  ;;  %2013 = vmatprep.mubr.f32.mxu0 %v17716_v7  ;;  %v1818_v23 = vld [vmem:[#allocation10 + $0x2a0] sm:$0xff]  ;;  %v1835_v27 = vld [vmem:[#allocation10 + $0x328] sm:$0xff]  ;;  %v1796_v47 = vld [vmem:[#allocation10 + $0x1f0] sm:$0xff] }
 0x286   : > { %2084 = vmatprep.mubr.f32.mxu1 %v17716_v7  ;;  %v16042_v31 = vpack.c.bf16 %v1818_v23, %v1802_v22  ;;  %v1840_v22 = vld [vmem:[#allocation10 + $0x350] sm:$0xff]  ;;  %v16092_v23 = vpack.c.bf16 %v1857_v16, %v1841_v15  ;;  %v1795_v38 = vld [vmem:[#allocation10 + $0x1e8] sm:$0xff] }
 0x287   : > { %16007 = vmatpush1.bf16.msra.mxu0 %v16006_v33  ;;  %v16044_v33 = vpack.c.bf16 %v1851_v28, %v1835_v27  ;;  %v1749_v27 = vld [vmem:[#allocation10 + $0x78] sm:$0xff]  ;;  %v16094_v30 = vpack.c.bf16 %v1856_v24, %v1840_v22  ;;  %v1828_v59 = vld [vmem:[#allocation10 + $0x2f0] sm:$0xff]  ;;  %v1859_v61 = vld [vmem:[#allocation10 + $0x3e8] sm:$0xff] }
 0x288   : > { %16023 = vmatpush1.bf16.msra.mxu1 %v16022_v34  ;;  %16009 = vmatprep.subr.bf16.mxu0 %v16008_v35  ;;  %v1834_v34 = vld [vmem:[#allocation10 + $0x320] sm:$0xff]  ;;  %v1765_v28 = vld [vmem:[#allocation10 + $0xf8] sm:$0xff]  ;;  %v1860_v10 = vld [vmem:[#allocation10 + $0x3f0] sm:$0xff] }
 0x289   : > { %16025 = vmatprep.subr.bf16.mxu1 %v16024_v39  ;;  %v1850_v35 = vld [vmem:[#allocation10 + $0x3a0] sm:$0xff]  ;;  %v1743_v39 = vld [vmem:[#allocation10 + $0x48] sm:$0xff] }
 0x28a   : > { %v16046_v43 = vpack.c.bf16 %v1850_v35, %v1834_v34  ;;  %v1748_v34 = vld [vmem:[#allocation10 + $0x70] sm:$0xff]  ;;  %v16112_v35 = vpack.c.bf16 %v1765_v28, %v1749_v27  ;;  %v1081_v27 = vlaneseq }
 0x28b   : > { %16011 = vmatpush1.bf16.msra.mxu0 %v16010_v63  ;;  %v16064_v63 = vpack.c.bf16 %v1759_v40, %v1743_v39  ;;  %v1781_v39 = vld [vmem:[#allocation10 + $0x178] sm:$0xff]  ;;  %v16114_v42 = vpack.c.bf16 %v1764_v36, %v1748_v34 }
 0x28c   : > { %16027 = vmatpush1.bf16.msra.mxu1 %v16026_v45  ;;  %16013 = vmatprep.subr.bf16.mxu0 %v16012_v46  ;;  %v1742_v45 = vld [vmem:[#allocation10 + $0x40] sm:$0xff]  ;;  %v1797_v40 = vld [vmem:[#allocation10 + $0x1f8] sm:$0xff]  ;;  %v18527_v28 = vshrl.u32 %v1081_v27, 7 }
 0x28d   : > { %16029 = vmatprep.subr.bf16.mxu1 %v16028_v50  ;;  %v1758_v46 = vld [vmem:[#allocation10 + $0xc0] sm:$0xff]  ;;  %v1775_v50 = vld [vmem:[#allocation10 + $0x148] sm:$0xff] }
 0x28e   : > { %v16066_v54 = vpack.c.bf16 %v1758_v46, %v1742_v45  ;;  %v1780_v45 = vld [vmem:[#allocation10 + $0x170] sm:$0xff]  ;;  %v16116_v46 = vpack.c.bf16 %v1797_v40, %v1781_v39  ;;  %v18541_v34 = vsub.s32 3, %v18527_v28 }
 0x28f   : > { %16015 = vmatpush1.bf16.msra.mxu0 %v16014_v56  ;;  %v16068_v56 = vpack.c.bf16 %v1791_v51, %v1775_v50  ;;  %v1813_v50 = vld [vmem:[#allocation10 + $0x278] sm:$0xff]  ;;  %v16118_v53 = vpack.c.bf16 %v1796_v47, %v1780_v45 }
 0x290   : > { %16031 = vmatpush1.bf16.msra.mxu1 %v16030_v57  ;;  %16033 = vmatprep.subr.bf16.mxu0 %v16032_v58  ;;  %v1774_v57 = vld [vmem:[#allocation10 + $0x140] sm:$0xff]  ;;  %v1829_v51 = vld [vmem:[#allocation10 + $0x2f8] sm:$0xff] }
 0x291   : > { %16049 = vmatprep.subr.bf16.mxu1 %v16048_v62  ;;  %v1790_v58 = vld [vmem:[#allocation10 + $0x1c0] sm:$0xff]  ;;  %v1807_v62 = vld [vmem:[#allocation10 + $0x248] sm:$0xff] }
 0x292   : > { %14477 = vmatmul.mubr.msk.f32.vlgmr.msra.gmra.mrb[8].mxu0 %vm1161_vm0, %v18479_v5  ;;  %v16070_v3 = vpack.c.bf16 %v1790_v58, %v1774_v57  ;;  %v1812_v57 = vld [vmem:[#allocation10 + $0x270] sm:$0xff]  ;;  %v16120_v58 = vpack.c.bf16 %v1829_v51, %v1813_v50 }
 0x293   : > { %14478 = vmatmul.mubr.msk.f32.vlgmr.msra.gmra.mrb[8].mxu1 %vm1161_vm0, %v18479_v5  ;;  %16035 = vmatpush1.bf16.msra.mxu0 %v16034_v6  ;;  %v16072_v6 = vpack.c.bf16 %v1823_v0, %v1807_v62  ;;  %v1845_v62 = vld [vmem:[#allocation10 + $0x378] sm:$0xff]  ;;  %v16122_v2 = vpack.c.bf16 %v1828_v59, %v1812_v57 }
 0x294   : > { %16051 = vmatpush1.bf16.msra.mxu1 %v16050_v8  ;;  %16037 = vmatprep.subr.bf16.mxu0 %v16036_v9  ;;  %v1806_v8 = vld [vmem:[#allocation10 + $0x240] sm:$0xff]  ;;  %v1861_v0 = vld [vmem:[#allocation10 + $0x3f8] sm:$0xff] }
 0x295   : > { %16053 = vmatprep.subr.bf16.mxu1 %v16052_v13  ;;  %2155 = vmatprep.mubr.f32.mxu0 %v17716_v7  ;;  %v1822_v9 = vld [vmem:[#allocation10 + $0x2c0] sm:$0xff]  ;;  %v1839_v13 = vld [vmem:[#allocation10 + $0x348] sm:$0xff] }
 0x296   : > { %2226 = vmatprep.mubr.f32.mxu1 %v17716_v7  ;;  %v16074_v17 = vpack.c.bf16 %v1822_v9, %v1806_v8  ;;  %v16124_v8 = vpack.c.bf16 %v1861_v0, %v1845_v62  ;;  %v1844_v9 = vld [vmem:[#allocation10 + $0x370] sm:$0xff]  ;;  %v18564_v62 = vsub.s32 4, %v18527_v28  ;;  %v18567_v0 = vsub.s32 5, %v18527_v28 }
 0x297   : > { %16039 = vmatpush1.bf16.msra.mxu0 %v16038_v19  ;;  %v16076_v19 = vpack.c.bf16 %v1855_v14, %v1839_v13  ;;  %v16126_v12 = vpack.c.bf16 %v1860_v10, %v1844_v9 }
 0x298   : > { %16055 = vmatpush1.bf16.msra.mxu1 %v16054_v20  ;;  %16041 = vmatprep.subr.bf16.mxu0 %v16040_v21  ;;  %v1838_v20 = vld [vmem:[#allocation10 + $0x340] sm:$0xff] }
 0x299   : > { %16057 = vmatprep.subr.bf16.mxu1 %v16056_v25  ;;  %v1854_v21 = vld [vmem:[#allocation10 + $0x3c0] sm:$0xff]  ;;  %v1747_v25 = vld [vmem:[#allocation10 + $0x68] sm:$0xff] }
 0x29a   : > { %v16078_v29 = vpack.c.bf16 %v1854_v21, %v1838_v20 }
 0x29b   : > { %16043 = vmatpush1.bf16.msra.mxu0 %v16042_v31  ;;  %v16096_v31 = vpack.c.bf16 %v1763_v26, %v1747_v25 }
 0x29c   : > { %16059 = vmatpush1.bf16.msra.mxu1 %v16058_v32  ;;  %16045 = vmatprep.subr.bf16.mxu0 %v16044_v33  ;;  %v1746_v32 = vld [vmem:[#allocation10 + $0x60] sm:$0xff] }
 0x29d   : > { %16061 = vmatprep.subr.bf16.mxu1 %v16060_v37  ;;  %v1762_v33 = vld [vmem:[#allocation10 + $0xe0] sm:$0xff]  ;;  %v1779_v37 = vld [vmem:[#allocation10 + $0x168] sm:$0xff] }
 0x29e   : > { %v16098_v41 = vpack.c.bf16 %v1762_v33, %v1746_v32  ;;  %v18535_v32 = vsub.s32 1, %v18527_v28  ;;  %v18538_v33 = vsub.s32 2, %v18527_v28 }
 0x29f   : > { %16047 = vmatpush1.bf16.msra.mxu0 %v16046_v43  ;;  %v16100_v43 = vpack.c.bf16 %v1795_v38, %v1779_v37 }
 0x2a0   : > { %16063 = vmatpush1.bf16.msra.mxu1 %v16062_v44  ;;  %16065 = vmatprep.subr.bf16.mxu0 %v16064_v63  ;;  %v1778_v44 = vld [vmem:[#allocation10 + $0x160] sm:$0xff] }
 0x2a1   : > { %16081 = vmatprep.subr.bf16.mxu1 %v16080_v48  ;;  %v1794_v63 = vld [vmem:[#allocation10 + $0x1e0] sm:$0xff]  ;;  %v1811_v48 = vld [vmem:[#allocation10 + $0x268] sm:$0xff] }
 0x2a2   : > { %14479 = vmatmul.mubr.msk.f32.vlgmr.msra.gmra.mrb[10].mxu0 %vm1161_vm0, %v18479_v5  ;;  %v16102_v52 = vpack.c.bf16 %v1794_v63, %v1778_v44 }
 0x2a3   : > { %14480 = vmatmul.mubr.msk.f32.vlgmr.msra.gmra.mrb[10].mxu1 %vm1161_vm0, %v18479_v5  ;;  %16067 = vmatpush1.bf16.msra.mxu0 %v16066_v54  ;;  %v16104_v54 = vpack.c.bf16 %v1827_v49, %v1811_v48 }
 0x2a4   : > { %16083 = vmatpush1.bf16.msra.mxu1 %v16082_v55  ;;  %16069 = vmatprep.subr.bf16.mxu0 %v16068_v56  ;;  %v1810_v55 = vld [vmem:[#allocation10 + $0x260] sm:$0xff] }
 0x2a5   : > { %16085 = vmatprep.subr.bf16.mxu1 %v16084_v60  ;;  %2297 = vmatprep.mubr.f32.mxu0 %v17716_v7  ;;  %v1826_v56 = vld [vmem:[#allocation10 + $0x2e0] sm:$0xff]  ;;  %v1843_v60 = vld [vmem:[#allocation10 + $0x368] sm:$0xff] }
 0x2a6   : > { %2368 = vmatprep.mubr.f32.mxu1 %v17716_v7  ;;  %v16106_v1 = vpack.c.bf16 %v1826_v56, %v1810_v55 }
 0x2a7   : > { %16071 = vmatpush1.bf16.msra.mxu0 %v16070_v3  ;;  %v16108_v3 = vpack.c.bf16 %v1859_v61, %v1843_v60 }
 0x2a8   : > { %16087 = vmatpush1.bf16.msra.mxu1 %v16086_v4  ;;  %16073 = vmatprep.subr.bf16.mxu0 %v16072_v6  ;;  %v1842_v4 = vld [vmem:[#allocation10 + $0x360] sm:$0xff] }
 0x2a9   : > { %16089 = vmatprep.subr.bf16.mxu1 %v16088_v11  ;;  %v1858_v6 = vld [vmem:[#allocation10 + $0x3e0] sm:$0xff] }
 0x2aa   : > { %v16110_v11 = vpack.c.bf16 %v1858_v6, %v1842_v4 }
 0x2ab   : > { %16075 = vmatpush1.bf16.msra.mxu0 %v16074_v17 }
 0x2ac   : > { %16091 = vmatpush1.bf16.msra.mxu1 %v16090_v18  ;;  %16077 = vmatprep.subr.bf16.mxu0 %v16076_v19 }
 0x2ad   : > { %16093 = vmatprep.subr.bf16.mxu1 %v16092_v23 }
 0x2af   : > { %16079 = vmatpush1.bf16.msra.mxu0 %v16078_v29  ;;  %v1862_v29 = vld [vmem:[#allocation12] sm:$0xff] }
 0x2b0   : > { %16095 = vmatpush1.bf16.msra.mxu1 %v16094_v30  ;;  %16097 = vmatprep.subr.bf16.mxu0 %v16096_v31  ;;  %v18530_v30 = vsub.s32 0, %v18527_v28  ;;  %v18532_v31 = vld [vmem:[#allocation9] sm:$0xff]  ;;  %v1877_v36 = vrot.slane %v1862_v29, %v18538_v33  ;;  %v1873_v37 = vrot.slane %v1862_v29, %v18535_v32  ;;  %v1881_v39 = vrot.slane %v1862_v29, %v18541_v34 }
 0x2b1   : > { %16113 = vmatprep.subr.bf16.mxu1 %v16112_v35  ;;  %v1088_v40 = vrot.slane %v18532_v31, %v18535_v32  ;;  %v1889_v6 = vrot.slane %v1862_v29, %v18567_v0 }
 0x2b2   : > { %14481 = vmatmul.mubr.msk.f32.vlgmr.msra.gmra.mrb[12].mxu0 %vm1161_vm0, %v18479_v5  ;;  %v1869_v35 = vrot.slane %v1862_v29, %v18530_v30  ;;  %v1084_v38 = vrot.slane %v18532_v31, %v18530_v30 }
 0x2b3   : > { %14482 = vmatmul.mubr.msk.f32.vlgmr.msra.gmra.mrb[12].mxu1 %vm1161_vm0, %v18479_v5  ;;  %16099 = vmatpush1.bf16.msra.mxu0 %v16098_v41  ;;  %v1092_v41 = vrot.slane %v18532_v31, %v18538_v33 }
 0x2b4   : > { %16115 = vmatpush1.bf16.msra.mxu1 %v16114_v42  ;;  %16101 = vmatprep.subr.bf16.mxu0 %v16100_v43  ;;  %v1096_v43 = vrot.slane %v18532_v31, %v18541_v34 }
 0x2b5   : > { %16117 = vmatprep.subr.bf16.mxu1 %v16116_v46  ;;  %2439 = vmatprep.mubr.f32.mxu0 %v17716_v7 }
 0x2b6   : > { %2510 = vmatprep.mubr.f32.mxu1 %v17716_v7 }
 0x2b7   : > { %16103 = vmatpush1.bf16.msra.mxu0 %v16102_v52 }
 0x2b8   : > { %16119 = vmatpush1.bf16.msra.mxu1 %v16118_v53  ;;  %16105 = vmatprep.subr.bf16.mxu0 %v16104_v54 }
 0x2b9   : > { %16121 = vmatprep.subr.bf16.mxu1 %v16120_v58 }
 0x2bb   : > { %16107 = vmatpush1.bf16.msra.mxu0 %v16106_v1  ;;  %v18570_v1 = vsub.s32 6, %v18527_v28 }
 0x2bc   : > { %16123 = vmatpush1.bf16.msra.mxu1 %v16122_v2  ;;  %16109 = vmatprep.subr.bf16.mxu0 %v16108_v3  ;;  %v18573_v2 = vsub.s32 7, %v18527_v28  ;;  %v1885_v3 = vrot.slane %v1862_v29, %v18564_v62 }
 0x2bd   : > { %16125 = vmatprep.subr.bf16.mxu1 %v16124_v8  ;;  %v1893_v4 = vrot.slane %v1862_v29, %v18570_v1  ;;  %v1100_v8 = vrot.slane %v18532_v31, %v18564_v62 }
 0x2bf   : > { %16111 = vmatpush1.bf16.msra.mxu0 %v16110_v11  ;;  %v1897_v11 = vrot.slane %v1862_v29, %v18573_v2 }
 0x2c0   : > { %16127 = vmatpush1.bf16.msra.mxu1 %v16126_v12  ;;  %v1104_v12 = vrot.slane %v18532_v31, %v18567_v0 }
 0x2c2   : > { %14483 = vmatmul.mubr.msk.f32.vlgmr.msra.gmra.mrb[14].mxu0 %vm1161_vm0, %v18479_v5 }
 0x2c3   : > { %14484 = vmatmul.mubr.msk.f32.vlgmr.msra.gmra.mrb[14].mxu1 %vm1161_vm0, %v18479_v5 }
 0x325   : > { %v1231_v7 = vpop.f32.mrb[0].mxu0 }
 0x326   : > { %v1233_v13 = vpop.f32.mrb[1].mxu0  ;;  %v1302_v14 = vpop.f32.mrb[0].mxu1  ;;  %v1232_v49 = vadd.f32 %v1231_v7, %v1084_v38  ;;  %v1108_v7 = vrot.slane %v18532_v31, %v18570_v1 }
 0x327   : > { %v1304_v15 = vpop.f32.mrb[1].mxu1  ;;  %v1234_v52 = vadd.f32 %v1233_v13, %v1088_v40  ;;  %v1303_v53 = vadd.f32 %v1302_v14, %v1092_v41  ;;  %v1112_v14 = vrot.slane %v18532_v31, %v18573_v2 }
 0x328   : > { %v1305_v56 = vadd.f32 %v1304_v15, %v1096_v43 }
 0x335   : > { %v18503_v16 = vpop.f32.mrb[2].mxu0 }
 0x336   : > { %v18505_v17 = vpop.f32.mrb[3].mxu0  ;;  %v18507_v18 = vpop.f32.mrb[2].mxu1  ;;  %v1374_v40 = vadd.f32 %v18503_v16, %v1100_v8 }
 0x337   : > { %v18509_v19 = vpop.f32.mrb[3].mxu1  ;;  %v1445_v43 = vadd.f32 %v18507_v18, %v1108_v7 }
 0x345   : > { %v18511_v20 = vpop.f32.mrb[4].mxu0 }
 0x346   : > { %v18513_v21 = vpop.f32.mrb[5].mxu0  ;;  %v18515_v22 = vpop.f32.mrb[4].mxu1 }
 0x347   : > { %v18517_v23 = vpop.f32.mrb[5].mxu1 }
 0x355   : > { %v18519_v5 = vpop.f32.mrb[6].mxu0 }
 0x356   : > { %v18521_v24 = vpop.f32.mrb[7].mxu0  ;;  %v18523_v25 = vpop.f32.mrb[6].mxu1 }
 0x357   : > { %v18525_v26 = vpop.f32.mrb[7].mxu1 }
 0x365   : > { %v2015_v42 = vpop.f32.mrb[8].mxu0 }
 0x366   : > { %v2016_v44 = vadd.f32 %v2015_v42, %v1869_v35  ;;  %v2086_v63 = vpop.f32.mrb[8].mxu1  ;;  %v2017_v45 = vpop.f32.mrb[9].mxu0  ;;  %v1376_v42 = vadd.f32 %v18505_v17, %v1104_v12 }
 0x367   : > { %v2087_v46 = vadd.f32 %v2086_v63, %v1877_v36  ;;  %v2018_v47 = vadd.f32 %v2017_v45, %v1873_v37  ;;  %v2088_v48 = vpop.f32.mrb[9].mxu1  ;;  %v1447_v45 = vadd.f32 %v18509_v19, %v1112_v14 }
 0x368   : > { %v2517_v50 = vadd.f32 1.0, %v2016_v44  ;;  %v2089_v51 = vadd.f32 %v2088_v48, %v1881_v39 }
 0x369   : > { %v2519_v54 = vadd.f32 1.0, %v2087_v46  ;;  %v2518_v55 = vadd.f32 1.0, %v2018_v47 }
 0x36a   : > { %v18555_v57 = vmul.f32 %v2517_v50, %v1232_v49  ;;  %v2520_v58 = vadd.f32 1.0, %v2089_v51  ;;  %v1863_v51 = vld [vmem:[#allocation12 + $0x8] sm:$0xff] }
 0x36b   : > { %v18557_v59 = vmul.f32 %v2519_v54, %v1303_v53  ;;  %v18559_v60 = vmul.f32 %v2518_v55, %v1234_v52  ;;  %v18609_v52 = vld [vmem:[#allocation9 + $0x8] sm:$0xff]  ;;  %v1901_v55 = vrot.slane %v1863_v51, %v18530_v30 }
 0x36c   : > { %v18561_v61 = vmul.f32 %v2520_v58, %v1305_v56  ;;  %v2554_v9 = vsel %vm2553_vm1, %v18555_v57, 0.0  ;;  %v1116_v56 = vrot.slane %v18609_v52, %v18530_v30  ;;  %v1909_v58 = vrot.slane %v1863_v51, %v18538_v33 }
 0x36d   : > { %v2555_v10 = vsel %vm2553_vm1, %v18559_v60, 0.0  ;;  %v2557_v31 = vsel %vm2553_vm1, %v18557_v59, 0.0  ;;  %v1124_v8 = vrot.slane %v18609_v52, %v18538_v33 }
 0x36e   : > { %v2556_v36 = vadd.f32 %v2555_v10, %v2554_v9  ;;  %v2559_v17 = vsel %vm2553_vm1, %v18561_v61, 0.0  ;;  %v1516_v14 = vadd.f32 %v18511_v20, %v1116_v56  ;;  %v1136_v56 = vrot.slane %v18609_v52, %v18567_v0 }
 0x370   : > { %v2558_v48 = vadd.f32 %v2557_v31, %v2556_v36 }
 0x372   : > { %v2560_v19 = vadd.f32 %v2559_v17, %v2558_v48  ;;  %v1917_v17 = vrot.slane %v1863_v51, %v18564_v62 }
 0x375   : > { %v2157_v13 = vpop.f32.mrb[10].mxu0 }
 0x376   : > { %v2158_v15 = vadd.f32 %v2157_v13, %v1885_v3  ;;  %v2228_v27 = vpop.f32.mrb[10].mxu1  ;;  %v2159_v35 = vpop.f32.mrb[11].mxu0  ;;  %v1905_v3 = vrot.slane %v1863_v51, %v18535_v32 }
 0x377   : > { %v2229_v37 = vadd.f32 %v2228_v27, %v1893_v4  ;;  %v2160_v38 = vadd.f32 %v2159_v35, %v1889_v6  ;;  %v2230_v39 = vpop.f32.mrb[11].mxu1  ;;  %v1120_v4 = vrot.slane %v18609_v52, %v18535_v32  ;;  %v1913_v6 = vrot.slane %v1863_v51, %v18541_v34 }
 0x378   : > { %v2521_v29 = vadd.f32 1.0, %v2158_v15  ;;  %v2231_v41 = vadd.f32 %v2230_v39, %v1897_v11  ;;  %v1128_v11 = vrot.slane %v18609_v52, %v18541_v34 }
 0x379   : > { %v2523_v44 = vadd.f32 1.0, %v2229_v37  ;;  %v2522_v63 = vadd.f32 1.0, %v2160_v38  ;;  %v1518_v36 = vadd.f32 %v18513_v21, %v1120_v4  ;;  %v1144_v4 = vrot.slane %v18609_v52, %v18573_v2 }
 0x37a   : > { %v18597_v46 = vmul.f32 %v2521_v29, %v1374_v40  ;;  %v2524_v47 = vadd.f32 1.0, %v2231_v41  ;;  %v1587_v40 = vadd.f32 %v18515_v22, %v1124_v8 }
 0x37b   : > { %v18599_v49 = vmul.f32 %v2523_v44, %v1445_v43  ;;  %v18601_v16 = vmul.f32 %v2522_v63, %v1376_v42  ;;  %v1589_v43 = vadd.f32 %v18517_v23, %v1128_v11 }
 0x37c   : > { %v18603_v50 = vmul.f32 %v2524_v47, %v1447_v45  ;;  %v2561_v18 = vsel %vm2553_vm1, %v18597_v46, 0.0 }
 0x37d   : > { %v2562_v53 = vadd.f32 %v2561_v18, %v2560_v19  ;;  %v2563_v54 = vsel %vm2553_vm1, %v18601_v16, 0.0  ;;  %v2565_v37 = vsel %vm2553_vm1, %v18599_v49, 0.0  ;;  %v1925_v19 = vrot.slane %v1863_v51, %v18570_v1 }
 0x37e   : > { %v2567_v21 = vsel %vm2553_vm1, %v18603_v50, 0.0 }
 0x37f   : > { %v2564_v9 = vadd.f32 %v2563_v54, %v2562_v53  ;;  %v1921_v53 = vrot.slane %v1863_v51, %v18567_v0  ;;  %v1132_v54 = vrot.slane %v18609_v52, %v18564_v62 }
 0x381   : > { %v2566_v29 = vadd.f32 %v2565_v37, %v2564_v9  ;;  %v1731_v37 = vadd.f32 %v18525_v26, %v1144_v4 }
 0x383   : > { %v2568_v22 = vadd.f32 %v2567_v21, %v2566_v29 }
 0x385   : > { %v2299_v10 = vpop.f32.mrb[12].mxu0 }
 0x386   : > { %v2300_v12 = vadd.f32 %v2299_v10, %v1901_v55  ;;  %v2370_v7 = vpop.f32.mrb[12].mxu1  ;;  %v2301_v13 = vpop.f32.mrb[13].mxu0  ;;  %v1929_v55 = vrot.slane %v1863_v51, %v18573_v2 }
 0x387   : > { %v2371_v15 = vadd.f32 %v2370_v7, %v1909_v58  ;;  %v2302_v27 = vadd.f32 %v2301_v13, %v1905_v3  ;;  %v2372_v35 = vpop.f32.mrb[13].mxu1  ;;  %v1140_v58 = vrot.slane %v18609_v52, %v18570_v1  ;;  %v1658_v13 = vadd.f32 %v18519_v5, %v1132_v54 }
 0x388   : > { %v2525_v38 = vadd.f32 1.0, %v2300_v12  ;;  %v2373_v39 = vadd.f32 %v2372_v35, %v1913_v6 }
 0x389   : > { %v2527_v41 = vadd.f32 1.0, %v2371_v15  ;;  %v2526_v42 = vadd.f32 1.0, %v2302_v27  ;;  %v1660_v27 = vadd.f32 %v18521_v24, %v1136_v56  ;;  %v1729_v35 = vadd.f32 %v18523_v25, %v1140_v58 }
 0x38a   : > { %v18631_v44 = vmul.f32 %v2525_v38, %v1516_v14  ;;  %v2528_v20 = vadd.f32 1.0, %v2373_v39 }
 0x38b   : > { %v18633_v63 = vmul.f32 %v2527_v41, %v1587_v40  ;;  %v18635_v45 = vmul.f32 %v2526_v42, %v1518_v36 }
 0x38c   : > { %v2569_v31 = vsel %vm2553_vm1, %v18631_v44, 0.0  ;;  %v18641_v47 = vmul.f32 %v2528_v20, %v1589_v43 }
 0x38d   : > { %v2570_v48 = vadd.f32 %v2569_v31, %v2568_v22  ;;  %v2571_v23 = vsel %vm2553_vm1, %v18635_v45, 0.0  ;;  %v2573_v6 = vsel %vm2553_vm1, %v18633_v63, 0.0 }
 0x38e   : > { %v2575_v38 = vsel %vm2553_vm1, %v18641_v47, 0.0 }
 0x38f   : > { %v2572_v18 = vadd.f32 %v2571_v23, %v2570_v48 }
 0x391   : > { %v2574_v11 = vadd.f32 %v2573_v6, %v2572_v18 }
 0x393   : > { %v2576_v29 = vadd.f32 %v2575_v38, %v2574_v11 }
 0x395   : > { %v2441_v3 = vpop.f32.mrb[14].mxu0 }
 0x396   : > { %v2442_v8 = vadd.f32 %v2441_v3, %v1917_v17  ;;  %v2512_v9 = vpop.f32.mrb[14].mxu1  ;;  %v2443_v10 = vpop.f32.mrb[15].mxu0 }
 0x397   : > { %v2513_v12 = vadd.f32 %v2512_v9, %v1925_v19  ;;  %v2444_v7 = vadd.f32 %v2443_v10, %v1921_v53  ;;  %v2514_v51 = vpop.f32.mrb[15].mxu1 }
 0x398   : > { %v2529_v14 = vadd.f32 1.0, %v2442_v8  ;;  %v2515_v15 = vadd.f32 %v2514_v51, %v1929_v55 }
 0x399   : > { %v2531_v36 = vadd.f32 1.0, %v2513_v12  ;;  %v2530_v52 = vadd.f32 1.0, %v2444_v7 }
 0x39a   : > { %v2545_v39 = vmul.f32 %v2529_v14, %v1658_v13  ;;  %v2532_v40 = vadd.f32 1.0, %v2515_v15 }
 0x39b   : > { %v2547_v41 = vmul.f32 %v2531_v36, %v1729_v35  ;;  %v2546_v42 = vmul.f32 %v2530_v52, %v1660_v27 }
 0x39c   : > { %v2577_v5 = vsel %vm2553_vm1, %v2545_v39, 0.0  ;;  %v2548_v43 = vmul.f32 %v2532_v40, %v1731_v37 }
 0x39d   : > { %v2578_v20 = vadd.f32 %v2577_v5, %v2576_v29  ;;  %v2579_v24 = vsel %vm2553_vm1, %v2546_v42, 0.0  ;;  %v2581_v25 = vsel %vm2553_vm1, %v2547_v41, 0.0 }
 0x39e   : > { %v2583_v26 = vsel %vm2553_vm1, %v2548_v43, 0.0 }
 0x39f   : > { %v2580_v21 = vadd.f32 %v2579_v24, %v2578_v20 }
 0x3a1   : > { %v2582_v31 = vadd.f32 %v2581_v25, %v2580_v21 }
 0x3a3   : > { %v2584_v22 = vadd.f32 %v2583_v26, %v2582_v31 }
 0x3a5   : > { %2585 = vadd.xlane.f32.xlu0 %v2584_v22 }
 0x432   : > { %v2586_v48 = vpop.xlane.xlu0 %2585 }
 0x433   : > { %v2588_v23 = vmul.f32 0.00048828125, %v2586_v48 }
 0x435   : > { %v18670_v17 = vsub.f32 %v18555_v57, %v2588_v23  ;;  %v18673_v18 = vsub.f32 %v18559_v60, %v2588_v23  ;;  %v18676_v19 = vsub.f32 %v18557_v59, %v2588_v23  ;;  %v18679_v53 = vsub.f32 %v18561_v61, %v2588_v23 }
 0x436   : > { %v18686_v56 = vsub.f32 %v18597_v46, %v2588_v23  ;;  %v18691_v60 = vsub.f32 %v18601_v16, %v2588_v23  ;;  %v18698_v4 = vsub.f32 %v18599_v49, %v2588_v23  ;;  %v18704_v16 = vsub.f32 %v18603_v50, %v2588_v23 }
 0x437   : > { %v2605_v54 = vmul.f32 %v18670_v17, %v18670_v17  ;;  %v2606_v55 = vmul.f32 %v18673_v18, %v18673_v18  ;;  %v2607_v57 = vmul.f32 %v18676_v19, %v18676_v19  ;;  %v2608_v59 = vmul.f32 %v18679_v53, %v18679_v53 }
 0x438   : > { %v2609_v46 = vmul.f32 %v18686_v56, %v18686_v56  ;;  %v2610_v9 = vmul.f32 %v18691_v60, %v18691_v60  ;;  %v18710_v12 = vsub.f32 %v18631_v44, %v2588_v23  ;;  %v2611_v49 = vmul.f32 %v18698_v4, %v18698_v4 }
 0x439   : > { %v2621_v61 = vsel %vm2553_vm1, %v2605_v54, 0.0  ;;  %v2622_v58 = vsel %vm2553_vm1, %v2606_v55, 0.0  ;;  %v2624_v6 = vsel %vm2553_vm1, %v2607_v57, 0.0  ;;  %v2626_v10 = vsel %vm2553_vm1, %v2608_v59, 0.0 }
 0x43a   : > { %v2623_v3 = vadd.f32 %v2622_v58, %v2621_v61  ;;  %v2628_v7 = vsel %vm2553_vm1, %v2609_v46, 0.0  ;;  %v18716_v13 = vsub.f32 %v18635_v45, %v2588_v23  ;;  %v2612_v50 = vmul.f32 %v18704_v16, %v18704_v16 }
 0x43b   : > { %v2630_v14 = vsel %vm2553_vm1, %v2610_v9, 0.0  ;;  %v18722_v27 = vsub.f32 %v18633_v63, %v2588_v23  ;;  %v2613_v44 = vmul.f32 %v18710_v12, %v18710_v12  ;;  %v2632_v35 = vsel %vm2553_vm1, %v2611_v49, 0.0  ;;  %v18763_v49 = vld [vmem:[#allocation15] sm:$0xff] }
 0x43c   : > { %v2625_v8 = vadd.f32 %v2624_v6, %v2623_v3  ;;  %v18728_v52 = vsub.f32 %v18641_v47, %v2588_v23  ;;  %v2614_v45 = vmul.f32 %v18716_v13, %v18716_v13  ;;  %v2634_v37 = vsel %vm2553_vm1, %v2612_v50, 0.0 }
 0x43d   : > { %v18733_v40 = vsub.f32 %v2545_v39, %v2588_v23  ;;  %v2615_v63 = vmul.f32 %v18722_v27, %v18722_v27  ;;  %v2636_v29 = vsel %vm2553_vm1, %v2613_v44, 0.0  ;;  %v18738_v20 = vsub.f32 %v2546_v42, %v2588_v23 }
 0x43e   : > { %v2627_v11 = vadd.f32 %v2626_v10, %v2625_v8  ;;  %v2616_v47 = vmul.f32 %v18728_v52, %v18728_v52  ;;  %v2638_v24 = vsel %vm2553_vm1, %v2614_v45, 0.0  ;;  %v18743_v25 = vsub.f32 %v2547_v41, %v2588_v23  ;;  %v2549_v10 = vld [vmem:[#allocation13] sm:$0xff] }
 0x43f   : > { %v2617_v39 = vmul.f32 %v18733_v40, %v18733_v40  ;;  %v2640_v31 = vsel %vm2553_vm1, %v2615_v63, 0.0  ;;  %v18748_v22 = vsub.f32 %v2548_v43, %v2588_v23  ;;  %v2618_v42 = vmul.f32 %v18738_v20, %v18738_v20 }
 0x440   : > { %v2629_v51 = vadd.f32 %v2628_v7, %v2627_v11  ;;  %v2642_v48 = vsel %vm2553_vm1, %v2616_v47, 0.0  ;;  %v2619_v55 = vmul.f32 %v18743_v25, %v18743_v25  ;;  %v18761_v11 = vld [vmem:[#allocation13 + $0x8] sm:$0xff]  ;;  %v18765_v7 = vld [vmem:[#allocation15 + $0x8] sm:$0xff]  ;;  %v2784_v63 = vrot.slane %v18763_v49, %v18538_v33 }
 0x441   : > { %v2644_v41 = vsel %vm2553_vm1, %v2617_v39, 0.0  ;;  %v2620_v59 = vmul.f32 %v18748_v22, %v18748_v22  ;;  %v2646_v61 = vsel %vm2553_vm1, %v2618_v42, 0.0  ;;  %v2710_v50 = vrot.slane %v18761_v11, %v18530_v30 }
 0x442   : > { %v2631_v15 = vadd.f32 %v2630_v14, %v2629_v51  ;;  %v2648_v43 = vsel %vm2553_vm1, %v2619_v55, 0.0  ;;  %v2678_v51 = vrot.slane %v2549_v10, %v18530_v30  ;;  %v2776_v14 = vrot.slane %v18763_v49, %v18530_v30 }
 0x443   : > { %v2650_v3 = vsel %vm2553_vm1, %v2620_v59, 0.0  ;;  %v2808_v44 = vrot.slane %v18765_v7, %v18530_v30  ;;  %v2812_v45 = vrot.slane %v18765_v7, %v18535_v32  ;;  %v2690_v47 = vrot.slane %v2549_v10, %v18541_v34 }
 0x444   : > { %v2633_v36 = vadd.f32 %v2632_v35, %v2631_v15  ;;  %v2682_v15 = vrot.slane %v2549_v10, %v18535_v32  ;;  %v2714_v35 = vrot.slane %v18761_v11, %v18535_v32  ;;  %v2792_v55 = vrot.slane %v18763_v49, %v18564_v62 }
 0x445   : > { %v2698_v59 = vrot.slane %v2549_v10, %v18567_v0  ;;  %v2738_v39 = vrot.slane %v18761_v11, %v18573_v2 }
 0x446   : > { %v2635_v38 = vadd.f32 %v2634_v37, %v2633_v36  ;;  %v2780_v36 = vrot.slane %v18763_v49, %v18535_v32  ;;  %v2686_v37 = vrot.slane %v2549_v10, %v18538_v33 }
 0x448   : > { %v2637_v5 = vadd.f32 %v2636_v29, %v2635_v38  ;;  %v2718_v38 = vrot.slane %v18761_v11, %v18538_v33  ;;  %v2816_v29 = vrot.slane %v18765_v7, %v18538_v33 }
 0x44a   : > { %v2639_v21 = vadd.f32 %v2638_v24, %v2637_v5  ;;  %v2722_v24 = vrot.slane %v18761_v11, %v18541_v34 }
 0x44c   : > { %v2641_v26 = vadd.f32 %v2640_v31, %v2639_v21  ;;  %v2788_v21 = vrot.slane %v18763_v49, %v18541_v34  ;;  %v2694_v31 = vrot.slane %v2549_v10, %v18564_v62 }
 0x44e   : > { %v2643_v54 = vadd.f32 %v2642_v48, %v2641_v26 }
 0x450   : > { %v2645_v57 = vadd.f32 %v2644_v41, %v2643_v54  ;;  %v2726_v54 = vrot.slane %v18761_v11, %v18564_v62  ;;  %v2832_v41 = vrot.slane %v18765_v7, %v18570_v1 }
 0x452   : > { %v2647_v58 = vadd.f32 %v2646_v61, %v2645_v57 }
 0x454   : > { %v2649_v23 = vadd.f32 %v2648_v43, %v2647_v58  ;;  %v2702_v58 = vrot.slane %v2549_v10, %v18570_v1  ;;  %v2734_v43 = vrot.slane %v18761_v11, %v18570_v1 }
 0x456   : > { %v2651_v46 = vadd.f32 %v2650_v3, %v2649_v23 }
 0x458   : > { %2652 = vadd.xlane.f32.xlu0 %v2651_v46 }
 0x4e5   : > { %v2653_v6 = vpop.xlane.xlu0 %2652 }
 0x4e6   : > { %v2654_v8 = vmul.f32 0.00048828125, %v2653_v6 }
 0x4e8   : > { %v2655_v9 = vadd.f32 1e-05, %v2654_v8  ;;  %v2800_v8 = vrot.slane %v18763_v49, %v18570_v1 }
 0x4ea   : > { %16985 = vrsqrt.f32 %v2655_v9 }
 0x4f4   : > { %v16986_v5 = vpop.eup %16985 }
 0x4f5   : > { %v2657_v26 = vmul.f32 %v16986_v5, %v18670_v17  ;;  %v2658_v42 = vmul.f32 %v16986_v5, %v18673_v18  ;;  %v2659_v48 = vmul.f32 %v16986_v5, %v18676_v19  ;;  %v2660_v57 = vmul.f32 %v16986_v5, %v18679_v53 }
 0x4f6   : > { %v2730_v17 = vrot.slane %v18761_v11, %v18567_v0  ;;  %v2796_v18 = vrot.slane %v18763_v49, %v18567_v0  ;;  %v2661_v19 = vmul.f32 %v16986_v5, %v18686_v56  ;;  %v2662_v53 = vmul.f32 %v16986_v5, %v18691_v60 }
 0x4f7   : > { %v2663_v23 = vmul.f32 %v16986_v5, %v18698_v4  ;;  %v2755_v3 = vmul.f32 %v2678_v51, %v2657_v26  ;;  %v2756_v46 = vmul.f32 %v2682_v15, %v2658_v42  ;;  %v2757_v6 = vmul.f32 %v2686_v37, %v2659_v48 }
 0x4f8   : > { %v2706_v56 = vrot.slane %v2549_v10, %v18573_v2  ;;  %v2664_v9 = vmul.f32 %v16986_v5, %v18704_v16  ;;  %v2758_v61 = vmul.f32 %v2690_v47, %v2660_v57  ;;  %v2665_v60 = vmul.f32 %v16986_v5, %v18710_v12 }
 0x4f9   : > { %v2759_v4 = vmul.f32 %v2694_v31, %v2661_v19  ;;  %v2804_v51 = vrot.slane %v18763_v49, %v18573_v2  ;;  %v2666_v15 = vmul.f32 %v16986_v5, %v18716_v13  ;;  %v2667_v37 = vmul.f32 %v16986_v5, %v18722_v27 }
 0x4fa   : > { %v2760_v10 = vmul.f32 %v2698_v59, %v2662_v53  ;;  %v2761_v26 = vmul.f32 %v2702_v58, %v2663_v23  ;;  %v18832_v16 = vadd.f32 %v2776_v14, %v2755_v3  ;;  %v18834_v47 = vadd.f32 %v2780_v36, %v2756_v46 }
 0x4fb   : > { %v18836_v1 = vadd.f32 %v2784_v63, %v2757_v6  ;;  %v2836_v11 = vrot.slane %v18765_v7, %v18573_v2  ;;  %v2668_v12 = vmul.f32 %v16986_v5, %v18728_v52  ;;  %v2762_v31 = vmul.f32 %v2706_v56, %v2664_v9 }
 0x4fc   : > { %v18841_v42 = vadd.f32 %v2788_v21, %v2758_v61  ;;  %v2669_v13 = vmul.f32 %v16986_v5, %v18733_v40  ;;  %v2670_v27 = vmul.f32 %v16986_v5, %v18738_v20  ;;  %v2763_v49 = vmul.f32 %v2710_v50, %v2665_v60 }
 0x4fd   : > { %v18845_v48 = vadd.f32 %v2792_v55, %v2759_v4  ;;  %v2671_v14 = vmul.f32 %v16986_v5, %v18743_v25  ;;  %v2764_v36 = vmul.f32 %v2714_v35, %v2666_v15  ;;  %v2765_v63 = vmul.f32 %v2718_v38, %v2667_v37 }
 0x4fe   : > { %v18848_v57 = vadd.f32 %v2796_v18, %v2760_v10  ;;  %v18850_v59 = vadd.f32 %v2800_v8, %v2761_v26  ;;  %v14485_v2 = vmul.f32 -1.442695, %v18832_v16  ;;  %v14486_v52 = vmul.f32 -1.442695, %v18834_v47 }
 0x4ff   : > { %v14487_v21 = vmul.f32 -1.442695, %v18836_v1  ;;  %v2672_v40 = vmul.f32 %v16986_v5, %v18748_v22  ;;  %v2766_v20 = vmul.f32 %v2722_v24, %v2668_v12  ;;  %v18856_v50 = vadd.f32 %v2804_v51, %v2762_v31 }
 0x500   : > { %v14488_v55 = vmul.f32 -1.442695, %v18841_v42  ;;  %v2767_v25 = vmul.f32 %v2726_v54, %v2669_v13  ;;  %v18862_v35 = vadd.f32 %v2808_v44, %v2763_v49  ;;  %16987 = vpow2.f32 %v14485_v2 }
 0x501   : > { %v14489_v38 = vmul.f32 -1.442695, %v18845_v48  ;;  %v2768_v18 = vmul.f32 %v2730_v17, %v2670_v27  ;;  %v18868_v19 = vadd.f32 %v2812_v45, %v2764_v36  ;;  %16989 = vpow2.f32 %v14486_v52 }
 0x502   : > { %v14490_v22 = vmul.f32 -1.442695, %v18848_v57  ;;  %v2769_v5 = vmul.f32 %v2734_v43, %v2671_v14  ;;  %v18874_v24 = vadd.f32 %v2816_v29, %v2765_v63  ;;  %16991 = vpow2.f32 %v14487_v21 }
 0x503   : > { %v14491_v30 = vmul.f32 -1.442695, %v18850_v59  ;;  %v2770_v44 = vmul.f32 %v2738_v39, %v2672_v40  ;;  %v21760_v54 = vrot.slane %v18765_v7, %v18541_v34  ;;  %16993 = vpow2.f32 %v14488_v55 }
 0x504   : > { %v14492_v32 = vmul.f32 -1.442695, %v18856_v50  ;;  %v21761_v45 = vrot.slane %v18765_v7, %v18564_v62  ;;  %16995 = vpow2.f32 %v14489_v38  ;;  %v14493_v33 = vmul.f32 -1.442695, %v18862_v35 }
 0x505   : > { %v18880_v17 = vadd.f32 %v21760_v54, %v2766_v20  ;;  %v21762_v29 = vrot.slane %v18765_v7, %v18567_v0  ;;  %16997 = vpow2.f32 %v14490_v22  ;;  %v14494_v34 = vmul.f32 -1.442695, %v18868_v19 }
 0x506   : > { %v18886_v61 = vadd.f32 %v21761_v45, %v2767_v25  ;;  %v18895_v58 = vadd.f32 %v2832_v41, %v2769_v5  ;;  %16999 = vpow2.f32 %v14491_v30  ;;  %v14495_v43 = vmul.f32 -1.442695, %v18874_v24 }
 0x507   : > { %v18892_v39 = vadd.f32 %v21762_v29, %v2768_v18  ;;  %v18898_v53 = vadd.f32 %v2836_v11, %v2770_v44  ;;  %17001 = vpow2.f32 %v14492_v32  ;;  %v14496_v62 = vmul.f32 -1.442695, %v18880_v17 }
 0x508   : > { %17003 = vpow2.f32 %v14493_v33  ;;  %v14497_v23 = vmul.f32 -1.442695, %v18886_v61  ;;  %v14499_v3 = vmul.f32 -1.442695, %v18895_v58  ;;  %v17717_v14 = vmov 1983009808  }
 0x509   : > { %17005 = vpow2.f32 %v14494_v34  ;;  %v14498_v0 = vmul.f32 -1.442695, %v18892_v39  ;;  %v14500_v46 = vmul.f32 -1.442695, %v18898_v53  ;;  %v2992_v36 = vunpack.c.l.s4 %v17717_v14 }
 0x50a   : > { %v16988_v7 = vpop.eup %16987  ;;  %17007 = vpow2.f32 %v14495_v43 }
 0x50b   : > { %v16990_v41 = vpop.eup %16989  ;;  %17009 = vpow2.f32 %v14496_v62  ;;  %v2917_v8 = vadd.f32 1.0, %v16988_v7  ;;  %v2993_v38 = vunpack.c.0.s8 %v2992_v36 }
 0x50c   : > { %v16992_v6 = vpop.eup %16991  ;;  %17011 = vpow2.f32 %v14497_v23  ;;  %v2918_v9 = vadd.f32 1.0, %v16990_v41 }
 0x50d   : > { %v16994_v56 = vpop.eup %16993  ;;  %17013 = vpow2.f32 %v14498_v0  ;;  %v2919_v4 = vadd.f32 1.0, %v16992_v6  ;;  %v2996_v29 = vsub.s32 %v2993_v38, %v18527_v28 }
 0x50e   : > { %v16996_v60 = vpop.eup %16995  ;;  %17015 = vpow2.f32 %v14499_v3  ;;  %v2920_v15 = vadd.f32 1.0, %v16994_v56 }
 0x50f   : > { %v16998_v51 = vpop.eup %16997  ;;  %17017 = vpow2.f32 %v14500_v46  ;;  %v2921_v10 = vadd.f32 1.0, %v16996_v60 }
 0x510   : > { %v17000_v37 = vpop.eup %16999  ;;  %17019 = vrcp.f32 %v2917_v8  ;;  %v2922_v11 = vadd.f32 1.0, %v16998_v51 }
 0x511   : > { %v17002_v26 = vpop.eup %17001  ;;  %17021 = vrcp.f32 %v2918_v9  ;;  %v2923_v31 = vadd.f32 1.0, %v17000_v37 }
 0x512   : > { %v17004_v12 = vpop.eup %17003  ;;  %17023 = vrcp.f32 %v2919_v4  ;;  %v2924_v27 = vadd.f32 1.0, %v17002_v26 }
 0x513   : > { %v17006_v13 = vpop.eup %17005  ;;  %17025 = vrcp.f32 %v2920_v15  ;;  %v2925_v63 = vadd.f32 1.0, %v17004_v12 }
 0x514   : > { %v17008_v49 = vpop.eup %17007  ;;  %17027 = vrcp.f32 %v2921_v10  ;;  %v2926_v52 = vadd.f32 1.0, %v17006_v13 }
 0x515   : > { %v17010_v2 = vpop.eup %17009  ;;  %17029 = vrcp.f32 %v2922_v11  ;;  %v2927_v40 = vadd.f32 1.0, %v17008_v49 }
 0x516   : > { %v17012_v21 = vpop.eup %17011  ;;  %17031 = vrcp.f32 %v2923_v31  ;;  %v2928_v55 = vadd.f32 1.0, %v17010_v2 }
 0x517   : > { %v17014_v20 = vpop.eup %17013  ;;  %17033 = vrcp.f32 %v2924_v27  ;;  %v2929_v18 = vadd.f32 1.0, %v17012_v21 }
 0x518   : > { %v17016_v25 = vpop.eup %17015  ;;  %17035 = vrcp.f32 %v2925_v63  ;;  %v2930_v5 = vadd.f32 1.0, %v17014_v20 }
 0x519   : > { %v17018_v22 = vpop.eup %17017  ;;  %17037 = vrcp.f32 %v2926_v52  ;;  %v2931_v44 = vadd.f32 1.0, %v17016_v25 }
 0x51a   : > { %v17020_v30 = vpop.eup %17019  ;;  %17039 = vrcp.f32 %v2927_v40  ;;  %v2932_v32 = vadd.f32 1.0, %v17018_v22 }
 0x51b   : > { %v17022_v54 = vpop.eup %17021  ;;  %17041 = vrcp.f32 %v2928_v55  ;;  %v2965_v45 = vmul.f32 %v17020_v30, %v18832_v16 }
 0x51c   : > { %v17024_v33 = vpop.eup %17023  ;;  %17043 = vrcp.f32 %v2929_v18  ;;  %v2966_v34 = vmul.f32 %v17022_v54, %v18834_v47 }
 0x51d   : > { %v17026_v43 = vpop.eup %17025  ;;  %17045 = vrcp.f32 %v2930_v5  ;;  %v2967_v62 = vmul.f32 %v17024_v33, %v18836_v1 }
 0x51e   : > { %v17028_v23 = vpop.eup %17027  ;;  %17047 = vrcp.f32 %v2931_v44  ;;  %v2968_v0 = vmul.f32 %v17026_v43, %v18841_v42  ;;  %v2989_v7 = vcombine.low %v2965_v45, %v2966_v34 }
 0x51f   : > { %v17030_v3 = vpop.eup %17029  ;;  %17049 = vrcp.f32 %v2932_v32  ;;  %v2969_v41 = vmul.f32 %v17028_v23, %v18845_v48 }
 0x520   : > { %v17032_v16 = vpop.eup %17031  ;;  %v2970_v46 = vmul.f32 %v17030_v3, %v18848_v57  ;;  %v2990_v28 = vcombine.low %v2967_v62, %v2968_v0  ;;  %v2997_v6 = vrot.slane %v2989_v7, %v2996_v29 }
 0x521   : > { %v17034_v8 = vpop.eup %17033  ;;  %v2971_v47 = vmul.f32 %v17032_v16, %v18850_v59 }
 0x522   : > { %v17036_v56 = vpop.eup %17035  ;;  %v2972_v1 = vmul.f32 %v17034_v8, %v18856_v50  ;;  %v3004_v9 = vrot.slane %v2990_v28, %v2996_v29  ;;  %v3006_v60 = vcombine.low %v2969_v41, %v2970_v46 }
 0x523   : > { %v17038_v4 = vpop.eup %17037  ;;  %v2973_v42 = vmul.f32 %v17036_v56, %v18862_v35 }
 0x524   : > { %v17040_v51 = vpop.eup %17039  ;;  %v2974_v15 = vmul.f32 %v17038_v4, %v18868_v19  ;;  %v3005_v48 = vcombine.low %v2997_v6, %v3004_v9  ;;  %v3007_v37 = vcombine.low %v2971_v47, %v2972_v1  ;;  %v3014_v10 = vrot.slane %v3006_v60, %v2996_v29 }
 0x525   : > { %v17042_v57 = vpop.eup %17041  ;;  %v2975_v26 = vmul.f32 %v17040_v51, %v18874_v24 }
 0x526   : > { %v17044_v11 = vpop.eup %17043  ;;  %v2976_v59 = vmul.f32 %v17042_v57, %v18880_v17  ;;  %v3021_v12 = vrot.slane %v3007_v37, %v2996_v29  ;;  %3025 = vst [vmem:[#allocation2] sm:$0xff] %v3005_v48  ;;  %v3035_v50 = vcombine.low %v2973_v42, %v2974_v15 }
 0x527   : > { %v17046_v31 = vpop.eup %17045  ;;  %v2977_v13 = vmul.f32 %v17044_v11, %v18886_v61 }
 0x528   : > { %v17048_v27 = vpop.eup %17047  ;;  %v2978_v35 = vmul.f32 %v17046_v31, %v18892_v39  ;;  %v3022_v49 = vcombine.low %v3014_v10, %v3021_v12  ;;  %v3036_v19 = vcombine.low %v2975_v26, %v2976_v59  ;;  %v3043_v14 = vrot.slane %v3035_v50, %v2996_v29 }
 0x529   : > { %v17050_v36 = vpop.eup %17049  ;;  %v2979_v63 = vmul.f32 %v17048_v27, %v18895_v58 }
 0x52a   : > { %v2980_v24 = vmul.f32 %v17050_v36, %v18898_v53  ;;  %3026 = vst [vmem:[#allocation2 + $0x8] sm:$0xff] %v3022_v49  ;;  %v3050_v2 = vrot.slane %v3036_v19, %v2996_v29  ;;  %v3052_v17 = vcombine.low %v2977_v13, %v2978_v35 }
 0x52c   : > { %v3051_v52 = vcombine.low %v3043_v14, %v3050_v2  ;;  %v3053_v21 = vcombine.low %v2979_v63, %v2980_v24  ;;  %v3060_v40 = vrot.slane %v3052_v17, %v2996_v29 }
 0x52e   : > { %v3067_v20 = vrot.slane %v3053_v21, %v2996_v29  ;;  %3072 = vst [vmem:[#allocation2 + $0x10] sm:$0xff] %v3051_v52 }
 0x530   : > { %v3068_v61 = vcombine.low %v3060_v40, %v3067_v20 }
 0x532   : > { %3073 = vst [vmem:[#allocation2 + $0x18] sm:$0xff] %v3068_v61 }
 0x533 PF: > { %s21763_s24 = sld [smem:[#allocation46_spill]] }
 0x539   : > { %p14501_p0 = scmp.ne.s32.totalorder %s21763_s24, 0 }
 0x53a   : > { %v17718_v39 = vmov (!%p14501_p0), 0.0  }
 0x53b   : > { %3076 = sbr.rel (%p14501_p0) target bundleno = 1346 (0x542), region = 164  ;;  %3077 = vst [vmem:[#allocation3] sm:$0xff] (!%p14501_p0), %v17718_v39  ;;  %3078 = vst [vmem:[#allocation3 + $0x8] sm:$0xff] (!%p14501_p0), %v17718_v39 }
 0x53c   : > { %3079 = vst [vmem:[#allocation3 + $0x10] sm:$0xff] (!%p14501_p0), %v17718_v39  ;;  %3080 = vst [vmem:[#allocation3 + $0x18] sm:$0xff] (!%p14501_p0), %v17718_v39 }
 0x542 PF: > { %v3142_v58 = vld [vmem:[%s18405_s15] sm:$0xff]  ;;  %v3143_v55 = vld [vmem:[%s18405_s15 + $0x8] sm:$0xff]  ;;  %v17719_v60 = vmov 1983009808   ;;  %v3096_v42 = vlaneseq  ;;  %s21764_s11 = sld [smem:[#allocation46_spill]] }
 0x543   : > { %v3150_v53 = vld [vmem:[%s18405_s15 + $0x40] sm:$0xff]  ;;  %v3151_v38 = vld [vmem:[%s18405_s15 + $0x48] sm:$0xff]  ;;  %v3094_v4 = vunpack.c.l.s4 %v17719_v60 }
 0x544   : > { %v14505_v25 = vcombine.high %v3142_v58, %v3150_v53  ;;  %v14504_v18 = vcombine.low %v3142_v58, %v3150_v53  ;;  %v3158_v22 = vld [vmem:[%s18405_s15 + $0x80] sm:$0xff]  ;;  %v14507_v30 = vcombine.high %v3143_v55, %v3151_v38  ;;  %v14506_v44 = vcombine.low %v3143_v55, %v3151_v38  ;;  %v3159_v32 = vld [vmem:[%s18405_s15 + $0x88] sm:$0xff] }
 0x545   : > { %v3166_v5 = vld [vmem:[%s18405_s15 + $0xc0] sm:$0xff]  ;;  %v3167_v45 = vld [vmem:[%s18405_s15 + $0xc8] sm:$0xff]  ;;  %v3095_v59 = vunpack.c.0.s8 %v3094_v4  ;;  %v18945_v12 = vshrl.u32 %v3096_v42, 7 }
 0x546   : > { %v14521_v54 = vcombine.high %v3158_v22, %v3166_v5  ;;  %v3174_v33 = vld [vmem:[%s18405_s15 + $0x100] sm:$0xff]  ;;  %9286 = vmatprep.subr.bf16.mxu0 %v14505_v25  ;;  %v14523_v29 = vcombine.high %v3159_v32, %v3167_v45  ;;  %v3175_v43 = vld [vmem:[%s18405_s15 + $0x108] sm:$0xff]  ;;  %9450 = vmatprep.subr.bf16.mxu1 %v14507_v30  ;;  %v14520_v23 = vcombine.low %v3158_v22, %v3166_v5 }
 0x547   : > { %v3182_v34 = vld [vmem:[%s18405_s15 + $0x140] sm:$0xff]  ;;  %v3183_v62 = vld [vmem:[%s18405_s15 + $0x148] sm:$0xff]  ;;  %9287 = vmatpush1.bf16.msra.mxu0 %v14504_v18  ;;  %9451 = vmatpush1.bf16.msra.mxu1 %v14506_v44  ;;  %v14522_v0 = vcombine.low %v3159_v32, %v3167_v45  ;;  %v18953_v36 = vsub.s32 %v3095_v59, %v18945_v12 }
 0x548   : > { %9288 = vmatprep.subr.bf16.mxu0 %v14521_v54  ;;  %v14537_v7 = vcombine.high %v3174_v33, %v3182_v34  ;;  %9452 = vmatprep.subr.bf16.mxu1 %v14523_v29  ;;  %v14539_v3 = vcombine.high %v3175_v43, %v3183_v62  ;;  %v3190_v41 = vld [vmem:[%s18405_s15 + $0x180] sm:$0xff]  ;;  %v3191_v46 = vld [vmem:[%s18405_s15 + $0x188] sm:$0xff]  ;;  %v14536_v6 = vcombine.low %v3174_v33, %v3182_v34  ;;  %s15563_s2 = sshll.u32 %s21764_s11, 4  ;;  %p15528_p11 = scmp.ne.s32.totalorder %s21764_s11, 1 }
 0x549   : > { %v3198_v16 = vld [vmem:[%s18405_s15 + $0x1c0] sm:$0xff]  ;;  %v3199_v28 = vld [vmem:[%s18405_s15 + $0x1c8] sm:$0xff]  ;;  %v14538_v8 = vcombine.low %v3175_v43, %v3183_v62  ;;  %s18957_s20 = scalar_lea.vmem [#allocation2], %s15563_s2  ;;  %vm10831_vm2 = vcmask (!%p15528_p11), 523264   ;;  %s21765_s10 = sld [smem:[#allocation58_spill]] (!%p15528_p11)  ;;  %vm12623_vm3 = vcmask (!%p15528_p11), 1041408  }
 0x54a   : > { %v14553_v47 = vcombine.high %v3190_v41, %v3198_v16  ;;  %v14555_v56 = vcombine.high %v3191_v46, %v3199_v28  ;;  %v3206_v1 = vld [vmem:[%s18405_s15 + $0x200] sm:$0xff]  ;;  %v3207_v51 = vld [vmem:[%s18405_s15 + $0x208] sm:$0xff]  ;;  %v14552_v48 = vcombine.low %v3190_v41, %v3198_v16  ;;  %v14554_v37 = vcombine.low %v3191_v46, %v3199_v28  ;;  %s21766_s3 = sld [smem:[#allocation47_spill]] (!%p15528_p11) }
 0x54b   : > { %9289 = vmatpush1.bf16.msra.mxu0 %v14520_v23  ;;  %9453 = vmatpush1.bf16.msra.mxu1 %v14522_v0  ;;  %v3214_v9 = vld [vmem:[%s18405_s15 + $0x240] sm:$0xff]  ;;  %v3215_v15 = vld [vmem:[%s18405_s15 + $0x248] sm:$0xff] }
 0x54c   : > { %9290 = vmatprep.subr.bf16.mxu0 %v14537_v7  ;;  %9454 = vmatprep.subr.bf16.mxu1 %v14539_v3  ;;  %v14569_v10 = vcombine.high %v3206_v1, %v3214_v9  ;;  %v14571_v57 = vcombine.high %v3207_v51, %v3215_v15  ;;  %v3222_v26 = vld [vmem:[%s18405_s15 + $0x280] sm:$0xff]  ;;  %v3223_v50 = vld [vmem:[%s18405_s15 + $0x288] sm:$0xff]  ;;  %v14568_v13 = vcombine.low %v3206_v1, %v3214_v9 }
 0x54d   : > { %v3230_v11 = vld [vmem:[%s18405_s15 + $0x2c0] sm:$0xff]  ;;  %v3231_v31 = vld [vmem:[%s18405_s15 + $0x2c8] sm:$0xff]  ;;  %v14570_v27 = vcombine.low %v3207_v51, %v3215_v15 }
 0x54e   : > { %v14585_v35 = vcombine.high %v3222_v26, %v3230_v11  ;;  %v14587_v49 = vcombine.high %v3223_v50, %v3231_v31  ;;  %v3238_v19 = vld [vmem:[%s18405_s15 + $0x300] sm:$0xff]  ;;  %v3239_v63 = vld [vmem:[%s18405_s15 + $0x308] sm:$0xff]  ;;  %v14584_v2 = vcombine.low %v3222_v26, %v3230_v11  ;;  %v14586_v17 = vcombine.low %v3223_v50, %v3231_v31 }
 0x54f   : > { %9291 = vmatpush1.bf16.msra.mxu0 %v14536_v6  ;;  %9455 = vmatpush1.bf16.msra.mxu1 %v14538_v8  ;;  %v3246_v14 = vld [vmem:[%s18405_s15 + $0x340] sm:$0xff]  ;;  %v3247_v24 = vld [vmem:[%s18405_s15 + $0x348] sm:$0xff] }
 0x550   : > { %9292 = vmatprep.subr.bf16.mxu0 %v14553_v47  ;;  %9456 = vmatprep.subr.bf16.mxu1 %v14555_v56  ;;  %v14601_v52 = vcombine.high %v3238_v19, %v3246_v14  ;;  %v18960_v21 = vld [vmem:[%s18957_s20] sm:$0xff]  ;;  %v14603_v40 = vcombine.high %v3239_v63, %v3247_v24  ;;  %v3255_v58 = vld [vmem:[%s18405_s15 + $0x388] sm:$0xff]  ;;  %v14600_v55 = vcombine.low %v3238_v19, %v3246_v14  ;;  %p15549_p5 = scmp.ne.s32.totalorder (!%p15528_p11), %s21766_s3, 17 }
 0x551   : > { %v3254_v20 = vld [vmem:[%s18405_s15 + $0x380] sm:$0xff]  ;;  %v18966_v39 = vrot.slane %v18960_v21, %v18953_v36  ;;  %v3263_v53 = vld [vmem:[%s18405_s15 + $0x3c8] sm:$0xff]  ;;  %v14602_v38 = vcombine.low %v3239_v63, %v3247_v24 }
 0x552   : > { %v3262_v61 = vld [vmem:[%s18405_s15 + $0x3c0] sm:$0xff]  ;;  %v14619_v22 = vcombine.high %v3255_v58, %v3263_v53  ;;  %v3271_v54 = vld [vmem:[%s18405_s15 + $0x408] sm:$0xff]  ;;  %v14618_v33 = vcombine.low %v3255_v58, %v3263_v53 }
 0x553   : > { %9293 = vmatpush1.bf16.msra.mxu0 %v14552_v48  ;;  %9457 = vmatpush1.bf16.msra.mxu1 %v14554_v37  ;;  %v3107_v25 = vcombine.high %v18966_v39, %v18966_v39  ;;  %v14617_v18 = vcombine.high %v3254_v20, %v3262_v61  ;;  %v3270_v5 = vld [vmem:[%s18405_s15 + $0x400] sm:$0xff]  ;;  %v3279_v32 = vld [vmem:[%s18405_s15 + $0x448] sm:$0xff]  ;;  %v14616_v45 = vcombine.low %v3254_v20, %v3262_v61 }
 0x554   : > { %9294 = vmatprep.subr.bf16.mxu0 %v14569_v10  ;;  %9458 = vmatprep.subr.bf16.mxu1 %v14571_v57  ;;  %v3278_v30 = vld [vmem:[%s18405_s15 + $0x440] sm:$0xff]  ;;  %v14635_v34 = vcombine.high %v3271_v54, %v3279_v32  ;;  %v3287_v23 = vld [vmem:[%s18405_s15 + $0x488] sm:$0xff]  ;;  %v14634_v3 = vcombine.low %v3271_v54, %v3279_v32 }
 0x555   : > { %v18974_v44 = vpack.c.bf16 %v3107_v25, %v3107_v25  ;;  %v14633_v29 = vcombine.high %v3270_v5, %v3278_v30  ;;  %v3286_v43 = vld [vmem:[%s18405_s15 + $0x480] sm:$0xff]  ;;  %v3295_v0 = vld [vmem:[%s18405_s15 + $0x4c8] sm:$0xff]  ;;  %v14632_v7 = vcombine.low %v3270_v5, %v3278_v30 }
 0x556   : > { %v3294_v62 = vld [vmem:[%s18405_s15 + $0x4c0] sm:$0xff]  ;;  %v14651_v16 = vcombine.high %v3287_v23, %v3295_v0  ;;  %v3303_v6 = vld [vmem:[%s18405_s15 + $0x508] sm:$0xff]  ;;  %v14650_v56 = vcombine.low %v3287_v23, %v3295_v0 }
 0x557   : > { %9295 = vmatpush1.bf16.msra.mxu0 %v14568_v13  ;;  %9459 = vmatpush1.bf16.msra.mxu1 %v14570_v27  ;;  %v14649_v41 = vcombine.high %v3286_v43, %v3294_v62  ;;  %v3302_v46 = vld [vmem:[%s18405_s15 + $0x500] sm:$0xff]  ;;  %v3311_v8 = vld [vmem:[%s18405_s15 + $0x548] sm:$0xff]  ;;  %v14648_v47 = vcombine.low %v3286_v43, %v3294_v62 }
 0x558   : > { %9296 = vmatprep.subr.bf16.mxu0 %v14585_v35  ;;  %9460 = vmatprep.subr.bf16.mxu1 %v14587_v49  ;;  %v3310_v28 = vld [vmem:[%s18405_s15 + $0x540] sm:$0xff]  ;;  %v14667_v9 = vcombine.high %v3303_v6, %v3311_v8  ;;  %v3319_v42 = vld [vmem:[%s18405_s15 + $0x588] sm:$0xff]  ;;  %v14666_v48 = vcombine.low %v3303_v6, %v3311_v8 }
 0x559   : > { %9318 = vmatprep.mubr.bf16.mxu0 %v18974_v44  ;;  %9482 = vmatprep.mubr.bf16.mxu1 %v18974_v44  ;;  %v14665_v1 = vcombine.high %v3302_v46, %v3310_v28  ;;  %v3318_v60 = vld [vmem:[%s18405_s15 + $0x580] sm:$0xff]  ;;  %v3327_v51 = vld [vmem:[%s18405_s15 + $0x5c8] sm:$0xff]  ;;  %v14664_v15 = vcombine.low %v3302_v46, %v3310_v28  ;;  %v19023_v28 = vpack.c.bf16 %v18966_v39, %v18966_v39 }
 0x55a   : > { %v3326_v4 = vld [vmem:[%s18405_s15 + $0x5c0] sm:$0xff]  ;;  %v14683_v10 = vcombine.high %v3319_v42, %v3327_v51  ;;  %v3335_v11 = vld [vmem:[%s18405_s15 + $0x608] sm:$0xff]  ;;  %v14682_v31 = vcombine.low %v3319_v42, %v3327_v51 }
 0x55b   : > { %9297 = vmatpush1.bf16.msra.mxu0 %v14584_v2  ;;  %9461 = vmatpush1.bf16.msra.mxu1 %v14586_v17  ;;  %v14681_v37 = vcombine.high %v3318_v60, %v3326_v4  ;;  %v3334_v57 = vld [vmem:[%s18405_s15 + $0x600] sm:$0xff]  ;;  %v3343_v59 = vld [vmem:[%s18405_s15 + $0x648] sm:$0xff]  ;;  %v14680_v50 = vcombine.low %v3318_v60, %v3326_v4 }
 0x55c   : > { %9298 = vmatprep.subr.bf16.mxu0 %v14601_v52  ;;  %9462 = vmatprep.subr.bf16.mxu1 %v14603_v40  ;;  %v3342_v26 = vld [vmem:[%s18405_s15 + $0x640] sm:$0xff]  ;;  %v14699_v27 = vcombine.high %v3335_v11, %v3343_v59  ;;  %v3351_v19 = vld [vmem:[%s18405_s15 + $0x688] sm:$0xff]  ;;  %v14698_v24 = vcombine.low %v3335_v11, %v3343_v59 }
 0x55d   : > { %v14697_v13 = vcombine.high %v3334_v57, %v3342_v26  ;;  %v3350_v35 = vld [vmem:[%s18405_s15 + $0x680] sm:$0xff]  ;;  %v3359_v14 = vld [vmem:[%s18405_s15 + $0x6c8] sm:$0xff]  ;;  %v14696_v63 = vcombine.low %v3334_v57, %v3342_v26 }
 0x55e   : > { %v3358_v49 = vld [vmem:[%s18405_s15 + $0x6c0] sm:$0xff]  ;;  %v14715_v17 = vcombine.high %v3351_v19, %v3359_v14  ;;  %v3367_v20 = vld [vmem:[%s18405_s15 + $0x708] sm:$0xff]  ;;  %v14714_v53 = vcombine.low %v3351_v19, %v3359_v14 }
 0x55f   : > { %9299 = vmatpush1.bf16.msra.mxu0 %v14600_v55  ;;  %9463 = vmatpush1.bf16.msra.mxu1 %v14602_v38  ;;  %v14713_v2 = vcombine.high %v3350_v35, %v3358_v49  ;;  %v3366_v52 = vld [vmem:[%s18405_s15 + $0x700] sm:$0xff]  ;;  %v3375_v61 = vld [vmem:[%s18405_s15 + $0x748] sm:$0xff]  ;;  %v14712_v58 = vcombine.low %v3350_v35, %v3358_v49 }
 0x560   : > { %9300 = vmatprep.subr.bf16.mxu0 %v14617_v18  ;;  %9464 = vmatprep.subr.bf16.mxu1 %v14619_v22  ;;  %v3374_v40 = vld [vmem:[%s18405_s15 + $0x740] sm:$0xff]  ;;  %v14731_v25 = vcombine.high %v3367_v20, %v3375_v61  ;;  %v3092_v22 = vcombine.high %v18960_v21, %v18960_v21  ;;  %v3383_v5 = vld [vmem:[%s18405_s15 + $0x788] sm:$0xff]  ;;  %v14730_v32 = vcombine.low %v3367_v20, %v3375_v61 }
 0x561   : > { %v14729_v55 = vcombine.high %v3366_v52, %v3374_v40  ;;  %v3382_v38 = vld [vmem:[%s18405_s15 + $0x780] sm:$0xff]  ;;  %v3391_v30 = vld [vmem:[%s18405_s15 + $0x7c8] sm:$0xff]  ;;  %v14728_v54 = vcombine.low %v3366_v52, %v3374_v40 }
 0x562   : > { %v3390_v18 = vld [vmem:[%s18405_s15 + $0x7c0] sm:$0xff]  ;;  %v19013_v43 = vrot.slane %v3092_v22, %v18953_v36  ;;  %v3399_v21 = vld [vmem:[%s18405_s15 + $0x808] sm:$0xff]  ;;  %v14746_v0 = vcombine.low %v3383_v5, %v3391_v30 }
 0x563   : > { %9301 = vmatpush1.bf16.msra.mxu0 %v14616_v45  ;;  %9465 = vmatpush1.bf16.msra.mxu1 %v14618_v33  ;;  %v14745_v45 = vcombine.high %v3382_v38, %v3390_v18  ;;  %v14747_v33 = vcombine.high %v3383_v5, %v3391_v30  ;;  %v3407_v62 = vld [vmem:[%s18405_s15 + $0x848] sm:$0xff]  ;;  %v14744_v23 = vcombine.low %v3382_v38, %v3390_v18  ;;  %v3430_v60 = vld [vmem:[%s18405_s15 + $0x900] sm:$0xff] }
 0x564   : > { %9302 = vmatprep.subr.bf16.mxu0 %v14633_v29  ;;  %9466 = vmatprep.subr.bf16.mxu1 %v14635_v34  ;;  %v3398_v29 = vld [vmem:[%s18405_s15 + $0x800] sm:$0xff]  ;;  %v3108_v46 = vcombine.high %v19013_v43, %v19013_v43  ;;  %v3415_v6 = vld [vmem:[%s18405_s15 + $0x888] sm:$0xff] }
 0x565   : > { %v3406_v34 = vld [vmem:[%s18405_s15 + $0x840] sm:$0xff]  ;;  %v3423_v8 = vld [vmem:[%s18405_s15 + $0x8c8] sm:$0xff] }
 0x566   : > { %v3438_v4 = vld [vmem:[%s18405_s15 + $0x940] sm:$0xff]  ;;  %v19029_v42 = vpack.c.bf16 %v3108_v46, %v3108_v46  ;;  %v3431_v39 = vld [vmem:[%s18405_s15 + $0x908] sm:$0xff] }
 0x567   : > { %9303 = vmatpush1.bf16.msra.mxu0 %v14632_v7  ;;  %9467 = vmatpush1.bf16.msra.mxu1 %v14634_v3  ;;  %v14761_v7 = vcombine.high %v3398_v29, %v3406_v34  ;;  %v14763_v3 = vcombine.high %v3399_v21, %v3407_v62  ;;  %v3439_v51 = vld [vmem:[%s18405_s15 + $0x948] sm:$0xff]  ;;  %v3446_v57 = vld [vmem:[%s18405_s15 + $0x980] sm:$0xff] }
 0x568   : > { %9304 = vmatprep.subr.bf16.mxu0 %v14649_v41  ;;  %9468 = vmatprep.subr.bf16.mxu1 %v14651_v16  ;;  %v3414_v41 = vld [vmem:[%s18405_s15 + $0x880] sm:$0xff]  ;;  %v3447_v11 = vld [vmem:[%s18405_s15 + $0x988] sm:$0xff] }
 0x569   : > { %v3422_v16 = vld [vmem:[%s18405_s15 + $0x8c0] sm:$0xff]  ;;  %v3455_v59 = vld [vmem:[%s18405_s15 + $0x9c8] sm:$0xff] }
 0x56a   : > { %v3454_v26 = vld [vmem:[%s18405_s15 + $0x9c0] sm:$0xff]  ;;  %v3463_v19 = vld [vmem:[%s18405_s15 + $0xa08] sm:$0xff] }
 0x56b   : > { %9305 = vmatpush1.bf16.msra.mxu0 %v14648_v47  ;;  %9469 = vmatpush1.bf16.msra.mxu1 %v14650_v56  ;;  %v14760_v47 = vcombine.low %v3398_v29, %v3406_v34  ;;  %v14762_v56 = vcombine.low %v3399_v21, %v3407_v62  ;;  %v3462_v35 = vld [vmem:[%s18405_s15 + $0xa00] sm:$0xff]  ;;  %v3471_v14 = vld [vmem:[%s18405_s15 + $0xa48] sm:$0xff] }
 0x56c   : > { %9306 = vmatprep.subr.bf16.mxu0 %v14665_v1  ;;  %9470 = vmatprep.subr.bf16.mxu1 %v14667_v9  ;;  %v14777_v1 = vcombine.high %v3414_v41, %v3422_v16  ;;  %v14779_v9 = vcombine.high %v3415_v6, %v3423_v8  ;;  %v3470_v49 = vld [vmem:[%s18405_s15 + $0xa40] sm:$0xff]  ;;  %v3479_v20 = vld [vmem:[%s18405_s15 + $0xa88] sm:$0xff] }
 0x56d   : > { %v3478_v52 = vld [vmem:[%s18405_s15 + $0xa80] sm:$0xff]  ;;  %v3487_v61 = vld [vmem:[%s18405_s15 + $0xac8] sm:$0xff] }
 0x56e   : > { %v3486_v40 = vld [vmem:[%s18405_s15 + $0xac0] sm:$0xff]  ;;  %v3495_v22 = vld [vmem:[%s18405_s15 + $0xb08] sm:$0xff] }
 0x56f   : > { %9307 = vmatpush1.bf16.msra.mxu0 %v14664_v15  ;;  %9471 = vmatpush1.bf16.msra.mxu1 %v14666_v48  ;;  %v14776_v15 = vcombine.low %v3414_v41, %v3422_v16  ;;  %v14778_v48 = vcombine.low %v3415_v6, %v3423_v8  ;;  %v3494_v38 = vld [vmem:[%s18405_s15 + $0xb00] sm:$0xff]  ;;  %v3503_v5 = vld [vmem:[%s18405_s15 + $0xb48] sm:$0xff]  ;;  %v14840_v30 = vcombine.low %v3478_v52, %v3486_v40 }
 0x570   : > { %9308 = vmatprep.subr.bf16.mxu0 %v14681_v37  ;;  %9472 = vmatprep.subr.bf16.mxu1 %v14683_v10  ;;  %v14793_v37 = vcombine.high %v3430_v60, %v3438_v4  ;;  %v14795_v10 = vcombine.high %v3431_v39, %v3439_v51  ;;  %v3502_v18 = vld [vmem:[%s18405_s15 + $0xb40] sm:$0xff]  ;;  %v3511_v34 = vld [vmem:[%s18405_s15 + $0xb88] sm:$0xff] }
 0x571   : > { %v3518_v29 = vld [vmem:[%s18405_s15 + $0xbc0] sm:$0xff]  ;;  %v3519_v21 = vld [vmem:[%s18405_s15 + $0xbc8] sm:$0xff]  ;;  %v14856_v62 = vcombine.low %v3494_v38, %v3502_v18 }
 0x572   : > { %v3534_v41 = vld [vmem:[%s18405_s15 + $0xc40] sm:$0xff]  ;;  %v3527_v16 = vld [vmem:[%s18405_s15 + $0xc08] sm:$0xff]  ;;  %v14874_v8 = vcombine.low %v3511_v34, %v3519_v21 }
 0x573   : > { %9309 = vmatpush1.bf16.msra.mxu0 %v14680_v50  ;;  %9473 = vmatpush1.bf16.msra.mxu1 %v14682_v31  ;;  %v14792_v50 = vcombine.low %v3430_v60, %v3438_v4  ;;  %v14794_v31 = vcombine.low %v3431_v39, %v3439_v51  ;;  %v3535_v46 = vld [vmem:[%s18405_s15 + $0xc48] sm:$0xff] }
 0x574   : > { %9310 = vmatprep.subr.bf16.mxu0 %v14697_v13  ;;  %9474 = vmatprep.subr.bf16.mxu1 %v14699_v27  ;;  %v14809_v13 = vcombine.high %v3446_v57, %v3454_v26  ;;  %v14811_v27 = vcombine.high %v3447_v11, %v3455_v59  ;;  %v3543_v60 = vld [vmem:[%s18405_s15 + $0xc88] sm:$0xff]  ;;  %v14890_v51 = vcombine.low %v3527_v16, %v3535_v46 }
 0x575   : > { %v3551_v4 = vld [vmem:[%s18405_s15 + $0xcc8] sm:$0xff] }
 0x577   : > { %9311 = vmatpush1.bf16.msra.mxu0 %v14696_v63  ;;  %9475 = vmatpush1.bf16.msra.mxu1 %v14698_v24  ;;  %v14808_v63 = vcombine.low %v3446_v57, %v3454_v26  ;;  %v14810_v24 = vcombine.low %v3447_v11, %v3455_v59  ;;  %v3559_v57 = vld [vmem:[%s18405_s15 + $0xd08] sm:$0xff]  ;;  %v14906_v59 = vcombine.low %v3543_v60, %v3551_v4 }
 0x578   : > { %9312 = vmatprep.subr.bf16.mxu0 %v14713_v2  ;;  %9476 = vmatprep.subr.bf16.mxu1 %v14715_v17  ;;  %v14825_v2 = vcombine.high %v3462_v35, %v3470_v49  ;;  %v14827_v17 = vcombine.high %v3463_v19, %v3471_v14  ;;  %v3567_v26 = vld [vmem:[%s18405_s15 + $0xd48] sm:$0xff] }
 0x57b   : > { %9313 = vmatpush1.bf16.msra.mxu0 %v14712_v58  ;;  %9477 = vmatpush1.bf16.msra.mxu1 %v14714_v53  ;;  %v14824_v58 = vcombine.low %v3462_v35, %v3470_v49  ;;  %v14826_v53 = vcombine.low %v3463_v19, %v3471_v14  ;;  %v3575_v35 = vld [vmem:[%s18405_s15 + $0xd88] sm:$0xff]  ;;  %v14922_v14 = vcombine.low %v3559_v57, %v3567_v26 }
 0x57c   : > { %9314 = vmatprep.subr.bf16.mxu0 %v14729_v55  ;;  %9478 = vmatprep.subr.bf16.mxu1 %v14731_v25  ;;  %v14841_v55 = vcombine.high %v3478_v52, %v3486_v40  ;;  %v14843_v25 = vcombine.high %v3479_v20, %v3487_v61  ;;  %v3583_v49 = vld [vmem:[%s18405_s15 + $0xdc8] sm:$0xff] }
 0x57d   : > { %v3591_v52 = vld [vmem:[%s18405_s15 + $0xe08] sm:$0xff] }
 0x57e   : > { %v3599_v40 = vld [vmem:[%s18405_s15 + $0xe48] sm:$0xff] }
 0x57f   : > { %9315 = vmatpush1.bf16.msra.mxu0 %v14728_v54  ;;  %9479 = vmatpush1.bf16.msra.mxu1 %v14730_v32  ;;  %v14842_v54 = vcombine.low %v3479_v20, %v3487_v61  ;;  %v14857_v32 = vcombine.high %v3494_v38, %v3502_v18  ;;  %v14938_v61 = vcombine.low %v3575_v35, %v3583_v49  ;;  %v3607_v38 = vld [vmem:[%s18405_s15 + $0xe88] sm:$0xff] }
 0x580   : > { %9316 = vmatprep.subr.bf16.mxu0 %v14745_v45  ;;  %9480 = vmatprep.subr.bf16.mxu1 %v14747_v33  ;;  %v14859_v45 = vcombine.high %v3495_v22, %v3503_v5  ;;  %v3510_v33 = vld [vmem:[%s18405_s15 + $0xb80] sm:$0xff]  ;;  %v3615_v18 = vld [vmem:[%s18405_s15 + $0xec8] sm:$0xff] }
 0x581   : > { %v14872_v6 = vcombine.low %v3510_v33, %v3518_v29 }
 0x583   : > { %9317 = vmatpush1.bf16.msra.mxu0 %v14744_v23  ;;  %9481 = vmatpush1.bf16.msra.mxu1 %v14746_v0  ;;  %v14858_v23 = vcombine.low %v3495_v22, %v3503_v5  ;;  %v14873_v0 = vcombine.high %v3510_v33, %v3518_v29  ;;  %v14954_v5 = vcombine.low %v3591_v52, %v3599_v40  ;;  %v3623_v33 = vld [vmem:[%s18405_s15 + $0xf08] sm:$0xff] }
 0x584   : > { %9327 = vmatprep.subr.bf16.mxu0 %v14761_v7  ;;  %9491 = vmatprep.subr.bf16.mxu1 %v14763_v3  ;;  %v14875_v7 = vcombine.high %v3511_v34, %v3519_v21  ;;  %v3526_v3 = vld [vmem:[%s18405_s15 + $0xc00] sm:$0xff]  ;;  %v3631_v29 = vld [vmem:[%s18405_s15 + $0xf48] sm:$0xff]  ;;  %v14970_v21 = vcombine.low %v3607_v38, %v3615_v18 }
 0x585   : > { %v14888_v39 = vcombine.low %v3526_v3, %v3534_v41 }
 0x586   : > { %9319 = vmatmul.mubr.bf16.vlgmr.msra.gmra.mrb[0].mxu0 %v19023_v28  ;;  %9483 = vmatmul.mubr.bf16.vlgmr.msra.gmra.mrb[0].mxu1 %v19023_v28 }
 0x587   : > { %9328 = vmatpush1.bf16.msra.mxu0 %v14760_v47  ;;  %9492 = vmatpush1.bf16.msra.mxu1 %v14762_v56  ;;  %v14889_v47 = vcombine.high %v3526_v3, %v3534_v41  ;;  %v14891_v56 = vcombine.high %v3527_v16, %v3535_v46  ;;  %v3639_v3 = vld [vmem:[%s18405_s15 + $0xf88] sm:$0xff] }
 0x588   : > { %9329 = vmatprep.subr.bf16.mxu0 %v14777_v1  ;;  %9493 = vmatprep.subr.bf16.mxu1 %v14779_v9  ;;  %v3542_v1 = vld [vmem:[%s18405_s15 + $0xc80] sm:$0xff]  ;;  %v3647_v41 = vld [vmem:[%s18405_s15 + $0xfc8] sm:$0xff] }
 0x589   : > { %9359 = vmatprep.mubr.bf16.mxu0 %v19029_v42  ;;  %9523 = vmatprep.mubr.bf16.mxu1 %v19029_v42  ;;  %v3550_v9 = vld [vmem:[%s18405_s15 + $0xcc0] sm:$0xff] }
 0x58a   : > { %v14904_v11 = vcombine.low %v3542_v1, %v3550_v9  ;;  %v19090_v16 = vld [vmem:[%s18957_s20 + $0x8] sm:$0xff] }
 0x58b   : > { %9330 = vmatpush1.bf16.msra.mxu0 %v14776_v15  ;;  %9494 = vmatpush1.bf16.msra.mxu1 %v14778_v48  ;;  %v14905_v15 = vcombine.high %v3542_v1, %v3550_v9  ;;  %v14907_v48 = vcombine.high %v3543_v60, %v3551_v4  ;;  %v3662_v1 = vld [vmem:[%s18405_s15 + $0x1040] sm:$0xff]  ;;  %v19096_v9 = vrot.slane %v19090_v16, %v18953_v36  ;;  %v3655_v60 = vld [vmem:[%s18405_s15 + $0x1008] sm:$0xff] }
 0x58c   : > { %9331 = vmatprep.subr.bf16.mxu0 %v14793_v37  ;;  %9495 = vmatprep.subr.bf16.mxu1 %v14795_v10  ;;  %v3558_v37 = vld [vmem:[%s18405_s15 + $0xd00] sm:$0xff]  ;;  %v3663_v4 = vld [vmem:[%s18405_s15 + $0x1048] sm:$0xff] }
 0x58d   : > { %v3566_v10 = vld [vmem:[%s18405_s15 + $0xd40] sm:$0xff] }
 0x58e   : > { %v14920_v19 = vcombine.low %v3558_v37, %v3566_v10 }
 0x58f   : > { %9332 = vmatpush1.bf16.msra.mxu0 %v14792_v50  ;;  %9496 = vmatpush1.bf16.msra.mxu1 %v14794_v31  ;;  %v14921_v50 = vcombine.high %v3558_v37, %v3566_v10  ;;  %v14923_v31 = vcombine.high %v3559_v57, %v3567_v26  ;;  %v3670_v37 = vld [vmem:[%s18405_s15 + $0x1080] sm:$0xff]  ;;  %v3124_v57 = vcombine.high %v19096_v9, %v19096_v9 }
 0x590   : > { %9333 = vmatprep.subr.bf16.mxu0 %v14809_v13  ;;  %9497 = vmatprep.subr.bf16.mxu1 %v14811_v27  ;;  %v3574_v13 = vld [vmem:[%s18405_s15 + $0xd80] sm:$0xff]  ;;  %v19106_v26 = vpack.c.bf16 %v19013_v43, %v19013_v43  ;;  %v3687_v43 = vld [vmem:[%s18405_s15 + $0x1108] sm:$0xff] }
 0x591   : > { %v3582_v27 = vld [vmem:[%s18405_s15 + $0xdc0] sm:$0xff] }
 0x592   : > { %v14936_v20 = vcombine.low %v3574_v13, %v3582_v27  ;;  %v3678_v10 = vld [vmem:[%s18405_s15 + $0x10c0] sm:$0xff] }
 0x593   : > { %9334 = vmatpush1.bf16.msra.mxu0 %v14808_v63  ;;  %9498 = vmatpush1.bf16.msra.mxu1 %v14810_v24  ;;  %v14937_v63 = vcombine.high %v3574_v13, %v3582_v27  ;;  %v14939_v24 = vcombine.high %v3575_v35, %v3583_v49  ;;  %v15033_v13 = vcombine.high %v3670_v37, %v3678_v10  ;;  %v3686_v35 = vld [vmem:[%s18405_s15 + $0x1100] sm:$0xff] }
 0x594   : > { %9335 = vmatprep.subr.bf16.mxu0 %v14825_v2  ;;  %9499 = vmatprep.subr.bf16.mxu1 %v14827_v17  ;;  %v3590_v2 = vld [vmem:[%s18405_s15 + $0xe00] sm:$0xff] }
 0x595   : > { %v3598_v17 = vld [vmem:[%s18405_s15 + $0xe40] sm:$0xff] }
 0x596   : > { %v14952_v22 = vcombine.low %v3590_v2, %v3598_v17  ;;  %v3694_v49 = vld [vmem:[%s18405_s15 + $0x1140] sm:$0xff] }
 0x597   : > { %9336 = vmatpush1.bf16.msra.mxu0 %v14824_v58  ;;  %9500 = vmatpush1.bf16.msra.mxu1 %v14826_v53  ;;  %v14953_v58 = vcombine.high %v3590_v2, %v3598_v17  ;;  %v14955_v53 = vcombine.high %v3591_v52, %v3599_v40  ;;  %v15049_v2 = vcombine.high %v3686_v35, %v3694_v49  ;;  %v3702_v52 = vld [vmem:[%s18405_s15 + $0x1180] sm:$0xff] }
 0x598   : > { %9337 = vmatprep.subr.bf16.mxu0 %v14841_v55  ;;  %9501 = vmatprep.subr.bf16.mxu1 %v14843_v25  ;;  %v3606_v55 = vld [vmem:[%s18405_s15 + $0xe80] sm:$0xff] }
 0x599   : > { %v3614_v25 = vld [vmem:[%s18405_s15 + $0xec0] sm:$0xff] }
 0x59a   : > { %v14968_v34 = vcombine.low %v3606_v55, %v3614_v25  ;;  %v3710_v40 = vld [vmem:[%s18405_s15 + $0x11c0] sm:$0xff] }
 0x59b   : > { %9338 = vmatpush1.bf16.msra.mxu0 %v14840_v30  ;;  %9502 = vmatpush1.bf16.msra.mxu1 %v14842_v54  ;;  %v14969_v30 = vcombine.high %v3606_v55, %v3614_v25  ;;  %v14971_v54 = vcombine.high %v3607_v38, %v3615_v18  ;;  %v15065_v55 = vcombine.high %v3702_v52, %v3710_v40  ;;  %v3718_v38 = vld [vmem:[%s18405_s15 + $0x1200] sm:$0xff] }
 0x59c   : > { %9339 = vmatprep.subr.bf16.mxu0 %v14857_v32  ;;  %9503 = vmatprep.subr.bf16.mxu1 %v14859_v45  ;;  %v3622_v32 = vld [vmem:[%s18405_s15 + $0xf00] sm:$0xff] }
 0x59d   : > { %v3630_v45 = vld [vmem:[%s18405_s15 + $0xf40] sm:$0xff] }
 0x59e   : > { %v14984_v46 = vcombine.low %v3622_v32, %v3630_v45  ;;  %v3726_v18 = vld [vmem:[%s18405_s15 + $0x1240] sm:$0xff] }
 0x59f   : > { %9340 = vmatpush1.bf16.msra.mxu0 %v14856_v62  ;;  %9504 = vmatpush1.bf16.msra.mxu1 %v14858_v23  ;;  %v14985_v62 = vcombine.high %v3622_v32, %v3630_v45  ;;  %v14987_v23 = vcombine.high %v3623_v33, %v3631_v29  ;;  %v15081_v32 = vcombine.high %v3718_v38, %v3726_v18 }
 0x5a0   : > { %9341 = vmatprep.subr.bf16.mxu0 %v14873_v0  ;;  %9505 = vmatprep.subr.bf16.mxu1 %v14875_v7  ;;  %v3638_v0 = vld [vmem:[%s18405_s15 + $0xf80] sm:$0xff] }
 0x5a1   : > { %v3646_v7 = vld [vmem:[%s18405_s15 + $0xfc0] sm:$0xff] }
 0x5a3   : > { %9342 = vmatpush1.bf16.msra.mxu0 %v14872_v6  ;;  %9506 = vmatpush1.bf16.msra.mxu1 %v14874_v8  ;;  %v14986_v6 = vcombine.low %v3623_v33, %v3631_v29  ;;  %v15001_v8 = vcombine.high %v3638_v0, %v3646_v7  ;;  %v3734_v33 = vld [vmem:[%s18405_s15 + $0x1280] sm:$0xff] }
 0x5a4   : > { %9343 = vmatprep.subr.bf16.mxu0 %v14889_v47  ;;  %9507 = vmatprep.subr.bf16.mxu1 %v14891_v56  ;;  %v15003_v47 = vcombine.high %v3639_v3, %v3647_v41  ;;  %v3654_v56 = vld [vmem:[%s18405_s15 + $0x1000] sm:$0xff] }
 0x5a5   : > { %v3742_v29 = vld [vmem:[%s18405_s15 + $0x12c0] sm:$0xff] }
 0x5a7   : > { %9344 = vmatpush1.bf16.msra.mxu0 %v14888_v39  ;;  %9508 = vmatpush1.bf16.msra.mxu1 %v14890_v51  ;;  %v15000_v39 = vcombine.low %v3638_v0, %v3646_v7  ;;  %v15002_v51 = vcombine.low %v3639_v3, %v3647_v41  ;;  %v15097_v0 = vcombine.high %v3734_v33, %v3742_v29  ;;  %v3750_v3 = vld [vmem:[%s18405_s15 + $0x1300] sm:$0xff] }
 0x5a8   : > { %9345 = vmatprep.subr.bf16.mxu0 %v14905_v15  ;;  %9509 = vmatprep.subr.bf16.mxu1 %v14907_v48  ;;  %v15017_v15 = vcombine.high %v3654_v56, %v3662_v1  ;;  %v15019_v48 = vcombine.high %v3655_v60, %v3663_v4  ;;  %v3758_v41 = vld [vmem:[%s18405_s15 + $0x1340] sm:$0xff] }
 0x5ab   : > { %9346 = vmatpush1.bf16.msra.mxu0 %v14904_v11  ;;  %9510 = vmatpush1.bf16.msra.mxu1 %v14906_v59  ;;  %v3671_v11 = vld [vmem:[%s18405_s15 + $0x1088] sm:$0xff] }
 0x5ac   : > { %9347 = vmatprep.subr.bf16.mxu0 %v14921_v50  ;;  %9511 = vmatprep.subr.bf16.mxu1 %v14923_v31  ;;  %v3679_v59 = vld [vmem:[%s18405_s15 + $0x10c8] sm:$0xff]  ;;  %v15016_v50 = vcombine.low %v3654_v56, %v3662_v1  ;;  %v15018_v31 = vcombine.low %v3655_v60, %v3663_v4  ;;  %v15113_v56 = vcombine.high %v3750_v3, %v3758_v41  ;;  %v3766_v60 = vld [vmem:[%s18405_s15 + $0x1380] sm:$0xff] }
 0x5ad   : > { %v15035_v27 = vcombine.high %v3671_v11, %v3679_v59  ;;  %v3774_v4 = vld [vmem:[%s18405_s15 + $0x13c0] sm:$0xff] }
 0x5af   : > { %9348 = vmatpush1.bf16.msra.mxu0 %v14920_v19  ;;  %9512 = vmatpush1.bf16.msra.mxu1 %v14922_v14  ;;  %v19112_v19 = vpack.c.bf16 %v3124_v57, %v3124_v57  ;;  %v3695_v14 = vld [vmem:[%s18405_s15 + $0x1148] sm:$0xff]  ;;  %v3782_v57 = vld [vmem:[%s18405_s15 + $0x1400] sm:$0xff] }
 0x5b0   : > { %9349 = vmatprep.subr.bf16.mxu0 %v14937_v63  ;;  %9513 = vmatprep.subr.bf16.mxu1 %v14939_v24  ;;  %v15032_v63 = vcombine.low %v3670_v37, %v3678_v10  ;;  %v15034_v24 = vcombine.low %v3671_v11, %v3679_v59  ;;  %v15051_v17 = vcombine.high %v3687_v43, %v3695_v14  ;;  %v3790_v11 = vld [vmem:[%s18405_s15 + $0x1440] sm:$0xff]  ;;  %v3783_v59 = vld [vmem:[%s18405_s15 + $0x1408] sm:$0xff] }
 0x5b1   : > { %v15129_v37 = vcombine.high %v3766_v60, %v3774_v4 }
 0x5b3   : > { %9350 = vmatpush1.bf16.msra.mxu0 %v14936_v20  ;;  %9514 = vmatpush1.bf16.msra.mxu1 %v14938_v61  ;;  %v3703_v20 = vld [vmem:[%s18405_s15 + $0x1188] sm:$0xff] }
 0x5b4   : > { %9351 = vmatprep.subr.bf16.mxu0 %v14953_v58  ;;  %9515 = vmatprep.subr.bf16.mxu1 %v14955_v53  ;;  %v3711_v61 = vld [vmem:[%s18405_s15 + $0x11c8] sm:$0xff]  ;;  %v15048_v58 = vcombine.low %v3686_v35, %v3694_v49  ;;  %v15050_v53 = vcombine.low %v3687_v43, %v3695_v14  ;;  %v3798_v49 = vld [vmem:[%s18405_s15 + $0x1480] sm:$0xff] }
 0x5b5   : > { %v15067_v25 = vcombine.high %v3703_v20, %v3711_v61  ;;  %v3806_v43 = vld [vmem:[%s18405_s15 + $0x14c0] sm:$0xff]  ;;  %v3799_v14 = vld [vmem:[%s18405_s15 + $0x1488] sm:$0xff] }
 0x5b7   : > { %9352 = vmatpush1.bf16.msra.mxu0 %v14952_v22  ;;  %9516 = vmatpush1.bf16.msra.mxu1 %v14954_v5  ;;  %v3719_v22 = vld [vmem:[%s18405_s15 + $0x1208] sm:$0xff] }
 0x5b8   : > { %9353 = vmatprep.subr.bf16.mxu0 %v14969_v30  ;;  %9517 = vmatprep.subr.bf16.mxu1 %v14971_v54  ;;  %v3727_v5 = vld [vmem:[%s18405_s15 + $0x1248] sm:$0xff]  ;;  %v15064_v30 = vcombine.low %v3702_v52, %v3710_v40  ;;  %v15066_v54 = vcombine.low %v3703_v20, %v3711_v61  ;;  %v3814_v40 = vld [vmem:[%s18405_s15 + $0x1500] sm:$0xff] }
 0x5b9   : > { %v15083_v45 = vcombine.high %v3719_v22, %v3727_v5  ;;  %v3822_v20 = vld [vmem:[%s18405_s15 + $0x1540] sm:$0xff]  ;;  %v3815_v61 = vld [vmem:[%s18405_s15 + $0x1508] sm:$0xff] }
 0x5bb   : > { %9354 = vmatpush1.bf16.msra.mxu0 %v14968_v34  ;;  %9518 = vmatpush1.bf16.msra.mxu1 %v14970_v21  ;;  %v3735_v34 = vld [vmem:[%s18405_s15 + $0x1288] sm:$0xff] }
 0x5bc   : > { %9355 = vmatprep.subr.bf16.mxu0 %v14985_v62  ;;  %9519 = vmatprep.subr.bf16.mxu1 %v14987_v23  ;;  %v3743_v21 = vld [vmem:[%s18405_s15 + $0x12c8] sm:$0xff]  ;;  %v15080_v62 = vcombine.low %v3718_v38, %v3726_v18  ;;  %v15082_v23 = vcombine.low %v3719_v22, %v3727_v5  ;;  %v3830_v18 = vld [vmem:[%s18405_s15 + $0x1580] sm:$0xff] }
 0x5bd   : > { %v15099_v7 = vcombine.high %v3735_v34, %v3743_v21  ;;  %v3838_v22 = vld [vmem:[%s18405_s15 + $0x15c0] sm:$0xff]  ;;  %v3831_v5 = vld [vmem:[%s18405_s15 + $0x1588] sm:$0xff] }
 0x5bf   : > { %9356 = vmatpush1.bf16.msra.mxu0 %v14984_v46  ;;  %9520 = vmatpush1.bf16.msra.mxu1 %v14986_v6  ;;  %v3751_v46 = vld [vmem:[%s18405_s15 + $0x1308] sm:$0xff] }
 0x5c0   : > { %9357 = vmatprep.subr.bf16.mxu0 %v15001_v8  ;;  %9521 = vmatprep.subr.bf16.mxu1 %v15003_v47  ;;  %v3759_v6 = vld [vmem:[%s18405_s15 + $0x1348] sm:$0xff]  ;;  %v15096_v8 = vcombine.low %v3734_v33, %v3742_v29  ;;  %v15098_v47 = vcombine.low %v3735_v34, %v3743_v21  ;;  %v3846_v29 = vld [vmem:[%s18405_s15 + $0x1600] sm:$0xff] }
 0x5c1   : > { %v15115_v1 = vcombine.high %v3751_v46, %v3759_v6  ;;  %v3854_v34 = vld [vmem:[%s18405_s15 + $0x1640] sm:$0xff]  ;;  %v3847_v21 = vld [vmem:[%s18405_s15 + $0x1608] sm:$0xff] }
 0x5c3   : > { %9358 = vmatpush1.bf16.msra.mxu0 %v15000_v39  ;;  %9522 = vmatpush1.bf16.msra.mxu1 %v15002_v51  ;;  %v3767_v39 = vld [vmem:[%s18405_s15 + $0x1388] sm:$0xff] }
 0x5c4   : > { %9368 = vmatprep.subr.bf16.mxu0 %v15017_v15  ;;  %9532 = vmatprep.subr.bf16.mxu1 %v15019_v48  ;;  %v3775_v51 = vld [vmem:[%s18405_s15 + $0x13c8] sm:$0xff]  ;;  %v15112_v15 = vcombine.low %v3750_v3, %v3758_v41  ;;  %v15114_v48 = vcombine.low %v3751_v46, %v3759_v6  ;;  %v3862_v41 = vld [vmem:[%s18405_s15 + $0x1680] sm:$0xff] }
 0x5c5   : > { %v15131_v10 = vcombine.high %v3767_v39, %v3775_v51  ;;  %v3870_v46 = vld [vmem:[%s18405_s15 + $0x16c0] sm:$0xff]  ;;  %v3863_v6 = vld [vmem:[%s18405_s15 + $0x1688] sm:$0xff] }
 0x5c6   : > { %9360 = vmatmul.mubr.bf16.vlgmr.msra.gmra.mrb[0].mxu0 %v19106_v26  ;;  %9524 = vmatmul.mubr.bf16.vlgmr.msra.gmra.mrb[0].mxu1 %v19106_v26 }
 0x5c7   : > { %9369 = vmatpush1.bf16.msra.mxu0 %v15016_v50  ;;  %9533 = vmatpush1.bf16.msra.mxu1 %v15018_v31  ;;  %v3791_v50 = vld [vmem:[%s18405_s15 + $0x1448] sm:$0xff]  ;;  %v15128_v31 = vcombine.low %v3766_v60, %v3774_v4  ;;  %v3878_v4 = vld [vmem:[%s18405_s15 + $0x1700] sm:$0xff] }
 0x5c8   : > { %9370 = vmatprep.subr.bf16.mxu0 %v15033_v13  ;;  %9534 = vmatprep.subr.bf16.mxu1 %v15035_v27  ;;  %v15130_v13 = vcombine.low %v3767_v39, %v3775_v51  ;;  %v15145_v27 = vcombine.high %v3782_v57, %v3790_v11  ;;  %v15147_v35 = vcombine.high %v3783_v59, %v3791_v50  ;;  %v3886_v39 = vld [vmem:[%s18405_s15 + $0x1740] sm:$0xff]  ;;  %v3879_v51 = vld [vmem:[%s18405_s15 + $0x1708] sm:$0xff] }
 0x5c9   : > { %9400 = vmatprep.mubr.bf16.mxu0 %v19112_v19  ;;  %9564 = vmatprep.mubr.bf16.mxu1 %v19112_v19 }
 0x5cb   : > { %9371 = vmatpush1.bf16.msra.mxu0 %v15032_v63  ;;  %9535 = vmatpush1.bf16.msra.mxu1 %v15034_v24  ;;  %v3807_v63 = vld [vmem:[%s18405_s15 + $0x14c8] sm:$0xff]  ;;  %v15144_v24 = vcombine.low %v3782_v57, %v3790_v11  ;;  %v3894_v11 = vld [vmem:[%s18405_s15 + $0x1780] sm:$0xff] }
 0x5cc   : > { %9372 = vmatprep.subr.bf16.mxu0 %v15049_v2  ;;  %9536 = vmatprep.subr.bf16.mxu1 %v15051_v17  ;;  %v15146_v2 = vcombine.low %v3783_v59, %v3791_v50  ;;  %v15161_v17 = vcombine.high %v3798_v49, %v3806_v43  ;;  %v15163_v52 = vcombine.high %v3799_v14, %v3807_v63  ;;  %v3902_v59 = vld [vmem:[%s18405_s15 + $0x17c0] sm:$0xff] }
 0x5cd   : > { %v3109_v50 = vcombine.high %v19090_v16, %v19090_v16  ;;  %v3911_v16 = vld [vmem:[%s18405_s15 + $0x1808] sm:$0xff] }
 0x5cf   : > { %9373 = vmatpush1.bf16.msra.mxu0 %v15048_v58  ;;  %9537 = vmatpush1.bf16.msra.mxu1 %v15050_v53  ;;  %v3823_v58 = vld [vmem:[%s18405_s15 + $0x1548] sm:$0xff]  ;;  %v15160_v53 = vcombine.low %v3798_v49, %v3806_v43  ;;  %v15257_v49 = vcombine.high %v3894_v11, %v3902_v59 }
 0x5d0   : > { %9374 = vmatprep.subr.bf16.mxu0 %v15065_v55  ;;  %9538 = vmatprep.subr.bf16.mxu1 %v15067_v25  ;;  %v15162_v55 = vcombine.low %v3799_v14, %v3807_v63  ;;  %v15177_v25 = vcombine.high %v3814_v40, %v3822_v20  ;;  %v15179_v38 = vcombine.high %v3815_v61, %v3823_v58  ;;  %v3910_v14 = vld [vmem:[%s18405_s15 + $0x1800] sm:$0xff] }
 0x5d1   : > { %v3918_v63 = vld [vmem:[%s18405_s15 + $0x1840] sm:$0xff] }
 0x5d3   : > { %9375 = vmatpush1.bf16.msra.mxu0 %v15064_v30  ;;  %9539 = vmatpush1.bf16.msra.mxu1 %v15066_v54  ;;  %v3839_v30 = vld [vmem:[%s18405_s15 + $0x15c8] sm:$0xff]  ;;  %v15176_v54 = vcombine.low %v3814_v40, %v3822_v20  ;;  %v15273_v40 = vcombine.high %v3910_v14, %v3918_v63 }
 0x5d4   : > { %9376 = vmatprep.subr.bf16.mxu0 %v15081_v32  ;;  %9540 = vmatprep.subr.bf16.mxu1 %v15083_v45  ;;  %v15178_v32 = vcombine.low %v3815_v61, %v3823_v58  ;;  %v15193_v45 = vcombine.high %v3830_v18, %v3838_v22  ;;  %v15195_v33 = vcombine.high %v3831_v5, %v3839_v30  ;;  %v3926_v61 = vld [vmem:[%s18405_s15 + $0x1880] sm:$0xff] }
 0x5d5   : > { %v3934_v58 = vld [vmem:[%s18405_s15 + $0x18c0] sm:$0xff] }
 0x5d7   : > { %9377 = vmatpush1.bf16.msra.mxu0 %v15080_v62  ;;  %9541 = vmatpush1.bf16.msra.mxu1 %v15082_v23  ;;  %v3855_v62 = vld [vmem:[%s18405_s15 + $0x1648] sm:$0xff]  ;;  %v15192_v23 = vcombine.low %v3830_v18, %v3838_v22  ;;  %v15272_v18 = vcombine.low %v3910_v14, %v3918_v63 }
 0x5d8   : > { %9378 = vmatprep.subr.bf16.mxu0 %v15097_v0  ;;  %9542 = vmatprep.subr.bf16.mxu1 %v15099_v7  ;;  %v15194_v0 = vcombine.low %v3831_v5, %v3839_v30  ;;  %v15209_v7 = vcombine.high %v3846_v29, %v3854_v34  ;;  %v15211_v3 = vcombine.high %v3847_v21, %v3855_v62 }
 0x5d9   : > { %v15289_v5 = vcombine.high %v3926_v61, %v3934_v58 }
 0x5db   : > { %9379 = vmatpush1.bf16.msra.mxu0 %v15096_v8  ;;  %9543 = vmatpush1.bf16.msra.mxu1 %v15098_v47  ;;  %v3871_v8 = vld [vmem:[%s18405_s15 + $0x16c8] sm:$0xff]  ;;  %v15208_v47 = vcombine.low %v3846_v29, %v3854_v34  ;;  %v15288_v29 = vcombine.low %v3926_v61, %v3934_v58 }
 0x5dc   : > { %9380 = vmatprep.subr.bf16.mxu0 %v15113_v56  ;;  %9544 = vmatprep.subr.bf16.mxu1 %v15115_v1  ;;  %v15210_v56 = vcombine.low %v3847_v21, %v3855_v62  ;;  %v15225_v1 = vcombine.high %v3862_v41, %v3870_v46  ;;  %v15227_v60 = vcombine.high %v3863_v6, %v3871_v8 }
 0x5df   : > { %9381 = vmatpush1.bf16.msra.mxu0 %v15112_v15  ;;  %9545 = vmatpush1.bf16.msra.mxu1 %v15114_v48  ;;  %v3887_v15 = vld [vmem:[%s18405_s15 + $0x1748] sm:$0xff]  ;;  %v15224_v48 = vcombine.low %v3862_v41, %v3870_v46 }
 0x5e0   : > { %9382 = vmatprep.subr.bf16.mxu0 %v15129_v37  ;;  %9546 = vmatprep.subr.bf16.mxu1 %v15131_v10  ;;  %v15226_v37 = vcombine.low %v3863_v6, %v3871_v8  ;;  %v15241_v10 = vcombine.high %v3878_v4, %v3886_v39  ;;  %v15243_v57 = vcombine.high %v3879_v51, %v3887_v15 }
 0x5e3   : > { %9383 = vmatpush1.bf16.msra.mxu0 %v15128_v31  ;;  %9547 = vmatpush1.bf16.msra.mxu1 %v15130_v13  ;;  %v3895_v31 = vld [vmem:[%s18405_s15 + $0x1788] sm:$0xff] }
 0x5e4   : > { %9384 = vmatprep.subr.bf16.mxu0 %v15145_v27  ;;  %9548 = vmatprep.subr.bf16.mxu1 %v15147_v35  ;;  %v3903_v13 = vld [vmem:[%s18405_s15 + $0x17c8] sm:$0xff]  ;;  %v15240_v27 = vcombine.low %v3878_v4, %v3886_v39  ;;  %v15242_v35 = vcombine.low %v3879_v51, %v3887_v15 }
 0x5e5   : > { %v15259_v43 = vcombine.high %v3895_v31, %v3903_v13 }
 0x5e7   : > { %9385 = vmatpush1.bf16.msra.mxu0 %v15144_v24  ;;  %9549 = vmatpush1.bf16.msra.mxu1 %v15146_v2  ;;  %v19177_v24 = vrot.slane %v3109_v50, %v18953_v36  ;;  %v3919_v2 = vld [vmem:[%s18405_s15 + $0x1848] sm:$0xff] }
 0x5e8   : > { %9386 = vmatprep.subr.bf16.mxu0 %v15161_v17  ;;  %9550 = vmatprep.subr.bf16.mxu1 %v15163_v52  ;;  %v15256_v17 = vcombine.low %v3894_v11, %v3902_v59  ;;  %v15258_v52 = vcombine.low %v3895_v31, %v3903_v13  ;;  %v15275_v20 = vcombine.high %v3911_v16, %v3919_v2  ;;  %v4006_v13 = vld [vmem:[%s18405_s15 + $0x1b00] sm:$0xff] }
 0x5e9   : > { %v15274_v22 = vcombine.low %v3911_v16, %v3919_v2  ;;  %v4022_v2 = vld [vmem:[%s18405_s15 + $0x1b80] sm:$0xff] }
 0x5eb   : > { %9387 = vmatpush1.bf16.msra.mxu0 %v15160_v53  ;;  %9551 = vmatpush1.bf16.msra.mxu1 %v15162_v55  ;;  %v3125_v53 = vcombine.high %v19177_v24, %v19177_v24  ;;  %v19187_v55 = vpack.c.bf16 %v19096_v9, %v19096_v9  ;;  %v3943_v9 = vld [vmem:[%s18405_s15 + $0x1908] sm:$0xff] }
 0x5ec   : > { %9388 = vmatprep.subr.bf16.mxu0 %v15177_v25  ;;  %9552 = vmatprep.subr.bf16.mxu1 %v15179_v38  ;;  %v3927_v25 = vld [vmem:[%s18405_s15 + $0x1888] sm:$0xff] }
 0x5ed   : > { %v3935_v38 = vld [vmem:[%s18405_s15 + $0x18c8] sm:$0xff] }
 0x5ee   : > { %v15291_v30 = vcombine.high %v3927_v25, %v3935_v38  ;;  %v15290_v34 = vcombine.low %v3927_v25, %v3935_v38  ;;  %v4038_v25 = vld [vmem:[%s18405_s15 + $0x1c00] sm:$0xff] }
 0x5ef   : > { %9389 = vmatpush1.bf16.msra.mxu0 %v15176_v54  ;;  %9553 = vmatpush1.bf16.msra.mxu1 %v15178_v32  ;;  %v3942_v54 = vld [vmem:[%s18405_s15 + $0x1900] sm:$0xff] }
 0x5f0   : > { %9390 = vmatprep.subr.bf16.mxu0 %v15193_v45  ;;  %9554 = vmatprep.subr.bf16.mxu1 %v15195_v33  ;;  %v3950_v32 = vld [vmem:[%s18405_s15 + $0x1940] sm:$0xff]  ;;  %v19193_v45 = vpack.c.bf16 %v3125_v53, %v3125_v53  ;;  %v3951_v33 = vld [vmem:[%s18405_s15 + $0x1948] sm:$0xff] }
 0x5f1   : > { %v15305_v21 = vcombine.high %v3942_v54, %v3950_v32  ;;  %v15307_v62 = vcombine.high %v3943_v9, %v3951_v33  ;;  %v15304_v41 = vcombine.low %v3942_v54, %v3950_v32  ;;  %v15306_v46 = vcombine.low %v3943_v9, %v3951_v33  ;;  %v4046_v38 = vld [vmem:[%s18405_s15 + $0x1c40] sm:$0xff] }
 0x5f2   : > { %v15401_v54 = vcombine.high %v4038_v25, %v4046_v38  ;;  %v4054_v9 = vld [vmem:[%s18405_s15 + $0x1c80] sm:$0xff] }
 0x5f3   : > { %9391 = vmatpush1.bf16.msra.mxu0 %v15192_v23  ;;  %9555 = vmatpush1.bf16.msra.mxu1 %v15194_v0  ;;  %v3958_v23 = vld [vmem:[%s18405_s15 + $0x1980] sm:$0xff] }
 0x5f4   : > { %9392 = vmatprep.subr.bf16.mxu0 %v15209_v7  ;;  %9556 = vmatprep.subr.bf16.mxu1 %v15211_v3  ;;  %v3966_v0 = vld [vmem:[%s18405_s15 + $0x19c0] sm:$0xff]  ;;  %v3959_v7 = vld [vmem:[%s18405_s15 + $0x1988] sm:$0xff] }
 0x5f5   : > { %v3967_v3 = vld [vmem:[%s18405_s15 + $0x19c8] sm:$0xff]  ;;  %v15321_v6 = vcombine.high %v3958_v23, %v3966_v0  ;;  %v15320_v4 = vcombine.low %v3958_v23, %v3966_v0  ;;  %v4062_v33 = vld [vmem:[%s18405_s15 + $0x1cc0] sm:$0xff] }
 0x5f6   : > { %v15323_v8 = vcombine.high %v3959_v7, %v3967_v3  ;;  %v15322_v39 = vcombine.low %v3959_v7, %v3967_v3  ;;  %v15417_v23 = vcombine.high %v4054_v9, %v4062_v33  ;;  %v4070_v7 = vld [vmem:[%s18405_s15 + $0x1d00] sm:$0xff] }
 0x5f7   : > { %9393 = vmatpush1.bf16.msra.mxu0 %v15208_v47  ;;  %9557 = vmatpush1.bf16.msra.mxu1 %v15210_v56  ;;  %v3974_v47 = vld [vmem:[%s18405_s15 + $0x1a00] sm:$0xff] }
 0x5f8   : > { %9394 = vmatprep.subr.bf16.mxu0 %v15225_v1  ;;  %9558 = vmatprep.subr.bf16.mxu1 %v15227_v60  ;;  %v3982_v56 = vld [vmem:[%s18405_s15 + $0x1a40] sm:$0xff]  ;;  %v3975_v1 = vld [vmem:[%s18405_s15 + $0x1a08] sm:$0xff] }
 0x5f9   : > { %v3983_v60 = vld [vmem:[%s18405_s15 + $0x1a48] sm:$0xff]  ;;  %v15337_v51 = vcombine.high %v3974_v47, %v3982_v56  ;;  %v15336_v11 = vcombine.low %v3974_v47, %v3982_v56  ;;  %v4078_v3 = vld [vmem:[%s18405_s15 + $0x1d40] sm:$0xff] }
 0x5fa   : > { %v15339_v15 = vcombine.high %v3975_v1, %v3983_v60  ;;  %v15338_v59 = vcombine.low %v3975_v1, %v3983_v60  ;;  %v15433_v47 = vcombine.high %v4070_v7, %v4078_v3  ;;  %v4086_v1 = vld [vmem:[%s18405_s15 + $0x1d80] sm:$0xff] }
 0x5fb   : > { %9395 = vmatpush1.bf16.msra.mxu0 %v15224_v48  ;;  %9559 = vmatpush1.bf16.msra.mxu1 %v15226_v37  ;;  %v3990_v48 = vld [vmem:[%s18405_s15 + $0x1a80] sm:$0xff] }
 0x5fc   : > { %9396 = vmatprep.subr.bf16.mxu0 %v15241_v10  ;;  %9560 = vmatprep.subr.bf16.mxu1 %v15243_v57  ;;  %v3998_v37 = vld [vmem:[%s18405_s15 + $0x1ac0] sm:$0xff]  ;;  %v3991_v10 = vld [vmem:[%s18405_s15 + $0x1a88] sm:$0xff] }
 0x5fd   : > { %v3999_v57 = vld [vmem:[%s18405_s15 + $0x1ac8] sm:$0xff]  ;;  %v15353_v50 = vcombine.high %v3990_v48, %v3998_v37  ;;  %v4094_v60 = vld [vmem:[%s18405_s15 + $0x1dc0] sm:$0xff] }
 0x5fe   : > { %v15355_v31 = vcombine.high %v3991_v10, %v3999_v57  ;;  %v15354_v14 = vcombine.low %v3991_v10, %v3999_v57  ;;  %v4102_v10 = vld [vmem:[%s18405_s15 + $0x1e00] sm:$0xff] }
 0x5ff   : > { %9397 = vmatpush1.bf16.msra.mxu0 %v15240_v27  ;;  %9561 = vmatpush1.bf16.msra.mxu1 %v15242_v35  ;;  %v4014_v27 = vld [vmem:[%s18405_s15 + $0x1b40] sm:$0xff]  ;;  %v4007_v35 = vld [vmem:[%s18405_s15 + $0x1b08] sm:$0xff] }
 0x600   : > { %9398 = vmatprep.subr.bf16.mxu0 %v15257_v49  ;;  %9562 = vmatprep.subr.bf16.mxu1 %v15259_v43  ;;  %v4015_v49 = vld [vmem:[%s18405_s15 + $0x1b48] sm:$0xff]  ;;  %v15352_v43 = vcombine.low %v3990_v48, %v3998_v37  ;;  %v15369_v63 = vcombine.high %v4006_v13, %v4014_v27  ;;  %v15449_v48 = vcombine.high %v4086_v1, %v4094_v60  ;;  %v4110_v57 = vld [vmem:[%s18405_s15 + $0x1e40] sm:$0xff] }
 0x601   : > { %v15371_v16 = vcombine.high %v4007_v35, %v4015_v49  ;;  %v15370_v61 = vcombine.low %v4007_v35, %v4015_v49  ;;  %v4118_v35 = vld [vmem:[%s18405_s15 + $0x1e80] sm:$0xff] }
 0x602   : > { %v4126_v49 = vld [vmem:[%s18405_s15 + $0x1ec0] sm:$0xff] }
 0x603   : > { %9399 = vmatpush1.bf16.msra.mxu0 %v15256_v17  ;;  %9563 = vmatpush1.bf16.msra.mxu1 %v15258_v52  ;;  %v4030_v17 = vld [vmem:[%s18405_s15 + $0x1bc0] sm:$0xff]  ;;  %v4023_v52 = vld [vmem:[%s18405_s15 + $0x1b88] sm:$0xff] }
 0x604   : > { %9409 = vmatprep.subr.bf16.mxu0 %v15273_v40  ;;  %9573 = vmatprep.subr.bf16.mxu1 %v15275_v20  ;;  %v4031_v40 = vld [vmem:[%s18405_s15 + $0x1bc8] sm:$0xff]  ;;  %v15368_v20 = vcombine.low %v4006_v13, %v4014_v27  ;;  %v15385_v58 = vcombine.high %v4022_v2, %v4030_v17  ;;  %v15465_v13 = vcombine.high %v4102_v10, %v4110_v57 }
 0x605   : > { %v15387_v53 = vcombine.high %v4023_v52, %v4031_v40 }
 0x606   : > { %9401 = vmatmul.mubr.bf16.vlgmr.msra.gmra.mrb[0].mxu0 %v19187_v55  ;;  %9565 = vmatmul.mubr.bf16.vlgmr.msra.gmra.mrb[0].mxu1 %v19187_v55 }
 0x607   : > { %9410 = vmatpush1.bf16.msra.mxu0 %v15272_v18  ;;  %9574 = vmatpush1.bf16.msra.mxu1 %v15274_v22  ;;  %v4039_v18 = vld [vmem:[%s18405_s15 + $0x1c08] sm:$0xff] }
 0x608   : > { %9411 = vmatprep.subr.bf16.mxu0 %v15289_v5  ;;  %9575 = vmatprep.subr.bf16.mxu1 %v15291_v30  ;;  %v4047_v22 = vld [vmem:[%s18405_s15 + $0x1c48] sm:$0xff]  ;;  %v15384_v5 = vcombine.low %v4022_v2, %v4030_v17  ;;  %v15386_v30 = vcombine.low %v4023_v52, %v4031_v40  ;;  %v15481_v2 = vcombine.high %v4118_v35, %v4126_v49  ;;  %v4134_v52 = vld [vmem:[%s18405_s15 + $0x1f00] sm:$0xff] }
 0x609   : > { %9441 = vmatprep.mubr.bf16.mxu0 %v19193_v45  ;;  %9605 = vmatprep.mubr.bf16.mxu1 %v19193_v45  ;;  %v15403_v32 = vcombine.high %v4039_v18, %v4047_v22  ;;  %v4142_v40 = vld [vmem:[%s18405_s15 + $0x1f40] sm:$0xff] }
 0x60b   : > { %9412 = vmatpush1.bf16.msra.mxu0 %v15288_v29  ;;  %9576 = vmatpush1.bf16.msra.mxu1 %v15290_v34  ;;  %v4055_v29 = vld [vmem:[%s18405_s15 + $0x1c88] sm:$0xff] }
 0x60c   : > { %9413 = vmatprep.subr.bf16.mxu0 %v15305_v21  ;;  %9577 = vmatprep.subr.bf16.mxu1 %v15307_v62  ;;  %v4063_v34 = vld [vmem:[%s18405_s15 + $0x1cc8] sm:$0xff]  ;;  %v15400_v21 = vcombine.low %v4038_v25, %v4046_v38  ;;  %v15402_v62 = vcombine.low %v4039_v18, %v4047_v22  ;;  %v15497_v25 = vcombine.high %v4134_v52, %v4142_v40  ;;  %v4150_v18 = vld [vmem:[%s18405_s15 + $0x1f80] sm:$0xff] }
 0x60d   : > { %v15419_v0 = vcombine.high %v4055_v29, %v4063_v34  ;;  %v4158_v22 = vld [vmem:[%s18405_s15 + $0x1fc0] sm:$0xff] }
 0x60f   : > { %9414 = vmatpush1.bf16.msra.mxu0 %v15304_v41  ;;  %9578 = vmatpush1.bf16.msra.mxu1 %v15306_v46  ;;  %v4071_v41 = vld [vmem:[%s18405_s15 + $0x1d08] sm:$0xff] }
 0x610   : > { %9415 = vmatprep.subr.bf16.mxu0 %v15321_v6  ;;  %9579 = vmatprep.subr.bf16.mxu1 %v15323_v8  ;;  %v4079_v46 = vld [vmem:[%s18405_s15 + $0x1d48] sm:$0xff]  ;;  %v15416_v6 = vcombine.low %v4054_v9, %v4062_v33  ;;  %v15418_v8 = vcombine.low %v4055_v29, %v4063_v34  ;;  %v15513_v9 = vcombine.high %v4150_v18, %v4158_v22  ;;  %v3144_v29 = vld [vmem:[%s18405_s15 + $0x10] sm:$0xff] }
 0x611   : > { %v15435_v56 = vcombine.high %v4071_v41, %v4079_v46  ;;  %v3152_v34 = vld [vmem:[%s18405_s15 + $0x50] sm:$0xff] }
 0x613   : > { %9416 = vmatpush1.bf16.msra.mxu0 %v15320_v4  ;;  %9580 = vmatpush1.bf16.msra.mxu1 %v15322_v39  ;;  %v4087_v4 = vld [vmem:[%s18405_s15 + $0x1d88] sm:$0xff] }
 0x614   : > { %9417 = vmatprep.subr.bf16.mxu0 %v15337_v51  ;;  %9581 = vmatprep.subr.bf16.mxu1 %v15339_v15  ;;  %v4095_v39 = vld [vmem:[%s18405_s15 + $0x1dc8] sm:$0xff]  ;;  %v15432_v51 = vcombine.low %v4070_v7, %v4078_v3  ;;  %v15434_v15 = vcombine.low %v4071_v41, %v4079_v46  ;;  %v14509_v7 = vcombine.high %v3144_v29, %v3152_v34  ;;  %v3160_v41 = vld [vmem:[%s18405_s15 + $0x90] sm:$0xff] }
 0x615   : > { %v15451_v37 = vcombine.high %v4087_v4, %v4095_v39  ;;  %v3168_v46 = vld [vmem:[%s18405_s15 + $0xd0] sm:$0xff] }
 0x617   : > { %9418 = vmatpush1.bf16.msra.mxu0 %v15336_v11  ;;  %9582 = vmatpush1.bf16.msra.mxu1 %v15338_v59  ;;  %v4103_v11 = vld [vmem:[%s18405_s15 + $0x1e08] sm:$0xff] }
 0x618   : > { %9419 = vmatprep.subr.bf16.mxu0 %v15353_v50  ;;  %9583 = vmatprep.subr.bf16.mxu1 %v15355_v31  ;;  %v4111_v59 = vld [vmem:[%s18405_s15 + $0x1e48] sm:$0xff]  ;;  %v15448_v50 = vcombine.low %v4086_v1, %v4094_v60  ;;  %v15450_v31 = vcombine.low %v4087_v4, %v4095_v39  ;;  %v14525_v60 = vcombine.high %v3160_v41, %v3168_v46  ;;  %v3176_v39 = vld [vmem:[%s18405_s15 + $0x110] sm:$0xff] }
 0x619   : > { %v15467_v27 = vcombine.high %v4103_v11, %v4111_v59 }
 0x61b   : > { %9420 = vmatpush1.bf16.msra.mxu0 %v15352_v43  ;;  %9584 = vmatpush1.bf16.msra.mxu1 %v15354_v14  ;;  %v4119_v43 = vld [vmem:[%s18405_s15 + $0x1e88] sm:$0xff] }
 0x61c   : > { %9421 = vmatprep.subr.bf16.mxu0 %v15369_v63  ;;  %9585 = vmatprep.subr.bf16.mxu1 %v15371_v16  ;;  %v4127_v14 = vld [vmem:[%s18405_s15 + $0x1ec8] sm:$0xff]  ;;  %v15464_v63 = vcombine.low %v4102_v10, %v4110_v57  ;;  %v15466_v16 = vcombine.low %v4103_v11, %v4111_v59  ;;  %v3192_v11 = vld [vmem:[%s18405_s15 + $0x190] sm:$0xff] }
 0x61d   : > { %v15483_v17 = vcombine.high %v4119_v43, %v4127_v14  ;;  %v3200_v59 = vld [vmem:[%s18405_s15 + $0x1d0] sm:$0xff] }
 0x61f   : > { %9422 = vmatpush1.bf16.msra.mxu0 %v15368_v20  ;;  %9586 = vmatpush1.bf16.msra.mxu1 %v15370_v61  ;;  %v4135_v20 = vld [vmem:[%s18405_s15 + $0x1f08] sm:$0xff] }
 0x620   : > { %9423 = vmatprep.subr.bf16.mxu0 %v15385_v58  ;;  %9587 = vmatprep.subr.bf16.mxu1 %v15387_v53  ;;  %v4143_v61 = vld [vmem:[%s18405_s15 + $0x1f48] sm:$0xff]  ;;  %v15480_v58 = vcombine.low %v4118_v35, %v4126_v49  ;;  %v15482_v53 = vcombine.low %v4119_v43, %v4127_v14  ;;  %v14557_v35 = vcombine.high %v3192_v11, %v3200_v59  ;;  %v3208_v43 = vld [vmem:[%s18405_s15 + $0x210] sm:$0xff] }
 0x621   : > { %v15499_v38 = vcombine.high %v4135_v20, %v4143_v61  ;;  %v3216_v14 = vld [vmem:[%s18405_s15 + $0x250] sm:$0xff] }
 0x623   : > { %9424 = vmatpush1.bf16.msra.mxu0 %v15384_v5  ;;  %9588 = vmatpush1.bf16.msra.mxu1 %v15386_v30  ;;  %v4151_v5 = vld [vmem:[%s18405_s15 + $0x1f88] sm:$0xff] }
 0x624   : > { %9425 = vmatprep.subr.bf16.mxu0 %v15401_v54  ;;  %9589 = vmatprep.subr.bf16.mxu1 %v15403_v32  ;;  %v4159_v30 = vld [vmem:[%s18405_s15 + $0x1fc8] sm:$0xff]  ;;  %v15496_v54 = vcombine.low %v4134_v52, %v4142_v40  ;;  %v15498_v32 = vcombine.low %v4135_v20, %v4143_v61  ;;  %v14573_v52 = vcombine.high %v3208_v43, %v3216_v14  ;;  %v3224_v20 = vld [vmem:[%s18405_s15 + $0x290] sm:$0xff] }
 0x625   : > { %v15515_v33 = vcombine.high %v4151_v5, %v4159_v30  ;;  %v3232_v61 = vld [vmem:[%s18405_s15 + $0x2d0] sm:$0xff] }
 0x627   : > { %9426 = vmatpush1.bf16.msra.mxu0 %v15400_v21  ;;  %9590 = vmatpush1.bf16.msra.mxu1 %v15402_v62  ;;  %v3145_v21 = vld [vmem:[%s18405_s15 + $0x18] sm:$0xff] }
 0x628   : > { %9427 = vmatprep.subr.bf16.mxu0 %v15417_v23  ;;  %9591 = vmatprep.subr.bf16.mxu1 %v15419_v0  ;;  %v3153_v62 = vld [vmem:[%s18405_s15 + $0x58] sm:$0xff]  ;;  %v15512_v23 = vcombine.low %v4150_v18, %v4158_v22  ;;  %v15514_v0 = vcombine.low %v4151_v5, %v4159_v30  ;;  %v14589_v18 = vcombine.high %v3224_v20, %v3232_v61  ;;  %v3240_v5 = vld [vmem:[%s18405_s15 + $0x310] sm:$0xff] }
 0x629   : > { %v14511_v3 = vcombine.high %v3145_v21, %v3153_v62  ;;  %v14510_v1 = vcombine.low %v3145_v21, %v3153_v62  ;;  %v3248_v30 = vld [vmem:[%s18405_s15 + $0x350] sm:$0xff] }
 0x62a   : > { %v3256_v21 = vld [vmem:[%s18405_s15 + $0x390] sm:$0xff] }
 0x62b   : > { %9428 = vmatpush1.bf16.msra.mxu0 %v15416_v6  ;;  %9592 = vmatpush1.bf16.msra.mxu1 %v15418_v8  ;;  %v19261_v6 = vpack.c.bf16 %v19177_v24, %v19177_v24  ;;  %v3161_v8 = vld [vmem:[%s18405_s15 + $0x98] sm:$0xff]  ;;  %v3264_v62 = vld [vmem:[%s18405_s15 + $0x3d0] sm:$0xff] }
 0x62c   : > { %9429 = vmatprep.subr.bf16.mxu0 %v15433_v47  ;;  %9593 = vmatprep.subr.bf16.mxu1 %v15435_v56  ;;  %v3169_v47 = vld [vmem:[%s18405_s15 + $0xd8] sm:$0xff]  ;;  %v14508_v56 = vcombine.low %v3144_v29, %v3152_v34  ;;  %v14605_v29 = vcombine.high %v3240_v5, %v3248_v30 }
 0x62d   : > { %v14527_v4 = vcombine.high %v3161_v8, %v3169_v47  ;;  %v3177_v24 = vld [vmem:[%s18405_s15 + $0x118] sm:$0xff] }
 0x62f   : > { %9430 = vmatpush1.bf16.msra.mxu0 %v15432_v51  ;;  %9594 = vmatpush1.bf16.msra.mxu1 %v15434_v15  ;;  %v3184_v51 = vld [vmem:[%s18405_s15 + $0x150] sm:$0xff]  ;;  %v3185_v15 = vld [vmem:[%s18405_s15 + $0x158] sm:$0xff] }
 0x630   : > { %9431 = vmatprep.subr.bf16.mxu0 %v15449_v48  ;;  %9595 = vmatprep.subr.bf16.mxu1 %v15451_v37  ;;  %v14524_v48 = vcombine.low %v3160_v41, %v3168_v46  ;;  %v14526_v37 = vcombine.low %v3161_v8, %v3169_v47  ;;  %v14541_v10 = vcombine.high %v3176_v39, %v3184_v51  ;;  %v3272_v8 = vld [vmem:[%s18405_s15 + $0x410] sm:$0xff] }
 0x631   : > { %v14543_v57 = vcombine.high %v3177_v24, %v3185_v15  ;;  %v14621_v41 = vcombine.high %v3256_v21, %v3264_v62  ;;  %v3280_v47 = vld [vmem:[%s18405_s15 + $0x450] sm:$0xff] }
 0x633   : > { %9432 = vmatpush1.bf16.msra.mxu0 %v15448_v50  ;;  %9596 = vmatpush1.bf16.msra.mxu1 %v15450_v31  ;;  %v3193_v50 = vld [vmem:[%s18405_s15 + $0x198] sm:$0xff] }
 0x634   : > { %9433 = vmatprep.subr.bf16.mxu0 %v15465_v13  ;;  %9597 = vmatprep.subr.bf16.mxu1 %v15467_v27  ;;  %v3201_v31 = vld [vmem:[%s18405_s15 + $0x1d8] sm:$0xff]  ;;  %v14540_v13 = vcombine.low %v3176_v39, %v3184_v51  ;;  %v14542_v27 = vcombine.low %v3177_v24, %v3185_v15  ;;  %v14637_v39 = vcombine.high %v3272_v8, %v3280_v47  ;;  %v3288_v24 = vld [vmem:[%s18405_s15 + $0x490] sm:$0xff] }
 0x635   : > { %v14559_v49 = vcombine.high %v3193_v50, %v3201_v31  ;;  %v3296_v15 = vld [vmem:[%s18405_s15 + $0x4d0] sm:$0xff] }
 0x637   : > { %9434 = vmatpush1.bf16.msra.mxu0 %v15464_v63  ;;  %9598 = vmatpush1.bf16.msra.mxu1 %v15466_v16  ;;  %v3209_v63 = vld [vmem:[%s18405_s15 + $0x218] sm:$0xff] }
 0x638   : > { %9435 = vmatprep.subr.bf16.mxu0 %v15481_v2  ;;  %9599 = vmatprep.subr.bf16.mxu1 %v15483_v17  ;;  %v3217_v16 = vld [vmem:[%s18405_s15 + $0x258] sm:$0xff]  ;;  %v14556_v2 = vcombine.low %v3192_v11, %v3200_v59  ;;  %v14558_v17 = vcombine.low %v3193_v50, %v3201_v31  ;;  %v14653_v11 = vcombine.high %v3288_v24, %v3296_v15  ;;  %v3304_v50 = vld [vmem:[%s18405_s15 + $0x510] sm:$0xff] }
 0x639   : > { %v14575_v40 = vcombine.high %v3209_v63, %v3217_v16  ;;  %v3312_v31 = vld [vmem:[%s18405_s15 + $0x550] sm:$0xff] }
 0x63b   : > { %9436 = vmatpush1.bf16.msra.mxu0 %v15480_v58  ;;  %9600 = vmatpush1.bf16.msra.mxu1 %v15482_v53  ;;  %v3225_v58 = vld [vmem:[%s18405_s15 + $0x298] sm:$0xff] }
 0x63c   : > { %9437 = vmatprep.subr.bf16.mxu0 %v15497_v25  ;;  %9601 = vmatprep.subr.bf16.mxu1 %v15499_v38  ;;  %v3233_v53 = vld [vmem:[%s18405_s15 + $0x2d8] sm:$0xff]  ;;  %v14572_v25 = vcombine.low %v3208_v43, %v3216_v14  ;;  %v14574_v38 = vcombine.low %v3209_v63, %v3217_v16  ;;  %v14669_v43 = vcombine.high %v3304_v50, %v3312_v31  ;;  %v3320_v63 = vld [vmem:[%s18405_s15 + $0x590] sm:$0xff] }
 0x63d   : > { %v14591_v22 = vcombine.high %v3225_v58, %v3233_v53  ;;  %v3328_v16 = vld [vmem:[%s18405_s15 + $0x5d0] sm:$0xff] }
 0x63f   : > { %9438 = vmatpush1.bf16.msra.mxu0 %v15496_v54  ;;  %9602 = vmatpush1.bf16.msra.mxu1 %v15498_v32  ;;  %v3241_v54 = vld [vmem:[%s18405_s15 + $0x318] sm:$0xff] }
 0x640   : > { %9439 = vmatprep.subr.bf16.mxu0 %v15513_v9  ;;  %9603 = vmatprep.subr.bf16.mxu1 %v15515_v33  ;;  %v3249_v32 = vld [vmem:[%s18405_s15 + $0x358] sm:$0xff]  ;;  %v14588_v9 = vcombine.low %v3224_v20, %v3232_v61  ;;  %v14590_v33 = vcombine.low %v3225_v58, %v3233_v53  ;;  %v14685_v20 = vcombine.high %v3320_v63, %v3328_v16  ;;  %v3336_v58 = vld [vmem:[%s18405_s15 + $0x610] sm:$0xff] }
 0x641   : > { %v14607_v34 = vcombine.high %v3241_v54, %v3249_v32  ;;  %v3344_v53 = vld [vmem:[%s18405_s15 + $0x650] sm:$0xff] }
 0x643   : > { %9440 = vmatpush1.bf16.msra.mxu0 %v15512_v23  ;;  %9604 = vmatpush1.bf16.msra.mxu1 %v15514_v0  ;;  %v3257_v23 = vld [vmem:[%s18405_s15 + $0x398] sm:$0xff] }
 0x644   : > { %9614 = vmatprep.subr.bf16.mxu0 %v14509_v7  ;;  %9778 = vmatprep.subr.bf16.mxu1 %v14511_v3  ;;  %v3265_v0 = vld [vmem:[%s18405_s15 + $0x3d8] sm:$0xff]  ;;  %v14604_v7 = vcombine.low %v3240_v5, %v3248_v30  ;;  %v14606_v3 = vcombine.low %v3241_v54, %v3249_v32  ;;  %v14701_v5 = vcombine.high %v3336_v58, %v3344_v53  ;;  %v3352_v54 = vld [vmem:[%s18405_s15 + $0x690] sm:$0xff] }
 0x645   : > { %v14623_v46 = vcombine.high %v3257_v23, %v3265_v0  ;;  %v3360_v32 = vld [vmem:[%s18405_s15 + $0x6d0] sm:$0xff] }
 0x646   : > { %9442 = vmatmul.mubr.bf16.vlgmr.msra.gmra.mrb[0].mxu0 %v19261_v6  ;;  %9606 = vmatmul.mubr.bf16.vlgmr.msra.gmra.mrb[0].mxu1 %v19261_v6 }
 0x647   : > { %9615 = vmatpush1.bf16.msra.mxu0 %v14508_v56  ;;  %9779 = vmatpush1.bf16.msra.mxu1 %v14510_v1  ;;  %v3273_v56 = vld [vmem:[%s18405_s15 + $0x418] sm:$0xff] }
 0x648   : > { %9616 = vmatprep.subr.bf16.mxu0 %v14525_v60  ;;  %9780 = vmatprep.subr.bf16.mxu1 %v14527_v4  ;;  %v3281_v1 = vld [vmem:[%s18405_s15 + $0x458] sm:$0xff]  ;;  %v14620_v60 = vcombine.low %v3256_v21, %v3264_v62  ;;  %v14622_v4 = vcombine.low %v3257_v23, %v3265_v0  ;;  %v14717_v21 = vcombine.high %v3352_v54, %v3360_v32  ;;  %v3368_v23 = vld [vmem:[%s18405_s15 + $0x710] sm:$0xff] }
 0x649   : > { %9646 = vmatprep.mubr.bf16.mxu0 %v18974_v44  ;;  %9810 = vmatprep.mubr.bf16.mxu1 %v18974_v44  ;;  %v14639_v51 = vcombine.high %v3273_v56, %v3281_v1  ;;  %v3376_v0 = vld [vmem:[%s18405_s15 + $0x750] sm:$0xff] }
 0x64b   : > { %9617 = vmatpush1.bf16.msra.mxu0 %v14524_v48  ;;  %9781 = vmatpush1.bf16.msra.mxu1 %v14526_v37  ;;  %v3289_v48 = vld [vmem:[%s18405_s15 + $0x498] sm:$0xff] }
 0x64c   : > { %9618 = vmatprep.subr.bf16.mxu0 %v14541_v10  ;;  %9782 = vmatprep.subr.bf16.mxu1 %v14543_v57  ;;  %v3297_v37 = vld [vmem:[%s18405_s15 + $0x4d8] sm:$0xff]  ;;  %v14636_v10 = vcombine.low %v3272_v8, %v3280_v47  ;;  %v14638_v57 = vcombine.low %v3273_v56, %v3281_v1  ;;  %v14733_v8 = vcombine.high %v3368_v23, %v3376_v0  ;;  %v3384_v56 = vld [vmem:[%s18405_s15 + $0x790] sm:$0xff] }
 0x64d   : > { %v14655_v59 = vcombine.high %v3289_v48, %v3297_v37  ;;  %v3392_v1 = vld [vmem:[%s18405_s15 + $0x7d0] sm:$0xff] }
 0x64f   : > { %9619 = vmatpush1.bf16.msra.mxu0 %v14540_v13  ;;  %9783 = vmatpush1.bf16.msra.mxu1 %v14542_v27  ;;  %v3305_v13 = vld [vmem:[%s18405_s15 + $0x518] sm:$0xff] }
 0x650   : > { %9620 = vmatprep.subr.bf16.mxu0 %v14557_v35  ;;  %9784 = vmatprep.subr.bf16.mxu1 %v14559_v49  ;;  %v3313_v27 = vld [vmem:[%s18405_s15 + $0x558] sm:$0xff]  ;;  %v14652_v35 = vcombine.low %v3288_v24, %v3296_v15  ;;  %v14654_v49 = vcombine.low %v3289_v48, %v3297_v37  ;;  %v14749_v24 = vcombine.high %v3384_v56, %v3392_v1  ;;  %v3400_v48 = vld [vmem:[%s18405_s15 + $0x810] sm:$0xff] }
 0x651   : > { %v14671_v14 = vcombine.high %v3305_v13, %v3313_v27  ;;  %v3408_v37 = vld [vmem:[%s18405_s15 + $0x850] sm:$0xff] }
 0x653   : > { %9621 = vmatpush1.bf16.msra.mxu0 %v14556_v2  ;;  %9785 = vmatpush1.bf16.msra.mxu1 %v14558_v17  ;;  %v3321_v2 = vld [vmem:[%s18405_s15 + $0x598] sm:$0xff] }
 0x654   : > { %9622 = vmatprep.subr.bf16.mxu0 %v14573_v52  ;;  %9786 = vmatprep.subr.bf16.mxu1 %v14575_v40  ;;  %v3329_v17 = vld [vmem:[%s18405_s15 + $0x5d8] sm:$0xff]  ;;  %v14668_v52 = vcombine.low %v3304_v50, %v3312_v31  ;;  %v14670_v40 = vcombine.low %v3305_v13, %v3313_v27  ;;  %v14765_v50 = vcombine.high %v3400_v48, %v3408_v37  ;;  %v3416_v13 = vld [vmem:[%s18405_s15 + $0x890] sm:$0xff] }
 0x655   : > { %v14687_v61 = vcombine.high %v3321_v2, %v3329_v17  ;;  %v3424_v27 = vld [vmem:[%s18405_s15 + $0x8d0] sm:$0xff] }
 0x657   : > { %9623 = vmatpush1.bf16.msra.mxu0 %v14572_v25  ;;  %9787 = vmatpush1.bf16.msra.mxu1 %v14574_v38  ;;  %v3337_v25 = vld [vmem:[%s18405_s15 + $0x618] sm:$0xff] }
 0x658   : > { %9624 = vmatprep.subr.bf16.mxu0 %v14589_v18  ;;  %9788 = vmatprep.subr.bf16.mxu1 %v14591_v22  ;;  %v3345_v38 = vld [vmem:[%s18405_s15 + $0x658] sm:$0xff]  ;;  %v14684_v18 = vcombine.low %v3320_v63, %v3328_v16  ;;  %v14686_v22 = vcombine.low %v3321_v2, %v3329_v17  ;;  %v14781_v63 = vcombine.high %v3416_v13, %v3424_v27  ;;  %v3432_v2 = vld [vmem:[%s18405_s15 + $0x910] sm:$0xff] }
 0x659   : > { %v14703_v30 = vcombine.high %v3337_v25, %v3345_v38  ;;  %v3440_v17 = vld [vmem:[%s18405_s15 + $0x950] sm:$0xff] }
 0x65b   : > { %9625 = vmatpush1.bf16.msra.mxu0 %v14588_v9  ;;  %9789 = vmatpush1.bf16.msra.mxu1 %v14590_v33  ;;  %v3353_v9 = vld [vmem:[%s18405_s15 + $0x698] sm:$0xff] }
 0x65c   : > { %9626 = vmatprep.subr.bf16.mxu0 %v14605_v29  ;;  %9790 = vmatprep.subr.bf16.mxu1 %v14607_v34  ;;  %v3361_v33 = vld [vmem:[%s18405_s15 + $0x6d8] sm:$0xff]  ;;  %v14700_v29 = vcombine.low %v3336_v58, %v3344_v53  ;;  %v14702_v34 = vcombine.low %v3337_v25, %v3345_v38  ;;  %v14797_v58 = vcombine.high %v3432_v2, %v3440_v17  ;;  %v3448_v25 = vld [vmem:[%s18405_s15 + $0x990] sm:$0xff] }
 0x65d   : > { %v14719_v62 = vcombine.high %v3353_v9, %v3361_v33  ;;  %v3456_v38 = vld [vmem:[%s18405_s15 + $0x9d0] sm:$0xff] }
 0x65f   : > { %9627 = vmatpush1.bf16.msra.mxu0 %v14604_v7  ;;  %9791 = vmatpush1.bf16.msra.mxu1 %v14606_v3  ;;  %v3369_v7 = vld [vmem:[%s18405_s15 + $0x718] sm:$0xff] }
 0x660   : > { %9628 = vmatprep.subr.bf16.mxu0 %v14621_v41  ;;  %9792 = vmatprep.subr.bf16.mxu1 %v14623_v46  ;;  %v3377_v3 = vld [vmem:[%s18405_s15 + $0x758] sm:$0xff]  ;;  %v14716_v41 = vcombine.low %v3352_v54, %v3360_v32  ;;  %v14718_v46 = vcombine.low %v3353_v9, %v3361_v33  ;;  %v14813_v54 = vcombine.high %v3448_v25, %v3456_v38  ;;  %v3464_v9 = vld [vmem:[%s18405_s15 + $0xa10] sm:$0xff] }
 0x661   : > { %v14735_v47 = vcombine.high %v3369_v7, %v3377_v3  ;;  %v3472_v33 = vld [vmem:[%s18405_s15 + $0xa50] sm:$0xff] }
 0x663   : > { %9629 = vmatpush1.bf16.msra.mxu0 %v14620_v60  ;;  %9793 = vmatpush1.bf16.msra.mxu1 %v14622_v4  ;;  %v3385_v60 = vld [vmem:[%s18405_s15 + $0x798] sm:$0xff] }
 0x664   : > { %9630 = vmatprep.subr.bf16.mxu0 %v14637_v39  ;;  %9794 = vmatprep.subr.bf16.mxu1 %v14639_v51  ;;  %v3393_v4 = vld [vmem:[%s18405_s15 + $0x7d8] sm:$0xff]  ;;  %v14732_v39 = vcombine.low %v3368_v23, %v3376_v0  ;;  %v14734_v51 = vcombine.low %v3369_v7, %v3377_v3  ;;  %v14829_v23 = vcombine.high %v3464_v9, %v3472_v33  ;;  %v3480_v7 = vld [vmem:[%s18405_s15 + $0xa90] sm:$0xff] }
 0x665   : > { %v14751_v15 = vcombine.high %v3385_v60, %v3393_v4  ;;  %v3488_v3 = vld [vmem:[%s18405_s15 + $0xad0] sm:$0xff] }
 0x667   : > { %9631 = vmatpush1.bf16.msra.mxu0 %v14636_v10  ;;  %9795 = vmatpush1.bf16.msra.mxu1 %v14638_v57  ;;  %v3401_v10 = vld [vmem:[%s18405_s15 + $0x818] sm:$0xff] }
 0x668   : > { %9632 = vmatprep.subr.bf16.mxu0 %v14653_v11  ;;  %9796 = vmatprep.subr.bf16.mxu1 %v14655_v59  ;;  %v3409_v57 = vld [vmem:[%s18405_s15 + $0x858] sm:$0xff]  ;;  %v14748_v11 = vcombine.low %v3384_v56, %v3392_v1  ;;  %v14750_v59 = vcombine.low %v3385_v60, %v3393_v4  ;;  %v14845_v56 = vcombine.high %v3480_v7, %v3488_v3  ;;  %v3496_v60 = vld [vmem:[%s18405_s15 + $0xb10] sm:$0xff] }
 0x669   : > { %v14767_v31 = vcombine.high %v3401_v10, %v3409_v57  ;;  %v3504_v4 = vld [vmem:[%s18405_s15 + $0xb50] sm:$0xff] }
 0x66b   : > { %9633 = vmatpush1.bf16.msra.mxu0 %v14652_v35  ;;  %9797 = vmatpush1.bf16.msra.mxu1 %v14654_v49  ;;  %v3417_v35 = vld [vmem:[%s18405_s15 + $0x898] sm:$0xff] }
 0x66c   : > { %9634 = vmatprep.subr.bf16.mxu0 %v14669_v43  ;;  %9798 = vmatprep.subr.bf16.mxu1 %v14671_v14  ;;  %v3425_v49 = vld [vmem:[%s18405_s15 + $0x8d8] sm:$0xff]  ;;  %v14764_v43 = vcombine.low %v3400_v48, %v3408_v37  ;;  %v14766_v14 = vcombine.low %v3401_v10, %v3409_v57  ;;  %v14861_v48 = vcombine.high %v3496_v60, %v3504_v4  ;;  %v3512_v10 = vld [vmem:[%s18405_s15 + $0xb90] sm:$0xff] }
 0x66d   : > { %v14783_v16 = vcombine.high %v3417_v35, %v3425_v49  ;;  %v3520_v57 = vld [vmem:[%s18405_s15 + $0xbd0] sm:$0xff] }
 0x66f   : > { %9635 = vmatpush1.bf16.msra.mxu0 %v14668_v52  ;;  %9799 = vmatpush1.bf16.msra.mxu1 %v14670_v40  ;;  %v3433_v52 = vld [vmem:[%s18405_s15 + $0x918] sm:$0xff] }
 0x670   : > { %9636 = vmatprep.subr.bf16.mxu0 %v14685_v20  ;;  %9800 = vmatprep.subr.bf16.mxu1 %v14687_v61  ;;  %v3441_v40 = vld [vmem:[%s18405_s15 + $0x958] sm:$0xff]  ;;  %v14780_v20 = vcombine.low %v3416_v13, %v3424_v27  ;;  %v14782_v61 = vcombine.low %v3417_v35, %v3425_v49  ;;  %v14877_v13 = vcombine.high %v3512_v10, %v3520_v57  ;;  %v3528_v35 = vld [vmem:[%s18405_s15 + $0xc10] sm:$0xff] }
 0x671   : > { %v14799_v53 = vcombine.high %v3433_v52, %v3441_v40  ;;  %v3536_v49 = vld [vmem:[%s18405_s15 + $0xc50] sm:$0xff] }
 0x673   : > { %9637 = vmatpush1.bf16.msra.mxu0 %v14684_v18  ;;  %9801 = vmatpush1.bf16.msra.mxu1 %v14686_v22  ;;  %v3449_v18 = vld [vmem:[%s18405_s15 + $0x998] sm:$0xff] }
 0x674   : > { %9638 = vmatprep.subr.bf16.mxu0 %v14701_v5  ;;  %9802 = vmatprep.subr.bf16.mxu1 %v14703_v30  ;;  %v3457_v22 = vld [vmem:[%s18405_s15 + $0x9d8] sm:$0xff]  ;;  %v14796_v5 = vcombine.low %v3432_v2, %v3440_v17  ;;  %v14798_v30 = vcombine.low %v3433_v52, %v3441_v40  ;;  %v14893_v2 = vcombine.high %v3528_v35, %v3536_v49  ;;  %v3544_v52 = vld [vmem:[%s18405_s15 + $0xc90] sm:$0xff] }
 0x675   : > { %v14815_v32 = vcombine.high %v3449_v18, %v3457_v22  ;;  %v3552_v40 = vld [vmem:[%s18405_s15 + $0xcd0] sm:$0xff] }
 0x677   : > { %9639 = vmatpush1.bf16.msra.mxu0 %v14700_v29  ;;  %9803 = vmatpush1.bf16.msra.mxu1 %v14702_v34  ;;  %v3465_v29 = vld [vmem:[%s18405_s15 + $0xa18] sm:$0xff] }
 0x678   : > { %9640 = vmatprep.subr.bf16.mxu0 %v14717_v21  ;;  %9804 = vmatprep.subr.bf16.mxu1 %v14719_v62  ;;  %v3473_v34 = vld [vmem:[%s18405_s15 + $0xa58] sm:$0xff]  ;;  %v14812_v21 = vcombine.low %v3448_v25, %v3456_v38  ;;  %v14814_v62 = vcombine.low %v3449_v18, %v3457_v22  ;;  %v14909_v25 = vcombine.high %v3544_v52, %v3552_v40  ;;  %v3560_v18 = vld [vmem:[%s18405_s15 + $0xd10] sm:$0xff] }
 0x679   : > { %v14831_v0 = vcombine.high %v3465_v29, %v3473_v34  ;;  %v3568_v22 = vld [vmem:[%s18405_s15 + $0xd50] sm:$0xff] }
 0x67b   : > { %9641 = vmatpush1.bf16.msra.mxu0 %v14716_v41  ;;  %9805 = vmatpush1.bf16.msra.mxu1 %v14718_v46  ;;  %v3481_v41 = vld [vmem:[%s18405_s15 + $0xa98] sm:$0xff] }
 0x67c   : > { %9642 = vmatprep.subr.bf16.mxu0 %v14733_v8  ;;  %9806 = vmatprep.subr.bf16.mxu1 %v14735_v47  ;;  %v3489_v46 = vld [vmem:[%s18405_s15 + $0xad8] sm:$0xff]  ;;  %v14828_v8 = vcombine.low %v3464_v9, %v3472_v33  ;;  %v14830_v47 = vcombine.low %v3465_v29, %v3473_v34  ;;  %v14925_v9 = vcombine.high %v3560_v18, %v3568_v22  ;;  %v3576_v29 = vld [vmem:[%s18405_s15 + $0xd90] sm:$0xff] }
 0x67d   : > { %v14847_v1 = vcombine.high %v3481_v41, %v3489_v46  ;;  %v3584_v34 = vld [vmem:[%s18405_s15 + $0xdd0] sm:$0xff] }
 0x67f   : > { %9643 = vmatpush1.bf16.msra.mxu0 %v14732_v39  ;;  %9807 = vmatpush1.bf16.msra.mxu1 %v14734_v51  ;;  %v3497_v39 = vld [vmem:[%s18405_s15 + $0xb18] sm:$0xff] }
 0x680   : > { %9644 = vmatprep.subr.bf16.mxu0 %v14749_v24  ;;  %9808 = vmatprep.subr.bf16.mxu1 %v14751_v15  ;;  %v3505_v51 = vld [vmem:[%s18405_s15 + $0xb58] sm:$0xff]  ;;  %v14844_v24 = vcombine.low %v3480_v7, %v3488_v3  ;;  %v14846_v15 = vcombine.low %v3481_v41, %v3489_v46  ;;  %v14941_v7 = vcombine.high %v3576_v29, %v3584_v34  ;;  %v3592_v41 = vld [vmem:[%s18405_s15 + $0xe10] sm:$0xff] }
 0x681   : > { %v14863_v37 = vcombine.high %v3497_v39, %v3505_v51  ;;  %v3600_v46 = vld [vmem:[%s18405_s15 + $0xe50] sm:$0xff] }
 0x683   : > { %9645 = vmatpush1.bf16.msra.mxu0 %v14748_v11  ;;  %9809 = vmatpush1.bf16.msra.mxu1 %v14750_v59  ;;  %v3513_v11 = vld [vmem:[%s18405_s15 + $0xb98] sm:$0xff] }
 0x684   : > { %9655 = vmatprep.subr.bf16.mxu0 %v14765_v50  ;;  %9819 = vmatprep.subr.bf16.mxu1 %v14767_v31  ;;  %v3521_v59 = vld [vmem:[%s18405_s15 + $0xbd8] sm:$0xff]  ;;  %v14860_v50 = vcombine.low %v3496_v60, %v3504_v4  ;;  %v14862_v31 = vcombine.low %v3497_v39, %v3505_v51  ;;  %v14957_v60 = vcombine.high %v3592_v41, %v3600_v46  ;;  %v3608_v39 = vld [vmem:[%s18405_s15 + $0xe90] sm:$0xff] }
 0x685   : > { %v14879_v27 = vcombine.high %v3513_v11, %v3521_v59  ;;  %v3616_v51 = vld [vmem:[%s18405_s15 + $0xed0] sm:$0xff] }
 0x686   : > { %9647 = vmatmul.mubr.bf16.vlgmr.msra.gmra.mrb[4].mxu0 %v19023_v28  ;;  %9811 = vmatmul.mubr.bf16.vlgmr.msra.gmra.mrb[4].mxu1 %v19023_v28 }
 0x687   : > { %9656 = vmatpush1.bf16.msra.mxu0 %v14764_v43  ;;  %9820 = vmatpush1.bf16.msra.mxu1 %v14766_v14  ;;  %v3529_v43 = vld [vmem:[%s18405_s15 + $0xc18] sm:$0xff] }
 0x688   : > { %9657 = vmatprep.subr.bf16.mxu0 %v14781_v63  ;;  %9821 = vmatprep.subr.bf16.mxu1 %v14783_v16  ;;  %v3537_v14 = vld [vmem:[%s18405_s15 + $0xc58] sm:$0xff]  ;;  %v14876_v63 = vcombine.low %v3512_v10, %v3520_v57  ;;  %v14878_v16 = vcombine.low %v3513_v11, %v3521_v59  ;;  %v14973_v10 = vcombine.high %v3608_v39, %v3616_v51  ;;  %v3624_v11 = vld [vmem:[%s18405_s15 + $0xf10] sm:$0xff] }
 0x689   : > { %9687 = vmatprep.mubr.bf16.mxu0 %v19029_v42  ;;  %9851 = vmatprep.mubr.bf16.mxu1 %v19029_v42  ;;  %v14895_v17 = vcombine.high %v3529_v43, %v3537_v14  ;;  %v3632_v59 = vld [vmem:[%s18405_s15 + $0xf50] sm:$0xff] }
 0x68b   : > { %9658 = vmatpush1.bf16.msra.mxu0 %v14780_v20  ;;  %9822 = vmatpush1.bf16.msra.mxu1 %v14782_v61  ;;  %v3545_v20 = vld [vmem:[%s18405_s15 + $0xc98] sm:$0xff] }
 0x68c   : > { %9659 = vmatprep.subr.bf16.mxu0 %v14797_v58  ;;  %9823 = vmatprep.subr.bf16.mxu1 %v14799_v53  ;;  %v3553_v61 = vld [vmem:[%s18405_s15 + $0xcd8] sm:$0xff]  ;;  %v14892_v58 = vcombine.low %v3528_v35, %v3536_v49  ;;  %v14894_v53 = vcombine.low %v3529_v43, %v3537_v14  ;;  %v14989_v35 = vcombine.high %v3624_v11, %v3632_v59  ;;  %v3640_v43 = vld [vmem:[%s18405_s15 + $0xf90] sm:$0xff] }
 0x68d   : > { %v14911_v38 = vcombine.high %v3545_v20, %v3553_v61  ;;  %v3648_v14 = vld [vmem:[%s18405_s15 + $0xfd0] sm:$0xff] }
 0x68f   : > { %9660 = vmatpush1.bf16.msra.mxu0 %v14796_v5  ;;  %9824 = vmatpush1.bf16.msra.mxu1 %v14798_v30  ;;  %v3561_v5 = vld [vmem:[%s18405_s15 + $0xd18] sm:$0xff] }
 0x690   : > { %9661 = vmatprep.subr.bf16.mxu0 %v14813_v54  ;;  %9825 = vmatprep.subr.bf16.mxu1 %v14815_v32  ;;  %v3569_v30 = vld [vmem:[%s18405_s15 + $0xd58] sm:$0xff]  ;;  %v14908_v54 = vcombine.low %v3544_v52, %v3552_v40  ;;  %v14910_v32 = vcombine.low %v3545_v20, %v3553_v61  ;;  %v15005_v52 = vcombine.high %v3640_v43, %v3648_v14  ;;  %v3656_v20 = vld [vmem:[%s18405_s15 + $0x1010] sm:$0xff] }
 0x691   : > { %v14927_v33 = vcombine.high %v3561_v5, %v3569_v30  ;;  %v3664_v61 = vld [vmem:[%s18405_s15 + $0x1050] sm:$0xff] }
 0x693   : > { %9662 = vmatpush1.bf16.msra.mxu0 %v14812_v21  ;;  %9826 = vmatpush1.bf16.msra.mxu1 %v14814_v62  ;;  %v3577_v21 = vld [vmem:[%s18405_s15 + $0xd98] sm:$0xff] }
 0x694   : > { %9663 = vmatprep.subr.bf16.mxu0 %v14829_v23  ;;  %9827 = vmatprep.subr.bf16.mxu1 %v14831_v0  ;;  %v3585_v62 = vld [vmem:[%s18405_s15 + $0xdd8] sm:$0xff]  ;;  %v14924_v23 = vcombine.low %v3560_v18, %v3568_v22  ;;  %v14926_v0 = vcombine.low %v3561_v5, %v3569_v30  ;;  %v15021_v18 = vcombine.high %v3656_v20, %v3664_v61  ;;  %v3672_v5 = vld [vmem:[%s18405_s15 + $0x1090] sm:$0xff] }
 0x695   : > { %v14943_v3 = vcombine.high %v3577_v21, %v3585_v62  ;;  %v3680_v30 = vld [vmem:[%s18405_s15 + $0x10d0] sm:$0xff] }
 0x697   : > { %9664 = vmatpush1.bf16.msra.mxu0 %v14828_v8  ;;  %9828 = vmatpush1.bf16.msra.mxu1 %v14830_v47  ;;  %v3593_v8 = vld [vmem:[%s18405_s15 + $0xe18] sm:$0xff] }
 0x698   : > { %9665 = vmatprep.subr.bf16.mxu0 %v14845_v56  ;;  %9829 = vmatprep.subr.bf16.mxu1 %v14847_v1  ;;  %v3601_v47 = vld [vmem:[%s18405_s15 + $0xe58] sm:$0xff]  ;;  %v14940_v56 = vcombine.low %v3576_v29, %v3584_v34  ;;  %v14942_v1 = vcombine.low %v3577_v21, %v3585_v62  ;;  %v15037_v29 = vcombine.high %v3672_v5, %v3680_v30  ;;  %v3688_v21 = vld [vmem:[%s18405_s15 + $0x1110] sm:$0xff] }
 0x699   : > { %v14959_v4 = vcombine.high %v3593_v8, %v3601_v47  ;;  %v3696_v62 = vld [vmem:[%s18405_s15 + $0x1150] sm:$0xff] }
 0x69b   : > { %9666 = vmatpush1.bf16.msra.mxu0 %v14844_v24  ;;  %9830 = vmatpush1.bf16.msra.mxu1 %v14846_v15  ;;  %v3609_v24 = vld [vmem:[%s18405_s15 + $0xe98] sm:$0xff] }
 0x69c   : > { %9667 = vmatprep.subr.bf16.mxu0 %v14861_v48  ;;  %9831 = vmatprep.subr.bf16.mxu1 %v14863_v37  ;;  %v3617_v15 = vld [vmem:[%s18405_s15 + $0xed8] sm:$0xff]  ;;  %v14956_v48 = vcombine.low %v3592_v41, %v3600_v46  ;;  %v14958_v37 = vcombine.low %v3593_v8, %v3601_v47  ;;  %v15053_v41 = vcombine.high %v3688_v21, %v3696_v62  ;;  %v3704_v8 = vld [vmem:[%s18405_s15 + $0x1190] sm:$0xff] }
 0x69d   : > { %v14975_v57 = vcombine.high %v3609_v24, %v3617_v15  ;;  %v3712_v47 = vld [vmem:[%s18405_s15 + $0x11d0] sm:$0xff] }
 0x69f   : > { %9668 = vmatpush1.bf16.msra.mxu0 %v14860_v50  ;;  %9832 = vmatpush1.bf16.msra.mxu1 %v14862_v31  ;;  %v3625_v50 = vld [vmem:[%s18405_s15 + $0xf18] sm:$0xff] }
 0x6a0   : > { %9669 = vmatprep.subr.bf16.mxu0 %v14877_v13  ;;  %9833 = vmatprep.subr.bf16.mxu1 %v14879_v27  ;;  %v3633_v31 = vld [vmem:[%s18405_s15 + $0xf58] sm:$0xff]  ;;  %v14972_v13 = vcombine.low %v3608_v39, %v3616_v51  ;;  %v14974_v27 = vcombine.low %v3609_v24, %v3617_v15  ;;  %v15069_v39 = vcombine.high %v3704_v8, %v3712_v47  ;;  %v3720_v24 = vld [vmem:[%s18405_s15 + $0x1210] sm:$0xff] }
 0x6a1   : > { %v14991_v49 = vcombine.high %v3625_v50, %v3633_v31  ;;  %v3728_v15 = vld [vmem:[%s18405_s15 + $0x1250] sm:$0xff] }
 0x6a3   : > { %9670 = vmatpush1.bf16.msra.mxu0 %v14876_v63  ;;  %9834 = vmatpush1.bf16.msra.mxu1 %v14878_v16  ;;  %v3641_v63 = vld [vmem:[%s18405_s15 + $0xf98] sm:$0xff] }
 0x6a4   : > { %9671 = vmatprep.subr.bf16.mxu0 %v14893_v2  ;;  %9835 = vmatprep.subr.bf16.mxu1 %v14895_v17  ;;  %v3649_v16 = vld [vmem:[%s18405_s15 + $0xfd8] sm:$0xff]  ;;  %v14988_v2 = vcombine.low %v3624_v11, %v3632_v59  ;;  %v14990_v17 = vcombine.low %v3625_v50, %v3633_v31  ;;  %v15085_v11 = vcombine.high %v3720_v24, %v3728_v15  ;;  %v3736_v50 = vld [vmem:[%s18405_s15 + $0x1290] sm:$0xff] }
 0x6a5   : > { %v15007_v40 = vcombine.high %v3641_v63, %v3649_v16  ;;  %v3744_v31 = vld [vmem:[%s18405_s15 + $0x12d0] sm:$0xff] }
 0x6a7   : > { %9672 = vmatpush1.bf16.msra.mxu0 %v14892_v58  ;;  %9836 = vmatpush1.bf16.msra.mxu1 %v14894_v53  ;;  %v3657_v58 = vld [vmem:[%s18405_s15 + $0x1018] sm:$0xff] }
 0x6a8   : > { %9673 = vmatprep.subr.bf16.mxu0 %v14909_v25  ;;  %9837 = vmatprep.subr.bf16.mxu1 %v14911_v38  ;;  %v3665_v53 = vld [vmem:[%s18405_s15 + $0x1058] sm:$0xff]  ;;  %v15004_v25 = vcombine.low %v3640_v43, %v3648_v14  ;;  %v15006_v38 = vcombine.low %v3641_v63, %v3649_v16  ;;  %v15101_v43 = vcombine.high %v3736_v50, %v3744_v31  ;;  %v3752_v63 = vld [vmem:[%s18405_s15 + $0x1310] sm:$0xff] }
 0x6a9   : > { %v15023_v22 = vcombine.high %v3657_v58, %v3665_v53  ;;  %v3760_v16 = vld [vmem:[%s18405_s15 + $0x1350] sm:$0xff] }
 0x6ab   : > { %9674 = vmatpush1.bf16.msra.mxu0 %v14908_v54  ;;  %9838 = vmatpush1.bf16.msra.mxu1 %v14910_v32  ;;  %v3673_v54 = vld [vmem:[%s18405_s15 + $0x1098] sm:$0xff] }
 0x6ac   : > { %9675 = vmatprep.subr.bf16.mxu0 %v14925_v9  ;;  %9839 = vmatprep.subr.bf16.mxu1 %v14927_v33  ;;  %v3681_v32 = vld [vmem:[%s18405_s15 + $0x10d8] sm:$0xff]  ;;  %v15020_v9 = vcombine.low %v3656_v20, %v3664_v61  ;;  %v15022_v33 = vcombine.low %v3657_v58, %v3665_v53  ;;  %v15117_v20 = vcombine.high %v3752_v63, %v3760_v16  ;;  %v3768_v58 = vld [vmem:[%s18405_s15 + $0x1390] sm:$0xff] }
 0x6ad   : > { %v15039_v34 = vcombine.high %v3673_v54, %v3681_v32  ;;  %v3776_v53 = vld [vmem:[%s18405_s15 + $0x13d0] sm:$0xff] }
 0x6af   : > { %9676 = vmatpush1.bf16.msra.mxu0 %v14924_v23  ;;  %9840 = vmatpush1.bf16.msra.mxu1 %v14926_v0  ;;  %v3689_v23 = vld [vmem:[%s18405_s15 + $0x1118] sm:$0xff] }
 0x6b0   : > { %9677 = vmatprep.subr.bf16.mxu0 %v14941_v7  ;;  %9841 = vmatprep.subr.bf16.mxu1 %v14943_v3  ;;  %v3697_v0 = vld [vmem:[%s18405_s15 + $0x1158] sm:$0xff]  ;;  %v15036_v7 = vcombine.low %v3672_v5, %v3680_v30  ;;  %v15038_v3 = vcombine.low %v3673_v54, %v3681_v32  ;;  %v15133_v5 = vcombine.high %v3768_v58, %v3776_v53  ;;  %v3784_v54 = vld [vmem:[%s18405_s15 + $0x1410] sm:$0xff] }
 0x6b1   : > { %v15055_v46 = vcombine.high %v3689_v23, %v3697_v0  ;;  %v3792_v32 = vld [vmem:[%s18405_s15 + $0x1450] sm:$0xff] }
 0x6b3   : > { %9678 = vmatpush1.bf16.msra.mxu0 %v14940_v56  ;;  %9842 = vmatpush1.bf16.msra.mxu1 %v14942_v1  ;;  %v3705_v56 = vld [vmem:[%s18405_s15 + $0x1198] sm:$0xff] }
 0x6b4   : > { %9679 = vmatprep.subr.bf16.mxu0 %v14957_v60  ;;  %9843 = vmatprep.subr.bf16.mxu1 %v14959_v4  ;;  %v3713_v1 = vld [vmem:[%s18405_s15 + $0x11d8] sm:$0xff]  ;;  %v15052_v60 = vcombine.low %v3688_v21, %v3696_v62  ;;  %v15054_v4 = vcombine.low %v3689_v23, %v3697_v0  ;;  %v15149_v21 = vcombine.high %v3784_v54, %v3792_v32  ;;  %v3800_v23 = vld [vmem:[%s18405_s15 + $0x1490] sm:$0xff] }
 0x6b5   : > { %v15071_v51 = vcombine.high %v3705_v56, %v3713_v1  ;;  %v3808_v0 = vld [vmem:[%s18405_s15 + $0x14d0] sm:$0xff] }
 0x6b7   : > { %9680 = vmatpush1.bf16.msra.mxu0 %v14956_v48  ;;  %9844 = vmatpush1.bf16.msra.mxu1 %v14958_v37  ;;  %v3721_v48 = vld [vmem:[%s18405_s15 + $0x1218] sm:$0xff] }
 0x6b8   : > { %9681 = vmatprep.subr.bf16.mxu0 %v14973_v10  ;;  %9845 = vmatprep.subr.bf16.mxu1 %v14975_v57  ;;  %v3729_v37 = vld [vmem:[%s18405_s15 + $0x1258] sm:$0xff]  ;;  %v15068_v10 = vcombine.low %v3704_v8, %v3712_v47  ;;  %v15070_v57 = vcombine.low %v3705_v56, %v3713_v1  ;;  %v15165_v8 = vcombine.high %v3800_v23, %v3808_v0  ;;  %v3816_v56 = vld [vmem:[%s18405_s15 + $0x1510] sm:$0xff] }
 0x6b9   : > { %v15087_v59 = vcombine.high %v3721_v48, %v3729_v37  ;;  %v3824_v1 = vld [vmem:[%s18405_s15 + $0x1550] sm:$0xff] }
 0x6bb   : > { %9682 = vmatpush1.bf16.msra.mxu0 %v14972_v13  ;;  %9846 = vmatpush1.bf16.msra.mxu1 %v14974_v27  ;;  %v3737_v13 = vld [vmem:[%s18405_s15 + $0x1298] sm:$0xff] }
 0x6bc   : > { %9683 = vmatprep.subr.bf16.mxu0 %v14989_v35  ;;  %9847 = vmatprep.subr.bf16.mxu1 %v14991_v49  ;;  %v3745_v27 = vld [vmem:[%s18405_s15 + $0x12d8] sm:$0xff]  ;;  %v15084_v35 = vcombine.low %v3720_v24, %v3728_v15  ;;  %v15086_v49 = vcombine.low %v3721_v48, %v3729_v37  ;;  %v15181_v24 = vcombine.high %v3816_v56, %v3824_v1  ;;  %v3832_v48 = vld [vmem:[%s18405_s15 + $0x1590] sm:$0xff] }
 0x6bd   : > { %v15103_v14 = vcombine.high %v3737_v13, %v3745_v27  ;;  %v3840_v37 = vld [vmem:[%s18405_s15 + $0x15d0] sm:$0xff] }
 0x6bf   : > { %9684 = vmatpush1.bf16.msra.mxu0 %v14988_v2  ;;  %9848 = vmatpush1.bf16.msra.mxu1 %v14990_v17  ;;  %v3753_v2 = vld [vmem:[%s18405_s15 + $0x1318] sm:$0xff] }
 0x6c0   : > { %9685 = vmatprep.subr.bf16.mxu0 %v15005_v52  ;;  %9849 = vmatprep.subr.bf16.mxu1 %v15007_v40  ;;  %v3761_v17 = vld [vmem:[%s18405_s15 + $0x1358] sm:$0xff]  ;;  %v15100_v52 = vcombine.low %v3736_v50, %v3744_v31  ;;  %v15102_v40 = vcombine.low %v3737_v13, %v3745_v27  ;;  %v15197_v50 = vcombine.high %v3832_v48, %v3840_v37  ;;  %v3848_v13 = vld [vmem:[%s18405_s15 + $0x1610] sm:$0xff] }
 0x6c1   : > { %v15119_v61 = vcombine.high %v3753_v2, %v3761_v17  ;;  %v3856_v27 = vld [vmem:[%s18405_s15 + $0x1650] sm:$0xff] }
 0x6c3   : > { %9686 = vmatpush1.bf16.msra.mxu0 %v15004_v25  ;;  %9850 = vmatpush1.bf16.msra.mxu1 %v15006_v38  ;;  %v3769_v25 = vld [vmem:[%s18405_s15 + $0x1398] sm:$0xff] }
 0x6c4   : > { %9696 = vmatprep.subr.bf16.mxu0 %v15021_v18  ;;  %9860 = vmatprep.subr.bf16.mxu1 %v15023_v22  ;;  %v3777_v38 = vld [vmem:[%s18405_s15 + $0x13d8] sm:$0xff]  ;;  %v15116_v18 = vcombine.low %v3752_v63, %v3760_v16  ;;  %v15118_v22 = vcombine.low %v3753_v2, %v3761_v17  ;;  %v15213_v63 = vcombine.high %v3848_v13, %v3856_v27  ;;  %v3864_v2 = vld [vmem:[%s18405_s15 + $0x1690] sm:$0xff] }
 0x6c5   : > { %v15135_v30 = vcombine.high %v3769_v25, %v3777_v38  ;;  %v3872_v17 = vld [vmem:[%s18405_s15 + $0x16d0] sm:$0xff] }
 0x6c6   : > { %9688 = vmatmul.mubr.bf16.vlgmr.msra.gmra.mrb[4].mxu0 %v19106_v26  ;;  %9852 = vmatmul.mubr.bf16.vlgmr.msra.gmra.mrb[4].mxu1 %v19106_v26 }
 0x6c7   : > { %9697 = vmatpush1.bf16.msra.mxu0 %v15020_v9  ;;  %9861 = vmatpush1.bf16.msra.mxu1 %v15022_v33  ;;  %v3785_v9 = vld [vmem:[%s18405_s15 + $0x1418] sm:$0xff] }
 0x6c8   : > { %9698 = vmatprep.subr.bf16.mxu0 %v15037_v29  ;;  %9862 = vmatprep.subr.bf16.mxu1 %v15039_v34  ;;  %v3793_v33 = vld [vmem:[%s18405_s15 + $0x1458] sm:$0xff]  ;;  %v15132_v29 = vcombine.low %v3768_v58, %v3776_v53  ;;  %v15134_v34 = vcombine.low %v3769_v25, %v3777_v38  ;;  %v15229_v58 = vcombine.high %v3864_v2, %v3872_v17  ;;  %v3880_v25 = vld [vmem:[%s18405_s15 + $0x1710] sm:$0xff] }
 0x6c9   : > { %9728 = vmatprep.mubr.bf16.mxu0 %v19112_v19  ;;  %9892 = vmatprep.mubr.bf16.mxu1 %v19112_v19  ;;  %v15151_v62 = vcombine.high %v3785_v9, %v3793_v33  ;;  %v3888_v38 = vld [vmem:[%s18405_s15 + $0x1750] sm:$0xff] }
 0x6cb   : > { %9699 = vmatpush1.bf16.msra.mxu0 %v15036_v7  ;;  %9863 = vmatpush1.bf16.msra.mxu1 %v15038_v3  ;;  %v3801_v7 = vld [vmem:[%s18405_s15 + $0x1498] sm:$0xff] }
 0x6cc   : > { %9700 = vmatprep.subr.bf16.mxu0 %v15053_v41  ;;  %9864 = vmatprep.subr.bf16.mxu1 %v15055_v46  ;;  %v3809_v3 = vld [vmem:[%s18405_s15 + $0x14d8] sm:$0xff]  ;;  %v15148_v41 = vcombine.low %v3784_v54, %v3792_v32  ;;  %v15150_v46 = vcombine.low %v3785_v9, %v3793_v33  ;;  %v15245_v54 = vcombine.high %v3880_v25, %v3888_v38  ;;  %v3896_v9 = vld [vmem:[%s18405_s15 + $0x1790] sm:$0xff] }
 0x6cd   : > { %v15167_v47 = vcombine.high %v3801_v7, %v3809_v3  ;;  %v3904_v33 = vld [vmem:[%s18405_s15 + $0x17d0] sm:$0xff] }
 0x6cf   : > { %9701 = vmatpush1.bf16.msra.mxu0 %v15052_v60  ;;  %9865 = vmatpush1.bf16.msra.mxu1 %v15054_v4  ;;  %v3817_v60 = vld [vmem:[%s18405_s15 + $0x1518] sm:$0xff] }
 0x6d0   : > { %9702 = vmatprep.subr.bf16.mxu0 %v15069_v39  ;;  %9866 = vmatprep.subr.bf16.mxu1 %v15071_v51  ;;  %v3825_v4 = vld [vmem:[%s18405_s15 + $0x1558] sm:$0xff]  ;;  %v15164_v39 = vcombine.low %v3800_v23, %v3808_v0  ;;  %v15166_v51 = vcombine.low %v3801_v7, %v3809_v3  ;;  %v15261_v23 = vcombine.high %v3896_v9, %v3904_v33  ;;  %v3912_v7 = vld [vmem:[%s18405_s15 + $0x1810] sm:$0xff] }
 0x6d1   : > { %v15183_v15 = vcombine.high %v3817_v60, %v3825_v4  ;;  %v3920_v3 = vld [vmem:[%s18405_s15 + $0x1850] sm:$0xff] }
 0x6d3   : > { %9703 = vmatpush1.bf16.msra.mxu0 %v15068_v10  ;;  %9867 = vmatpush1.bf16.msra.mxu1 %v15070_v57  ;;  %v3833_v10 = vld [vmem:[%s18405_s15 + $0x1598] sm:$0xff] }
 0x6d4   : > { %9704 = vmatprep.subr.bf16.mxu0 %v15085_v11  ;;  %9868 = vmatprep.subr.bf16.mxu1 %v15087_v59  ;;  %v3841_v57 = vld [vmem:[%s18405_s15 + $0x15d8] sm:$0xff]  ;;  %v15180_v11 = vcombine.low %v3816_v56, %v3824_v1  ;;  %v15182_v59 = vcombine.low %v3817_v60, %v3825_v4  ;;  %v15277_v56 = vcombine.high %v3912_v7, %v3920_v3  ;;  %v3928_v60 = vld [vmem:[%s18405_s15 + $0x1890] sm:$0xff] }
 0x6d5   : > { %v15199_v31 = vcombine.high %v3833_v10, %v3841_v57  ;;  %v3936_v4 = vld [vmem:[%s18405_s15 + $0x18d0] sm:$0xff] }
 0x6d7   : > { %9705 = vmatpush1.bf16.msra.mxu0 %v15084_v35  ;;  %9869 = vmatpush1.bf16.msra.mxu1 %v15086_v49  ;;  %v3849_v35 = vld [vmem:[%s18405_s15 + $0x1618] sm:$0xff] }
 0x6d8   : > { %9706 = vmatprep.subr.bf16.mxu0 %v15101_v43  ;;  %9870 = vmatprep.subr.bf16.mxu1 %v15103_v14  ;;  %v3857_v49 = vld [vmem:[%s18405_s15 + $0x1658] sm:$0xff]  ;;  %v15196_v43 = vcombine.low %v3832_v48, %v3840_v37  ;;  %v15198_v14 = vcombine.low %v3833_v10, %v3841_v57  ;;  %v15293_v48 = vcombine.high %v3928_v60, %v3936_v4  ;;  %v3944_v10 = vld [vmem:[%s18405_s15 + $0x1910] sm:$0xff] }
 0x6d9   : > { %v15215_v16 = vcombine.high %v3849_v35, %v3857_v49  ;;  %v3952_v57 = vld [vmem:[%s18405_s15 + $0x1950] sm:$0xff] }
 0x6db   : > { %9707 = vmatpush1.bf16.msra.mxu0 %v15100_v52  ;;  %9871 = vmatpush1.bf16.msra.mxu1 %v15102_v40  ;;  %v3865_v52 = vld [vmem:[%s18405_s15 + $0x1698] sm:$0xff] }
 0x6dc   : > { %9708 = vmatprep.subr.bf16.mxu0 %v15117_v20  ;;  %9872 = vmatprep.subr.bf16.mxu1 %v15119_v61  ;;  %v3873_v40 = vld [vmem:[%s18405_s15 + $0x16d8] sm:$0xff]  ;;  %v15212_v20 = vcombine.low %v3848_v13, %v3856_v27  ;;  %v15214_v61 = vcombine.low %v3849_v35, %v3857_v49  ;;  %v15309_v13 = vcombine.high %v3944_v10, %v3952_v57  ;;  %v3960_v35 = vld [vmem:[%s18405_s15 + $0x1990] sm:$0xff] }
 0x6dd   : > { %v15231_v53 = vcombine.high %v3865_v52, %v3873_v40  ;;  %v3968_v49 = vld [vmem:[%s18405_s15 + $0x19d0] sm:$0xff] }
 0x6df   : > { %9709 = vmatpush1.bf16.msra.mxu0 %v15116_v18  ;;  %9873 = vmatpush1.bf16.msra.mxu1 %v15118_v22  ;;  %v3881_v18 = vld [vmem:[%s18405_s15 + $0x1718] sm:$0xff] }
 0x6e0   : > { %9710 = vmatprep.subr.bf16.mxu0 %v15133_v5  ;;  %9874 = vmatprep.subr.bf16.mxu1 %v15135_v30  ;;  %v3889_v22 = vld [vmem:[%s18405_s15 + $0x1758] sm:$0xff]  ;;  %v15228_v5 = vcombine.low %v3864_v2, %v3872_v17  ;;  %v15230_v30 = vcombine.low %v3865_v52, %v3873_v40  ;;  %v15325_v2 = vcombine.high %v3960_v35, %v3968_v49  ;;  %v3976_v52 = vld [vmem:[%s18405_s15 + $0x1a10] sm:$0xff] }
 0x6e1   : > { %v15247_v32 = vcombine.high %v3881_v18, %v3889_v22  ;;  %v3984_v40 = vld [vmem:[%s18405_s15 + $0x1a50] sm:$0xff] }
 0x6e3   : > { %9711 = vmatpush1.bf16.msra.mxu0 %v15132_v29  ;;  %9875 = vmatpush1.bf16.msra.mxu1 %v15134_v34  ;;  %v3897_v29 = vld [vmem:[%s18405_s15 + $0x1798] sm:$0xff] }
 0x6e4   : > { %9712 = vmatprep.subr.bf16.mxu0 %v15149_v21  ;;  %9876 = vmatprep.subr.bf16.mxu1 %v15151_v62  ;;  %v3905_v34 = vld [vmem:[%s18405_s15 + $0x17d8] sm:$0xff]  ;;  %v15244_v21 = vcombine.low %v3880_v25, %v3888_v38  ;;  %v15246_v62 = vcombine.low %v3881_v18, %v3889_v22  ;;  %v15341_v25 = vcombine.high %v3976_v52, %v3984_v40  ;;  %v3992_v18 = vld [vmem:[%s18405_s15 + $0x1a90] sm:$0xff] }
 0x6e5   : > { %v15263_v0 = vcombine.high %v3897_v29, %v3905_v34  ;;  %v4000_v22 = vld [vmem:[%s18405_s15 + $0x1ad0] sm:$0xff] }
 0x6e7   : > { %9713 = vmatpush1.bf16.msra.mxu0 %v15148_v41  ;;  %9877 = vmatpush1.bf16.msra.mxu1 %v15150_v46  ;;  %v3913_v41 = vld [vmem:[%s18405_s15 + $0x1818] sm:$0xff] }
 0x6e8   : > { %9714 = vmatprep.subr.bf16.mxu0 %v15165_v8  ;;  %9878 = vmatprep.subr.bf16.mxu1 %v15167_v47  ;;  %v3921_v46 = vld [vmem:[%s18405_s15 + $0x1858] sm:$0xff]  ;;  %v15260_v8 = vcombine.low %v3896_v9, %v3904_v33  ;;  %v15262_v47 = vcombine.low %v3897_v29, %v3905_v34  ;;  %v15357_v9 = vcombine.high %v3992_v18, %v4000_v22  ;;  %v4008_v29 = vld [vmem:[%s18405_s15 + $0x1b10] sm:$0xff] }
 0x6e9   : > { %v15279_v1 = vcombine.high %v3913_v41, %v3921_v46  ;;  %v4016_v34 = vld [vmem:[%s18405_s15 + $0x1b50] sm:$0xff] }
 0x6eb   : > { %9715 = vmatpush1.bf16.msra.mxu0 %v15164_v39  ;;  %9879 = vmatpush1.bf16.msra.mxu1 %v15166_v51  ;;  %v3929_v39 = vld [vmem:[%s18405_s15 + $0x1898] sm:$0xff] }
 0x6ec   : > { %9716 = vmatprep.subr.bf16.mxu0 %v15181_v24  ;;  %9880 = vmatprep.subr.bf16.mxu1 %v15183_v15  ;;  %v3937_v51 = vld [vmem:[%s18405_s15 + $0x18d8] sm:$0xff]  ;;  %v15276_v24 = vcombine.low %v3912_v7, %v3920_v3  ;;  %v15278_v15 = vcombine.low %v3913_v41, %v3921_v46  ;;  %v15373_v7 = vcombine.high %v4008_v29, %v4016_v34  ;;  %v4024_v46 = vld [vmem:[%s18405_s15 + $0x1b90] sm:$0xff] }
 0x6ed   : > { %v15295_v37 = vcombine.high %v3929_v39, %v3937_v51 }
 0x6ef   : > { %9717 = vmatpush1.bf16.msra.mxu0 %v15180_v11  ;;  %9881 = vmatpush1.bf16.msra.mxu1 %v15182_v59  ;;  %v3945_v11 = vld [vmem:[%s18405_s15 + $0x1918] sm:$0xff] }
 0x6f0   : > { %9718 = vmatprep.subr.bf16.mxu0 %v15197_v50  ;;  %9882 = vmatprep.subr.bf16.mxu1 %v15199_v31  ;;  %v3953_v59 = vld [vmem:[%s18405_s15 + $0x1958] sm:$0xff]  ;;  %v15292_v50 = vcombine.low %v3928_v60, %v3936_v4  ;;  %v15294_v31 = vcombine.low %v3929_v39, %v3937_v51 }
 0x6f1   : > { %v15311_v27 = vcombine.high %v3945_v11, %v3953_v59  ;;  %v4033_v60 = vld [vmem:[%s18405_s15 + $0x1bd8] sm:$0xff] }
 0x6f3   : > { %9719 = vmatpush1.bf16.msra.mxu0 %v15196_v43  ;;  %9883 = vmatpush1.bf16.msra.mxu1 %v15198_v14  ;;  %v3961_v43 = vld [vmem:[%s18405_s15 + $0x1998] sm:$0xff] }
 0x6f4   : > { %9720 = vmatprep.subr.bf16.mxu0 %v15213_v63  ;;  %9884 = vmatprep.subr.bf16.mxu1 %v15215_v16  ;;  %v3969_v14 = vld [vmem:[%s18405_s15 + $0x19d8] sm:$0xff]  ;;  %v15308_v63 = vcombine.low %v3944_v10, %v3952_v57  ;;  %v15310_v16 = vcombine.low %v3945_v11, %v3953_v59 }
 0x6f5   : > { %v15327_v17 = vcombine.high %v3961_v43, %v3969_v14 }
 0x6f7   : > { %9721 = vmatpush1.bf16.msra.mxu0 %v15212_v20  ;;  %9885 = vmatpush1.bf16.msra.mxu1 %v15214_v61  ;;  %v3977_v20 = vld [vmem:[%s18405_s15 + $0x1a18] sm:$0xff] }
 0x6f8   : > { %9722 = vmatprep.subr.bf16.mxu0 %v15229_v58  ;;  %9886 = vmatprep.subr.bf16.mxu1 %v15231_v53  ;;  %v3985_v61 = vld [vmem:[%s18405_s15 + $0x1a58] sm:$0xff]  ;;  %v15324_v58 = vcombine.low %v3960_v35, %v3968_v49  ;;  %v15326_v53 = vcombine.low %v3961_v43, %v3969_v14 }
 0x6f9   : > { %v15343_v38 = vcombine.high %v3977_v20, %v3985_v61  ;;  %v4041_v35 = vld [vmem:[%s18405_s15 + $0x1c18] sm:$0xff] }
 0x6fa   : > { %v4049_v49 = vld [vmem:[%s18405_s15 + $0x1c58] sm:$0xff] }
 0x6fb   : > { %9723 = vmatpush1.bf16.msra.mxu0 %v15228_v5  ;;  %9887 = vmatpush1.bf16.msra.mxu1 %v15230_v30  ;;  %v3993_v5 = vld [vmem:[%s18405_s15 + $0x1a98] sm:$0xff] }
 0x6fc   : > { %9724 = vmatprep.subr.bf16.mxu0 %v15245_v54  ;;  %9888 = vmatprep.subr.bf16.mxu1 %v15247_v32  ;;  %v4001_v30 = vld [vmem:[%s18405_s15 + $0x1ad8] sm:$0xff]  ;;  %v15340_v54 = vcombine.low %v3976_v52, %v3984_v40  ;;  %v15342_v32 = vcombine.low %v3977_v20, %v3985_v61  ;;  %v4056_v52 = vld [vmem:[%s18405_s15 + $0x1c90] sm:$0xff] }
 0x6fd   : > { %v15359_v33 = vcombine.high %v3993_v5, %v4001_v30  ;;  %v3081_v43 = vld [vmem:[#allocation3] sm:$0xff]  ;;  %v4064_v40 = vld [vmem:[%s18405_s15 + $0x1cd0] sm:$0xff] }
 0x6fe   : > { %v4057_v61 = vld [vmem:[%s18405_s15 + $0x1c98] sm:$0xff] }
 0x6ff   : > { %9725 = vmatpush1.bf16.msra.mxu0 %v15244_v21  ;;  %9889 = vmatpush1.bf16.msra.mxu1 %v15246_v62  ;;  %v4009_v21 = vld [vmem:[%s18405_s15 + $0x1b18] sm:$0xff] }
 0x700   : > { %9726 = vmatprep.subr.bf16.mxu0 %v15261_v23  ;;  %9890 = vmatprep.subr.bf16.mxu1 %v15263_v0  ;;  %v4017_v62 = vld [vmem:[%s18405_s15 + $0x1b58] sm:$0xff]  ;;  %v15356_v23 = vcombine.low %v3992_v18, %v4000_v22  ;;  %v15358_v0 = vcombine.low %v3993_v5, %v4001_v30  ;;  %v4072_v22 = vld [vmem:[%s18405_s15 + $0x1d10] sm:$0xff] }
 0x701   : > { %v15375_v41 = vcombine.high %v4009_v21, %v4017_v62  ;;  %v15374_v10 = vcombine.low %v4009_v21, %v4017_v62  ;;  %v4080_v5 = vld [vmem:[%s18405_s15 + $0x1d50] sm:$0xff]  ;;  %v4073_v30 = vld [vmem:[%s18405_s15 + $0x1d18] sm:$0xff] }
 0x702   : > { %v4096_v21 = vld [vmem:[%s18405_s15 + $0x1dd0] sm:$0xff]  ;;  %v4089_v62 = vld [vmem:[%s18405_s15 + $0x1d98] sm:$0xff] }
 0x703   : > { %9727 = vmatpush1.bf16.msra.mxu0 %v15260_v8  ;;  %9891 = vmatpush1.bf16.msra.mxu1 %v15262_v47  ;;  %v4032_v8 = vld [vmem:[%s18405_s15 + $0x1bd0] sm:$0xff] }
 0x704   : > { %9737 = vmatprep.subr.bf16.mxu0 %v15277_v56  ;;  %9901 = vmatprep.subr.bf16.mxu1 %v15279_v1  ;;  %v4025_v1 = vld [vmem:[%s18405_s15 + $0x1b98] sm:$0xff]  ;;  %v15389_v57 = vcombine.high %v4024_v46, %v4032_v8  ;;  %v15388_v14 = vcombine.low %v4024_v46, %v4032_v8  ;;  %v4104_v46 = vld [vmem:[%s18405_s15 + $0x1e10] sm:$0xff] }
 0x705   : > { %v4112_v8 = vld [vmem:[%s18405_s15 + $0x1e50] sm:$0xff] }
 0x706   : > { %9729 = vmatmul.mubr.bf16.vlgmr.msra.gmra.mrb[4].mxu0 %v19187_v55  ;;  %9893 = vmatmul.mubr.bf16.vlgmr.msra.gmra.mrb[4].mxu1 %v19187_v55 }
 0x707   : > { %9738 = vmatpush1.bf16.msra.mxu0 %v15276_v24  ;;  %9902 = vmatpush1.bf16.msra.mxu1 %v15278_v15  ;;  %v15372_v24 = vcombine.low %v4008_v29, %v4016_v34  ;;  %v4088_v34 = vld [vmem:[%s18405_s15 + $0x1d90] sm:$0xff] }
 0x708   : > { %9739 = vmatprep.subr.bf16.mxu0 %v15293_v48  ;;  %9903 = vmatprep.subr.bf16.mxu1 %v15295_v37 }
 0x709   : > { %9769 = vmatprep.mubr.bf16.mxu0 %v19193_v45  ;;  %9933 = vmatprep.mubr.bf16.mxu1 %v19193_v45 }
 0x70b   : > { %9740 = vmatpush1.bf16.msra.mxu0 %v15292_v50  ;;  %9904 = vmatpush1.bf16.msra.mxu1 %v15294_v31  ;;  %v15391_v50 = vcombine.high %v4025_v1, %v4033_v60  ;;  %v4040_v31 = vld [vmem:[%s18405_s15 + $0x1c10] sm:$0xff] }
 0x70c   : > { %9741 = vmatprep.subr.bf16.mxu0 %v15309_v13  ;;  %9905 = vmatprep.subr.bf16.mxu1 %v15311_v27  ;;  %v4048_v13 = vld [vmem:[%s18405_s15 + $0x1c50] sm:$0xff] }
 0x70f   : > { %9742 = vmatpush1.bf16.msra.mxu0 %v15308_v63  ;;  %9906 = vmatpush1.bf16.msra.mxu1 %v15310_v16  ;;  %v15390_v16 = vcombine.low %v4025_v1, %v4033_v60  ;;  %v15452_v1 = vcombine.low %v4088_v34, %v4096_v21 }
 0x710   : > { %9743 = vmatprep.subr.bf16.mxu0 %v15325_v2  ;;  %9907 = vmatprep.subr.bf16.mxu1 %v15327_v17  ;;  %v15405_v2 = vcombine.high %v4040_v31, %v4048_v13  ;;  %v15407_v17 = vcombine.high %v4041_v35, %v4049_v49 }
 0x713   : > { %9744 = vmatpush1.bf16.msra.mxu0 %v15324_v58  ;;  %9908 = vmatpush1.bf16.msra.mxu1 %v15326_v53  ;;  %v4065_v58 = vld [vmem:[%s18405_s15 + $0x1cd8] sm:$0xff]  ;;  %v15404_v53 = vcombine.low %v4040_v31, %v4048_v13 }
 0x714   : > { %9745 = vmatprep.subr.bf16.mxu0 %v15341_v25  ;;  %9909 = vmatprep.subr.bf16.mxu1 %v15343_v38  ;;  %v15406_v25 = vcombine.low %v4041_v35, %v4049_v49  ;;  %v15421_v38 = vcombine.high %v4056_v52, %v4064_v40  ;;  %v15423_v18 = vcombine.high %v4057_v61, %v4065_v58  ;;  %v4137_v31 = vld [vmem:[%s18405_s15 + $0x1f18] sm:$0xff] }
 0x715   : > { %v4145_v13 = vld [vmem:[%s18405_s15 + $0x1f58] sm:$0xff] }
 0x717   : > { %9746 = vmatpush1.bf16.msra.mxu0 %v15340_v54  ;;  %9910 = vmatpush1.bf16.msra.mxu1 %v15342_v32  ;;  %v4081_v54 = vld [vmem:[%s18405_s15 + $0x1d58] sm:$0xff]  ;;  %v15420_v32 = vcombine.low %v4056_v52, %v4064_v40  ;;  %v15502_v52 = vcombine.low %v4137_v31, %v4145_v13 }
 0x718   : > { %9747 = vmatprep.subr.bf16.mxu0 %v15357_v9  ;;  %9911 = vmatprep.subr.bf16.mxu1 %v15359_v33  ;;  %v15422_v9 = vcombine.low %v4057_v61, %v4065_v58  ;;  %v15437_v33 = vcombine.high %v4072_v22, %v4080_v5  ;;  %v15439_v29 = vcombine.high %v4073_v30, %v4081_v54  ;;  %v3146_v61 = vld [vmem:[%s18405_s15 + $0x20] sm:$0xff] }
 0x719   : > { %v9443_v3 = vpop.f32.mrb[0].mxu0  ;;  %v9607_v47 = vpop.f32.mrb[0].mxu1  ;;  %v3154_v58 = vld [vmem:[%s18405_s15 + $0x60] sm:$0xff] }
 0x71a   : > { %v9445_v56 = vpop.f32.mrb[1].mxu0  ;;  %v9609_v39 = vpop.f32.mrb[1].mxu1 }
 0x71b   : > { %v10614_v4 = vcombine.low %v9443_v3, %v9445_v56  ;;  %v9447_v51 = vpop.f32.mrb[2].mxu0  ;;  %9748 = vmatpush1.bf16.msra.mxu0 %v15356_v23  ;;  %v10615_v15 = vcombine.low %v9607_v47, %v9609_v39  ;;  %v9611_v48 = vpop.f32.mrb[2].mxu1  ;;  %9912 = vmatpush1.bf16.msra.mxu1 %v15358_v0  ;;  %v4097_v23 = vld [vmem:[%s18405_s15 + $0x1dd8] sm:$0xff]  ;;  %v15436_v0 = vcombine.low %v4072_v22, %v4080_v5 }
 0x71c   : > { %v9448_v37 = vpop.f32.mrb[3].mxu0  ;;  %9749 = vmatprep.subr.bf16.mxu0 %v15373_v7  ;;  %v9612_v59 = vpop.f32.mrb[3].mxu1  ;;  %9913 = vmatprep.subr.bf16.mxu1 %v15375_v41  ;;  %v15438_v7 = vcombine.low %v4073_v30, %v4081_v54  ;;  %v15453_v3 = vcombine.high %v4088_v34, %v4096_v21  ;;  %v15455_v41 = vcombine.high %v4089_v62, %v4097_v23  ;;  %v4105_v47 = vld [vmem:[%s18405_s15 + $0x1e18] sm:$0xff]  ;;  %v4120_v51 = vld [vmem:[%s18405_s15 + $0x1e90] sm:$0xff]  ;;  %v3162_v30 = vld [vmem:[%s18405_s15 + $0xa0] sm:$0xff] }
 0x71d   : > { %v10622_v11 = vrot.slane %v10614_v4, %v18953_v36  ;;  %v10629_v27 = vrot.slane %v10615_v15, %v18953_v36  ;;  %v4113_v56 = vld [vmem:[%s18405_s15 + $0x1e58] sm:$0xff]  ;;  %v15454_v60 = vcombine.low %v4089_v62, %v4097_v23  ;;  %v15469_v4 = vcombine.high %v4104_v46, %v4112_v8  ;;  %v4136_v59 = vld [vmem:[%s18405_s15 + $0x1f10] sm:$0xff]  ;;  %v3170_v54 = vld [vmem:[%s18405_s15 + $0xe0] sm:$0xff] }
 0x71e   : > { %v15471_v39 = vcombine.high %v4105_v47, %v4113_v56  ;;  %v4121_v15 = vld [vmem:[%s18405_s15 + $0x1e98] sm:$0xff]  ;;  %v15468_v37 = vcombine.low %v4104_v46, %v4112_v8  ;;  %v14513_v22 = vcombine.high %v3146_v61, %v3154_v58  ;;  %v14529_v34 = vcombine.high %v3162_v30, %v3170_v54  ;;  %v3178_v62 = vld [vmem:[%s18405_s15 + $0x120] sm:$0xff] }
 0x71f   : > { %9750 = vmatpush1.bf16.msra.mxu0 %v15372_v24  ;;  %v10630_v63 = vcombine.low %v10622_v11, %v10629_v27  ;;  %9914 = vmatpush1.bf16.msra.mxu1 %v15374_v10  ;;  %v4128_v24 = vld [vmem:[%s18405_s15 + $0x1ed0] sm:$0xff]  ;;  %v4129_v48 = vld [vmem:[%s18405_s15 + $0x1ed8] sm:$0xff]  ;;  %v15470_v10 = vcombine.low %v4105_v47, %v4113_v56  ;;  %v3186_v23 = vld [vmem:[%s18405_s15 + $0x160] sm:$0xff] }
 0x720   : > { %9751 = vmatprep.subr.bf16.mxu0 %v15389_v57  ;;  %9915 = vmatprep.subr.bf16.mxu1 %v15391_v50  ;;  %v15485_v57 = vcombine.high %v4120_v51, %v4128_v24  ;;  %v15487_v11 = vcombine.high %v4121_v15, %v4129_v48  ;;  %v4144_v50 = vld [vmem:[%s18405_s15 + $0x1f50] sm:$0xff]  ;;  %v15484_v27 = vcombine.low %v4120_v51, %v4128_v24  ;;  %v3194_v47 = vld [vmem:[%s18405_s15 + $0x1a0] sm:$0xff] }
 0x721   : > { %v10686_v20 = vadd.f32 %v10630_v63, %v3081_v43  ;;  %v15486_v35 = vcombine.low %v4121_v15, %v4129_v48  ;;  %v15501_v49 = vcombine.high %v4136_v59, %v4144_v50  ;;  %v15503_v43 = vcombine.high %v4137_v31, %v4145_v13  ;;  %v4160_v63 = vld [vmem:[%s18405_s15 + $0x1fd0] sm:$0xff]  ;;  %v3202_v56 = vld [vmem:[%s18405_s15 + $0x1e0] sm:$0xff] }
 0x722   : > { %v14545_v46 = vcombine.high %v3178_v62, %v3186_v23  ;;  %v14561_v51 = vcombine.high %v3194_v47, %v3202_v56  ;;  %v3210_v15 = vld [vmem:[%s18405_s15 + $0x220] sm:$0xff] }
 0x723   : > { %9752 = vmatpush1.bf16.msra.mxu0 %v15388_v14  ;;  %10690 = vst [vmem:[#allocation3] sm:$0xff] %v10686_v20  ;;  %9916 = vmatpush1.bf16.msra.mxu1 %v15390_v16  ;;  %v4152_v14 = vld [vmem:[%s18405_s15 + $0x1f90] sm:$0xff]  ;;  %v4153_v16 = vld [vmem:[%s18405_s15 + $0x1f98] sm:$0xff]  ;;  %v3218_v48 = vld [vmem:[%s18405_s15 + $0x260] sm:$0xff] }
 0x724   : > { %9753 = vmatprep.subr.bf16.mxu0 %v15405_v2  ;;  %9917 = vmatprep.subr.bf16.mxu1 %v15407_v17  ;;  %v4161_v2 = vld [vmem:[%s18405_s15 + $0x1fd8] sm:$0xff]  ;;  %v15500_v17 = vcombine.low %v4136_v59, %v4144_v50  ;;  %v15517_v40 = vcombine.high %v4152_v14, %v4160_v63  ;;  %v14577_v59 = vcombine.high %v3210_v15, %v3218_v48  ;;  %v3226_v31 = vld [vmem:[%s18405_s15 + $0x2a0] sm:$0xff] }
 0x725   : > { %v15519_v20 = vcombine.high %v4153_v16, %v4161_v2  ;;  %v3234_v13 = vld [vmem:[%s18405_s15 + $0x2e0] sm:$0xff] }
 0x727   : > { %9754 = vmatpush1.bf16.msra.mxu0 %v15404_v53  ;;  %9918 = vmatpush1.bf16.msra.mxu1 %v15406_v25  ;;  %v3147_v53 = vld [vmem:[%s18405_s15 + $0x28] sm:$0xff] }
 0x728   : > { %9755 = vmatprep.subr.bf16.mxu0 %v15421_v38  ;;  %9919 = vmatprep.subr.bf16.mxu1 %v15423_v18  ;;  %v3155_v25 = vld [vmem:[%s18405_s15 + $0x68] sm:$0xff]  ;;  %v15516_v38 = vcombine.low %v4152_v14, %v4160_v63  ;;  %v15518_v18 = vcombine.low %v4153_v16, %v4161_v2  ;;  %v14593_v14 = vcombine.high %v3226_v31, %v3234_v13  ;;  %v3242_v16 = vld [vmem:[%s18405_s15 + $0x320] sm:$0xff] }
 0x729   : > { %v14515_v5 = vcombine.high %v3147_v53, %v3155_v25  ;;  %v3250_v2 = vld [vmem:[%s18405_s15 + $0x360] sm:$0xff] }
 0x72b   : > { %9756 = vmatpush1.bf16.msra.mxu0 %v15420_v32  ;;  %9920 = vmatpush1.bf16.msra.mxu1 %v15422_v9  ;;  %v3163_v32 = vld [vmem:[%s18405_s15 + $0xa8] sm:$0xff] }
 0x72c   : > { %9757 = vmatprep.subr.bf16.mxu0 %v15437_v33  ;;  %9921 = vmatprep.subr.bf16.mxu1 %v15439_v29  ;;  %v3171_v9 = vld [vmem:[%s18405_s15 + $0xe8] sm:$0xff]  ;;  %v14512_v33 = vcombine.low %v3146_v61, %v3154_v58  ;;  %v14514_v29 = vcombine.low %v3147_v53, %v3155_v25  ;;  %v14609_v61 = vcombine.high %v3242_v16, %v3250_v2  ;;  %v3258_v53 = vld [vmem:[%s18405_s15 + $0x3a0] sm:$0xff] }
 0x72d   : > { %v14531_v21 = vcombine.high %v3163_v32, %v3171_v9  ;;  %v3266_v25 = vld [vmem:[%s18405_s15 + $0x3e0] sm:$0xff] }
 0x72f   : > { %9758 = vmatpush1.bf16.msra.mxu0 %v15436_v0  ;;  %9922 = vmatpush1.bf16.msra.mxu1 %v15438_v7  ;;  %v3179_v0 = vld [vmem:[%s18405_s15 + $0x128] sm:$0xff] }
 0x730   : > { %9759 = vmatprep.subr.bf16.mxu0 %v15453_v3  ;;  %9923 = vmatprep.subr.bf16.mxu1 %v15455_v41  ;;  %v3187_v7 = vld [vmem:[%s18405_s15 + $0x168] sm:$0xff]  ;;  %v14528_v3 = vcombine.low %v3162_v30, %v3170_v54  ;;  %v14530_v41 = vcombine.low %v3163_v32, %v3171_v9  ;;  %v14625_v30 = vcombine.high %v3258_v53, %v3266_v25  ;;  %v3274_v32 = vld [vmem:[%s18405_s15 + $0x420] sm:$0xff] }
 0x731   : > { %v14547_v8 = vcombine.high %v3179_v0, %v3187_v7  ;;  %v3282_v9 = vld [vmem:[%s18405_s15 + $0x460] sm:$0xff] }
 0x733   : > { %9760 = vmatpush1.bf16.msra.mxu0 %v15452_v1  ;;  %9924 = vmatpush1.bf16.msra.mxu1 %v15454_v60  ;;  %v3195_v1 = vld [vmem:[%s18405_s15 + $0x1a8] sm:$0xff] }
 0x734   : > { %9761 = vmatprep.subr.bf16.mxu0 %v15469_v4  ;;  %9925 = vmatprep.subr.bf16.mxu1 %v15471_v39  ;;  %v3203_v60 = vld [vmem:[%s18405_s15 + $0x1e8] sm:$0xff]  ;;  %v14544_v4 = vcombine.low %v3178_v62, %v3186_v23  ;;  %v14546_v39 = vcombine.low %v3179_v0, %v3187_v7  ;;  %v14641_v62 = vcombine.high %v3274_v32, %v3282_v9  ;;  %v3290_v0 = vld [vmem:[%s18405_s15 + $0x4a0] sm:$0xff] }
 0x735   : > { %v14563_v24 = vcombine.high %v3195_v1, %v3203_v60  ;;  %v3298_v7 = vld [vmem:[%s18405_s15 + $0x4e0] sm:$0xff] }
 0x737   : > { %9762 = vmatpush1.bf16.msra.mxu0 %v15468_v37  ;;  %9926 = vmatpush1.bf16.msra.mxu1 %v15470_v10  ;;  %v3211_v37 = vld [vmem:[%s18405_s15 + $0x228] sm:$0xff] }
 0x738   : > { %9763 = vmatprep.subr.bf16.mxu0 %v15485_v57  ;;  %9927 = vmatprep.subr.bf16.mxu1 %v15487_v11  ;;  %v3219_v10 = vld [vmem:[%s18405_s15 + $0x268] sm:$0xff]  ;;  %v14560_v57 = vcombine.low %v3194_v47, %v3202_v56  ;;  %v14562_v11 = vcombine.low %v3195_v1, %v3203_v60  ;;  %v14657_v47 = vcombine.high %v3290_v0, %v3298_v7  ;;  %v3306_v1 = vld [vmem:[%s18405_s15 + $0x520] sm:$0xff] }
 0x739   : > { %v14579_v50 = vcombine.high %v3211_v37, %v3219_v10  ;;  %v3314_v60 = vld [vmem:[%s18405_s15 + $0x560] sm:$0xff] }
 0x73b   : > { %9764 = vmatpush1.bf16.msra.mxu0 %v15484_v27  ;;  %9928 = vmatpush1.bf16.msra.mxu1 %v15486_v35  ;;  %v3227_v27 = vld [vmem:[%s18405_s15 + $0x2a8] sm:$0xff] }
 0x73c   : > { %9765 = vmatprep.subr.bf16.mxu0 %v15501_v49  ;;  %9929 = vmatprep.subr.bf16.mxu1 %v15503_v43  ;;  %v3235_v35 = vld [vmem:[%s18405_s15 + $0x2e8] sm:$0xff]  ;;  %v14576_v49 = vcombine.low %v3210_v15, %v3218_v48  ;;  %v14578_v43 = vcombine.low %v3211_v37, %v3219_v10  ;;  %v14673_v15 = vcombine.high %v3306_v1, %v3314_v60  ;;  %v3322_v37 = vld [vmem:[%s18405_s15 + $0x5a0] sm:$0xff] }
 0x73d   : > { %v14595_v63 = vcombine.high %v3227_v27, %v3235_v35  ;;  %v3330_v10 = vld [vmem:[%s18405_s15 + $0x5e0] sm:$0xff] }
 0x73f   : > { %9766 = vmatpush1.bf16.msra.mxu0 %v15500_v17  ;;  %9930 = vmatpush1.bf16.msra.mxu1 %v15502_v52  ;;  %v3243_v17 = vld [vmem:[%s18405_s15 + $0x328] sm:$0xff] }
 0x740   : > { %9767 = vmatprep.subr.bf16.mxu0 %v15517_v40  ;;  %9931 = vmatprep.subr.bf16.mxu1 %v15519_v20  ;;  %v3251_v52 = vld [vmem:[%s18405_s15 + $0x368] sm:$0xff]  ;;  %v14592_v40 = vcombine.low %v3226_v31, %v3234_v13  ;;  %v14594_v20 = vcombine.low %v3227_v27, %v3235_v35  ;;  %v14689_v31 = vcombine.high %v3322_v37, %v3330_v10  ;;  %v3338_v27 = vld [vmem:[%s18405_s15 + $0x620] sm:$0xff] }
 0x741   : > { %v14611_v58 = vcombine.high %v3243_v17, %v3251_v52  ;;  %v3346_v35 = vld [vmem:[%s18405_s15 + $0x660] sm:$0xff] }
 0x743   : > { %9768 = vmatpush1.bf16.msra.mxu0 %v15516_v38  ;;  %9932 = vmatpush1.bf16.msra.mxu1 %v15518_v18  ;;  %v3259_v38 = vld [vmem:[%s18405_s15 + $0x3a8] sm:$0xff] }
 0x744   : > { %9942 = vmatprep.subr.bf16.mxu0 %v14513_v22  ;;  %10106 = vmatprep.subr.bf16.mxu1 %v14515_v5  ;;  %v3267_v18 = vld [vmem:[%s18405_s15 + $0x3e8] sm:$0xff]  ;;  %v14608_v22 = vcombine.low %v3242_v16, %v3250_v2  ;;  %v14610_v5 = vcombine.low %v3243_v17, %v3251_v52  ;;  %v14705_v16 = vcombine.high %v3338_v27, %v3346_v35  ;;  %v3354_v17 = vld [vmem:[%s18405_s15 + $0x6a0] sm:$0xff] }
 0x745   : > { %v14627_v54 = vcombine.high %v3259_v38, %v3267_v18  ;;  %v3362_v52 = vld [vmem:[%s18405_s15 + $0x6e0] sm:$0xff] }
 0x746   : > { %9770 = vmatmul.mubr.bf16.vlgmr.msra.gmra.mrb[4].mxu0 %v19261_v6  ;;  %9934 = vmatmul.mubr.bf16.vlgmr.msra.gmra.mrb[4].mxu1 %v19261_v6 }
 0x747   : > { %9943 = vmatpush1.bf16.msra.mxu0 %v14512_v33  ;;  %10107 = vmatpush1.bf16.msra.mxu1 %v14514_v29  ;;  %v3275_v33 = vld [vmem:[%s18405_s15 + $0x428] sm:$0xff] }
 0x748   : > { %9944 = vmatprep.subr.bf16.mxu0 %v14529_v34  ;;  %10108 = vmatprep.subr.bf16.mxu1 %v14531_v21  ;;  %v3283_v29 = vld [vmem:[%s18405_s15 + $0x468] sm:$0xff]  ;;  %v14624_v34 = vcombine.low %v3258_v53, %v3266_v25  ;;  %v14626_v21 = vcombine.low %v3259_v38, %v3267_v18  ;;  %v14721_v53 = vcombine.high %v3354_v17, %v3362_v52  ;;  %v3370_v38 = vld [vmem:[%s18405_s15 + $0x720] sm:$0xff] }
 0x749   : > { %9974 = vmatprep.mubr.bf16.mxu0 %v18974_v44  ;;  %10138 = vmatprep.mubr.bf16.mxu1 %v18974_v44  ;;  %v14643_v23 = vcombine.high %v3275_v33, %v3283_v29  ;;  %v3378_v18 = vld [vmem:[%s18405_s15 + $0x760] sm:$0xff] }
 0x74b   : > { %9945 = vmatpush1.bf16.msra.mxu0 %v14528_v3  ;;  %10109 = vmatpush1.bf16.msra.mxu1 %v14530_v41  ;;  %v3291_v3 = vld [vmem:[%s18405_s15 + $0x4a8] sm:$0xff] }
 0x74c   : > { %9946 = vmatprep.subr.bf16.mxu0 %v14545_v46  ;;  %10110 = vmatprep.subr.bf16.mxu1 %v14547_v8  ;;  %v3299_v41 = vld [vmem:[%s18405_s15 + $0x4e8] sm:$0xff]  ;;  %v14640_v46 = vcombine.low %v3274_v32, %v3282_v9  ;;  %v14642_v8 = vcombine.low %v3275_v33, %v3283_v29  ;;  %v14737_v32 = vcombine.high %v3370_v38, %v3378_v18  ;;  %v3386_v33 = vld [vmem:[%s18405_s15 + $0x7a0] sm:$0xff] }
 0x74d   : > { %v14659_v56 = vcombine.high %v3291_v3, %v3299_v41  ;;  %v3394_v29 = vld [vmem:[%s18405_s15 + $0x7e0] sm:$0xff] }
 0x74f   : > { %9947 = vmatpush1.bf16.msra.mxu0 %v14544_v4  ;;  %10111 = vmatpush1.bf16.msra.mxu1 %v14546_v39  ;;  %v3307_v4 = vld [vmem:[%s18405_s15 + $0x528] sm:$0xff] }
 0x750   : > { %9948 = vmatprep.subr.bf16.mxu0 %v14561_v51  ;;  %10112 = vmatprep.subr.bf16.mxu1 %v14563_v24  ;;  %v3315_v39 = vld [vmem:[%s18405_s15 + $0x568] sm:$0xff]  ;;  %v14656_v51 = vcombine.low %v3290_v0, %v3298_v7  ;;  %v14658_v24 = vcombine.low %v3291_v3, %v3299_v41  ;;  %v14753_v0 = vcombine.high %v3386_v33, %v3394_v29  ;;  %v3402_v3 = vld [vmem:[%s18405_s15 + $0x820] sm:$0xff] }
 0x751   : > { %v14675_v48 = vcombine.high %v3307_v4, %v3315_v39  ;;  %v3410_v41 = vld [vmem:[%s18405_s15 + $0x860] sm:$0xff] }
 0x753   : > { %9949 = vmatpush1.bf16.msra.mxu0 %v14560_v57  ;;  %10113 = vmatpush1.bf16.msra.mxu1 %v14562_v11  ;;  %v3323_v57 = vld [vmem:[%s18405_s15 + $0x5a8] sm:$0xff] }
 0x754   : > { %9950 = vmatprep.subr.bf16.mxu0 %v14577_v59  ;;  %10114 = vmatprep.subr.bf16.mxu1 %v14579_v50  ;;  %v3331_v11 = vld [vmem:[%s18405_s15 + $0x5e8] sm:$0xff]  ;;  %v14672_v59 = vcombine.low %v3306_v1, %v3314_v60  ;;  %v14674_v50 = vcombine.low %v3307_v4, %v3315_v39  ;;  %v14769_v1 = vcombine.high %v3402_v3, %v3410_v41  ;;  %v3418_v4 = vld [vmem:[%s18405_s15 + $0x8a0] sm:$0xff] }
 0x755   : > { %v14691_v13 = vcombine.high %v3323_v57, %v3331_v11  ;;  %v3426_v39 = vld [vmem:[%s18405_s15 + $0x8e0] sm:$0xff] }
 0x757   : > { %9951 = vmatpush1.bf16.msra.mxu0 %v14576_v49  ;;  %10115 = vmatpush1.bf16.msra.mxu1 %v14578_v43  ;;  %v3339_v49 = vld [vmem:[%s18405_s15 + $0x628] sm:$0xff] }
 0x758   : > { %9952 = vmatprep.subr.bf16.mxu0 %v14593_v14  ;;  %10116 = vmatprep.subr.bf16.mxu1 %v14595_v63  ;;  %v3347_v43 = vld [vmem:[%s18405_s15 + $0x668] sm:$0xff]  ;;  %v14688_v14 = vcombine.low %v3322_v37, %v3330_v10  ;;  %v14690_v63 = vcombine.low %v3323_v57, %v3331_v11  ;;  %v14785_v37 = vcombine.high %v3418_v4, %v3426_v39  ;;  %v3434_v57 = vld [vmem:[%s18405_s15 + $0x920] sm:$0xff] }
 0x759   : > { %v14707_v2 = vcombine.high %v3339_v49, %v3347_v43  ;;  %v3442_v11 = vld [vmem:[%s18405_s15 + $0x960] sm:$0xff] }
 0x75b   : > { %9953 = vmatpush1.bf16.msra.mxu0 %v14592_v40  ;;  %10117 = vmatpush1.bf16.msra.mxu1 %v14594_v20  ;;  %v3355_v40 = vld [vmem:[%s18405_s15 + $0x6a8] sm:$0xff] }
 0x75c   : > { %9954 = vmatprep.subr.bf16.mxu0 %v14609_v61  ;;  %10118 = vmatprep.subr.bf16.mxu1 %v14611_v58  ;;  %v3363_v20 = vld [vmem:[%s18405_s15 + $0x6e8] sm:$0xff]  ;;  %v14704_v61 = vcombine.low %v3338_v27, %v3346_v35  ;;  %v14706_v58 = vcombine.low %v3339_v49, %v3347_v43  ;;  %v14801_v27 = vcombine.high %v3434_v57, %v3442_v11  ;;  %v3450_v49 = vld [vmem:[%s18405_s15 + $0x9a0] sm:$0xff] }
 0x75d   : > { %v14723_v25 = vcombine.high %v3355_v40, %v3363_v20  ;;  %v3458_v43 = vld [vmem:[%s18405_s15 + $0x9e0] sm:$0xff] }
 0x75f   : > { %9955 = vmatpush1.bf16.msra.mxu0 %v14608_v22  ;;  %10119 = vmatpush1.bf16.msra.mxu1 %v14610_v5  ;;  %v3371_v22 = vld [vmem:[%s18405_s15 + $0x728] sm:$0xff] }
 0x760   : > { %9956 = vmatprep.subr.bf16.mxu0 %v14625_v30  ;;  %10120 = vmatprep.subr.bf16.mxu1 %v14627_v54  ;;  %v3379_v5 = vld [vmem:[%s18405_s15 + $0x768] sm:$0xff]  ;;  %v14720_v30 = vcombine.low %v3354_v17, %v3362_v52  ;;  %v14722_v54 = vcombine.low %v3355_v40, %v3363_v20  ;;  %v14817_v17 = vcombine.high %v3450_v49, %v3458_v43  ;;  %v3466_v40 = vld [vmem:[%s18405_s15 + $0xa20] sm:$0xff] }
 0x761   : > { %v14739_v9 = vcombine.high %v3371_v22, %v3379_v5  ;;  %v3474_v20 = vld [vmem:[%s18405_s15 + $0xa60] sm:$0xff] }
 0x763   : > { %9957 = vmatpush1.bf16.msra.mxu0 %v14624_v34  ;;  %10121 = vmatpush1.bf16.msra.mxu1 %v14626_v21  ;;  %v3387_v34 = vld [vmem:[%s18405_s15 + $0x7a8] sm:$0xff] }
 0x764   : > { %9958 = vmatprep.subr.bf16.mxu0 %v14641_v62  ;;  %10122 = vmatprep.subr.bf16.mxu1 %v14643_v23  ;;  %v3395_v21 = vld [vmem:[%s18405_s15 + $0x7e8] sm:$0xff]  ;;  %v14736_v62 = vcombine.low %v3370_v38, %v3378_v18  ;;  %v14738_v23 = vcombine.low %v3371_v22, %v3379_v5  ;;  %v14833_v38 = vcombine.high %v3466_v40, %v3474_v20  ;;  %v3482_v22 = vld [vmem:[%s18405_s15 + $0xaa0] sm:$0xff] }
 0x765   : > { %v14755_v7 = vcombine.high %v3387_v34, %v3395_v21  ;;  %v3490_v5 = vld [vmem:[%s18405_s15 + $0xae0] sm:$0xff] }
 0x767   : > { %9959 = vmatpush1.bf16.msra.mxu0 %v14640_v46  ;;  %10123 = vmatpush1.bf16.msra.mxu1 %v14642_v8  ;;  %v3403_v46 = vld [vmem:[%s18405_s15 + $0x828] sm:$0xff] }
 0x768   : > { %9960 = vmatprep.subr.bf16.mxu0 %v14657_v47  ;;  %10124 = vmatprep.subr.bf16.mxu1 %v14659_v56  ;;  %v3411_v8 = vld [vmem:[%s18405_s15 + $0x868] sm:$0xff]  ;;  %v14752_v47 = vcombine.low %v3386_v33, %v3394_v29  ;;  %v14754_v56 = vcombine.low %v3387_v34, %v3395_v21  ;;  %v14849_v33 = vcombine.high %v3482_v22, %v3490_v5  ;;  %v3498_v34 = vld [vmem:[%s18405_s15 + $0xb20] sm:$0xff] }
 0x769   : > { %v14771_v60 = vcombine.high %v3403_v46, %v3411_v8  ;;  %v3506_v21 = vld [vmem:[%s18405_s15 + $0xb60] sm:$0xff] }
 0x76b   : > { %9961 = vmatpush1.bf16.msra.mxu0 %v14656_v51  ;;  %10125 = vmatpush1.bf16.msra.mxu1 %v14658_v24  ;;  %v3419_v51 = vld [vmem:[%s18405_s15 + $0x8a8] sm:$0xff] }
 0x76c   : > { %9962 = vmatprep.subr.bf16.mxu0 %v14673_v15  ;;  %10126 = vmatprep.subr.bf16.mxu1 %v14675_v48  ;;  %v3427_v24 = vld [vmem:[%s18405_s15 + $0x8e8] sm:$0xff]  ;;  %v14768_v15 = vcombine.low %v3402_v3, %v3410_v41  ;;  %v14770_v48 = vcombine.low %v3403_v46, %v3411_v8  ;;  %v14865_v3 = vcombine.high %v3498_v34, %v3506_v21  ;;  %v3514_v46 = vld [vmem:[%s18405_s15 + $0xba0] sm:$0xff] }
 0x76d   : > { %v14787_v10 = vcombine.high %v3419_v51, %v3427_v24  ;;  %v3522_v8 = vld [vmem:[%s18405_s15 + $0xbe0] sm:$0xff] }
 0x76f   : > { %9963 = vmatpush1.bf16.msra.mxu0 %v14672_v59  ;;  %10127 = vmatpush1.bf16.msra.mxu1 %v14674_v50  ;;  %v3435_v59 = vld [vmem:[%s18405_s15 + $0x928] sm:$0xff] }
 0x770   : > { %9964 = vmatprep.subr.bf16.mxu0 %v14689_v31  ;;  %10128 = vmatprep.subr.bf16.mxu1 %v14691_v13  ;;  %v3443_v50 = vld [vmem:[%s18405_s15 + $0x968] sm:$0xff]  ;;  %v14784_v31 = vcombine.low %v3418_v4, %v3426_v39  ;;  %v14786_v13 = vcombine.low %v3419_v51, %v3427_v24  ;;  %v14881_v4 = vcombine.high %v3514_v46, %v3522_v8  ;;  %v3530_v51 = vld [vmem:[%s18405_s15 + $0xc20] sm:$0xff] }
 0x771   : > { %v14803_v35 = vcombine.high %v3435_v59, %v3443_v50  ;;  %v3538_v24 = vld [vmem:[%s18405_s15 + $0xc60] sm:$0xff] }
 0x773   : > { %9965 = vmatpush1.bf16.msra.mxu0 %v14688_v14  ;;  %10129 = vmatpush1.bf16.msra.mxu1 %v14690_v63  ;;  %v3451_v14 = vld [vmem:[%s18405_s15 + $0x9a8] sm:$0xff] }
 0x774   : > { %9966 = vmatprep.subr.bf16.mxu0 %v14705_v16  ;;  %10130 = vmatprep.subr.bf16.mxu1 %v14707_v2  ;;  %v3459_v63 = vld [vmem:[%s18405_s15 + $0x9e8] sm:$0xff]  ;;  %v14800_v16 = vcombine.low %v3434_v57, %v3442_v11  ;;  %v14802_v2 = vcombine.low %v3435_v59, %v3443_v50  ;;  %v14897_v57 = vcombine.high %v3530_v51, %v3538_v24  ;;  %v3546_v59 = vld [vmem:[%s18405_s15 + $0xca0] sm:$0xff] }
 0x775   : > { %v14819_v52 = vcombine.high %v3451_v14, %v3459_v63  ;;  %v3554_v50 = vld [vmem:[%s18405_s15 + $0xce0] sm:$0xff] }
 0x777   : > { %9967 = vmatpush1.bf16.msra.mxu0 %v14704_v61  ;;  %10131 = vmatpush1.bf16.msra.mxu1 %v14706_v58  ;;  %v3467_v61 = vld [vmem:[%s18405_s15 + $0xa28] sm:$0xff] }
 0x778   : > { %9968 = vmatprep.subr.bf16.mxu0 %v14721_v53  ;;  %10132 = vmatprep.subr.bf16.mxu1 %v14723_v25  ;;  %v3475_v58 = vld [vmem:[%s18405_s15 + $0xa68] sm:$0xff]  ;;  %v14816_v53 = vcombine.low %v3450_v49, %v3458_v43  ;;  %v14818_v25 = vcombine.low %v3451_v14, %v3459_v63  ;;  %v14913_v49 = vcombine.high %v3546_v59, %v3554_v50  ;;  %v3562_v14 = vld [vmem:[%s18405_s15 + $0xd20] sm:$0xff] }
 0x779   : > { %v14835_v18 = vcombine.high %v3467_v61, %v3475_v58  ;;  %v3570_v63 = vld [vmem:[%s18405_s15 + $0xd60] sm:$0xff] }
 0x77b   : > { %9969 = vmatpush1.bf16.msra.mxu0 %v14720_v30  ;;  %10133 = vmatpush1.bf16.msra.mxu1 %v14722_v54  ;;  %v3483_v30 = vld [vmem:[%s18405_s15 + $0xaa8] sm:$0xff] }
 0x77c   : > { %9970 = vmatprep.subr.bf16.mxu0 %v14737_v32  ;;  %10134 = vmatprep.subr.bf16.mxu1 %v14739_v9  ;;  %v3491_v54 = vld [vmem:[%s18405_s15 + $0xae8] sm:$0xff]  ;;  %v14832_v32 = vcombine.low %v3466_v40, %v3474_v20  ;;  %v14834_v9 = vcombine.low %v3467_v61, %v3475_v58  ;;  %v14929_v40 = vcombine.high %v3562_v14, %v3570_v63  ;;  %v3578_v61 = vld [vmem:[%s18405_s15 + $0xda0] sm:$0xff] }
 0x77d   : > { %v14851_v29 = vcombine.high %v3483_v30, %v3491_v54  ;;  %v3586_v58 = vld [vmem:[%s18405_s15 + $0xde0] sm:$0xff] }
 0x77f   : > { %9971 = vmatpush1.bf16.msra.mxu0 %v14736_v62  ;;  %10135 = vmatpush1.bf16.msra.mxu1 %v14738_v23  ;;  %v3499_v62 = vld [vmem:[%s18405_s15 + $0xb28] sm:$0xff] }
 0x780   : > { %9972 = vmatprep.subr.bf16.mxu0 %v14753_v0  ;;  %10136 = vmatprep.subr.bf16.mxu1 %v14755_v7  ;;  %v3507_v23 = vld [vmem:[%s18405_s15 + $0xb68] sm:$0xff]  ;;  %v14848_v0 = vcombine.low %v3482_v22, %v3490_v5  ;;  %v14850_v7 = vcombine.low %v3483_v30, %v3491_v54  ;;  %v14945_v22 = vcombine.high %v3578_v61, %v3586_v58  ;;  %v3594_v30 = vld [vmem:[%s18405_s15 + $0xe20] sm:$0xff] }
 0x781   : > { %v14867_v41 = vcombine.high %v3499_v62, %v3507_v23  ;;  %v3602_v54 = vld [vmem:[%s18405_s15 + $0xe60] sm:$0xff] }
 0x783   : > { %9973 = vmatpush1.bf16.msra.mxu0 %v14752_v47  ;;  %10137 = vmatpush1.bf16.msra.mxu1 %v14754_v56  ;;  %v3515_v47 = vld [vmem:[%s18405_s15 + $0xba8] sm:$0xff] }
 0x784   : > { %9983 = vmatprep.subr.bf16.mxu0 %v14769_v1  ;;  %10147 = vmatprep.subr.bf16.mxu1 %v14771_v60  ;;  %v3523_v56 = vld [vmem:[%s18405_s15 + $0xbe8] sm:$0xff]  ;;  %v14864_v1 = vcombine.low %v3498_v34, %v3506_v21  ;;  %v14866_v60 = vcombine.low %v3499_v62, %v3507_v23  ;;  %v14961_v34 = vcombine.high %v3594_v30, %v3602_v54  ;;  %v3610_v62 = vld [vmem:[%s18405_s15 + $0xea0] sm:$0xff] }
 0x785   : > { %v14883_v39 = vcombine.high %v3515_v47, %v3523_v56  ;;  %v3618_v23 = vld [vmem:[%s18405_s15 + $0xee0] sm:$0xff] }
 0x786   : > { %9975 = vmatmul.mubr.bf16.vlgmr.msra.gmra.mrb[8].mxu0 %v19023_v28  ;;  %10139 = vmatmul.mubr.bf16.vlgmr.msra.gmra.mrb[8].mxu1 %v19023_v28 }
 0x787   : > { %9984 = vmatpush1.bf16.msra.mxu0 %v14768_v15  ;;  %10148 = vmatpush1.bf16.msra.mxu1 %v14770_v48  ;;  %v3531_v15 = vld [vmem:[%s18405_s15 + $0xc28] sm:$0xff] }
 0x788   : > { %9985 = vmatprep.subr.bf16.mxu0 %v14785_v37  ;;  %10149 = vmatprep.subr.bf16.mxu1 %v14787_v10  ;;  %v3539_v48 = vld [vmem:[%s18405_s15 + $0xc68] sm:$0xff]  ;;  %v14880_v37 = vcombine.low %v3514_v46, %v3522_v8  ;;  %v14882_v10 = vcombine.low %v3515_v47, %v3523_v56  ;;  %v14977_v46 = vcombine.high %v3610_v62, %v3618_v23  ;;  %v3626_v47 = vld [vmem:[%s18405_s15 + $0xf20] sm:$0xff] }
 0x789   : > { %10015 = vmatprep.mubr.bf16.mxu0 %v19029_v42  ;;  %10179 = vmatprep.mubr.bf16.mxu1 %v19029_v42  ;;  %v14899_v11 = vcombine.high %v3531_v15, %v3539_v48  ;;  %v3634_v56 = vld [vmem:[%s18405_s15 + $0xf60] sm:$0xff] }
 0x78b   : > { %9986 = vmatpush1.bf16.msra.mxu0 %v14784_v31  ;;  %10150 = vmatpush1.bf16.msra.mxu1 %v14786_v13  ;;  %v3547_v31 = vld [vmem:[%s18405_s15 + $0xca8] sm:$0xff] }
 0x78c   : > { %9987 = vmatprep.subr.bf16.mxu0 %v14801_v27  ;;  %10151 = vmatprep.subr.bf16.mxu1 %v14803_v35  ;;  %v3555_v13 = vld [vmem:[%s18405_s15 + $0xce8] sm:$0xff]  ;;  %v14896_v27 = vcombine.low %v3530_v51, %v3538_v24  ;;  %v14898_v35 = vcombine.low %v3531_v15, %v3539_v48  ;;  %v14993_v51 = vcombine.high %v3626_v47, %v3634_v56  ;;  %v3642_v15 = vld [vmem:[%s18405_s15 + $0xfa0] sm:$0xff] }
 0x78d   : > { %v14915_v43 = vcombine.high %v3547_v31, %v3555_v13  ;;  %v3650_v48 = vld [vmem:[%s18405_s15 + $0xfe0] sm:$0xff] }
 0x78f   : > { %9988 = vmatpush1.bf16.msra.mxu0 %v14800_v16  ;;  %10152 = vmatpush1.bf16.msra.mxu1 %v14802_v2  ;;  %v3563_v16 = vld [vmem:[%s18405_s15 + $0xd28] sm:$0xff] }
 0x790   : > { %9989 = vmatprep.subr.bf16.mxu0 %v14817_v17  ;;  %10153 = vmatprep.subr.bf16.mxu1 %v14819_v52  ;;  %v3571_v2 = vld [vmem:[%s18405_s15 + $0xd68] sm:$0xff]  ;;  %v14912_v17 = vcombine.low %v3546_v59, %v3554_v50  ;;  %v14914_v52 = vcombine.low %v3547_v31, %v3555_v13  ;;  %v15009_v59 = vcombine.high %v3642_v15, %v3650_v48  ;;  %v3658_v31 = vld [vmem:[%s18405_s15 + $0x1020] sm:$0xff] }
 0x791   : > { %v14931_v20 = vcombine.high %v3563_v16, %v3571_v2  ;;  %v3666_v13 = vld [vmem:[%s18405_s15 + $0x1060] sm:$0xff] }
 0x793   : > { %9990 = vmatpush1.bf16.msra.mxu0 %v14816_v53  ;;  %10154 = vmatpush1.bf16.msra.mxu1 %v14818_v25  ;;  %v3579_v53 = vld [vmem:[%s18405_s15 + $0xda8] sm:$0xff] }
 0x794   : > { %9991 = vmatprep.subr.bf16.mxu0 %v14833_v38  ;;  %10155 = vmatprep.subr.bf16.mxu1 %v14835_v18  ;;  %v3587_v25 = vld [vmem:[%s18405_s15 + $0xde8] sm:$0xff]  ;;  %v14928_v38 = vcombine.low %v3562_v14, %v3570_v63  ;;  %v14930_v18 = vcombine.low %v3563_v16, %v3571_v2  ;;  %v15025_v14 = vcombine.high %v3658_v31, %v3666_v13  ;;  %v3674_v16 = vld [vmem:[%s18405_s15 + $0x10a0] sm:$0xff] }
 0x795   : > { %v14947_v5 = vcombine.high %v3579_v53, %v3587_v25  ;;  %v3682_v2 = vld [vmem:[%s18405_s15 + $0x10e0] sm:$0xff] }
 0x797   : > { %9992 = vmatpush1.bf16.msra.mxu0 %v14832_v32  ;;  %10156 = vmatpush1.bf16.msra.mxu1 %v14834_v9  ;;  %v3595_v32 = vld [vmem:[%s18405_s15 + $0xe28] sm:$0xff] }
 0x798   : > { %9993 = vmatprep.subr.bf16.mxu0 %v14849_v33  ;;  %10157 = vmatprep.subr.bf16.mxu1 %v14851_v29  ;;  %v3603_v9 = vld [vmem:[%s18405_s15 + $0xe68] sm:$0xff]  ;;  %v14944_v33 = vcombine.low %v3578_v61, %v3586_v58  ;;  %v14946_v29 = vcombine.low %v3579_v53, %v3587_v25  ;;  %v15041_v61 = vcombine.high %v3674_v16, %v3682_v2  ;;  %v3690_v53 = vld [vmem:[%s18405_s15 + $0x1120] sm:$0xff] }
 0x799   : > { %v14963_v21 = vcombine.high %v3595_v32, %v3603_v9  ;;  %v3698_v25 = vld [vmem:[%s18405_s15 + $0x1160] sm:$0xff] }
 0x79b   : > { %9994 = vmatpush1.bf16.msra.mxu0 %v14848_v0  ;;  %10158 = vmatpush1.bf16.msra.mxu1 %v14850_v7  ;;  %v3611_v0 = vld [vmem:[%s18405_s15 + $0xea8] sm:$0xff] }
 0x79c   : > { %9995 = vmatprep.subr.bf16.mxu0 %v14865_v3  ;;  %10159 = vmatprep.subr.bf16.mxu1 %v14867_v41  ;;  %v3619_v7 = vld [vmem:[%s18405_s15 + $0xee8] sm:$0xff]  ;;  %v14960_v3 = vcombine.low %v3594_v30, %v3602_v54  ;;  %v14962_v41 = vcombine.low %v3595_v32, %v3603_v9  ;;  %v15057_v30 = vcombine.high %v3690_v53, %v3698_v25  ;;  %v3706_v32 = vld [vmem:[%s18405_s15 + $0x11a0] sm:$0xff] }
 0x79d   : > { %v14979_v8 = vcombine.high %v3611_v0, %v3619_v7  ;;  %v3714_v9 = vld [vmem:[%s18405_s15 + $0x11e0] sm:$0xff] }
 0x79f   : > { %9996 = vmatpush1.bf16.msra.mxu0 %v14864_v1  ;;  %10160 = vmatpush1.bf16.msra.mxu1 %v14866_v60  ;;  %v3627_v1 = vld [vmem:[%s18405_s15 + $0xf28] sm:$0xff] }
 0x7a0   : > { %9997 = vmatprep.subr.bf16.mxu0 %v14881_v4  ;;  %10161 = vmatprep.subr.bf16.mxu1 %v14883_v39  ;;  %v3635_v60 = vld [vmem:[%s18405_s15 + $0xf68] sm:$0xff]  ;;  %v14976_v4 = vcombine.low %v3610_v62, %v3618_v23  ;;  %v14978_v39 = vcombine.low %v3611_v0, %v3619_v7  ;;  %v15073_v62 = vcombine.high %v3706_v32, %v3714_v9  ;;  %v3722_v0 = vld [vmem:[%s18405_s15 + $0x1220] sm:$0xff] }
 0x7a1   : > { %v14995_v24 = vcombine.high %v3627_v1, %v3635_v60  ;;  %v3730_v7 = vld [vmem:[%s18405_s15 + $0x1260] sm:$0xff] }
 0x7a3   : > { %9998 = vmatpush1.bf16.msra.mxu0 %v14880_v37  ;;  %10162 = vmatpush1.bf16.msra.mxu1 %v14882_v10  ;;  %v3643_v37 = vld [vmem:[%s18405_s15 + $0xfa8] sm:$0xff] }
 0x7a4   : > { %9999 = vmatprep.subr.bf16.mxu0 %v14897_v57  ;;  %10163 = vmatprep.subr.bf16.mxu1 %v14899_v11  ;;  %v3651_v10 = vld [vmem:[%s18405_s15 + $0xfe8] sm:$0xff]  ;;  %v14992_v57 = vcombine.low %v3626_v47, %v3634_v56  ;;  %v14994_v11 = vcombine.low %v3627_v1, %v3635_v60  ;;  %v15089_v47 = vcombine.high %v3722_v0, %v3730_v7  ;;  %v3738_v1 = vld [vmem:[%s18405_s15 + $0x12a0] sm:$0xff] }
 0x7a5   : > { %v15011_v50 = vcombine.high %v3643_v37, %v3651_v10  ;;  %v3746_v60 = vld [vmem:[%s18405_s15 + $0x12e0] sm:$0xff] }
 0x7a7   : > { %10000 = vmatpush1.bf16.msra.mxu0 %v14896_v27  ;;  %10164 = vmatpush1.bf16.msra.mxu1 %v14898_v35  ;;  %v3659_v27 = vld [vmem:[%s18405_s15 + $0x1028] sm:$0xff] }
 0x7a8   : > { %10001 = vmatprep.subr.bf16.mxu0 %v14913_v49  ;;  %10165 = vmatprep.subr.bf16.mxu1 %v14915_v43  ;;  %v3667_v35 = vld [vmem:[%s18405_s15 + $0x1068] sm:$0xff]  ;;  %v15008_v49 = vcombine.low %v3642_v15, %v3650_v48  ;;  %v15010_v43 = vcombine.low %v3643_v37, %v3651_v10  ;;  %v15105_v15 = vcombine.high %v3738_v1, %v3746_v60  ;;  %v3754_v37 = vld [vmem:[%s18405_s15 + $0x1320] sm:$0xff] }
 0x7a9   : > { %v15027_v63 = vcombine.high %v3659_v27, %v3667_v35  ;;  %v3762_v10 = vld [vmem:[%s18405_s15 + $0x1360] sm:$0xff] }
 0x7ab   : > { %10002 = vmatpush1.bf16.msra.mxu0 %v14912_v17  ;;  %10166 = vmatpush1.bf16.msra.mxu1 %v14914_v52  ;;  %v3675_v17 = vld [vmem:[%s18405_s15 + $0x10a8] sm:$0xff] }
 0x7ac   : > { %10003 = vmatprep.subr.bf16.mxu0 %v14929_v40  ;;  %10167 = vmatprep.subr.bf16.mxu1 %v14931_v20  ;;  %v3683_v52 = vld [vmem:[%s18405_s15 + $0x10e8] sm:$0xff]  ;;  %v15024_v40 = vcombine.low %v3658_v31, %v3666_v13  ;;  %v15026_v20 = vcombine.low %v3659_v27, %v3667_v35  ;;  %v15121_v31 = vcombine.high %v3754_v37, %v3762_v10  ;;  %v3770_v27 = vld [vmem:[%s18405_s15 + $0x13a0] sm:$0xff] }
 0x7ad   : > { %v15043_v58 = vcombine.high %v3675_v17, %v3683_v52  ;;  %v3778_v35 = vld [vmem:[%s18405_s15 + $0x13e0] sm:$0xff] }
 0x7af   : > { %10004 = vmatpush1.bf16.msra.mxu0 %v14928_v38  ;;  %10168 = vmatpush1.bf16.msra.mxu1 %v14930_v18  ;;  %v3691_v38 = vld [vmem:[%s18405_s15 + $0x1128] sm:$0xff] }
 0x7b0   : > { %10005 = vmatprep.subr.bf16.mxu0 %v14945_v22  ;;  %10169 = vmatprep.subr.bf16.mxu1 %v14947_v5  ;;  %v3699_v18 = vld [vmem:[%s18405_s15 + $0x1168] sm:$0xff]  ;;  %v15040_v22 = vcombine.low %v3674_v16, %v3682_v2  ;;  %v15042_v5 = vcombine.low %v3675_v17, %v3683_v52  ;;  %v15137_v16 = vcombine.high %v3770_v27, %v3778_v35  ;;  %v3786_v17 = vld [vmem:[%s18405_s15 + $0x1420] sm:$0xff] }
 0x7b1   : > { %v15059_v54 = vcombine.high %v3691_v38, %v3699_v18  ;;  %v3794_v52 = vld [vmem:[%s18405_s15 + $0x1460] sm:$0xff] }
 0x7b3   : > { %10006 = vmatpush1.bf16.msra.mxu0 %v14944_v33  ;;  %10170 = vmatpush1.bf16.msra.mxu1 %v14946_v29  ;;  %v3707_v33 = vld [vmem:[%s18405_s15 + $0x11a8] sm:$0xff] }
 0x7b4   : > { %10007 = vmatprep.subr.bf16.mxu0 %v14961_v34  ;;  %10171 = vmatprep.subr.bf16.mxu1 %v14963_v21  ;;  %v3715_v29 = vld [vmem:[%s18405_s15 + $0x11e8] sm:$0xff]  ;;  %v15056_v34 = vcombine.low %v3690_v53, %v3698_v25  ;;  %v15058_v21 = vcombine.low %v3691_v38, %v3699_v18  ;;  %v15153_v53 = vcombine.high %v3786_v17, %v3794_v52  ;;  %v3802_v38 = vld [vmem:[%s18405_s15 + $0x14a0] sm:$0xff] }
 0x7b5   : > { %v15075_v23 = vcombine.high %v3707_v33, %v3715_v29  ;;  %v3810_v18 = vld [vmem:[%s18405_s15 + $0x14e0] sm:$0xff] }
 0x7b7   : > { %10008 = vmatpush1.bf16.msra.mxu0 %v14960_v3  ;;  %10172 = vmatpush1.bf16.msra.mxu1 %v14962_v41  ;;  %v3723_v3 = vld [vmem:[%s18405_s15 + $0x1228] sm:$0xff] }
 0x7b8   : > { %10009 = vmatprep.subr.bf16.mxu0 %v14977_v46  ;;  %10173 = vmatprep.subr.bf16.mxu1 %v14979_v8  ;;  %v3731_v41 = vld [vmem:[%s18405_s15 + $0x1268] sm:$0xff]  ;;  %v15072_v46 = vcombine.low %v3706_v32, %v3714_v9  ;;  %v15074_v8 = vcombine.low %v3707_v33, %v3715_v29  ;;  %v15169_v32 = vcombine.high %v3802_v38, %v3810_v18  ;;  %v3818_v33 = vld [vmem:[%s18405_s15 + $0x1520] sm:$0xff] }
 0x7b9   : > { %v15091_v56 = vcombine.high %v3723_v3, %v3731_v41  ;;  %v3826_v29 = vld [vmem:[%s18405_s15 + $0x1560] sm:$0xff] }
 0x7bb   : > { %10010 = vmatpush1.bf16.msra.mxu0 %v14976_v4  ;;  %10174 = vmatpush1.bf16.msra.mxu1 %v14978_v39  ;;  %v3739_v4 = vld [vmem:[%s18405_s15 + $0x12a8] sm:$0xff] }
 0x7bc   : > { %10011 = vmatprep.subr.bf16.mxu0 %v14993_v51  ;;  %10175 = vmatprep.subr.bf16.mxu1 %v14995_v24  ;;  %v3747_v39 = vld [vmem:[%s18405_s15 + $0x12e8] sm:$0xff]  ;;  %v15088_v51 = vcombine.low %v3722_v0, %v3730_v7  ;;  %v15090_v24 = vcombine.low %v3723_v3, %v3731_v41  ;;  %v15185_v0 = vcombine.high %v3818_v33, %v3826_v29  ;;  %v3834_v3 = vld [vmem:[%s18405_s15 + $0x15a0] sm:$0xff] }
 0x7bd   : > { %v15107_v48 = vcombine.high %v3739_v4, %v3747_v39  ;;  %v3842_v41 = vld [vmem:[%s18405_s15 + $0x15e0] sm:$0xff] }
 0x7bf   : > { %10012 = vmatpush1.bf16.msra.mxu0 %v14992_v57  ;;  %10176 = vmatpush1.bf16.msra.mxu1 %v14994_v11  ;;  %v3755_v57 = vld [vmem:[%s18405_s15 + $0x1328] sm:$0xff] }
 0x7c0   : > { %10013 = vmatprep.subr.bf16.mxu0 %v15009_v59  ;;  %10177 = vmatprep.subr.bf16.mxu1 %v15011_v50  ;;  %v3763_v11 = vld [vmem:[%s18405_s15 + $0x1368] sm:$0xff]  ;;  %v15104_v59 = vcombine.low %v3738_v1, %v3746_v60  ;;  %v15106_v50 = vcombine.low %v3739_v4, %v3747_v39  ;;  %v15201_v1 = vcombine.high %v3834_v3, %v3842_v41  ;;  %v3850_v4 = vld [vmem:[%s18405_s15 + $0x1620] sm:$0xff] }
 0x7c1   : > { %v15123_v13 = vcombine.high %v3755_v57, %v3763_v11  ;;  %v3858_v39 = vld [vmem:[%s18405_s15 + $0x1660] sm:$0xff] }
 0x7c3   : > { %10014 = vmatpush1.bf16.msra.mxu0 %v15008_v49  ;;  %10178 = vmatpush1.bf16.msra.mxu1 %v15010_v43  ;;  %v3771_v49 = vld [vmem:[%s18405_s15 + $0x13a8] sm:$0xff] }
 0x7c4   : > { %10024 = vmatprep.subr.bf16.mxu0 %v15025_v14  ;;  %10188 = vmatprep.subr.bf16.mxu1 %v15027_v63  ;;  %v3779_v43 = vld [vmem:[%s18405_s15 + $0x13e8] sm:$0xff]  ;;  %v15120_v14 = vcombine.low %v3754_v37, %v3762_v10  ;;  %v15122_v63 = vcombine.low %v3755_v57, %v3763_v11  ;;  %v15217_v37 = vcombine.high %v3850_v4, %v3858_v39  ;;  %v3866_v57 = vld [vmem:[%s18405_s15 + $0x16a0] sm:$0xff] }
 0x7c5   : > { %v15139_v2 = vcombine.high %v3771_v49, %v3779_v43  ;;  %v3874_v11 = vld [vmem:[%s18405_s15 + $0x16e0] sm:$0xff] }
 0x7c6   : > { %10016 = vmatmul.mubr.bf16.vlgmr.msra.gmra.mrb[8].mxu0 %v19106_v26  ;;  %10180 = vmatmul.mubr.bf16.vlgmr.msra.gmra.mrb[8].mxu1 %v19106_v26 }
 0x7c7   : > { %10025 = vmatpush1.bf16.msra.mxu0 %v15024_v40  ;;  %10189 = vmatpush1.bf16.msra.mxu1 %v15026_v20  ;;  %v3787_v40 = vld [vmem:[%s18405_s15 + $0x1428] sm:$0xff] }
 0x7c8   : > { %10026 = vmatprep.subr.bf16.mxu0 %v15041_v61  ;;  %10190 = vmatprep.subr.bf16.mxu1 %v15043_v58  ;;  %v3795_v20 = vld [vmem:[%s18405_s15 + $0x1468] sm:$0xff]  ;;  %v15136_v61 = vcombine.low %v3770_v27, %v3778_v35  ;;  %v15138_v58 = vcombine.low %v3771_v49, %v3779_v43  ;;  %v15233_v27 = vcombine.high %v3866_v57, %v3874_v11  ;;  %v3882_v49 = vld [vmem:[%s18405_s15 + $0x1720] sm:$0xff] }
 0x7c9   : > { %10056 = vmatprep.mubr.bf16.mxu0 %v19112_v19  ;;  %10220 = vmatprep.mubr.bf16.mxu1 %v19112_v19  ;;  %v15155_v25 = vcombine.high %v3787_v40, %v3795_v20  ;;  %v3890_v43 = vld [vmem:[%s18405_s15 + $0x1760] sm:$0xff] }
 0x7cb   : > { %10027 = vmatpush1.bf16.msra.mxu0 %v15040_v22  ;;  %10191 = vmatpush1.bf16.msra.mxu1 %v15042_v5  ;;  %v3803_v22 = vld [vmem:[%s18405_s15 + $0x14a8] sm:$0xff] }
 0x7cc   : > { %10028 = vmatprep.subr.bf16.mxu0 %v15057_v30  ;;  %10192 = vmatprep.subr.bf16.mxu1 %v15059_v54  ;;  %v3811_v5 = vld [vmem:[%s18405_s15 + $0x14e8] sm:$0xff]  ;;  %v15152_v30 = vcombine.low %v3786_v17, %v3794_v52  ;;  %v15154_v54 = vcombine.low %v3787_v40, %v3795_v20  ;;  %v15249_v17 = vcombine.high %v3882_v49, %v3890_v43  ;;  %v3898_v40 = vld [vmem:[%s18405_s15 + $0x17a0] sm:$0xff] }
 0x7cd   : > { %v15171_v9 = vcombine.high %v3803_v22, %v3811_v5  ;;  %v3906_v20 = vld [vmem:[%s18405_s15 + $0x17e0] sm:$0xff] }
 0x7cf   : > { %10029 = vmatpush1.bf16.msra.mxu0 %v15056_v34  ;;  %10193 = vmatpush1.bf16.msra.mxu1 %v15058_v21  ;;  %v3819_v34 = vld [vmem:[%s18405_s15 + $0x1528] sm:$0xff] }
 0x7d0   : > { %10030 = vmatprep.subr.bf16.mxu0 %v15073_v62  ;;  %10194 = vmatprep.subr.bf16.mxu1 %v15075_v23  ;;  %v3827_v21 = vld [vmem:[%s18405_s15 + $0x1568] sm:$0xff]  ;;  %v15168_v62 = vcombine.low %v3802_v38, %v3810_v18  ;;  %v15170_v23 = vcombine.low %v3803_v22, %v3811_v5  ;;  %v15265_v38 = vcombine.high %v3898_v40, %v3906_v20  ;;  %v3914_v22 = vld [vmem:[%s18405_s15 + $0x1820] sm:$0xff] }
 0x7d1   : > { %v15187_v7 = vcombine.high %v3819_v34, %v3827_v21  ;;  %v3922_v5 = vld [vmem:[%s18405_s15 + $0x1860] sm:$0xff] }
 0x7d3   : > { %10031 = vmatpush1.bf16.msra.mxu0 %v15072_v46  ;;  %10195 = vmatpush1.bf16.msra.mxu1 %v15074_v8  ;;  %v3835_v46 = vld [vmem:[%s18405_s15 + $0x15a8] sm:$0xff] }
 0x7d4   : > { %10032 = vmatprep.subr.bf16.mxu0 %v15089_v47  ;;  %10196 = vmatprep.subr.bf16.mxu1 %v15091_v56  ;;  %v3843_v8 = vld [vmem:[%s18405_s15 + $0x15e8] sm:$0xff]  ;;  %v15184_v47 = vcombine.low %v3818_v33, %v3826_v29  ;;  %v15186_v56 = vcombine.low %v3819_v34, %v3827_v21  ;;  %v15281_v33 = vcombine.high %v3914_v22, %v3922_v5  ;;  %v3930_v34 = vld [vmem:[%s18405_s15 + $0x18a0] sm:$0xff] }
 0x7d5   : > { %v15203_v60 = vcombine.high %v3835_v46, %v3843_v8  ;;  %v3938_v21 = vld [vmem:[%s18405_s15 + $0x18e0] sm:$0xff] }
 0x7d7   : > { %10033 = vmatpush1.bf16.msra.mxu0 %v15088_v51  ;;  %10197 = vmatpush1.bf16.msra.mxu1 %v15090_v24  ;;  %v3851_v51 = vld [vmem:[%s18405_s15 + $0x1628] sm:$0xff] }
 0x7d8   : > { %10034 = vmatprep.subr.bf16.mxu0 %v15105_v15  ;;  %10198 = vmatprep.subr.bf16.mxu1 %v15107_v48  ;;  %v3859_v24 = vld [vmem:[%s18405_s15 + $0x1668] sm:$0xff]  ;;  %v15200_v15 = vcombine.low %v3834_v3, %v3842_v41  ;;  %v15202_v48 = vcombine.low %v3835_v46, %v3843_v8  ;;  %v15297_v3 = vcombine.high %v3930_v34, %v3938_v21  ;;  %v3946_v46 = vld [vmem:[%s18405_s15 + $0x1920] sm:$0xff] }
 0x7d9   : > { %v15219_v10 = vcombine.high %v3851_v51, %v3859_v24  ;;  %v3954_v8 = vld [vmem:[%s18405_s15 + $0x1960] sm:$0xff] }
 0x7db   : > { %10035 = vmatpush1.bf16.msra.mxu0 %v15104_v59  ;;  %10199 = vmatpush1.bf16.msra.mxu1 %v15106_v50  ;;  %v3867_v59 = vld [vmem:[%s18405_s15 + $0x16a8] sm:$0xff] }
 0x7dc   : > { %10036 = vmatprep.subr.bf16.mxu0 %v15121_v31  ;;  %10200 = vmatprep.subr.bf16.mxu1 %v15123_v13  ;;  %v3875_v50 = vld [vmem:[%s18405_s15 + $0x16e8] sm:$0xff]  ;;  %v15216_v31 = vcombine.low %v3850_v4, %v3858_v39  ;;  %v15218_v13 = vcombine.low %v3851_v51, %v3859_v24  ;;  %v15313_v4 = vcombine.high %v3946_v46, %v3954_v8  ;;  %v3962_v51 = vld [vmem:[%s18405_s15 + $0x19a0] sm:$0xff] }
 0x7dd   : > { %v15235_v35 = vcombine.high %v3867_v59, %v3875_v50  ;;  %v3970_v24 = vld [vmem:[%s18405_s15 + $0x19e0] sm:$0xff] }
 0x7df   : > { %10037 = vmatpush1.bf16.msra.mxu0 %v15120_v14  ;;  %10201 = vmatpush1.bf16.msra.mxu1 %v15122_v63  ;;  %v3883_v14 = vld [vmem:[%s18405_s15 + $0x1728] sm:$0xff] }
 0x7e0   : > { %10038 = vmatprep.subr.bf16.mxu0 %v15137_v16  ;;  %10202 = vmatprep.subr.bf16.mxu1 %v15139_v2  ;;  %v3891_v63 = vld [vmem:[%s18405_s15 + $0x1768] sm:$0xff]  ;;  %v15232_v16 = vcombine.low %v3866_v57, %v3874_v11  ;;  %v15234_v2 = vcombine.low %v3867_v59, %v3875_v50  ;;  %v15329_v57 = vcombine.high %v3962_v51, %v3970_v24  ;;  %v3978_v59 = vld [vmem:[%s18405_s15 + $0x1a20] sm:$0xff] }
 0x7e1   : > { %v15251_v52 = vcombine.high %v3883_v14, %v3891_v63  ;;  %v3986_v50 = vld [vmem:[%s18405_s15 + $0x1a60] sm:$0xff] }
 0x7e3   : > { %10039 = vmatpush1.bf16.msra.mxu0 %v15136_v61  ;;  %10203 = vmatpush1.bf16.msra.mxu1 %v15138_v58  ;;  %v3899_v61 = vld [vmem:[%s18405_s15 + $0x17a8] sm:$0xff] }
 0x7e4   : > { %10040 = vmatprep.subr.bf16.mxu0 %v15153_v53  ;;  %10204 = vmatprep.subr.bf16.mxu1 %v15155_v25  ;;  %v3907_v58 = vld [vmem:[%s18405_s15 + $0x17e8] sm:$0xff]  ;;  %v15248_v53 = vcombine.low %v3882_v49, %v3890_v43  ;;  %v15250_v25 = vcombine.low %v3883_v14, %v3891_v63  ;;  %v15345_v49 = vcombine.high %v3978_v59, %v3986_v50  ;;  %v3994_v14 = vld [vmem:[%s18405_s15 + $0x1aa0] sm:$0xff] }
 0x7e5   : > { %v15267_v18 = vcombine.high %v3899_v61, %v3907_v58  ;;  %v4002_v63 = vld [vmem:[%s18405_s15 + $0x1ae0] sm:$0xff] }
 0x7e7   : > { %10041 = vmatpush1.bf16.msra.mxu0 %v15152_v30  ;;  %10205 = vmatpush1.bf16.msra.mxu1 %v15154_v54  ;;  %v3915_v30 = vld [vmem:[%s18405_s15 + $0x1828] sm:$0xff] }
 0x7e8   : > { %10042 = vmatprep.subr.bf16.mxu0 %v15169_v32  ;;  %10206 = vmatprep.subr.bf16.mxu1 %v15171_v9  ;;  %v3923_v54 = vld [vmem:[%s18405_s15 + $0x1868] sm:$0xff]  ;;  %v15264_v32 = vcombine.low %v3898_v40, %v3906_v20  ;;  %v15266_v9 = vcombine.low %v3899_v61, %v3907_v58  ;;  %v15361_v40 = vcombine.high %v3994_v14, %v4002_v63  ;;  %v4010_v61 = vld [vmem:[%s18405_s15 + $0x1b20] sm:$0xff] }
 0x7e9   : > { %v15283_v29 = vcombine.high %v3915_v30, %v3923_v54  ;;  %v4018_v58 = vld [vmem:[%s18405_s15 + $0x1b60] sm:$0xff] }
 0x7eb   : > { %10043 = vmatpush1.bf16.msra.mxu0 %v15168_v62  ;;  %10207 = vmatpush1.bf16.msra.mxu1 %v15170_v23  ;;  %v3931_v62 = vld [vmem:[%s18405_s15 + $0x18a8] sm:$0xff] }
 0x7ec   : > { %10044 = vmatprep.subr.bf16.mxu0 %v15185_v0  ;;  %10208 = vmatprep.subr.bf16.mxu1 %v15187_v7  ;;  %v3939_v23 = vld [vmem:[%s18405_s15 + $0x18e8] sm:$0xff]  ;;  %v15280_v0 = vcombine.low %v3914_v22, %v3922_v5  ;;  %v15282_v7 = vcombine.low %v3915_v30, %v3923_v54  ;;  %v15377_v22 = vcombine.high %v4010_v61, %v4018_v58  ;;  %v4026_v54 = vld [vmem:[%s18405_s15 + $0x1ba0] sm:$0xff] }
 0x7ed   : > { %v15299_v41 = vcombine.high %v3931_v62, %v3939_v23 }
 0x7ef   : > { %10045 = vmatpush1.bf16.msra.mxu0 %v15184_v47  ;;  %10209 = vmatpush1.bf16.msra.mxu1 %v15186_v56  ;;  %v3947_v47 = vld [vmem:[%s18405_s15 + $0x1928] sm:$0xff] }
 0x7f0   : > { %10046 = vmatprep.subr.bf16.mxu0 %v15201_v1  ;;  %10210 = vmatprep.subr.bf16.mxu1 %v15203_v60  ;;  %v3955_v56 = vld [vmem:[%s18405_s15 + $0x1968] sm:$0xff]  ;;  %v15296_v1 = vcombine.low %v3930_v34, %v3938_v21  ;;  %v15298_v60 = vcombine.low %v3931_v62, %v3939_v23 }
 0x7f1   : > { %v15315_v39 = vcombine.high %v3947_v47, %v3955_v56  ;;  %v4035_v34 = vld [vmem:[%s18405_s15 + $0x1be8] sm:$0xff] }
 0x7f3   : > { %10047 = vmatpush1.bf16.msra.mxu0 %v15200_v15  ;;  %10211 = vmatpush1.bf16.msra.mxu1 %v15202_v48  ;;  %v3963_v15 = vld [vmem:[%s18405_s15 + $0x19a8] sm:$0xff] }
 0x7f4   : > { %10048 = vmatprep.subr.bf16.mxu0 %v15217_v37  ;;  %10212 = vmatprep.subr.bf16.mxu1 %v15219_v10  ;;  %v3971_v48 = vld [vmem:[%s18405_s15 + $0x19e8] sm:$0xff]  ;;  %v15312_v37 = vcombine.low %v3946_v46, %v3954_v8  ;;  %v15314_v10 = vcombine.low %v3947_v47, %v3955_v56 }
 0x7f5   : > { %v15331_v11 = vcombine.high %v3963_v15, %v3971_v48 }
 0x7f7   : > { %10049 = vmatpush1.bf16.msra.mxu0 %v15216_v31  ;;  %10213 = vmatpush1.bf16.msra.mxu1 %v15218_v13  ;;  %v3979_v31 = vld [vmem:[%s18405_s15 + $0x1a28] sm:$0xff] }
 0x7f8   : > { %10050 = vmatprep.subr.bf16.mxu0 %v15233_v27  ;;  %10214 = vmatprep.subr.bf16.mxu1 %v15235_v35  ;;  %v3987_v13 = vld [vmem:[%s18405_s15 + $0x1a68] sm:$0xff]  ;;  %v15328_v27 = vcombine.low %v3962_v51, %v3970_v24  ;;  %v15330_v35 = vcombine.low %v3963_v15, %v3971_v48 }
 0x7f9   : > { %v15347_v43 = vcombine.high %v3979_v31, %v3987_v13  ;;  %v4043_v51 = vld [vmem:[%s18405_s15 + $0x1c28] sm:$0xff] }
 0x7fa   : > { %v4051_v24 = vld [vmem:[%s18405_s15 + $0x1c68] sm:$0xff] }
 0x7fb   : > { %10051 = vmatpush1.bf16.msra.mxu0 %v15232_v16  ;;  %10215 = vmatpush1.bf16.msra.mxu1 %v15234_v2  ;;  %v3995_v16 = vld [vmem:[%s18405_s15 + $0x1aa8] sm:$0xff] }
 0x7fc   : > { %10052 = vmatprep.subr.bf16.mxu0 %v15249_v17  ;;  %10216 = vmatprep.subr.bf16.mxu1 %v15251_v52  ;;  %v4003_v2 = vld [vmem:[%s18405_s15 + $0x1ae8] sm:$0xff]  ;;  %v15344_v17 = vcombine.low %v3978_v59, %v3986_v50  ;;  %v15346_v52 = vcombine.low %v3979_v31, %v3987_v13  ;;  %v4058_v59 = vld [vmem:[%s18405_s15 + $0x1ca0] sm:$0xff] }
 0x7fd   : > { %v15363_v20 = vcombine.high %v3995_v16, %v4003_v2  ;;  %v3082_v15 = vld [vmem:[#allocation3 + $0x8] sm:$0xff] }
 0x7fe   : > { %v4066_v50 = vld [vmem:[%s18405_s15 + $0x1ce0] sm:$0xff]  ;;  %v4059_v13 = vld [vmem:[%s18405_s15 + $0x1ca8] sm:$0xff] }
 0x7ff   : > { %10053 = vmatpush1.bf16.msra.mxu0 %v15248_v53  ;;  %10217 = vmatpush1.bf16.msra.mxu1 %v15250_v25  ;;  %v4011_v53 = vld [vmem:[%s18405_s15 + $0x1b28] sm:$0xff] }
 0x800   : > { %10054 = vmatprep.subr.bf16.mxu0 %v15265_v38  ;;  %10218 = vmatprep.subr.bf16.mxu1 %v15267_v18  ;;  %v4019_v25 = vld [vmem:[%s18405_s15 + $0x1b68] sm:$0xff]  ;;  %v15360_v38 = vcombine.low %v3994_v14, %v4002_v63  ;;  %v15362_v18 = vcombine.low %v3995_v16, %v4003_v2  ;;  %v4074_v63 = vld [vmem:[%s18405_s15 + $0x1d20] sm:$0xff] }
 0x801   : > { %v15379_v30 = vcombine.high %v4011_v53, %v4019_v25  ;;  %v15378_v46 = vcombine.low %v4011_v53, %v4019_v25  ;;  %v4082_v16 = vld [vmem:[%s18405_s15 + $0x1d60] sm:$0xff]  ;;  %v4075_v2 = vld [vmem:[%s18405_s15 + $0x1d28] sm:$0xff] }
 0x802   : > { %v4098_v53 = vld [vmem:[%s18405_s15 + $0x1de0] sm:$0xff]  ;;  %v4091_v25 = vld [vmem:[%s18405_s15 + $0x1da8] sm:$0xff] }
 0x803   : > { %10055 = vmatpush1.bf16.msra.mxu0 %v15264_v32  ;;  %10219 = vmatpush1.bf16.msra.mxu1 %v15266_v9  ;;  %v4034_v32 = vld [vmem:[%s18405_s15 + $0x1be0] sm:$0xff] }
 0x804   : > { %10065 = vmatprep.subr.bf16.mxu0 %v15281_v33  ;;  %10229 = vmatprep.subr.bf16.mxu1 %v15283_v29  ;;  %v4027_v29 = vld [vmem:[%s18405_s15 + $0x1ba8] sm:$0xff]  ;;  %v15393_v8 = vcombine.high %v4026_v54, %v4034_v32  ;;  %v15392_v48 = vcombine.low %v4026_v54, %v4034_v32  ;;  %v4106_v54 = vld [vmem:[%s18405_s15 + $0x1e20] sm:$0xff] }
 0x805   : > { %v4114_v32 = vld [vmem:[%s18405_s15 + $0x1e60] sm:$0xff] }
 0x806   : > { %10057 = vmatmul.mubr.bf16.vlgmr.msra.gmra.mrb[8].mxu0 %v19187_v55  ;;  %10221 = vmatmul.mubr.bf16.vlgmr.msra.gmra.mrb[8].mxu1 %v19187_v55 }
 0x807   : > { %10066 = vmatpush1.bf16.msra.mxu0 %v15280_v0  ;;  %10230 = vmatpush1.bf16.msra.mxu1 %v15282_v7  ;;  %v15376_v0 = vcombine.low %v4010_v61, %v4018_v58  ;;  %v4090_v58 = vld [vmem:[%s18405_s15 + $0x1da0] sm:$0xff] }
 0x808   : > { %10067 = vmatprep.subr.bf16.mxu0 %v15297_v3  ;;  %10231 = vmatprep.subr.bf16.mxu1 %v15299_v41 }
 0x809   : > { %10097 = vmatprep.mubr.bf16.mxu0 %v19193_v45  ;;  %10261 = vmatprep.mubr.bf16.mxu1 %v19193_v45 }
 0x80b   : > { %10068 = vmatpush1.bf16.msra.mxu0 %v15296_v1  ;;  %10232 = vmatpush1.bf16.msra.mxu1 %v15298_v60  ;;  %v15395_v1 = vcombine.high %v4027_v29, %v4035_v34  ;;  %v4042_v60 = vld [vmem:[%s18405_s15 + $0x1c20] sm:$0xff] }
 0x80c   : > { %10069 = vmatprep.subr.bf16.mxu0 %v15313_v4  ;;  %10233 = vmatprep.subr.bf16.mxu1 %v15315_v39  ;;  %v4050_v4 = vld [vmem:[%s18405_s15 + $0x1c60] sm:$0xff] }
 0x80f   : > { %10070 = vmatpush1.bf16.msra.mxu0 %v15312_v37  ;;  %10234 = vmatpush1.bf16.msra.mxu1 %v15314_v10  ;;  %v15394_v10 = vcombine.low %v4027_v29, %v4035_v34  ;;  %v15456_v29 = vcombine.low %v4090_v58, %v4098_v53 }
 0x810   : > { %10071 = vmatprep.subr.bf16.mxu0 %v15329_v57  ;;  %10235 = vmatprep.subr.bf16.mxu1 %v15331_v11  ;;  %v15409_v57 = vcombine.high %v4042_v60, %v4050_v4  ;;  %v15411_v11 = vcombine.high %v4043_v51, %v4051_v24 }
 0x813   : > { %10072 = vmatpush1.bf16.msra.mxu0 %v15328_v27  ;;  %10236 = vmatpush1.bf16.msra.mxu1 %v15330_v35  ;;  %v4067_v27 = vld [vmem:[%s18405_s15 + $0x1ce8] sm:$0xff]  ;;  %v15408_v35 = vcombine.low %v4042_v60, %v4050_v4 }
 0x814   : > { %10073 = vmatprep.subr.bf16.mxu0 %v15345_v49  ;;  %10237 = vmatprep.subr.bf16.mxu1 %v15347_v43  ;;  %v15410_v49 = vcombine.low %v4043_v51, %v4051_v24  ;;  %v15425_v43 = vcombine.high %v4058_v59, %v4066_v50  ;;  %v15427_v14 = vcombine.high %v4059_v13, %v4067_v27  ;;  %v4139_v60 = vld [vmem:[%s18405_s15 + $0x1f28] sm:$0xff] }
 0x815   : > { %v4147_v4 = vld [vmem:[%s18405_s15 + $0x1f68] sm:$0xff] }
 0x817   : > { %10074 = vmatpush1.bf16.msra.mxu0 %v15344_v17  ;;  %10238 = vmatpush1.bf16.msra.mxu1 %v15346_v52  ;;  %v4083_v17 = vld [vmem:[%s18405_s15 + $0x1d68] sm:$0xff]  ;;  %v15424_v52 = vcombine.low %v4058_v59, %v4066_v50  ;;  %v15506_v59 = vcombine.low %v4139_v60, %v4147_v4 }
 0x818   : > { %10075 = vmatprep.subr.bf16.mxu0 %v15361_v40  ;;  %10239 = vmatprep.subr.bf16.mxu1 %v15363_v20  ;;  %v15426_v40 = vcombine.low %v4059_v13, %v4067_v27  ;;  %v15441_v20 = vcombine.high %v4074_v63, %v4082_v16  ;;  %v15443_v61 = vcombine.high %v4075_v2, %v4083_v17  ;;  %v3148_v13 = vld [vmem:[%s18405_s15 + $0x30] sm:$0xff] }
 0x819   : > { %v9771_v5 = vpop.f32.mrb[4].mxu0  ;;  %v9935_v9 = vpop.f32.mrb[4].mxu1  ;;  %v3156_v27 = vld [vmem:[%s18405_s15 + $0x70] sm:$0xff] }
 0x81a   : > { %v9773_v33 = vpop.f32.mrb[5].mxu0  ;;  %v9937_v62 = vpop.f32.mrb[5].mxu1 }
 0x81b   : > { %v10631_v21 = vcombine.low %v9771_v5, %v9773_v33  ;;  %v9775_v23 = vpop.f32.mrb[6].mxu0  ;;  %10076 = vmatpush1.bf16.msra.mxu0 %v15360_v38  ;;  %v10632_v7 = vcombine.low %v9935_v9, %v9937_v62  ;;  %v9939_v3 = vpop.f32.mrb[6].mxu1  ;;  %10240 = vmatpush1.bf16.msra.mxu1 %v15362_v18  ;;  %v4099_v38 = vld [vmem:[%s18405_s15 + $0x1de8] sm:$0xff]  ;;  %v15440_v18 = vcombine.low %v4074_v63, %v4082_v16 }
 0x81c   : > { %v9776_v41 = vpop.f32.mrb[7].mxu0  ;;  %10077 = vmatprep.subr.bf16.mxu0 %v15377_v22  ;;  %v9940_v56 = vpop.f32.mrb[7].mxu1  ;;  %10241 = vmatprep.subr.bf16.mxu1 %v15379_v30  ;;  %v15442_v22 = vcombine.low %v4075_v2, %v4083_v17  ;;  %v15457_v5 = vcombine.high %v4090_v58, %v4098_v53  ;;  %v15459_v30 = vcombine.high %v4091_v25, %v4099_v38  ;;  %v4107_v9 = vld [vmem:[%s18405_s15 + $0x1e28] sm:$0xff]  ;;  %v4122_v23 = vld [vmem:[%s18405_s15 + $0x1ea0] sm:$0xff]  ;;  %v3164_v2 = vld [vmem:[%s18405_s15 + $0xb0] sm:$0xff] }
 0x81d   : > { %v10639_v47 = vrot.slane %v10631_v21, %v18953_v36  ;;  %v10646_v39 = vrot.slane %v10632_v7, %v18953_v36  ;;  %v4115_v33 = vld [vmem:[%s18405_s15 + $0x1e68] sm:$0xff]  ;;  %v15458_v34 = vcombine.low %v4091_v25, %v4099_v38  ;;  %v15473_v21 = vcombine.high %v4106_v54, %v4114_v32  ;;  %v4138_v56 = vld [vmem:[%s18405_s15 + $0x1f20] sm:$0xff]  ;;  %v3172_v17 = vld [vmem:[%s18405_s15 + $0xf0] sm:$0xff] }
 0x81e   : > { %v15475_v62 = vcombine.high %v4107_v9, %v4115_v33  ;;  %v4123_v7 = vld [vmem:[%s18405_s15 + $0x1ea8] sm:$0xff]  ;;  %v15472_v41 = vcombine.low %v4106_v54, %v4114_v32  ;;  %v14517_v63 = vcombine.high %v3148_v13, %v3156_v27  ;;  %v14533_v58 = vcombine.high %v3164_v2, %v3172_v17  ;;  %v3180_v25 = vld [vmem:[%s18405_s15 + $0x130] sm:$0xff] }
 0x81f   : > { %10078 = vmatpush1.bf16.msra.mxu0 %v15376_v0  ;;  %v10647_v37 = vcombine.low %v10639_v47, %v10646_v39  ;;  %10242 = vmatpush1.bf16.msra.mxu1 %v15378_v46  ;;  %v4130_v0 = vld [vmem:[%s18405_s15 + $0x1ee0] sm:$0xff]  ;;  %v4131_v3 = vld [vmem:[%s18405_s15 + $0x1ee8] sm:$0xff]  ;;  %v15474_v46 = vcombine.low %v4107_v9, %v4115_v33  ;;  %v3188_v38 = vld [vmem:[%s18405_s15 + $0x170] sm:$0xff] }
 0x820   : > { %10079 = vmatprep.subr.bf16.mxu0 %v15393_v8  ;;  %10243 = vmatprep.subr.bf16.mxu1 %v15395_v1  ;;  %v15489_v8 = vcombine.high %v4122_v23, %v4130_v0  ;;  %v15491_v47 = vcombine.high %v4123_v7, %v4131_v3  ;;  %v4146_v1 = vld [vmem:[%s18405_s15 + $0x1f60] sm:$0xff]  ;;  %v15488_v39 = vcombine.low %v4122_v23, %v4130_v0  ;;  %v3196_v9 = vld [vmem:[%s18405_s15 + $0x1b0] sm:$0xff] }
 0x821   : > { %v10687_v31 = vadd.f32 %v10647_v37, %v3082_v15  ;;  %v15490_v51 = vcombine.low %v4123_v7, %v4131_v3  ;;  %v15505_v24 = vcombine.high %v4138_v56, %v4146_v1  ;;  %v15507_v15 = vcombine.high %v4139_v60, %v4147_v4  ;;  %v4162_v37 = vld [vmem:[%s18405_s15 + $0x1fe0] sm:$0xff]  ;;  %v3204_v33 = vld [vmem:[%s18405_s15 + $0x1f0] sm:$0xff]  ;;  %v3229_v4 = vld [vmem:[%s18405_s15 + $0x2b8] sm:$0xff] }
 0x822   : > { %v14549_v54 = vcombine.high %v3180_v25, %v3188_v38  ;;  %v14565_v23 = vcombine.high %v3196_v9, %v3204_v33  ;;  %v3212_v7 = vld [vmem:[%s18405_s15 + $0x230] sm:$0xff] }
 0x823   : > { %10080 = vmatpush1.bf16.msra.mxu0 %v15392_v48  ;;  %10691 = vst [vmem:[#allocation3 + $0x8] sm:$0xff] %v10687_v31  ;;  %10244 = vmatpush1.bf16.msra.mxu1 %v15394_v10  ;;  %v4154_v48 = vld [vmem:[%s18405_s15 + $0x1fa0] sm:$0xff]  ;;  %v4155_v10 = vld [vmem:[%s18405_s15 + $0x1fa8] sm:$0xff]  ;;  %v3220_v3 = vld [vmem:[%s18405_s15 + $0x270] sm:$0xff] }
 0x824   : > { %10081 = vmatprep.subr.bf16.mxu0 %v15409_v57  ;;  %10245 = vmatprep.subr.bf16.mxu1 %v15411_v11  ;;  %v4163_v57 = vld [vmem:[%s18405_s15 + $0x1fe8] sm:$0xff]  ;;  %v15504_v11 = vcombine.low %v4138_v56, %v4146_v1  ;;  %v15521_v50 = vcombine.high %v4154_v48, %v4162_v37  ;;  %v3228_v1 = vld [vmem:[%s18405_s15 + $0x2b0] sm:$0xff] }
 0x825   : > { %v15523_v31 = vcombine.high %v4155_v10, %v4163_v57  ;;  %v3236_v60 = vld [vmem:[%s18405_s15 + $0x2f0] sm:$0xff] }
 0x827   : > { %10082 = vmatpush1.bf16.msra.mxu0 %v15408_v35  ;;  %10246 = vmatpush1.bf16.msra.mxu1 %v15410_v49  ;;  %v3149_v35 = vld [vmem:[%s18405_s15 + $0x38] sm:$0xff] }
 0x828   : > { %10083 = vmatprep.subr.bf16.mxu0 %v15425_v43  ;;  %10247 = vmatprep.subr.bf16.mxu1 %v15427_v14  ;;  %v3157_v49 = vld [vmem:[%s18405_s15 + $0x78] sm:$0xff]  ;;  %v15520_v43 = vcombine.low %v4154_v48, %v4162_v37  ;;  %v15522_v14 = vcombine.low %v4155_v10, %v4163_v57  ;;  %v3244_v37 = vld [vmem:[%s18405_s15 + $0x330] sm:$0xff] }
 0x829   : > { %v14519_v16 = vcombine.high %v3149_v35, %v3157_v49  ;;  %v3252_v10 = vld [vmem:[%s18405_s15 + $0x370] sm:$0xff]  ;;  %v3245_v57 = vld [vmem:[%s18405_s15 + $0x338] sm:$0xff] }
 0x82b   : > { %10084 = vmatpush1.bf16.msra.mxu0 %v15424_v52  ;;  %10248 = vmatpush1.bf16.msra.mxu1 %v15426_v40  ;;  %v3165_v52 = vld [vmem:[%s18405_s15 + $0xb8] sm:$0xff] }
 0x82c   : > { %10085 = vmatprep.subr.bf16.mxu0 %v15441_v20  ;;  %10249 = vmatprep.subr.bf16.mxu1 %v15443_v61  ;;  %v3173_v40 = vld [vmem:[%s18405_s15 + $0xf8] sm:$0xff]  ;;  %v14516_v20 = vcombine.low %v3148_v13, %v3156_v27  ;;  %v14518_v61 = vcombine.low %v3149_v35, %v3157_v49  ;;  %v3260_v27 = vld [vmem:[%s18405_s15 + $0x3b0] sm:$0xff] }
 0x82d   : > { %v14535_v53 = vcombine.high %v3165_v52, %v3173_v40  ;;  %v3268_v35 = vld [vmem:[%s18405_s15 + $0x3f0] sm:$0xff]  ;;  %v3261_v49 = vld [vmem:[%s18405_s15 + $0x3b8] sm:$0xff] }
 0x82f   : > { %10086 = vmatpush1.bf16.msra.mxu0 %v15440_v18  ;;  %10250 = vmatpush1.bf16.msra.mxu1 %v15442_v22  ;;  %v3181_v18 = vld [vmem:[%s18405_s15 + $0x138] sm:$0xff] }
 0x830   : > { %10087 = vmatprep.subr.bf16.mxu0 %v15457_v5  ;;  %10251 = vmatprep.subr.bf16.mxu1 %v15459_v30  ;;  %v3189_v22 = vld [vmem:[%s18405_s15 + $0x178] sm:$0xff]  ;;  %v14532_v5 = vcombine.low %v3164_v2, %v3172_v17  ;;  %v14534_v30 = vcombine.low %v3165_v52, %v3173_v40  ;;  %v3276_v17 = vld [vmem:[%s18405_s15 + $0x430] sm:$0xff] }
 0x831   : > { %v14551_v32 = vcombine.high %v3181_v18, %v3189_v22  ;;  %v3284_v52 = vld [vmem:[%s18405_s15 + $0x470] sm:$0xff]  ;;  %v3277_v40 = vld [vmem:[%s18405_s15 + $0x438] sm:$0xff] }
 0x833   : > { %10088 = vmatpush1.bf16.msra.mxu0 %v15456_v29  ;;  %10252 = vmatpush1.bf16.msra.mxu1 %v15458_v34  ;;  %v3197_v29 = vld [vmem:[%s18405_s15 + $0x1b8] sm:$0xff] }
 0x834   : > { %10089 = vmatprep.subr.bf16.mxu0 %v15473_v21  ;;  %10253 = vmatprep.subr.bf16.mxu1 %v15475_v62  ;;  %v3205_v34 = vld [vmem:[%s18405_s15 + $0x1f8] sm:$0xff]  ;;  %v14548_v21 = vcombine.low %v3180_v25, %v3188_v38  ;;  %v14550_v62 = vcombine.low %v3181_v18, %v3189_v22  ;;  %v3292_v38 = vld [vmem:[%s18405_s15 + $0x4b0] sm:$0xff] }
 0x835   : > { %v14567_v0 = vcombine.high %v3197_v29, %v3205_v34  ;;  %v3300_v18 = vld [vmem:[%s18405_s15 + $0x4f0] sm:$0xff]  ;;  %v3293_v22 = vld [vmem:[%s18405_s15 + $0x4b8] sm:$0xff] }
 0x837   : > { %10090 = vmatpush1.bf16.msra.mxu0 %v15472_v41  ;;  %10254 = vmatpush1.bf16.msra.mxu1 %v15474_v46  ;;  %v3213_v41 = vld [vmem:[%s18405_s15 + $0x238] sm:$0xff] }
 0x838   : > { %10091 = vmatprep.subr.bf16.mxu0 %v15489_v8  ;;  %10255 = vmatprep.subr.bf16.mxu1 %v15491_v47  ;;  %v3221_v46 = vld [vmem:[%s18405_s15 + $0x278] sm:$0xff]  ;;  %v14564_v8 = vcombine.low %v3196_v9, %v3204_v33  ;;  %v14581_v47 = vcombine.high %v3212_v7, %v3220_v3  ;;  %v3308_v33 = vld [vmem:[%s18405_s15 + $0x530] sm:$0xff] }
 0x839   : > { %v14583_v56 = vcombine.high %v3213_v41, %v3221_v46 }
 0x83b   : > { %10092 = vmatpush1.bf16.msra.mxu0 %v15488_v39  ;;  %10256 = vmatpush1.bf16.msra.mxu1 %v15490_v51  ;;  %v3237_v39 = vld [vmem:[%s18405_s15 + $0x2f8] sm:$0xff]  ;;  %v14580_v51 = vcombine.low %v3212_v7, %v3220_v3  ;;  %v3324_v3 = vld [vmem:[%s18405_s15 + $0x5b0] sm:$0xff] }
 0x83c   : > { %10093 = vmatprep.subr.bf16.mxu0 %v15505_v24  ;;  %10257 = vmatprep.subr.bf16.mxu1 %v15507_v15  ;;  %v14582_v24 = vcombine.low %v3213_v41, %v3221_v46  ;;  %v14597_v15 = vcombine.high %v3228_v1, %v3236_v60  ;;  %v14599_v48 = vcombine.high %v3229_v4, %v3237_v39  ;;  %v3332_v41 = vld [vmem:[%s18405_s15 + $0x5f0] sm:$0xff]  ;;  %v3325_v46 = vld [vmem:[%s18405_s15 + $0x5b8] sm:$0xff] }
 0x83f   : > { %10094 = vmatpush1.bf16.msra.mxu0 %v15504_v11  ;;  %10258 = vmatpush1.bf16.msra.mxu1 %v15506_v59  ;;  %v3253_v11 = vld [vmem:[%s18405_s15 + $0x378] sm:$0xff]  ;;  %v14596_v59 = vcombine.low %v3228_v1, %v3236_v60  ;;  %v3340_v60 = vld [vmem:[%s18405_s15 + $0x630] sm:$0xff] }
 0x840   : > { %10095 = vmatprep.subr.bf16.mxu0 %v15521_v50  ;;  %10259 = vmatprep.subr.bf16.mxu1 %v15523_v31  ;;  %v14598_v50 = vcombine.low %v3229_v4, %v3237_v39  ;;  %v14613_v31 = vcombine.high %v3244_v37, %v3252_v10  ;;  %v14615_v13 = vcombine.high %v3245_v57, %v3253_v11  ;;  %v3348_v4 = vld [vmem:[%s18405_s15 + $0x670] sm:$0xff]  ;;  %v3341_v39 = vld [vmem:[%s18405_s15 + $0x638] sm:$0xff] }
 0x843   : > { %10096 = vmatpush1.bf16.msra.mxu0 %v15520_v43  ;;  %10260 = vmatpush1.bf16.msra.mxu1 %v15522_v14  ;;  %v3269_v43 = vld [vmem:[%s18405_s15 + $0x3f8] sm:$0xff]  ;;  %v14612_v14 = vcombine.low %v3244_v37, %v3252_v10  ;;  %v3356_v10 = vld [vmem:[%s18405_s15 + $0x6b0] sm:$0xff] }
 0x844   : > { %10270 = vmatprep.subr.bf16.mxu0 %v14517_v63  ;;  %10434 = vmatprep.subr.bf16.mxu1 %v14519_v16  ;;  %v14614_v63 = vcombine.low %v3245_v57, %v3253_v11  ;;  %v14629_v16 = vcombine.high %v3260_v27, %v3268_v35  ;;  %v14631_v2 = vcombine.high %v3261_v49, %v3269_v43  ;;  %v3364_v57 = vld [vmem:[%s18405_s15 + $0x6f0] sm:$0xff]  ;;  %v3357_v11 = vld [vmem:[%s18405_s15 + $0x6b8] sm:$0xff] }
 0x846   : > { %10098 = vmatmul.mubr.bf16.vlgmr.msra.gmra.mrb[8].mxu0 %v19261_v6  ;;  %10262 = vmatmul.mubr.bf16.vlgmr.msra.gmra.mrb[8].mxu1 %v19261_v6 }
 0x847   : > { %10271 = vmatpush1.bf16.msra.mxu0 %v14516_v20  ;;  %10435 = vmatpush1.bf16.msra.mxu1 %v14518_v61  ;;  %v3285_v20 = vld [vmem:[%s18405_s15 + $0x478] sm:$0xff]  ;;  %v14628_v61 = vcombine.low %v3260_v27, %v3268_v35  ;;  %v3372_v35 = vld [vmem:[%s18405_s15 + $0x730] sm:$0xff] }
 0x848   : > { %10272 = vmatprep.subr.bf16.mxu0 %v14533_v58  ;;  %10436 = vmatprep.subr.bf16.mxu1 %v14535_v53  ;;  %v14630_v58 = vcombine.low %v3261_v49, %v3269_v43  ;;  %v14645_v53 = vcombine.high %v3276_v17, %v3284_v52  ;;  %v14647_v25 = vcombine.high %v3277_v40, %v3285_v20  ;;  %v3380_v49 = vld [vmem:[%s18405_s15 + $0x770] sm:$0xff]  ;;  %v3373_v43 = vld [vmem:[%s18405_s15 + $0x738] sm:$0xff] }
 0x849   : > { %10302 = vmatprep.mubr.bf16.mxu0 %v18974_v44  ;;  %10466 = vmatprep.mubr.bf16.mxu1 %v18974_v44  ;;  %v14566_v44 = vcombine.low %v3197_v29, %v3205_v34  ;;  %v3316_v29 = vld [vmem:[%s18405_s15 + $0x570] sm:$0xff]  ;;  %v3309_v34 = vld [vmem:[%s18405_s15 + $0x538] sm:$0xff] }
 0x84b   : > { %10273 = vmatpush1.bf16.msra.mxu0 %v14532_v5  ;;  %10437 = vmatpush1.bf16.msra.mxu1 %v14534_v30  ;;  %v3301_v5 = vld [vmem:[%s18405_s15 + $0x4f8] sm:$0xff]  ;;  %v14644_v30 = vcombine.low %v3276_v17, %v3284_v52  ;;  %v3388_v52 = vld [vmem:[%s18405_s15 + $0x7b0] sm:$0xff] }
 0x84c   : > { %10274 = vmatprep.subr.bf16.mxu0 %v14549_v54  ;;  %10438 = vmatprep.subr.bf16.mxu1 %v14551_v32  ;;  %v14646_v54 = vcombine.low %v3277_v40, %v3285_v20  ;;  %v14661_v32 = vcombine.high %v3292_v38, %v3300_v18  ;;  %v14663_v9 = vcombine.high %v3293_v22, %v3301_v5  ;;  %v3396_v40 = vld [vmem:[%s18405_s15 + $0x7f0] sm:$0xff]  ;;  %v3389_v20 = vld [vmem:[%s18405_s15 + $0x7b8] sm:$0xff] }
 0x84f   : > { %10275 = vmatpush1.bf16.msra.mxu0 %v14548_v21  ;;  %10439 = vmatpush1.bf16.msra.mxu1 %v14550_v62  ;;  %v3317_v21 = vld [vmem:[%s18405_s15 + $0x578] sm:$0xff]  ;;  %v14660_v62 = vcombine.low %v3292_v38, %v3300_v18  ;;  %v3404_v18 = vld [vmem:[%s18405_s15 + $0x830] sm:$0xff] }
 0x850   : > { %10276 = vmatprep.subr.bf16.mxu0 %v14565_v23  ;;  %10440 = vmatprep.subr.bf16.mxu1 %v14567_v0  ;;  %v14662_v23 = vcombine.low %v3293_v22, %v3301_v5  ;;  %v14677_v0 = vcombine.high %v3308_v33, %v3316_v29  ;;  %v14679_v7 = vcombine.high %v3309_v34, %v3317_v21  ;;  %v3412_v22 = vld [vmem:[%s18405_s15 + $0x870] sm:$0xff]  ;;  %v3405_v5 = vld [vmem:[%s18405_s15 + $0x838] sm:$0xff] }
 0x853   : > { %10277 = vmatpush1.bf16.msra.mxu0 %v14564_v8  ;;  %10441 = vmatpush1.bf16.msra.mxu1 %v14566_v44  ;;  %v3333_v8 = vld [vmem:[%s18405_s15 + $0x5f8] sm:$0xff]  ;;  %v14676_v44 = vcombine.low %v3308_v33, %v3316_v29  ;;  %v3420_v29 = vld [vmem:[%s18405_s15 + $0x8b0] sm:$0xff] }
 0x854   : > { %10278 = vmatprep.subr.bf16.mxu0 %v14581_v47  ;;  %10442 = vmatprep.subr.bf16.mxu1 %v14583_v56  ;;  %v14678_v47 = vcombine.low %v3309_v34, %v3317_v21  ;;  %v14693_v56 = vcombine.high %v3324_v3, %v3332_v41  ;;  %v14695_v1 = vcombine.high %v3325_v46, %v3333_v8  ;;  %v3428_v34 = vld [vmem:[%s18405_s15 + $0x8f0] sm:$0xff]  ;;  %v3421_v21 = vld [vmem:[%s18405_s15 + $0x8b8] sm:$0xff] }
 0x857   : > { %10279 = vmatpush1.bf16.msra.mxu0 %v14580_v51  ;;  %10443 = vmatpush1.bf16.msra.mxu1 %v14582_v24  ;;  %v3349_v51 = vld [vmem:[%s18405_s15 + $0x678] sm:$0xff]  ;;  %v14692_v24 = vcombine.low %v3324_v3, %v3332_v41  ;;  %v3436_v41 = vld [vmem:[%s18405_s15 + $0x930] sm:$0xff] }
 0x858   : > { %10280 = vmatprep.subr.bf16.mxu0 %v14597_v15  ;;  %10444 = vmatprep.subr.bf16.mxu1 %v14599_v48  ;;  %v14694_v15 = vcombine.low %v3325_v46, %v3333_v8  ;;  %v14709_v48 = vcombine.high %v3340_v60, %v3348_v4  ;;  %v14711_v37 = vcombine.high %v3341_v39, %v3349_v51  ;;  %v3444_v46 = vld [vmem:[%s18405_s15 + $0x970] sm:$0xff]  ;;  %v3437_v8 = vld [vmem:[%s18405_s15 + $0x938] sm:$0xff] }
 0x85b   : > { %10281 = vmatpush1.bf16.msra.mxu0 %v14596_v59  ;;  %10445 = vmatpush1.bf16.msra.mxu1 %v14598_v50  ;;  %v3365_v59 = vld [vmem:[%s18405_s15 + $0x6f8] sm:$0xff]  ;;  %v14708_v50 = vcombine.low %v3340_v60, %v3348_v4  ;;  %v3452_v4 = vld [vmem:[%s18405_s15 + $0x9b0] sm:$0xff] }
 0x85c   : > { %10282 = vmatprep.subr.bf16.mxu0 %v14613_v31  ;;  %10446 = vmatprep.subr.bf16.mxu1 %v14615_v13  ;;  %v14710_v31 = vcombine.low %v3341_v39, %v3349_v51  ;;  %v14725_v13 = vcombine.high %v3356_v10, %v3364_v57  ;;  %v14727_v27 = vcombine.high %v3357_v11, %v3365_v59  ;;  %v3460_v39 = vld [vmem:[%s18405_s15 + $0x9f0] sm:$0xff]  ;;  %v3453_v51 = vld [vmem:[%s18405_s15 + $0x9b8] sm:$0xff] }
 0x85f   : > { %10283 = vmatpush1.bf16.msra.mxu0 %v14612_v14  ;;  %10447 = vmatpush1.bf16.msra.mxu1 %v14614_v63  ;;  %v3381_v14 = vld [vmem:[%s18405_s15 + $0x778] sm:$0xff]  ;;  %v14724_v63 = vcombine.low %v3356_v10, %v3364_v57  ;;  %v3468_v10 = vld [vmem:[%s18405_s15 + $0xa30] sm:$0xff] }
 0x860   : > { %10284 = vmatprep.subr.bf16.mxu0 %v14629_v16  ;;  %10448 = vmatprep.subr.bf16.mxu1 %v14631_v2  ;;  %v14726_v16 = vcombine.low %v3357_v11, %v3365_v59  ;;  %v14741_v2 = vcombine.high %v3372_v35, %v3380_v49  ;;  %v14743_v17 = vcombine.high %v3373_v43, %v3381_v14  ;;  %v3476_v57 = vld [vmem:[%s18405_s15 + $0xa70] sm:$0xff]  ;;  %v3469_v11 = vld [vmem:[%s18405_s15 + $0xa38] sm:$0xff] }
 0x861   : > { %v3477_v59 = vld [vmem:[%s18405_s15 + $0xa78] sm:$0xff] }
 0x863   : > { %10285 = vmatpush1.bf16.msra.mxu0 %v14628_v61  ;;  %10449 = vmatpush1.bf16.msra.mxu1 %v14630_v58  ;;  %v3397_v61 = vld [vmem:[%s18405_s15 + $0x7f8] sm:$0xff]  ;;  %v14740_v58 = vcombine.low %v3372_v35, %v3380_v49  ;;  %v3492_v35 = vld [vmem:[%s18405_s15 + $0xaf0] sm:$0xff] }
 0x864   : > { %10286 = vmatprep.subr.bf16.mxu0 %v14645_v53  ;;  %10450 = vmatprep.subr.bf16.mxu1 %v14647_v25  ;;  %v14742_v53 = vcombine.low %v3373_v43, %v3381_v14  ;;  %v14757_v25 = vcombine.high %v3388_v52, %v3396_v40  ;;  %v14759_v38 = vcombine.high %v3389_v20, %v3397_v61  ;;  %v3485_v49 = vld [vmem:[%s18405_s15 + $0xab8] sm:$0xff] }
 0x865   : > { %v3493_v43 = vld [vmem:[%s18405_s15 + $0xaf8] sm:$0xff]  ;;  %v14836_v14 = vcombine.low %v3468_v10, %v3476_v57 }
 0x867   : > { %10287 = vmatpush1.bf16.msra.mxu0 %v14644_v30  ;;  %10451 = vmatpush1.bf16.msra.mxu1 %v14646_v54  ;;  %v3413_v30 = vld [vmem:[%s18405_s15 + $0x878] sm:$0xff]  ;;  %v14756_v54 = vcombine.low %v3388_v52, %v3396_v40  ;;  %v3508_v52 = vld [vmem:[%s18405_s15 + $0xb70] sm:$0xff] }
 0x868   : > { %10288 = vmatprep.subr.bf16.mxu0 %v14661_v32  ;;  %10452 = vmatprep.subr.bf16.mxu1 %v14663_v9  ;;  %v14758_v32 = vcombine.low %v3389_v20, %v3397_v61  ;;  %v14773_v9 = vcombine.high %v3404_v18, %v3412_v22  ;;  %v14775_v33 = vcombine.high %v3405_v5, %v3413_v30  ;;  %v3501_v40 = vld [vmem:[%s18405_s15 + $0xb38] sm:$0xff] }
 0x869   : > { %v3509_v20 = vld [vmem:[%s18405_s15 + $0xb78] sm:$0xff] }
 0x86b   : > { %10289 = vmatpush1.bf16.msra.mxu0 %v14660_v62  ;;  %10453 = vmatpush1.bf16.msra.mxu1 %v14662_v23  ;;  %v3429_v62 = vld [vmem:[%s18405_s15 + $0x8f8] sm:$0xff]  ;;  %v14772_v23 = vcombine.low %v3404_v18, %v3412_v22  ;;  %v3524_v18 = vld [vmem:[%s18405_s15 + $0xbf0] sm:$0xff] }
 0x86c   : > { %10290 = vmatprep.subr.bf16.mxu0 %v14677_v0  ;;  %10454 = vmatprep.subr.bf16.mxu1 %v14679_v7  ;;  %v14774_v0 = vcombine.low %v3405_v5, %v3413_v30  ;;  %v14789_v7 = vcombine.high %v3420_v29, %v3428_v34  ;;  %v14791_v3 = vcombine.high %v3421_v21, %v3429_v62  ;;  %v3517_v22 = vld [vmem:[%s18405_s15 + $0xbb8] sm:$0xff] }
 0x86d   : > { %v3525_v5 = vld [vmem:[%s18405_s15 + $0xbf8] sm:$0xff] }
 0x86f   : > { %10291 = vmatpush1.bf16.msra.mxu0 %v14676_v44  ;;  %10455 = vmatpush1.bf16.msra.mxu1 %v14678_v47  ;;  %v3445_v44 = vld [vmem:[%s18405_s15 + $0x978] sm:$0xff]  ;;  %v14788_v47 = vcombine.low %v3420_v29, %v3428_v34  ;;  %v3540_v29 = vld [vmem:[%s18405_s15 + $0xc70] sm:$0xff] }
 0x870   : > { %10292 = vmatprep.subr.bf16.mxu0 %v14693_v56  ;;  %10456 = vmatprep.subr.bf16.mxu1 %v14695_v1  ;;  %v14790_v56 = vcombine.low %v3421_v21, %v3429_v62  ;;  %v14805_v1 = vcombine.high %v3436_v41, %v3444_v46  ;;  %v14807_v60 = vcombine.high %v3437_v8, %v3445_v44  ;;  %v3533_v34 = vld [vmem:[%s18405_s15 + $0xc38] sm:$0xff] }
 0x871   : > { %v3541_v21 = vld [vmem:[%s18405_s15 + $0xc78] sm:$0xff] }
 0x873   : > { %10293 = vmatpush1.bf16.msra.mxu0 %v14692_v24  ;;  %10457 = vmatpush1.bf16.msra.mxu1 %v14694_v15  ;;  %v3461_v24 = vld [vmem:[%s18405_s15 + $0x9f8] sm:$0xff]  ;;  %v14806_v15 = vcombine.low %v3437_v8, %v3445_v44 }
 0x874   : > { %10294 = vmatprep.subr.bf16.mxu0 %v14709_v48  ;;  %10458 = vmatprep.subr.bf16.mxu1 %v14711_v37  ;;  %v14821_v48 = vcombine.high %v3452_v4, %v3460_v39  ;;  %v14823_v37 = vcombine.high %v3453_v51, %v3461_v24  ;;  %v3557_v8 = vld [vmem:[%s18405_s15 + $0xcf8] sm:$0xff] }
 0x877   : > { %10295 = vmatpush1.bf16.msra.mxu0 %v14708_v50  ;;  %10459 = vmatpush1.bf16.msra.mxu1 %v14710_v31  ;;  %v14820_v50 = vcombine.low %v3452_v4, %v3460_v39  ;;  %v14837_v31 = vcombine.high %v3468_v10, %v3476_v57  ;;  %v3572_v4 = vld [vmem:[%s18405_s15 + $0xd70] sm:$0xff]  ;;  %v3565_v39 = vld [vmem:[%s18405_s15 + $0xd38] sm:$0xff] }
 0x878   : > { %10296 = vmatprep.subr.bf16.mxu0 %v14725_v13  ;;  %10460 = vmatprep.subr.bf16.mxu1 %v14727_v27  ;;  %v14839_v13 = vcombine.high %v3469_v11, %v3477_v59  ;;  %v3484_v27 = vld [vmem:[%s18405_s15 + $0xab0] sm:$0xff]  ;;  %v3581_v57 = vld [vmem:[%s18405_s15 + $0xdb8] sm:$0xff] }
 0x879   : > { %v14852_v61 = vcombine.low %v3484_v27, %v3492_v35  ;;  %v3588_v10 = vld [vmem:[%s18405_s15 + $0xdf0] sm:$0xff] }
 0x87b   : > { %10297 = vmatpush1.bf16.msra.mxu0 %v14724_v63  ;;  %10461 = vmatpush1.bf16.msra.mxu1 %v14726_v16  ;;  %v14838_v63 = vcombine.low %v3469_v11, %v3477_v59  ;;  %v14853_v16 = vcombine.high %v3484_v27, %v3492_v35  ;;  %v3589_v11 = vld [vmem:[%s18405_s15 + $0xdf8] sm:$0xff]  ;;  %v3604_v27 = vld [vmem:[%s18405_s15 + $0xe70] sm:$0xff] }
 0x87c   : > { %10298 = vmatprep.subr.bf16.mxu0 %v14741_v2  ;;  %10462 = vmatprep.subr.bf16.mxu1 %v14743_v17  ;;  %v14855_v2 = vcombine.high %v3485_v49, %v3493_v43  ;;  %v3500_v17 = vld [vmem:[%s18405_s15 + $0xb30] sm:$0xff]  ;;  %v3597_v35 = vld [vmem:[%s18405_s15 + $0xe38] sm:$0xff] }
 0x87d   : > { %v14868_v30 = vcombine.low %v3500_v17, %v3508_v52 }
 0x87f   : > { %10299 = vmatpush1.bf16.msra.mxu0 %v14740_v58  ;;  %10463 = vmatpush1.bf16.msra.mxu1 %v14742_v53  ;;  %v14854_v58 = vcombine.low %v3485_v49, %v3493_v43  ;;  %v14869_v53 = vcombine.high %v3500_v17, %v3508_v52  ;;  %v3605_v49 = vld [vmem:[%s18405_s15 + $0xe78] sm:$0xff]  ;;  %v3620_v17 = vld [vmem:[%s18405_s15 + $0xef0] sm:$0xff] }
 0x880   : > { %10300 = vmatprep.subr.bf16.mxu0 %v14757_v25  ;;  %10464 = vmatprep.subr.bf16.mxu1 %v14759_v38  ;;  %v14871_v25 = vcombine.high %v3501_v40, %v3509_v20  ;;  %v3516_v38 = vld [vmem:[%s18405_s15 + $0xbb0] sm:$0xff]  ;;  %v3613_v52 = vld [vmem:[%s18405_s15 + $0xeb8] sm:$0xff] }
 0x881   : > { %v14884_v62 = vcombine.low %v3516_v38, %v3524_v18 }
 0x883   : > { %10301 = vmatpush1.bf16.msra.mxu0 %v14756_v54  ;;  %10465 = vmatpush1.bf16.msra.mxu1 %v14758_v32  ;;  %v14870_v54 = vcombine.low %v3501_v40, %v3509_v20  ;;  %v14885_v32 = vcombine.high %v3516_v38, %v3524_v18  ;;  %v3621_v40 = vld [vmem:[%s18405_s15 + $0xef8] sm:$0xff]  ;;  %v3636_v38 = vld [vmem:[%s18405_s15 + $0xf70] sm:$0xff] }
 0x884   : > { %10311 = vmatprep.subr.bf16.mxu0 %v14773_v9  ;;  %10475 = vmatprep.subr.bf16.mxu1 %v14775_v33  ;;  %v14887_v9 = vcombine.high %v3517_v22, %v3525_v5  ;;  %v3532_v33 = vld [vmem:[%s18405_s15 + $0xc30] sm:$0xff]  ;;  %v3629_v18 = vld [vmem:[%s18405_s15 + $0xf38] sm:$0xff] }
 0x885   : > { %v14900_v44 = vcombine.low %v3532_v33, %v3540_v29 }
 0x886   : > { %10303 = vmatmul.mubr.bf16.vlgmr.msra.gmra.mrb[12].mxu0 %v19023_v28  ;;  %10467 = vmatmul.mubr.bf16.vlgmr.msra.gmra.mrb[12].mxu1 %v19023_v28  ;;  %v14804_v28 = vcombine.low %v3436_v41, %v3444_v46  ;;  %v3556_v41 = vld [vmem:[%s18405_s15 + $0xcf0] sm:$0xff]  ;;  %v3549_v46 = vld [vmem:[%s18405_s15 + $0xcb8] sm:$0xff] }
 0x887   : > { %10312 = vmatpush1.bf16.msra.mxu0 %v14772_v23  ;;  %10476 = vmatpush1.bf16.msra.mxu1 %v14774_v0  ;;  %v14886_v23 = vcombine.low %v3517_v22, %v3525_v5  ;;  %v14901_v0 = vcombine.high %v3532_v33, %v3540_v29  ;;  %v3637_v22 = vld [vmem:[%s18405_s15 + $0xf78] sm:$0xff]  ;;  %v3652_v33 = vld [vmem:[%s18405_s15 + $0xff0] sm:$0xff] }
 0x888   : > { %10313 = vmatprep.subr.bf16.mxu0 %v14789_v7  ;;  %10477 = vmatprep.subr.bf16.mxu1 %v14791_v3  ;;  %v14903_v7 = vcombine.high %v3533_v34, %v3541_v21  ;;  %v3548_v3 = vld [vmem:[%s18405_s15 + $0xcb0] sm:$0xff]  ;;  %v3645_v29 = vld [vmem:[%s18405_s15 + $0xfb8] sm:$0xff] }
 0x889   : > { %10343 = vmatprep.mubr.bf16.mxu0 %v19029_v42  ;;  %10507 = vmatprep.mubr.bf16.mxu1 %v19029_v42  ;;  %v14822_v42 = vcombine.low %v3453_v51, %v3461_v24  ;;  %v3573_v51 = vld [vmem:[%s18405_s15 + $0xd78] sm:$0xff]  ;;  %v14916_v24 = vcombine.low %v3548_v3, %v3556_v41 }
 0x88b   : > { %10314 = vmatpush1.bf16.msra.mxu0 %v14788_v47  ;;  %10478 = vmatpush1.bf16.msra.mxu1 %v14790_v56  ;;  %v14902_v47 = vcombine.low %v3533_v34, %v3541_v21  ;;  %v14917_v56 = vcombine.high %v3548_v3, %v3556_v41  ;;  %v3653_v34 = vld [vmem:[%s18405_s15 + $0xff8] sm:$0xff]  ;;  %v3668_v3 = vld [vmem:[%s18405_s15 + $0x1070] sm:$0xff] }
 0x88c   : > { %10315 = vmatprep.subr.bf16.mxu0 %v14805_v1  ;;  %10479 = vmatprep.subr.bf16.mxu1 %v14807_v60  ;;  %v14919_v1 = vcombine.high %v3549_v46, %v3557_v8  ;;  %v3564_v60 = vld [vmem:[%s18405_s15 + $0xd30] sm:$0xff]  ;;  %v3661_v41 = vld [vmem:[%s18405_s15 + $0x1038] sm:$0xff] }
 0x88d   : > { %v14932_v59 = vcombine.low %v3564_v60, %v3572_v4 }
 0x88f   : > { %10316 = vmatpush1.bf16.msra.mxu0 %v14804_v28  ;;  %10480 = vmatpush1.bf16.msra.mxu1 %v14806_v15  ;;  %v14918_v28 = vcombine.low %v3549_v46, %v3557_v8  ;;  %v14933_v15 = vcombine.high %v3564_v60, %v3572_v4  ;;  %v3669_v46 = vld [vmem:[%s18405_s15 + $0x1078] sm:$0xff]  ;;  %v3684_v60 = vld [vmem:[%s18405_s15 + $0x10f0] sm:$0xff] }
 0x890   : > { %10317 = vmatprep.subr.bf16.mxu0 %v14821_v48  ;;  %10481 = vmatprep.subr.bf16.mxu1 %v14823_v37  ;;  %v14935_v48 = vcombine.high %v3565_v39, %v3573_v51  ;;  %v3580_v37 = vld [vmem:[%s18405_s15 + $0xdb0] sm:$0xff]  ;;  %v3677_v4 = vld [vmem:[%s18405_s15 + $0x10b8] sm:$0xff] }
 0x891   : > { %v14948_v43 = vcombine.low %v3580_v37, %v3588_v10 }
 0x893   : > { %10318 = vmatpush1.bf16.msra.mxu0 %v14820_v50  ;;  %10482 = vmatpush1.bf16.msra.mxu1 %v14822_v42  ;;  %v14934_v50 = vcombine.low %v3565_v39, %v3573_v51  ;;  %v14949_v42 = vcombine.high %v3580_v37, %v3588_v10  ;;  %v3685_v39 = vld [vmem:[%s18405_s15 + $0x10f8] sm:$0xff]  ;;  %v3700_v37 = vld [vmem:[%s18405_s15 + $0x1170] sm:$0xff] }
 0x894   : > { %10319 = vmatprep.subr.bf16.mxu0 %v14837_v31  ;;  %10483 = vmatprep.subr.bf16.mxu1 %v14839_v13  ;;  %v14951_v31 = vcombine.high %v3581_v57, %v3589_v11  ;;  %v3596_v13 = vld [vmem:[%s18405_s15 + $0xe30] sm:$0xff]  ;;  %v3693_v10 = vld [vmem:[%s18405_s15 + $0x1138] sm:$0xff] }
 0x895   : > { %v14964_v20 = vcombine.low %v3596_v13, %v3604_v27 }
 0x897   : > { %10320 = vmatpush1.bf16.msra.mxu0 %v14836_v14  ;;  %10484 = vmatpush1.bf16.msra.mxu1 %v14838_v63  ;;  %v14950_v14 = vcombine.low %v3581_v57, %v3589_v11  ;;  %v14965_v63 = vcombine.high %v3596_v13, %v3604_v27  ;;  %v3701_v57 = vld [vmem:[%s18405_s15 + $0x1178] sm:$0xff]  ;;  %v3716_v13 = vld [vmem:[%s18405_s15 + $0x11f0] sm:$0xff] }
 0x898   : > { %10321 = vmatprep.subr.bf16.mxu0 %v14853_v16  ;;  %10485 = vmatprep.subr.bf16.mxu1 %v14855_v2  ;;  %v14967_v16 = vcombine.high %v3597_v35, %v3605_v49  ;;  %v3612_v2 = vld [vmem:[%s18405_s15 + $0xeb0] sm:$0xff]  ;;  %v3709_v27 = vld [vmem:[%s18405_s15 + $0x11b8] sm:$0xff] }
 0x899   : > { %v14980_v5 = vcombine.low %v3612_v2, %v3620_v17 }
 0x89b   : > { %10322 = vmatpush1.bf16.msra.mxu0 %v14852_v61  ;;  %10486 = vmatpush1.bf16.msra.mxu1 %v14854_v58  ;;  %v14966_v61 = vcombine.low %v3597_v35, %v3605_v49  ;;  %v14981_v58 = vcombine.high %v3612_v2, %v3620_v17  ;;  %v3717_v35 = vld [vmem:[%s18405_s15 + $0x11f8] sm:$0xff]  ;;  %v15062_v49 = vcombine.low %v3693_v10, %v3701_v57 }
 0x89c   : > { %10323 = vmatprep.subr.bf16.mxu0 %v14869_v53  ;;  %10487 = vmatprep.subr.bf16.mxu1 %v14871_v25  ;;  %v14983_v53 = vcombine.high %v3613_v52, %v3621_v40  ;;  %v3628_v25 = vld [vmem:[%s18405_s15 + $0xf30] sm:$0xff]  ;;  %v3725_v2 = vld [vmem:[%s18405_s15 + $0x1238] sm:$0xff] }
 0x89d   : > { %v14996_v21 = vcombine.low %v3628_v25, %v3636_v38  ;;  %v3733_v17 = vld [vmem:[%s18405_s15 + $0x1278] sm:$0xff] }
 0x89f   : > { %10324 = vmatpush1.bf16.msra.mxu0 %v14868_v30  ;;  %10488 = vmatpush1.bf16.msra.mxu1 %v14870_v54  ;;  %v14982_v30 = vcombine.low %v3613_v52, %v3621_v40  ;;  %v14997_v54 = vcombine.high %v3628_v25, %v3636_v38  ;;  %v3749_v25 = vld [vmem:[%s18405_s15 + $0x12f8] sm:$0xff] }
 0x8a0   : > { %10325 = vmatprep.subr.bf16.mxu0 %v14885_v32  ;;  %10489 = vmatprep.subr.bf16.mxu1 %v14887_v9  ;;  %v14999_v32 = vcombine.high %v3629_v18, %v3637_v22  ;;  %v3644_v9 = vld [vmem:[%s18405_s15 + $0xfb0] sm:$0xff] }
 0x8a1   : > { %v15012_v8 = vcombine.low %v3644_v9, %v3652_v33 }
 0x8a3   : > { %10326 = vmatpush1.bf16.msra.mxu0 %v14884_v62  ;;  %10490 = vmatpush1.bf16.msra.mxu1 %v14886_v23  ;;  %v14998_v62 = vcombine.low %v3629_v18, %v3637_v22  ;;  %v15013_v23 = vcombine.high %v3644_v9, %v3652_v33  ;;  %v15094_v18 = vcombine.low %v3725_v2, %v3733_v17  ;;  %v3765_v9 = vld [vmem:[%s18405_s15 + $0x1378] sm:$0xff] }
 0x8a4   : > { %10327 = vmatprep.subr.bf16.mxu0 %v14901_v0  ;;  %10491 = vmatprep.subr.bf16.mxu1 %v14903_v7  ;;  %v15015_v0 = vcombine.high %v3645_v29, %v3653_v34  ;;  %v3660_v7 = vld [vmem:[%s18405_s15 + $0x1030] sm:$0xff] }
 0x8a5   : > { %v15028_v51 = vcombine.low %v3660_v7, %v3668_v3 }
 0x8a7   : > { %10328 = vmatpush1.bf16.msra.mxu0 %v14900_v44  ;;  %10492 = vmatpush1.bf16.msra.mxu1 %v14902_v47  ;;  %v15014_v44 = vcombine.low %v3645_v29, %v3653_v34  ;;  %v15029_v47 = vcombine.high %v3660_v7, %v3668_v3  ;;  %v3781_v7 = vld [vmem:[%s18405_s15 + $0x13f8] sm:$0xff] }
 0x8a8   : > { %10329 = vmatprep.subr.bf16.mxu0 %v14917_v56  ;;  %10493 = vmatprep.subr.bf16.mxu1 %v14919_v1  ;;  %v15031_v56 = vcombine.high %v3661_v41, %v3669_v46  ;;  %v3676_v1 = vld [vmem:[%s18405_s15 + $0x10b0] sm:$0xff] }
 0x8a9   : > { %v15044_v11 = vcombine.low %v3676_v1, %v3684_v60 }
 0x8ab   : > { %10330 = vmatpush1.bf16.msra.mxu0 %v14916_v24  ;;  %10494 = vmatpush1.bf16.msra.mxu1 %v14918_v28  ;;  %v15030_v24 = vcombine.low %v3661_v41, %v3669_v46  ;;  %v15045_v28 = vcombine.high %v3676_v1, %v3684_v60  ;;  %v3797_v1 = vld [vmem:[%s18405_s15 + $0x1478] sm:$0xff] }
 0x8ac   : > { %10331 = vmatprep.subr.bf16.mxu0 %v14933_v15  ;;  %10495 = vmatprep.subr.bf16.mxu1 %v14935_v48  ;;  %v15047_v15 = vcombine.high %v3677_v4, %v3685_v39  ;;  %v3692_v48 = vld [vmem:[%s18405_s15 + $0x1130] sm:$0xff] }
 0x8af   : > { %10332 = vmatpush1.bf16.msra.mxu0 %v14932_v59  ;;  %10496 = vmatpush1.bf16.msra.mxu1 %v14934_v50  ;;  %v15046_v59 = vcombine.low %v3677_v4, %v3685_v39  ;;  %v15061_v50 = vcombine.high %v3692_v48, %v3700_v37 }
 0x8b0   : > { %10333 = vmatprep.subr.bf16.mxu0 %v14949_v42  ;;  %10497 = vmatprep.subr.bf16.mxu1 %v14951_v31  ;;  %v15063_v42 = vcombine.high %v3693_v10, %v3701_v57  ;;  %v3708_v31 = vld [vmem:[%s18405_s15 + $0x11b0] sm:$0xff] }
 0x8b1   : > { %v15076_v52 = vcombine.low %v3708_v31, %v3716_v13 }
 0x8b3   : > { %10334 = vmatpush1.bf16.msra.mxu0 %v14948_v43  ;;  %10498 = vmatpush1.bf16.msra.mxu1 %v14950_v14  ;;  %v15077_v43 = vcombine.high %v3708_v31, %v3716_v13  ;;  %v15079_v14 = vcombine.high %v3709_v27, %v3717_v35  ;;  %v3829_v31 = vld [vmem:[%s18405_s15 + $0x1578] sm:$0xff] }
 0x8b4   : > { %10335 = vmatprep.subr.bf16.mxu0 %v14965_v63  ;;  %10499 = vmatprep.subr.bf16.mxu1 %v14967_v16  ;;  %v3724_v63 = vld [vmem:[%s18405_s15 + $0x1230] sm:$0xff] }
 0x8b5   : > { %v3732_v16 = vld [vmem:[%s18405_s15 + $0x1270] sm:$0xff] }
 0x8b6   : > { %v15093_v40 = vcombine.high %v3724_v63, %v3732_v16  ;;  %v15092_v38 = vcombine.low %v3724_v63, %v3732_v16  ;;  %v3845_v63 = vld [vmem:[%s18405_s15 + $0x15f8] sm:$0xff] }
 0x8b7   : > { %10336 = vmatpush1.bf16.msra.mxu0 %v14964_v20  ;;  %10500 = vmatpush1.bf16.msra.mxu1 %v14966_v61  ;;  %v15095_v20 = vcombine.high %v3725_v2, %v3733_v17  ;;  %v3740_v61 = vld [vmem:[%s18405_s15 + $0x12b0] sm:$0xff] }
 0x8b8   : > { %10337 = vmatprep.subr.bf16.mxu0 %v14981_v58  ;;  %10501 = vmatprep.subr.bf16.mxu1 %v14983_v53  ;;  %v3748_v58 = vld [vmem:[%s18405_s15 + $0x12f0] sm:$0xff]  ;;  %v3741_v53 = vld [vmem:[%s18405_s15 + $0x12b8] sm:$0xff] }
 0x8b9   : > { %v15109_v22 = vcombine.high %v3740_v61, %v3748_v58  ;;  %v15108_v33 = vcombine.low %v3740_v61, %v3748_v58  ;;  %v15110_v29 = vcombine.low %v3741_v53, %v3749_v25  ;;  %v3861_v61 = vld [vmem:[%s18405_s15 + $0x1678] sm:$0xff] }
 0x8bb   : > { %10338 = vmatpush1.bf16.msra.mxu0 %v14980_v5  ;;  %10502 = vmatpush1.bf16.msra.mxu1 %v14982_v30  ;;  %v15111_v5 = vcombine.high %v3741_v53, %v3749_v25  ;;  %v3756_v30 = vld [vmem:[%s18405_s15 + $0x1330] sm:$0xff] }
 0x8bc   : > { %10339 = vmatprep.subr.bf16.mxu0 %v14997_v54  ;;  %10503 = vmatprep.subr.bf16.mxu1 %v14999_v32  ;;  %v3764_v54 = vld [vmem:[%s18405_s15 + $0x1370] sm:$0xff]  ;;  %v3757_v32 = vld [vmem:[%s18405_s15 + $0x1338] sm:$0xff] }
 0x8bd   : > { %v15125_v34 = vcombine.high %v3756_v30, %v3764_v54  ;;  %v15124_v3 = vcombine.low %v3756_v30, %v3764_v54  ;;  %v15126_v41 = vcombine.low %v3757_v32, %v3765_v9  ;;  %v3877_v30 = vld [vmem:[%s18405_s15 + $0x16f8] sm:$0xff] }
 0x8bf   : > { %10340 = vmatpush1.bf16.msra.mxu0 %v14996_v21  ;;  %10504 = vmatpush1.bf16.msra.mxu1 %v14998_v62  ;;  %v15127_v21 = vcombine.high %v3757_v32, %v3765_v9  ;;  %v3772_v62 = vld [vmem:[%s18405_s15 + $0x13b0] sm:$0xff] }
 0x8c0   : > { %10341 = vmatprep.subr.bf16.mxu0 %v15013_v23  ;;  %10505 = vmatprep.subr.bf16.mxu1 %v15015_v0  ;;  %v3780_v23 = vld [vmem:[%s18405_s15 + $0x13f0] sm:$0xff]  ;;  %v3773_v0 = vld [vmem:[%s18405_s15 + $0x13b8] sm:$0xff] }
 0x8c1   : > { %v15141_v46 = vcombine.high %v3772_v62, %v3780_v23  ;;  %v15140_v60 = vcombine.low %v3772_v62, %v3780_v23  ;;  %v15142_v4 = vcombine.low %v3773_v0, %v3781_v7  ;;  %v3893_v62 = vld [vmem:[%s18405_s15 + $0x1778] sm:$0xff] }
 0x8c3   : > { %10342 = vmatpush1.bf16.msra.mxu0 %v15012_v8  ;;  %10506 = vmatpush1.bf16.msra.mxu1 %v15014_v44  ;;  %v15143_v8 = vcombine.high %v3773_v0, %v3781_v7  ;;  %v3788_v44 = vld [vmem:[%s18405_s15 + $0x1430] sm:$0xff] }
 0x8c4   : > { %10352 = vmatprep.subr.bf16.mxu0 %v15029_v47  ;;  %10516 = vmatprep.subr.bf16.mxu1 %v15031_v56  ;;  %v3796_v47 = vld [vmem:[%s18405_s15 + $0x1470] sm:$0xff]  ;;  %v3789_v56 = vld [vmem:[%s18405_s15 + $0x1438] sm:$0xff] }
 0x8c5   : > { %v15157_v39 = vcombine.high %v3788_v44, %v3796_v47  ;;  %v15158_v10 = vcombine.low %v3789_v56, %v3797_v1 }
 0x8c6   : > { %10344 = vmatmul.mubr.bf16.vlgmr.msra.gmra.mrb[12].mxu0 %v19106_v26  ;;  %10508 = vmatmul.mubr.bf16.vlgmr.msra.gmra.mrb[12].mxu1 %v19106_v26  ;;  %v15060_v26 = vcombine.low %v3692_v48, %v3700_v37  ;;  %v3813_v48 = vld [vmem:[%s18405_s15 + $0x14f8] sm:$0xff]  ;;  %v15156_v37 = vcombine.low %v3788_v44, %v3796_v47 }
 0x8c7   : > { %10353 = vmatpush1.bf16.msra.mxu0 %v15028_v51  ;;  %10517 = vmatpush1.bf16.msra.mxu1 %v15030_v24  ;;  %v15159_v51 = vcombine.high %v3789_v56, %v3797_v1  ;;  %v3804_v24 = vld [vmem:[%s18405_s15 + $0x14b0] sm:$0xff]  ;;  %v3909_v44 = vld [vmem:[%s18405_s15 + $0x17f8] sm:$0xff] }
 0x8c8   : > { %10354 = vmatprep.subr.bf16.mxu0 %v15045_v28  ;;  %10518 = vmatprep.subr.bf16.mxu1 %v15047_v15  ;;  %v3812_v28 = vld [vmem:[%s18405_s15 + $0x14f0] sm:$0xff]  ;;  %v3805_v15 = vld [vmem:[%s18405_s15 + $0x14b8] sm:$0xff] }
 0x8c9   : > { %10384 = vmatprep.mubr.bf16.mxu0 %v19112_v19  ;;  %10548 = vmatprep.mubr.bf16.mxu1 %v19112_v19  ;;  %v15078_v19 = vcombine.low %v3709_v27, %v3717_v35  ;;  %v15173_v57 = vcombine.high %v3804_v24, %v3812_v28  ;;  %v15172_v13 = vcombine.low %v3804_v24, %v3812_v28  ;;  %v3925_v24 = vld [vmem:[%s18405_s15 + $0x1878] sm:$0xff] }
 0x8ca   : > { %v15174_v27 = vcombine.low %v3805_v15, %v3813_v48 }
 0x8cb   : > { %10355 = vmatpush1.bf16.msra.mxu0 %v15044_v11  ;;  %10519 = vmatpush1.bf16.msra.mxu1 %v15046_v59  ;;  %v15175_v11 = vcombine.high %v3805_v15, %v3813_v48  ;;  %v3820_v59 = vld [vmem:[%s18405_s15 + $0x1530] sm:$0xff] }
 0x8cc   : > { %10356 = vmatprep.subr.bf16.mxu0 %v15061_v50  ;;  %10520 = vmatprep.subr.bf16.mxu1 %v15063_v42  ;;  %v3828_v50 = vld [vmem:[%s18405_s15 + $0x1570] sm:$0xff]  ;;  %v3821_v42 = vld [vmem:[%s18405_s15 + $0x1538] sm:$0xff] }
 0x8cd   : > { %v15189_v35 = vcombine.high %v3820_v59, %v3828_v50  ;;  %v15188_v16 = vcombine.low %v3820_v59, %v3828_v50  ;;  %v15190_v2 = vcombine.low %v3821_v42, %v3829_v31  ;;  %v3941_v59 = vld [vmem:[%s18405_s15 + $0x18f8] sm:$0xff] }
 0x8cf   : > { %10357 = vmatpush1.bf16.msra.mxu0 %v15060_v26  ;;  %10521 = vmatpush1.bf16.msra.mxu1 %v15062_v49  ;;  %v15191_v26 = vcombine.high %v3821_v42, %v3829_v31  ;;  %v3836_v49 = vld [vmem:[%s18405_s15 + $0x15b0] sm:$0xff] }
 0x8d0   : > { %10358 = vmatprep.subr.bf16.mxu0 %v15077_v43  ;;  %10522 = vmatprep.subr.bf16.mxu1 %v15079_v14  ;;  %v3844_v43 = vld [vmem:[%s18405_s15 + $0x15f0] sm:$0xff]  ;;  %v3837_v14 = vld [vmem:[%s18405_s15 + $0x15b8] sm:$0xff] }
 0x8d1   : > { %v15205_v17 = vcombine.high %v3836_v49, %v3844_v43  ;;  %v15204_v58 = vcombine.low %v3836_v49, %v3844_v43  ;;  %v15206_v53 = vcombine.low %v3837_v14, %v3845_v63  ;;  %v3957_v49 = vld [vmem:[%s18405_s15 + $0x1978] sm:$0xff] }
 0x8d3   : > { %10359 = vmatpush1.bf16.msra.mxu0 %v15076_v52  ;;  %10523 = vmatpush1.bf16.msra.mxu1 %v15078_v19  ;;  %v15207_v52 = vcombine.high %v3837_v14, %v3845_v63  ;;  %v3852_v19 = vld [vmem:[%s18405_s15 + $0x1630] sm:$0xff] }
 0x8d4   : > { %10360 = vmatprep.subr.bf16.mxu0 %v15093_v40  ;;  %10524 = vmatprep.subr.bf16.mxu1 %v15095_v20  ;;  %v3860_v40 = vld [vmem:[%s18405_s15 + $0x1670] sm:$0xff]  ;;  %v3853_v20 = vld [vmem:[%s18405_s15 + $0x1638] sm:$0xff] }
 0x8d5   : > { %v15221_v25 = vcombine.high %v3852_v19, %v3860_v40  ;;  %v15220_v54 = vcombine.low %v3852_v19, %v3860_v40  ;;  %v15222_v32 = vcombine.low %v3853_v20, %v3861_v61  ;;  %v3973_v19 = vld [vmem:[%s18405_s15 + $0x19f8] sm:$0xff] }
 0x8d7   : > { %10361 = vmatpush1.bf16.msra.mxu0 %v15092_v38  ;;  %10525 = vmatpush1.bf16.msra.mxu1 %v15094_v18  ;;  %v15223_v38 = vcombine.high %v3853_v20, %v3861_v61  ;;  %v3868_v18 = vld [vmem:[%s18405_s15 + $0x16b0] sm:$0xff] }
 0x8d8   : > { %10362 = vmatprep.subr.bf16.mxu0 %v15109_v22  ;;  %10526 = vmatprep.subr.bf16.mxu1 %v15111_v5  ;;  %v3876_v22 = vld [vmem:[%s18405_s15 + $0x16f0] sm:$0xff]  ;;  %v3869_v5 = vld [vmem:[%s18405_s15 + $0x16b8] sm:$0xff] }
 0x8d9   : > { %v15237_v9 = vcombine.high %v3868_v18, %v3876_v22  ;;  %v15236_v23 = vcombine.low %v3868_v18, %v3876_v22  ;;  %v15238_v0 = vcombine.low %v3869_v5, %v3877_v30 }
 0x8db   : > { %10363 = vmatpush1.bf16.msra.mxu0 %v15108_v33  ;;  %10527 = vmatpush1.bf16.msra.mxu1 %v15110_v29  ;;  %v15239_v33 = vcombine.high %v3869_v5, %v3877_v30  ;;  %v3884_v29 = vld [vmem:[%s18405_s15 + $0x1730] sm:$0xff] }
 0x8dc   : > { %10364 = vmatprep.subr.bf16.mxu0 %v15125_v34  ;;  %10528 = vmatprep.subr.bf16.mxu1 %v15127_v21  ;;  %v3892_v34 = vld [vmem:[%s18405_s15 + $0x1770] sm:$0xff]  ;;  %v3885_v21 = vld [vmem:[%s18405_s15 + $0x1738] sm:$0xff] }
 0x8dd   : > { %v15253_v7 = vcombine.high %v3884_v29, %v3892_v34  ;;  %v15252_v47 = vcombine.low %v3884_v29, %v3892_v34  ;;  %v15254_v56 = vcombine.low %v3885_v21, %v3893_v62  ;;  %v3996_v30 = vld [vmem:[%s18405_s15 + $0x1ab0] sm:$0xff] }
 0x8df   : > { %10365 = vmatpush1.bf16.msra.mxu0 %v15124_v3  ;;  %10529 = vmatpush1.bf16.msra.mxu1 %v15126_v41  ;;  %v15255_v3 = vcombine.high %v3885_v21, %v3893_v62  ;;  %v3900_v41 = vld [vmem:[%s18405_s15 + $0x17b0] sm:$0xff] }
 0x8e0   : > { %10366 = vmatprep.subr.bf16.mxu0 %v15141_v46  ;;  %10530 = vmatprep.subr.bf16.mxu1 %v15143_v8  ;;  %v3908_v46 = vld [vmem:[%s18405_s15 + $0x17f0] sm:$0xff]  ;;  %v3901_v8 = vld [vmem:[%s18405_s15 + $0x17b8] sm:$0xff] }
 0x8e1   : > { %v15269_v1 = vcombine.high %v3900_v41, %v3908_v46  ;;  %v15268_v28 = vcombine.low %v3900_v41, %v3908_v46  ;;  %v15270_v15 = vcombine.low %v3901_v8, %v3909_v44  ;;  %v4012_v62 = vld [vmem:[%s18405_s15 + $0x1b30] sm:$0xff] }
 0x8e3   : > { %10367 = vmatpush1.bf16.msra.mxu0 %v15140_v60  ;;  %10531 = vmatpush1.bf16.msra.mxu1 %v15142_v4  ;;  %v15271_v60 = vcombine.high %v3901_v8, %v3909_v44  ;;  %v3916_v4 = vld [vmem:[%s18405_s15 + $0x1830] sm:$0xff] }
 0x8e4   : > { %10368 = vmatprep.subr.bf16.mxu0 %v15157_v39  ;;  %10532 = vmatprep.subr.bf16.mxu1 %v15159_v51  ;;  %v3924_v39 = vld [vmem:[%s18405_s15 + $0x1870] sm:$0xff]  ;;  %v3917_v51 = vld [vmem:[%s18405_s15 + $0x1838] sm:$0xff] }
 0x8e5   : > { %v15285_v48 = vcombine.high %v3916_v4, %v3924_v39  ;;  %v15284_v50 = vcombine.low %v3916_v4, %v3924_v39  ;;  %v15286_v42 = vcombine.low %v3917_v51, %v3925_v24  ;;  %v4029_v4 = vld [vmem:[%s18405_s15 + $0x1bb8] sm:$0xff] }
 0x8e6   : > { %v4037_v39 = vld [vmem:[%s18405_s15 + $0x1bf8] sm:$0xff] }
 0x8e7   : > { %10369 = vmatpush1.bf16.msra.mxu0 %v15156_v37  ;;  %10533 = vmatpush1.bf16.msra.mxu1 %v15158_v10  ;;  %v15287_v37 = vcombine.high %v3917_v51, %v3925_v24  ;;  %v3932_v10 = vld [vmem:[%s18405_s15 + $0x18b0] sm:$0xff] }
 0x8e8   : > { %10370 = vmatprep.subr.bf16.mxu0 %v15173_v57  ;;  %10534 = vmatprep.subr.bf16.mxu1 %v15175_v11  ;;  %v3940_v57 = vld [vmem:[%s18405_s15 + $0x18f0] sm:$0xff]  ;;  %v3933_v11 = vld [vmem:[%s18405_s15 + $0x18b8] sm:$0xff] }
 0x8e9   : > { %v15301_v31 = vcombine.high %v3932_v10, %v3940_v57  ;;  %v15300_v43 = vcombine.low %v3932_v10, %v3940_v57  ;;  %v15302_v14 = vcombine.low %v3933_v11, %v3941_v59 }
 0x8eb   : > { %10371 = vmatpush1.bf16.msra.mxu0 %v15172_v13  ;;  %10535 = vmatpush1.bf16.msra.mxu1 %v15174_v27  ;;  %v15303_v13 = vcombine.high %v3933_v11, %v3941_v59  ;;  %v3948_v27 = vld [vmem:[%s18405_s15 + $0x1930] sm:$0xff] }
 0x8ec   : > { %10372 = vmatprep.subr.bf16.mxu0 %v15189_v35  ;;  %10536 = vmatprep.subr.bf16.mxu1 %v15191_v26  ;;  %v3956_v35 = vld [vmem:[%s18405_s15 + $0x1970] sm:$0xff]  ;;  %v3949_v26 = vld [vmem:[%s18405_s15 + $0x1938] sm:$0xff] }
 0x8ed   : > { %v15317_v63 = vcombine.high %v3948_v27, %v3956_v35  ;;  %v15318_v40 = vcombine.low %v3949_v26, %v3957_v49 }
 0x8ef   : > { %10373 = vmatpush1.bf16.msra.mxu0 %v15188_v16  ;;  %10537 = vmatpush1.bf16.msra.mxu1 %v15190_v2  ;;  %v15319_v16 = vcombine.high %v3949_v26, %v3957_v49  ;;  %v3964_v2 = vld [vmem:[%s18405_s15 + $0x19b0] sm:$0xff]  ;;  %v4053_v26 = vld [vmem:[%s18405_s15 + $0x1c78] sm:$0xff] }
 0x8f0   : > { %10374 = vmatprep.subr.bf16.mxu0 %v15205_v17  ;;  %10538 = vmatprep.subr.bf16.mxu1 %v15207_v52  ;;  %v3972_v17 = vld [vmem:[%s18405_s15 + $0x19f0] sm:$0xff]  ;;  %v3965_v52 = vld [vmem:[%s18405_s15 + $0x19b8] sm:$0xff] }
 0x8f1   : > { %v15333_v20 = vcombine.high %v3964_v2, %v3972_v17  ;;  %v15335_v61 = vcombine.high %v3965_v52, %v3973_v19  ;;  %v15332_v18 = vcombine.low %v3964_v2, %v3972_v17  ;;  %v3083_v49 = vld [vmem:[#allocation3 + $0x10] sm:$0xff] }
 0x8f2   : > { %v4060_v17 = vld [vmem:[%s18405_s15 + $0x1cb0] sm:$0xff] }
 0x8f3   : > { %10375 = vmatpush1.bf16.msra.mxu0 %v15204_v58  ;;  %10539 = vmatpush1.bf16.msra.mxu1 %v15206_v53  ;;  %v3980_v58 = vld [vmem:[%s18405_s15 + $0x1a30] sm:$0xff] }
 0x8f4   : > { %10376 = vmatprep.subr.bf16.mxu0 %v15221_v25  ;;  %10540 = vmatprep.subr.bf16.mxu1 %v15223_v38  ;;  %v3988_v53 = vld [vmem:[%s18405_s15 + $0x1a70] sm:$0xff]  ;;  %v3981_v25 = vld [vmem:[%s18405_s15 + $0x1a38] sm:$0xff] }
 0x8f5   : > { %v3989_v38 = vld [vmem:[%s18405_s15 + $0x1a78] sm:$0xff]  ;;  %v15349_v22 = vcombine.high %v3980_v58, %v3988_v53 }
 0x8f6   : > { %v15351_v5 = vcombine.high %v3981_v25, %v3989_v38  ;;  %v15350_v29 = vcombine.low %v3981_v25, %v3989_v38  ;;  %v4076_v25 = vld [vmem:[%s18405_s15 + $0x1d30] sm:$0xff] }
 0x8f7   : > { %10377 = vmatpush1.bf16.msra.mxu0 %v15220_v54  ;;  %10541 = vmatpush1.bf16.msra.mxu1 %v15222_v32  ;;  %v4004_v54 = vld [vmem:[%s18405_s15 + $0x1af0] sm:$0xff]  ;;  %v3997_v32 = vld [vmem:[%s18405_s15 + $0x1ab8] sm:$0xff] }
 0x8f8   : > { %10378 = vmatprep.subr.bf16.mxu0 %v15237_v9  ;;  %10542 = vmatprep.subr.bf16.mxu1 %v15239_v33  ;;  %v4005_v9 = vld [vmem:[%s18405_s15 + $0x1af8] sm:$0xff]  ;;  %v15348_v33 = vcombine.low %v3980_v58, %v3988_v53  ;;  %v15365_v34 = vcombine.high %v3996_v30, %v4004_v54  ;;  %v4084_v38 = vld [vmem:[%s18405_s15 + $0x1d70] sm:$0xff] }
 0x8f9   : > { %v15367_v21 = vcombine.high %v3997_v32, %v4005_v9  ;;  %v15366_v41 = vcombine.low %v3997_v32, %v4005_v9  ;;  %v4092_v32 = vld [vmem:[%s18405_s15 + $0x1db0] sm:$0xff] }
 0x8fa   : > { %v4100_v9 = vld [vmem:[%s18405_s15 + $0x1df0] sm:$0xff] }
 0x8fb   : > { %10379 = vmatpush1.bf16.msra.mxu0 %v15236_v23  ;;  %10543 = vmatpush1.bf16.msra.mxu1 %v15238_v0  ;;  %v4020_v23 = vld [vmem:[%s18405_s15 + $0x1b70] sm:$0xff]  ;;  %v4013_v0 = vld [vmem:[%s18405_s15 + $0x1b38] sm:$0xff] }
 0x8fc   : > { %10380 = vmatprep.subr.bf16.mxu0 %v15253_v7  ;;  %10544 = vmatprep.subr.bf16.mxu1 %v15255_v3  ;;  %v4021_v7 = vld [vmem:[%s18405_s15 + $0x1b78] sm:$0xff]  ;;  %v15364_v3 = vcombine.low %v3996_v30, %v4004_v54  ;;  %v15381_v46 = vcombine.high %v4012_v62, %v4020_v23  ;;  %v15445_v30 = vcombine.high %v4076_v25, %v4084_v38 }
 0x8fd   : > { %v15383_v44 = vcombine.high %v4013_v0, %v4021_v7  ;;  %v15382_v57 = vcombine.low %v4013_v0, %v4021_v7  ;;  %v4108_v0 = vld [vmem:[%s18405_s15 + $0x1e30] sm:$0xff] }
 0x8fe   : > { %v4116_v7 = vld [vmem:[%s18405_s15 + $0x1e70] sm:$0xff] }
 0x8ff   : > { %10381 = vmatpush1.bf16.msra.mxu0 %v15252_v47  ;;  %10545 = vmatpush1.bf16.msra.mxu1 %v15254_v56  ;;  %v4028_v47 = vld [vmem:[%s18405_s15 + $0x1bb0] sm:$0xff] }
 0x900   : > { %10382 = vmatprep.subr.bf16.mxu0 %v15269_v1  ;;  %10546 = vmatprep.subr.bf16.mxu1 %v15271_v60  ;;  %v4036_v56 = vld [vmem:[%s18405_s15 + $0x1bf0] sm:$0xff] }
 0x901   : > { %v15397_v11 = vcombine.high %v4028_v47, %v4036_v56 }
 0x903   : > { %10383 = vmatpush1.bf16.msra.mxu0 %v15268_v28  ;;  %10547 = vmatpush1.bf16.msra.mxu1 %v15270_v15  ;;  %v15380_v15 = vcombine.low %v4012_v62, %v4020_v23  ;;  %v15461_v62 = vcombine.high %v4092_v32, %v4100_v9 }
 0x904   : > { %10393 = vmatprep.subr.bf16.mxu0 %v15285_v48  ;;  %10557 = vmatprep.subr.bf16.mxu1 %v15287_v37 }
 0x906   : > { %10385 = vmatmul.mubr.bf16.vlgmr.msra.gmra.mrb[12].mxu0 %v19187_v55  ;;  %10549 = vmatmul.mubr.bf16.vlgmr.msra.gmra.mrb[12].mxu1 %v19187_v55  ;;  %v15316_v55 = vcombine.low %v3948_v27, %v3956_v35  ;;  %v4045_v35 = vld [vmem:[%s18405_s15 + $0x1c38] sm:$0xff] }
 0x907   : > { %10394 = vmatpush1.bf16.msra.mxu0 %v15284_v50  ;;  %10558 = vmatpush1.bf16.msra.mxu1 %v15286_v42  ;;  %v15399_v42 = vcombine.high %v4029_v4, %v4037_v39  ;;  %v15415_v2 = vcombine.high %v4045_v35, %v4053_v26 }
 0x908   : > { %10395 = vmatprep.subr.bf16.mxu0 %v15301_v31  ;;  %10559 = vmatprep.subr.bf16.mxu1 %v15303_v13  ;;  %v4044_v31 = vld [vmem:[%s18405_s15 + $0x1c30] sm:$0xff] }
 0x909   : > { %10425 = vmatprep.mubr.bf16.mxu0 %v19193_v45  ;;  %10589 = vmatprep.mubr.bf16.mxu1 %v19193_v45  ;;  %v15334_v45 = vcombine.low %v3965_v52, %v3973_v19  ;;  %v4052_v13 = vld [vmem:[%s18405_s15 + $0x1c70] sm:$0xff] }
 0x90a   : > { %v4068_v52 = vld [vmem:[%s18405_s15 + $0x1cf0] sm:$0xff] }
 0x90b   : > { %10396 = vmatpush1.bf16.msra.mxu0 %v15300_v43  ;;  %10560 = vmatpush1.bf16.msra.mxu1 %v15302_v14  ;;  %v15396_v43 = vcombine.low %v4028_v47, %v4036_v56  ;;  %v15429_v58 = vcombine.high %v4060_v17, %v4068_v52  ;;  %v4124_v56 = vld [vmem:[%s18405_s15 + $0x1eb0] sm:$0xff] }
 0x90c   : > { %10397 = vmatprep.subr.bf16.mxu0 %v15317_v63  ;;  %10561 = vmatprep.subr.bf16.mxu1 %v15319_v16  ;;  %v15398_v63 = vcombine.low %v4029_v4, %v4037_v39  ;;  %v15413_v16 = vcombine.high %v4044_v31, %v4052_v13  ;;  %v4133_v4 = vld [vmem:[%s18405_s15 + $0x1ef8] sm:$0xff]  ;;  %v15476_v39 = vcombine.low %v4108_v0, %v4116_v7 }
 0x90f   : > { %10398 = vmatpush1.bf16.msra.mxu0 %v15316_v55  ;;  %10562 = vmatpush1.bf16.msra.mxu1 %v15318_v40  ;;  %v4061_v55 = vld [vmem:[%s18405_s15 + $0x1cb8] sm:$0xff] }
 0x910   : > { %10399 = vmatprep.subr.bf16.mxu0 %v15333_v20  ;;  %10563 = vmatprep.subr.bf16.mxu1 %v15335_v61  ;;  %v4069_v40 = vld [vmem:[%s18405_s15 + $0x1cf8] sm:$0xff]  ;;  %v15412_v20 = vcombine.low %v4044_v31, %v4052_v13  ;;  %v15414_v61 = vcombine.low %v4045_v35, %v4053_v26  ;;  %v4164_v31 = vld [vmem:[%s18405_s15 + $0x1ff0] sm:$0xff] }
 0x911   : > { %v15431_v53 = vcombine.high %v4061_v55, %v4069_v40  ;;  %v4157_v13 = vld [vmem:[%s18405_s15 + $0x1fb8] sm:$0xff] }
 0x913   : > { %10400 = vmatpush1.bf16.msra.mxu0 %v15332_v18  ;;  %10564 = vmatpush1.bf16.msra.mxu1 %v15334_v45  ;;  %v4077_v18 = vld [vmem:[%s18405_s15 + $0x1d38] sm:$0xff] }
 0x914   : > { %10401 = vmatprep.subr.bf16.mxu0 %v15349_v22  ;;  %10565 = vmatprep.subr.bf16.mxu1 %v15351_v5  ;;  %v4085_v45 = vld [vmem:[%s18405_s15 + $0x1d78] sm:$0xff]  ;;  %v15428_v22 = vcombine.low %v4060_v17, %v4068_v52  ;;  %v15430_v5 = vcombine.low %v4061_v55, %v4069_v40 }
 0x915   : > { %v15447_v54 = vcombine.high %v4077_v18, %v4085_v45 }
 0x917   : > { %10402 = vmatpush1.bf16.msra.mxu0 %v15348_v33  ;;  %10566 = vmatpush1.bf16.msra.mxu1 %v15350_v29  ;;  %v4093_v33 = vld [vmem:[%s18405_s15 + $0x1db8] sm:$0xff] }
 0x918   : > { %10403 = vmatprep.subr.bf16.mxu0 %v15365_v34  ;;  %10567 = vmatprep.subr.bf16.mxu1 %v15367_v21  ;;  %v4101_v29 = vld [vmem:[%s18405_s15 + $0x1df8] sm:$0xff]  ;;  %v15444_v34 = vcombine.low %v4076_v25, %v4084_v38  ;;  %v15446_v21 = vcombine.low %v4077_v18, %v4085_v45 }
 0x919   : > { %v10099_v8 = vpop.f32.mrb[8].mxu0  ;;  %v10263_v1 = vpop.f32.mrb[8].mxu1  ;;  %v15463_v23 = vcombine.high %v4093_v33, %v4101_v29  ;;  %v3084_v38 = vld [vmem:[#allocation3 + $0x18] sm:$0xff] }
 0x91a   : > { %v10101_v60 = vpop.f32.mrb[9].mxu0  ;;  %v10265_v24 = vpop.f32.mrb[9].mxu1 }
 0x91b   : > { %v10648_v51 = vcombine.low %v10099_v8, %v10101_v60  ;;  %v10103_v28 = vpop.f32.mrb[10].mxu0  ;;  %10404 = vmatpush1.bf16.msra.mxu0 %v15364_v3  ;;  %v10649_v48 = vcombine.low %v10263_v1, %v10265_v24  ;;  %v10267_v37 = vpop.f32.mrb[10].mxu1  ;;  %10568 = vmatpush1.bf16.msra.mxu1 %v15366_v41  ;;  %v4109_v3 = vld [vmem:[%s18405_s15 + $0x1e38] sm:$0xff]  ;;  %v15462_v8 = vcombine.low %v4093_v33, %v4101_v29  ;;  %v4132_v1 = vld [vmem:[%s18405_s15 + $0x1ef0] sm:$0xff]  ;;  %v17720_v33 = vmov (!%p15528_p11), 0.0  }
 0x91c   : > { %v10104_v10 = vpop.f32.mrb[11].mxu0  ;;  %10405 = vmatprep.subr.bf16.mxu0 %v15381_v46  ;;  %v10268_v50 = vpop.f32.mrb[11].mxu1  ;;  %10569 = vmatprep.subr.bf16.mxu1 %v15383_v44  ;;  %v4117_v41 = vld [vmem:[%s18405_s15 + $0x1e78] sm:$0xff]  ;;  %v15460_v46 = vcombine.low %v4092_v32, %v4100_v9  ;;  %v15477_v44 = vcombine.high %v4108_v0, %v4116_v7  ;;  %v15493_v24 = vcombine.high %v4124_v56, %v4132_v1  ;;  %v10703_v32 = vld [vmem:[%s18412_s18] sm:$0xff] (!%p15528_p11)  ;;  %v10752_v7 = vld [vmem:[%s18412_s18 + $0x188] sm:$0xff] (!%p15528_p11) }
 0x91d   : > { %v10656_v59 = vrot.slane %v10648_v51, %v18953_v36  ;;  %v10663_v27 = vrot.slane %v10649_v48, %v18953_v36  ;;  %v15479_v47 = vcombine.high %v4109_v3, %v4117_v41  ;;  %v4125_v60 = vld [vmem:[%s18405_s15 + $0x1eb8] sm:$0xff]  ;;  %v15478_v51 = vcombine.low %v4109_v3, %v4117_v41  ;;  %v4148_v48 = vld [vmem:[%s18405_s15 + $0x1f70] sm:$0xff]  ;;  %v10719_v9 = vld [vmem:[%s18412_s18 + $0x80] sm:$0xff] (!%p15528_p11) }
 0x91e   : > { %v15495_v28 = vcombine.high %v4125_v60, %v4133_v4  ;;  %v4141_v37 = vld [vmem:[%s18405_s15 + $0x1f38] sm:$0xff] }
 0x91f   : > { %10406 = vmatpush1.bf16.msra.mxu0 %v15380_v15  ;;  %v10664_v14 = vcombine.low %v10656_v59, %v10663_v27  ;;  %10570 = vmatpush1.bf16.msra.mxu1 %v15382_v57  ;;  %v4140_v15 = vld [vmem:[%s18405_s15 + $0x1f30] sm:$0xff]  ;;  %v4149_v10 = vld [vmem:[%s18405_s15 + $0x1f78] sm:$0xff]  ;;  %v15492_v57 = vcombine.low %v4124_v56, %v4132_v1 }
 0x920   : > { %10407 = vmatprep.subr.bf16.mxu0 %v15397_v11  ;;  %10571 = vmatprep.subr.bf16.mxu1 %v15399_v42  ;;  %v15494_v11 = vcombine.low %v4125_v60, %v4133_v4  ;;  %v15509_v59 = vcombine.high %v4140_v15, %v4148_v48  ;;  %v15511_v50 = vcombine.high %v4141_v37, %v4149_v10  ;;  %v4156_v42 = vld [vmem:[%s18405_s15 + $0x1fb0] sm:$0xff]  ;;  %v4165_v27 = vld [vmem:[%s18405_s15 + $0x1ff8] sm:$0xff]  ;;  %v10768_v4 = vld [vmem:[%s18412_s18 + $0x208] sm:$0xff] (!%p15528_p11) }
 0x921   : > { %v10688_v19 = vadd.f32 %v10664_v14, %v3083_v49  ;;  %v15508_v35 = vcombine.low %v4140_v15, %v4148_v48  ;;  %v15510_v26 = vcombine.low %v4141_v37, %v4149_v10  ;;  %v15525_v49 = vcombine.high %v4156_v42, %v4164_v31  ;;  %v10738_v3 = vld [vmem:[%s18412_s18 + $0x118] sm:$0xff] (!%p15528_p11)  ;;  %v10737_v56 = vld [vmem:[%s18412_s18 + $0x110] sm:$0xff] (!%p15528_p11)  ;;  %v10767_v48 = vld [vmem:[%s18412_s18 + $0x200] sm:$0xff] (!%p15528_p11) }
 0x922   : > { %v15524_v14 = vcombine.low %v4156_v42, %v4164_v31  ;;  %v10754_v41 = vld [vmem:[%s18412_s18 + $0x198] sm:$0xff] (!%p15528_p11)  ;;  %v10753_v60 = vld [vmem:[%s18412_s18 + $0x190] sm:$0xff] (!%p15528_p11)  ;;  %v10783_v10 = vld [vmem:[%s18412_s18 + $0x280] sm:$0xff] (!%p15528_p11) }
 0x923   : > { %10408 = vmatpush1.bf16.msra.mxu0 %v15396_v43  ;;  %10692 = vst [vmem:[#allocation3 + $0x10] sm:$0xff] %v10688_v19  ;;  %10572 = vmatpush1.bf16.msra.mxu1 %v15398_v63  ;;  %v15527_v43 = vcombine.high %v4157_v13, %v4165_v27  ;;  %v15526_v63 = vcombine.low %v4157_v13, %v4165_v27  ;;  %v10786_v15 = vld [vmem:[%s18412_s18 + $0x298] sm:$0xff] (!%p15528_p11)  ;;  %v10816_v42 = vld [vmem:[%s18412_s18 + $0x388] sm:$0xff] (!%p15528_p11) }
 0x924   : > { %10409 = vmatprep.subr.bf16.mxu0 %v15413_v16  ;;  %10573 = vmatprep.subr.bf16.mxu1 %v15415_v2  ;;  %v10802_v31 = vld [vmem:[%s18412_s18 + $0x318] sm:$0xff] (!%p15528_p11) }
 0x927   : > { %10410 = vmatpush1.bf16.msra.mxu0 %v15412_v20  ;;  %10574 = vmatpush1.bf16.msra.mxu1 %v15414_v61 }
 0x928   : > { %10411 = vmatprep.subr.bf16.mxu0 %v15429_v58  ;;  %10575 = vmatprep.subr.bf16.mxu1 %v15431_v53 }
 0x92b   : > { %10412 = vmatpush1.bf16.msra.mxu0 %v15428_v22  ;;  %10576 = vmatpush1.bf16.msra.mxu1 %v15430_v5  ;;  %v10720_v22 = vld [vmem:[%s18412_s18 + $0x88] sm:$0xff] (!%p15528_p11)  ;;  %v10706_v5 = vld [vmem:[%s18412_s18 + $0x18] sm:$0xff] (!%p15528_p11) }
 0x92c   : > { %10413 = vmatprep.subr.bf16.mxu0 %v15445_v30  ;;  %10577 = vmatprep.subr.bf16.mxu1 %v15447_v54  ;;  %v10722_v54 = vld [vmem:[%s18412_s18 + $0x98] sm:$0xff] (!%p15528_p11) }
 0x92d   : > { %v16144_v29 = vpack.c.bf16 (!%p15528_p11), %v10722_v54, %v10706_v5 }
 0x92f   : > { %10414 = vmatpush1.bf16.msra.mxu0 %v15444_v34  ;;  %10578 = vmatpush1.bf16.msra.mxu1 %v15446_v21  ;;  %v16130_v34 = vpack.c.bf16 (!%p15528_p11), %v10719_v9, %v10703_v32  ;;  %v10705_v21 = vld [vmem:[%s18412_s18 + $0x10] sm:$0xff] (!%p15528_p11)  ;;  %v10739_v32 = vld [vmem:[%s18412_s18 + $0x120] sm:$0xff] (!%p15528_p11) }
 0x930   : > { %10415 = vmatprep.subr.bf16.mxu0 %v15461_v62  ;;  %10579 = vmatprep.subr.bf16.mxu1 %v15463_v23  ;;  %v10721_v62 = vld [vmem:[%s18412_s18 + $0x90] sm:$0xff] (!%p15528_p11)  ;;  %v10736_v23 = vld [vmem:[%s18412_s18 + $0x108] sm:$0xff] (!%p15528_p11)  ;;  %v10755_v9 = vld [vmem:[%s18412_s18 + $0x1a0] sm:$0xff] (!%p15528_p11) }
 0x931   : > { %v16146_v0 = vpack.c.bf16 (!%p15528_p11), %v10721_v62, %v10705_v21  ;;  %v10757_v21 = vld [vmem:[%s18412_s18 + $0x1b0] sm:$0xff] (!%p15528_p11)  ;;  %v10772_v62 = vld [vmem:[%s18412_s18 + $0x228] sm:$0xff] (!%p15528_p11) }
 0x933   : > { %10416 = vmatpush1.bf16.msra.mxu0 %v15460_v46  ;;  %10580 = vmatpush1.bf16.msra.mxu1 %v15462_v8  ;;  %v16132_v46 = vpack.c.bf16 (!%p15528_p11), %v10752_v7, %v10736_v23  ;;  %v16148_v8 = vpack.c.bf16 (!%p15528_p11), %v10754_v41, %v10738_v3  ;;  %v10788_v23 = vld [vmem:[%s18412_s18 + $0x2a8] sm:$0xff] (!%p15528_p11)  ;;  %v10790_v7 = vld [vmem:[%s18412_s18 + $0x2b8] sm:$0xff] (!%p15528_p11)  ;;  %v16166_v3 = vpack.c.bf16 (!%p15528_p11), %v10755_v9, %v10739_v32  ;;  %v10775_v32 = vld [vmem:[%s18412_s18 + $0x240] sm:$0xff] (!%p15528_p11) }
 0x934   : > { %10417 = vmatprep.subr.bf16.mxu0 %v15477_v44  ;;  %10581 = vmatprep.subr.bf16.mxu1 %v15479_v47  ;;  %v10735_v44 = vld [vmem:[%s18412_s18 + $0x100] sm:$0xff] (!%p15528_p11) }
 0x935   : > { %v10751_v47 = vld [vmem:[%s18412_s18 + $0x180] sm:$0xff] (!%p15528_p11) }
 0x936   : > { %v16134_v1 = vpack.c.bf16 (!%p15528_p11), %v10751_v47, %v10735_v44  ;;  %v10787_v44 = vld [vmem:[%s18412_s18 + $0x2a0] sm:$0xff] (!%p15528_p11)  ;;  %v10773_v47 = vld [vmem:[%s18412_s18 + $0x230] sm:$0xff] (!%p15528_p11) }
 0x937   : > { %10418 = vmatpush1.bf16.msra.mxu0 %v15476_v39  ;;  %10582 = vmatpush1.bf16.msra.mxu1 %v15478_v51  ;;  %v10784_v39 = vld [vmem:[%s18412_s18 + $0x288] sm:$0xff] (!%p15528_p11)  ;;  %v16150_v51 = vpack.c.bf16 (!%p15528_p11), %v10753_v60, %v10737_v56  ;;  %v10791_v9 = vld [vmem:[%s18412_s18 + $0x2c0] sm:$0xff] (!%p15528_p11) }
 0x938   : > { %10419 = vmatprep.subr.bf16.mxu0 %v15493_v24  ;;  %10583 = vmatprep.subr.bf16.mxu1 %v15495_v28  ;;  %v16136_v24 = vpack.c.bf16 (!%p15528_p11), %v10784_v39, %v10768_v4  ;;  %v10770_v28 = vld [vmem:[%s18412_s18 + $0x218] sm:$0xff] (!%p15528_p11)  ;;  %v10804_v60 = vld [vmem:[%s18412_s18 + $0x328] sm:$0xff] (!%p15528_p11) }
 0x939   : > { %v16152_v37 = vpack.c.bf16 (!%p15528_p11), %v10786_v15, %v10770_v28  ;;  %v10820_v4 = vld [vmem:[%s18412_s18 + $0x3a8] sm:$0xff] (!%p15528_p11)  ;;  %v10806_v39 = vld [vmem:[%s18412_s18 + $0x338] sm:$0xff] (!%p15528_p11) }
 0x93a   : > { %v16172_v15 = vpack.c.bf16 (!%p15528_p11), %v10820_v4, %v10804_v60  ;;  %v10716_v60 = vld [vmem:[%s18412_s18 + $0x68] sm:$0xff] (!%p15528_p11) }
 0x93b   : > { %10420 = vmatpush1.bf16.msra.mxu0 %v15492_v57  ;;  %10584 = vmatpush1.bf16.msra.mxu1 %v15494_v11  ;;  %v10769_v57 = vld [vmem:[%s18412_s18 + $0x210] sm:$0xff] (!%p15528_p11)  ;;  %v10732_v4 = vld [vmem:[%s18412_s18 + $0xe8] sm:$0xff] (!%p15528_p11) }
 0x93c   : > { %10421 = vmatprep.subr.bf16.mxu0 %v15509_v59  ;;  %10585 = vmatprep.subr.bf16.mxu1 %v15511_v50  ;;  %v10785_v11 = vld [vmem:[%s18412_s18 + $0x290] sm:$0xff] (!%p15528_p11)  ;;  %v16138_v59 = vpack.c.bf16 (!%p15528_p11), %v10783_v10, %v10767_v48  ;;  %v10800_v50 = vld [vmem:[%s18412_s18 + $0x308] sm:$0xff] (!%p15528_p11)  ;;  %v10803_v48 = vld [vmem:[%s18412_s18 + $0x320] sm:$0xff] (!%p15528_p11) }
 0x93d   : > { %v16154_v13 = vpack.c.bf16 (!%p15528_p11), %v10785_v11, %v10769_v57  ;;  %v16140_v27 = vpack.c.bf16 (!%p15528_p11), %v10816_v42, %v10800_v50  ;;  %v10805_v10 = vld [vmem:[%s18412_s18 + $0x330] sm:$0xff] (!%p15528_p11)  ;;  %v10728_v50 = vld [vmem:[%s18412_s18 + $0xc8] sm:$0xff] (!%p15528_p11)  ;;  %v10714_v42 = vld [vmem:[%s18412_s18 + $0x58] sm:$0xff] (!%p15528_p11) }
 0x93e   : > { %v10821_v11 = vld [vmem:[%s18412_s18 + $0x3b0] sm:$0xff] (!%p15528_p11) }
 0x93f   : > { %10422 = vmatpush1.bf16.msra.mxu0 %v15508_v35  ;;  %10586 = vmatpush1.bf16.msra.mxu1 %v15510_v26  ;;  %v10818_v35 = vld [vmem:[%s18412_s18 + $0x398] sm:$0xff] (!%p15528_p11)  ;;  %v10799_v26 = vld [vmem:[%s18412_s18 + $0x300] sm:$0xff] (!%p15528_p11) }
 0x940   : > { %10423 = vmatprep.subr.bf16.mxu0 %v15525_v49  ;;  %10587 = vmatprep.subr.bf16.mxu1 %v15527_v43  ;;  %v10815_v49 = vld [vmem:[%s18412_s18 + $0x380] sm:$0xff] (!%p15528_p11)  ;;  %v16156_v43 = vpack.c.bf16 (!%p15528_p11), %v10818_v35, %v10802_v31  ;;  %v10730_v31 = vld [vmem:[%s18412_s18 + $0xd8] sm:$0xff] (!%p15528_p11) }
 0x943   : > { %10424 = vmatpush1.bf16.msra.mxu0 %v15524_v14  ;;  %10588 = vmatpush1.bf16.msra.mxu1 %v15526_v63  ;;  %v10801_v14 = vld [vmem:[%s18412_s18 + $0x310] sm:$0xff] (!%p15528_p11) }
 0x944   : > { %16145 = vmatprep.subr.bf16.mxu1 (!%p15528_p11), %v16144_v29  ;;  %v10817_v63 = vld [vmem:[%s18412_s18 + $0x390] sm:$0xff] (!%p15528_p11) }
 0x945   : > { %v10741_v29 = vld [vmem:[%s18412_s18 + $0x130] sm:$0xff] (!%p15528_p11) }
 0x946   : > { %10426 = vmatmul.mubr.bf16.vlgmr.msra.gmra.mrb[12].mxu0 %v19261_v6  ;;  %10590 = vmatmul.mubr.bf16.vlgmr.msra.gmra.mrb[12].mxu1 %v19261_v6  ;;  %v10704_v6 = vld [vmem:[%s18412_s18 + $0x8] sm:$0xff] (!%p15528_p11)  ;;  %v16182_v41 = vpack.c.bf16 (!%p15528_p11), %v10757_v21, %v10741_v29  ;;  %v10777_v29 = vld [vmem:[%s18412_s18 + $0x250] sm:$0xff] (!%p15528_p11) }
 0x947   : > { %v16128_v30 = vpack.c.bf16 (!%p15528_p11), %v10720_v22, %v10704_v6  ;;  %10899 = vmatprep.mubr.f32.mxu0 (!%p15528_p11), %v17720_v33  ;;  %10970 = vmatprep.mubr.f32.mxu1 (!%p15528_p11), %v17720_v33  ;;  %v10758_v6 = vld [vmem:[%s18412_s18 + $0x1b8] sm:$0xff] (!%p15528_p11)  ;;  %v10793_v21 = vld [vmem:[%s18412_s18 + $0x2d0] sm:$0xff] (!%p15528_p11) }
 0x948   : > { %16147 = vmatpush1.bf16.msra.mxu1 (!%p15528_p11), %v16146_v0  ;;  %v20130_v22 = vld [vmem:[#allocation4] sm:$0x3] (!%p15528_p11) }
 0x949   : > { %16129 = vmatprep.subr.bf16.mxu0 (!%p15528_p11), %v16128_v30  ;;  %16149 = vmatprep.subr.bf16.mxu1 (!%p15528_p11), %v16148_v8  ;;  %v10774_v0 = vld [vmem:[%s18412_s18 + $0x238] sm:$0xff] (!%p15528_p11)  ;;  %v10771_v8 = vld [vmem:[%s18412_s18 + $0x220] sm:$0xff] (!%p15528_p11) }
 0x94a   : > { %16131 = vmatpush1.bf16.msra.mxu0 (!%p15528_p11), %v16130_v34  ;;  %v16184_v56 = vpack.c.bf16 (!%p15528_p11), %v10790_v7, %v10774_v0  ;;  %v10810_v0 = vld [vmem:[%s18412_s18 + $0x358] sm:$0xff] (!%p15528_p11) }
 0x94b   : > { %16133 = vmatprep.subr.bf16.mxu0 (!%p15528_p11), %v16132_v46  ;;  %v16168_v46 = vpack.c.bf16 (!%p15528_p11), %v10788_v23, %v10772_v62  ;;  %v10808_v62 = vld [vmem:[%s18412_s18 + $0x348] sm:$0xff] (!%p15528_p11)  ;;  %v10826_v7 = vld [vmem:[%s18412_s18 + $0x3d8] sm:$0xff] (!%p15528_p11) }
 0x94c   : > { %16151 = vmatpush1.bf16.msra.mxu1 (!%p15528_p11), %v16150_v51  ;;  %v10822_v51 = vld [vmem:[%s18412_s18 + $0x3b8] sm:$0xff] (!%p15528_p11)  ;;  %v10824_v23 = vld [vmem:[%s18412_s18 + $0x3c8] sm:$0xff] (!%p15528_p11) }
 0x94d   : > { %16153 = vmatprep.subr.bf16.mxu1 (!%p15528_p11), %v16152_v37  ;;  %v10819_v37 = vld [vmem:[%s18412_s18 + $0x3a0] sm:$0xff] (!%p15528_p11)  ;;  %v16188_v57 = vpack.c.bf16 (!%p15528_p11), %v10822_v51, %v10806_v39  ;;  %v10718_v39 = vld [vmem:[%s18412_s18 + $0x78] sm:$0xff] (!%p15528_p11) }
 0x94e   : > { %16135 = vmatpush1.bf16.msra.mxu0 (!%p15528_p11), %v16134_v1  ;;  %v10789_v1 = vld [vmem:[%s18412_s18 + $0x2b0] sm:$0xff] (!%p15528_p11)  ;;  %v10734_v51 = vld [vmem:[%s18412_s18 + $0xf8] sm:$0xff] (!%p15528_p11) }
 0x94f   : > { %16137 = vmatprep.subr.bf16.mxu0 (!%p15528_p11), %v16136_v24  ;;  %v16170_v24 = vpack.c.bf16 (!%p15528_p11), %v10787_v44, %v10771_v8  ;;  %v16186_v28 = vpack.c.bf16 (!%p15528_p11), %v10789_v1, %v10773_v47  ;;  %v10807_v8 = vld [vmem:[%s18412_s18 + $0x340] sm:$0xff] (!%p15528_p11)  ;;  %v10809_v47 = vld [vmem:[%s18412_s18 + $0x350] sm:$0xff] (!%p15528_p11) }
 0x950   : > { %16155 = vmatpush1.bf16.msra.mxu1 (!%p15528_p11), %v16154_v13  ;;  %v16174_v13 = vpack.c.bf16 (!%p15528_p11), %v10819_v37, %v10803_v48  ;;  %v10823_v44 = vld [vmem:[%s18412_s18 + $0x3c0] sm:$0xff] (!%p15528_p11)  ;;  %v10825_v1 = vld [vmem:[%s18412_s18 + $0x3d0] sm:$0xff] (!%p15528_p11) }
 0x951   : > { %16157 = vmatprep.subr.bf16.mxu1 (!%p15528_p11), %v16156_v43  ;;  %v10713_v43 = vld [vmem:[%s18412_s18 + $0x50] sm:$0xff] (!%p15528_p11)  ;;  %v10715_v48 = vld [vmem:[%s18412_s18 + $0x60] sm:$0xff] (!%p15528_p11) }
 0x952   : > { %16139 = vmatpush1.bf16.msra.mxu0 (!%p15528_p11), %v16138_v59  ;;  %v10712_v59 = vld [vmem:[%s18412_s18 + $0x48] sm:$0xff] (!%p15528_p11)  ;;  %v10731_v37 = vld [vmem:[%s18412_s18 + $0xe0] sm:$0xff] (!%p15528_p11) }
 0x953   : > { %16141 = vmatprep.subr.bf16.mxu0 (!%p15528_p11), %v16140_v27  ;;  %v16190_v27 = vpack.c.bf16 (!%p15528_p11), %v10821_v11, %v10805_v10  ;;  %v16192_v35 = vpack.c.bf16 (!%p15528_p11), %v10728_v50, %v10712_v59  ;;  %v10717_v10 = vld [vmem:[%s18412_s18 + $0x70] sm:$0xff] (!%p15528_p11)  ;;  %v10748_v59 = vld [vmem:[%s18412_s18 + $0x168] sm:$0xff] (!%p15528_p11) }
 0x954   : > { %v10733_v11 = vld [vmem:[%s18412_s18 + $0xf0] sm:$0xff] (!%p15528_p11)  ;;  %v10764_v50 = vld [vmem:[%s18412_s18 + $0x1e8] sm:$0xff] (!%p15528_p11) }
 0xa19   : > { %v10427_v16 = vpop.f32.mrb[12].mxu0  ;;  %v10591_v2 = vpop.f32.mrb[12].mxu1 }
 0xa1a   : > { %v10429_v17 = vpop.f32.mrb[13].mxu0  ;;  %v10593_v19 = vpop.f32.mrb[13].mxu1 }
 0xa1b   : > { %v10665_v52 = vcombine.low %v10427_v16, %v10429_v17  ;;  %v10431_v55 = vpop.f32.mrb[14].mxu0  ;;  %v10666_v40 = vcombine.low %v10591_v2, %v10593_v19  ;;  %v10595_v20 = vpop.f32.mrb[14].mxu1  ;;  %v10708_v16 = vld [vmem:[%s18412_s18 + $0x28] sm:$0xff] (!%p15528_p11)  ;;  %v10710_v17 = vld [vmem:[%s18412_s18 + $0x38] sm:$0xff] (!%p15528_p11) }
 0xa1c   : > { %v10432_v61 = vpop.f32.mrb[15].mxu0  ;;  %v10596_v53 = vpop.f32.mrb[15].mxu1  ;;  %v10724_v2 = vld [vmem:[%s18412_s18 + $0xa8] sm:$0xff] (!%p15528_p11)  ;;  %v10726_v19 = vld [vmem:[%s18412_s18 + $0xb8] sm:$0xff] (!%p15528_p11)  ;;  %v16158_v55 = vpack.c.bf16 (!%p15528_p11), %v10817_v63, %v10801_v14  ;;  %v10707_v20 = vld [vmem:[%s18412_s18 + $0x20] sm:$0xff] (!%p15528_p11)  ;;  %v16208_v14 = vpack.c.bf16 (!%p15528_p11), %v10730_v31, %v10714_v42 }
 0xa1d   : > { %v10673_v58 = vrot.slane %v10665_v52, %v18953_v36  ;;  %v10680_v25 = vrot.slane %v10666_v40, %v18953_v36  ;;  %10697 = sbr.rel (%p15528_p11) target bundleno = 3674 (0xe5a), region = 168  ;;  %v16142_v52 = vpack.c.bf16 (!%p15528_p11), %v10815_v49, %v10799_v26  ;;  %v16160_v40 = vpack.c.bf16 (!%p15528_p11), %v10724_v2, %v10708_v16  ;;  %v10723_v61 = vld [vmem:[%s18412_s18 + $0xa0] sm:$0xff] (!%p15528_p11)  ;;  %v10729_v63 = vld [vmem:[%s18412_s18 + $0xd0] sm:$0xff] (!%p15528_p11)  ;;  %v10744_v16 = vld [vmem:[%s18412_s18 + $0x148] sm:$0xff] (!%p15528_p11) }
 0xa1e   : > { %v16176_v53 = vpack.c.bf16 (!%p15528_p11), %v10726_v19, %v10710_v17  ;;  %v16162_v5 = vpack.c.bf16 (!%p15528_p11), %v10723_v61, %v10707_v20  ;;  %16159 = vmatpush1.bf16.msra.mxu1 (!%p15528_p11), %v16158_v55  ;;  %v10711_v26 = vld [vmem:[%s18412_s18 + $0x40] sm:$0xff] (!%p15528_p11)  ;;  %v10760_v2 = vld [vmem:[%s18412_s18 + $0x1c8] sm:$0xff] (!%p15528_p11)  ;;  %v10746_v17 = vld [vmem:[%s18412_s18 + $0x158] sm:$0xff] (!%p15528_p11)  ;;  %v16210_v55 = vpack.c.bf16 (!%p15528_p11), %v10729_v63, %v10713_v43 }
 0xa1f   : > { %v10681_v18 = vcombine.low %v10673_v58, %v10680_v25  ;;  %v10709_v58 = vld [vmem:[%s18412_s18 + $0x30] sm:$0xff] (!%p15528_p11)  ;;  %16143 = vmatpush1.bf16.msra.mxu0 (!%p15528_p11), %v16142_v52  ;;  %v10727_v49 = vld [vmem:[%s18412_s18 + $0xc0] sm:$0xff] (!%p15528_p11)  ;;  %v10762_v52 = vld [vmem:[%s18412_s18 + $0x1d8] sm:$0xff] (!%p15528_p11) }
 0xa20   : > { %v10725_v25 = vld [vmem:[%s18412_s18 + $0xb0] sm:$0xff] (!%p15528_p11)  ;;  %16161 = vmatprep.subr.bf16.mxu0 (!%p15528_p11), %v16160_v40  ;;  %16177 = vmatprep.subr.bf16.mxu1 (!%p15528_p11), %v16176_v53  ;;  %v16194_v19 = vpack.c.bf16 (!%p15528_p11), %v10727_v49, %v10711_v26  ;;  %v16196_v40 = vpack.c.bf16 (!%p15528_p11), %v10760_v2, %v10744_v16  ;;  %v10743_v20 = vld [vmem:[%s18412_s18 + $0x140] sm:$0xff] (!%p15528_p11)  ;;  %v16212_v53 = vpack.c.bf16 (!%p15528_p11), %v10762_v52, %v10746_v17  ;;  %v10750_v42 = vld [vmem:[%s18412_s18 + $0x178] sm:$0xff] (!%p15528_p11) }
 0xa21   : > { %v10689_v45 = vadd.f32 %v10681_v18, %v3084_v38  ;;  %v10740_v38 = vld [vmem:[%s18412_s18 + $0x128] sm:$0xff] (!%p15528_p11)  ;;  %v16178_v30 = vpack.c.bf16 (!%p15528_p11), %v10725_v25, %v10709_v58  ;;  %15530 = vmatmul.mubr.msk.f32.vlgmr.msra.gmra.mrb[0].mxu1 (!%p15528_p11), %vm10831_vm2, %v20130_v22  ;;  %v10759_v61 = vld [vmem:[%s18412_s18 + $0x1c0] sm:$0xff] (!%p15528_p11)  ;;  %v10745_v58 = vld [vmem:[%s18412_s18 + $0x150] sm:$0xff] (!%p15528_p11) }
 0xa22   : > { %v10756_v18 = vld [vmem:[%s18412_s18 + $0x1a8] sm:$0xff] (!%p15528_p11)  ;;  %15529 = vmatmul.mubr.msk.f32.vlgmr.msra.gmra.mrb[0].mxu0 (!%p15528_p11), %vm10831_vm2, %v20130_v22  ;;  %11112 = vmatprep.mubr.f32.mxu1 (!%p15528_p11), %v17720_v33  ;;  %v10761_v25 = vld [vmem:[%s18412_s18 + $0x1d0] sm:$0xff] (!%p15528_p11)  ;;  %v10766_v31 = vld [vmem:[%s18412_s18 + $0x1f8] sm:$0xff] (!%p15528_p11) }
 0xa23   : > { %10693 = vst [vmem:[#allocation3 + $0x18] sm:$0xff] %v10689_v45  ;;  %v10742_v45 = vld [vmem:[%s18412_s18 + $0x138] sm:$0xff] (!%p15528_p11)  ;;  %v16164_v54 = vpack.c.bf16 (!%p15528_p11), %v10756_v18, %v10740_v38  ;;  %16163 = vmatpush1.bf16.msra.mxu0 (!%p15528_p11), %v16162_v5  ;;  %16179 = vmatpush1.bf16.msra.mxu1 (!%p15528_p11), %v16178_v30  ;;  %v10776_v38 = vld [vmem:[%s18412_s18 + $0x248] sm:$0xff] (!%p15528_p11)  ;;  %v16198_v5 = vpack.c.bf16 (!%p15528_p11), %v10759_v61, %v10743_v20  ;;  %v10747_v26 = vld [vmem:[%s18412_s18 + $0x160] sm:$0xff] (!%p15528_p11) }
 0xa24   : > { %v16180_v34 = vpack.c.bf16 %v10758_v6, %v10742_v45  ;;  %11041 = vmatprep.mubr.f32.mxu0 %v17720_v33  ;;  %v10792_v18 = vld [vmem:[%s18412_s18 + $0x2c8] sm:$0xff]  ;;  %v10778_v45 = vld [vmem:[%s18412_s18 + $0x258] sm:$0xff]  ;;  %v16214_v30 = vpack.c.bf16 %v10761_v25, %v10745_v58  ;;  %v10763_v49 = vld [vmem:[%s18412_s18 + $0x1e0] sm:$0xff]  ;;  %vm17723_vm4 = vmmov (!%p15549_p5), 0   ;;  %vm14124_vm5 = vcmask (!%p15549_p5), 517120  }
 0xa25   : > { %16165 = vmatprep.subr.bf16.mxu0 %v16164_v54  ;;  %v10794_v6 = vld [vmem:[%s18412_s18 + $0x2d8] sm:$0xff]  ;;  %v16200_v54 = vpack.c.bf16 %v10792_v18, %v10776_v38  ;;  %v10749_v43 = vld [vmem:[%s18412_s18 + $0x170] sm:$0xff]  ;;  %v10780_v16 = vld [vmem:[%s18412_s18 + $0x268] sm:$0xff] }
 0xa26   : > { %16181 = vmatprep.subr.bf16.mxu1 %v16180_v34  ;;  %v16216_v34 = vpack.c.bf16 %v10794_v6, %v10778_v45  ;;  %v10765_v63 = vld [vmem:[%s18412_s18 + $0x1f0] sm:$0xff]  ;;  %v10796_v2 = vld [vmem:[%s18412_s18 + $0x2e8] sm:$0xff]  ;;  %v10782_v17 = vld [vmem:[%s18412_s18 + $0x278] sm:$0xff] }
 0xa27   : > { %16167 = vmatpush1.bf16.msra.mxu0 %v16166_v3  ;;  %16183 = vmatpush1.bf16.msra.mxu1 %v16182_v41  ;;  %v16202_v3 = vpack.c.bf16 %v10791_v9, %v10775_v32  ;;  %v16218_v41 = vpack.c.bf16 %v10793_v21, %v10777_v29  ;;  %v10798_v52 = vld [vmem:[%s18412_s18 + $0x2f8] sm:$0xff]  ;;  %v10779_v20 = vld [vmem:[%s18412_s18 + $0x260] sm:$0xff]  ;;  %v10781_v58 = vld [vmem:[%s18412_s18 + $0x270] sm:$0xff] }
 0xa28   : > { %16169 = vmatprep.subr.bf16.mxu0 %v16168_v46  ;;  %16185 = vmatprep.subr.bf16.mxu1 %v16184_v56  ;;  %v16204_v46 = vpack.c.bf16 %v10824_v23, %v10808_v62  ;;  %v16220_v56 = vpack.c.bf16 %v10826_v7, %v10810_v0  ;;  %v10795_v61 = vld [vmem:[%s18412_s18 + $0x2e0] sm:$0xff]  ;;  %v10797_v25 = vld [vmem:[%s18412_s18 + $0x2f0] sm:$0xff]  ;;  %v10812_v38 = vld [vmem:[%s18412_s18 + $0x368] sm:$0xff] }
 0xa29   : > { %v10828_v18 = vld [vmem:[%s18412_s18 + $0x3e8] sm:$0xff]  ;;  %v10814_v45 = vld [vmem:[%s18412_s18 + $0x378] sm:$0xff]  ;;  %v10811_v32 = vld [vmem:[%s18412_s18 + $0x360] sm:$0xff] }
 0xa2a   : > { %v10830_v6 = vld [vmem:[%s18412_s18 + $0x3f8] sm:$0xff]  ;;  %v10827_v9 = vld [vmem:[%s18412_s18 + $0x3e0] sm:$0xff]  ;;  %v10813_v29 = vld [vmem:[%s18412_s18 + $0x370] sm:$0xff] }
 0xa2b   : > { %16171 = vmatpush1.bf16.msra.mxu0 %v16170_v24  ;;  %16187 = vmatpush1.bf16.msra.mxu1 %v16186_v28  ;;  %v16206_v24 = vpack.c.bf16 %v10823_v44, %v10807_v8  ;;  %v16222_v28 = vpack.c.bf16 %v10825_v1, %v10809_v47  ;;  %v10829_v21 = vld [vmem:[%s18412_s18 + $0x3f0] sm:$0xff]  ;;  %v11641_v62 = vld [vmem:[%s18418_s29 + $0x8] sm:$0xff]  ;;  %v11643_v0 = vld [vmem:[%s18418_s29 + $0x18] sm:$0xff] }
 0xa2c   : > { %16173 = vmatprep.subr.bf16.mxu0 %v16172_v15  ;;  %16189 = vmatprep.subr.bf16.mxu1 %v16188_v57  ;;  %v16224_v15 = vpack.c.bf16 %v10732_v4, %v10716_v60  ;;  %v16240_v57 = vpack.c.bf16 %v10734_v51, %v10718_v39  ;;  %v11657_v23 = vld [vmem:[%s18418_s29 + $0x88] sm:$0xff]  ;;  %v11659_v7 = vld [vmem:[%s18418_s29 + $0x98] sm:$0xff]  ;;  %v11640_v8 = vld [vmem:[%s18418_s29] sm:$0xff] }
 0xa2d   : > { %v11656_v44 = vld [vmem:[%s18418_s29 + $0x80] sm:$0xff]  ;;  %v11642_v47 = vld [vmem:[%s18418_s29 + $0x10] sm:$0xff]  ;;  %v11673_v60 = vld [vmem:[%s18418_s29 + $0x108] sm:$0xff] }
 0xa2e   : > { %v11658_v1 = vld [vmem:[%s18418_s29 + $0x90] sm:$0xff]  ;;  %v11689_v4 = vld [vmem:[%s18418_s29 + $0x188] sm:$0xff]  ;;  %v11675_v39 = vld [vmem:[%s18418_s29 + $0x118] sm:$0xff] }
 0xa2f   : > { %16175 = vmatpush1.bf16.msra.mxu0 %v16174_v13  ;;  %16191 = vmatpush1.bf16.msra.mxu1 %v16190_v27  ;;  %v16226_v13 = vpack.c.bf16 %v10731_v37, %v10715_v48  ;;  %v16242_v27 = vpack.c.bf16 %v10733_v11, %v10717_v10  ;;  %v11691_v51 = vld [vmem:[%s18418_s29 + $0x198] sm:$0xff]  ;;  %v11672_v48 = vld [vmem:[%s18418_s29 + $0x100] sm:$0xff]  ;;  %v11674_v10 = vld [vmem:[%s18418_s29 + $0x110] sm:$0xff] }
 0xa30   : > { %16193 = vmatprep.subr.bf16.mxu0 %v16192_v35  ;;  %16209 = vmatprep.subr.bf16.mxu1 %v16208_v14  ;;  %v16228_v35 = vpack.c.bf16 %v10764_v50, %v10748_v59  ;;  %v16244_v14 = vpack.c.bf16 %v10766_v31, %v10750_v42  ;;  %v11688_v37 = vld [vmem:[%s18418_s29 + $0x180] sm:$0xff]  ;;  %v11690_v11 = vld [vmem:[%s18418_s29 + $0x190] sm:$0xff]  ;;  %v11705_v59 = vld [vmem:[%s18418_s29 + $0x208] sm:$0xff] }
 0xa31   : > { %v11721_v50 = vld [vmem:[%s18418_s29 + $0x288] sm:$0xff]  ;;  %v11707_v42 = vld [vmem:[%s18418_s29 + $0x218] sm:$0xff] }
 0xa32   : > { %15531 = vmatmul.mubr.msk.f32.vlgmr.msra.gmra.mrb[2].mxu0 %vm10831_vm2, %v20130_v22  ;;  %15532 = vmatmul.mubr.msk.f32.vlgmr.msra.gmra.mrb[2].mxu1 %vm10831_vm2, %v20130_v22  ;;  %v11723_v31 = vld [vmem:[%s18418_s29 + $0x298] sm:$0xff] }
 0xa33   : > { %16195 = vmatpush1.bf16.msra.mxu0 %v16194_v19  ;;  %16211 = vmatpush1.bf16.msra.mxu1 %v16210_v55  ;;  %v16230_v19 = vpack.c.bf16 %v10763_v49, %v10747_v26  ;;  %v16246_v55 = vpack.c.bf16 %v10765_v63, %v10749_v43  ;;  %v11704_v26 = vld [vmem:[%s18418_s29 + $0x200] sm:$0xff]  ;;  %v11706_v43 = vld [vmem:[%s18418_s29 + $0x210] sm:$0xff] }
 0xa34   : > { %16197 = vmatprep.subr.bf16.mxu0 %v16196_v40  ;;  %16213 = vmatprep.subr.bf16.mxu1 %v16212_v53  ;;  %v16232_v40 = vpack.c.bf16 %v10796_v2, %v10780_v16  ;;  %v16248_v53 = vpack.c.bf16 %v10798_v52, %v10782_v17  ;;  %v11720_v49 = vld [vmem:[%s18418_s29 + $0x280] sm:$0xff]  ;;  %v11722_v63 = vld [vmem:[%s18418_s29 + $0x290] sm:$0xff]  ;;  %v11737_v16 = vld [vmem:[%s18418_s29 + $0x308] sm:$0xff] }
 0xa35   : > { %11183 = vmatprep.mubr.f32.mxu0 %v17720_v33  ;;  %11254 = vmatprep.mubr.f32.mxu1 %v17720_v33  ;;  %v11753_v2 = vld [vmem:[%s18418_s29 + $0x388] sm:$0xff]  ;;  %v11739_v17 = vld [vmem:[%s18418_s29 + $0x318] sm:$0xff] }
 0xa36   : > { %v11755_v52 = vld [vmem:[%s18418_s29 + $0x398] sm:$0xff] }
 0xa37   : > { %16199 = vmatpush1.bf16.msra.mxu0 %v16198_v5  ;;  %16215 = vmatpush1.bf16.msra.mxu1 %v16214_v30  ;;  %v16234_v5 = vpack.c.bf16 %v10795_v61, %v10779_v20  ;;  %v16250_v30 = vpack.c.bf16 %v10797_v25, %v10781_v58  ;;  %v11736_v20 = vld [vmem:[%s18418_s29 + $0x300] sm:$0xff]  ;;  %v11738_v58 = vld [vmem:[%s18418_s29 + $0x310] sm:$0xff] }
 0xa38   : > { %16201 = vmatprep.subr.bf16.mxu0 %v16200_v54  ;;  %16217 = vmatprep.subr.bf16.mxu1 %v16216_v34  ;;  %v16236_v54 = vpack.c.bf16 %v10828_v18, %v10812_v38  ;;  %v16252_v34 = vpack.c.bf16 %v10830_v6, %v10814_v45  ;;  %v11752_v61 = vld [vmem:[%s18418_s29 + $0x380] sm:$0xff]  ;;  %v11754_v25 = vld [vmem:[%s18418_s29 + $0x390] sm:$0xff]  ;;  %v11645_v38 = vld [vmem:[%s18418_s29 + $0x28] sm:$0xff] }
 0xa39   : > { %v11661_v18 = vld [vmem:[%s18418_s29 + $0xa8] sm:$0xff]  ;;  %v11647_v45 = vld [vmem:[%s18418_s29 + $0x38] sm:$0xff] }
 0xa3a   : > { %v11663_v6 = vld [vmem:[%s18418_s29 + $0xb8] sm:$0xff] }
 0xa3b   : > { %16203 = vmatpush1.bf16.msra.mxu0 %v16202_v3  ;;  %16219 = vmatpush1.bf16.msra.mxu1 %v16218_v41  ;;  %v16238_v3 = vpack.c.bf16 %v10827_v9, %v10811_v32  ;;  %v16254_v41 = vpack.c.bf16 %v10829_v21, %v10813_v29  ;;  %v11644_v32 = vld [vmem:[%s18418_s29 + $0x20] sm:$0xff]  ;;  %v11646_v29 = vld [vmem:[%s18418_s29 + $0x30] sm:$0xff] }
 0xa3c   : > { %16205 = vmatprep.subr.bf16.mxu0 %v16204_v46  ;;  %16221 = vmatprep.subr.bf16.mxu1 %v16220_v56  ;;  %v16256_v46 = vpack.c.bf16 %v11657_v23, %v11641_v62  ;;  %v16272_v56 = vpack.c.bf16 %v11659_v7, %v11643_v0  ;;  %v11660_v9 = vld [vmem:[%s18418_s29 + $0xa0] sm:$0xff]  ;;  %v11662_v21 = vld [vmem:[%s18418_s29 + $0xb0] sm:$0xff]  ;;  %v11677_v62 = vld [vmem:[%s18418_s29 + $0x128] sm:$0xff] }
 0xa3d   : > { %v11693_v23 = vld [vmem:[%s18418_s29 + $0x1a8] sm:$0xff]  ;;  %v11679_v0 = vld [vmem:[%s18418_s29 + $0x138] sm:$0xff] }
 0xa3e   : > { %v11695_v7 = vld [vmem:[%s18418_s29 + $0x1b8] sm:$0xff] }
 0xa3f   : > { %16207 = vmatpush1.bf16.msra.mxu0 %v16206_v24  ;;  %16223 = vmatpush1.bf16.msra.mxu1 %v16222_v28  ;;  %v16258_v24 = vpack.c.bf16 %v11656_v44, %v11640_v8  ;;  %v16274_v28 = vpack.c.bf16 %v11658_v1, %v11642_v47  ;;  %v16292_v8 = vpack.c.bf16 %v11693_v23, %v11677_v62  ;;  %v11676_v44 = vld [vmem:[%s18418_s29 + $0x120] sm:$0xff]  ;;  %v11698_v62 = vld [vmem:[%s18418_s29 + $0x1d0] sm:$0xff]  ;;  %v11713_v23 = vld [vmem:[%s18418_s29 + $0x248] sm:$0xff] }
 0xa40   : > { %16225 = vmatprep.subr.bf16.mxu0 %v16224_v15  ;;  %16241 = vmatprep.subr.bf16.mxu1 %v16240_v57  ;;  %v16260_v15 = vpack.c.bf16 %v11689_v4, %v11673_v60  ;;  %v16276_v57 = vpack.c.bf16 %v11691_v51, %v11675_v39  ;;  %v11692_v47 = vld [vmem:[%s18418_s29 + $0x1a0] sm:$0xff]  ;;  %v16308_v1 = vpack.c.bf16 %v11695_v7, %v11679_v0  ;;  %v11694_v60 = vld [vmem:[%s18418_s29 + $0x1b0] sm:$0xff]  ;;  %v11709_v4 = vld [vmem:[%s18418_s29 + $0x228] sm:$0xff] }
 0xa41   : > { %v11725_v39 = vld [vmem:[%s18418_s29 + $0x2a8] sm:$0xff]  ;;  %v11711_v51 = vld [vmem:[%s18418_s29 + $0x238] sm:$0xff] }
 0xa42   : > { %15533 = vmatmul.mubr.msk.f32.vlgmr.msra.gmra.mrb[4].mxu0 %vm10831_vm2, %v20130_v22  ;;  %15534 = vmatmul.mubr.msk.f32.vlgmr.msra.gmra.mrb[4].mxu1 %vm10831_vm2, %v20130_v22  ;;  %v11729_v0 = vld [vmem:[%s18418_s29 + $0x2c8] sm:$0xff]  ;;  %v11715_v7 = vld [vmem:[%s18418_s29 + $0x258] sm:$0xff] }
 0xa43   : > { %16227 = vmatpush1.bf16.msra.mxu0 %v16226_v13  ;;  %16243 = vmatpush1.bf16.msra.mxu1 %v16242_v27  ;;  %v16262_v13 = vpack.c.bf16 %v11688_v37, %v11672_v48  ;;  %v16278_v27 = vpack.c.bf16 %v11690_v11, %v11674_v10  ;;  %v16296_v48 = vpack.c.bf16 %v11725_v39, %v11709_v4  ;;  %v11708_v37 = vld [vmem:[%s18418_s29 + $0x220] sm:$0xff]  ;;  %v11730_v4 = vld [vmem:[%s18418_s29 + $0x2d0] sm:$0xff]  ;;  %v11745_v39 = vld [vmem:[%s18418_s29 + $0x348] sm:$0xff] }
 0xa44   : > { %16229 = vmatprep.subr.bf16.mxu0 %v16228_v35  ;;  %16245 = vmatprep.subr.bf16.mxu1 %v16244_v14  ;;  %v16264_v35 = vpack.c.bf16 %v11721_v50, %v11705_v59  ;;  %v16280_v14 = vpack.c.bf16 %v11723_v31, %v11707_v42  ;;  %v11724_v10 = vld [vmem:[%s18418_s29 + $0x2a0] sm:$0xff]  ;;  %v11726_v59 = vld [vmem:[%s18418_s29 + $0x2b0] sm:$0xff]  ;;  %v11741_v50 = vld [vmem:[%s18418_s29 + $0x328] sm:$0xff] }
 0xa45   : > { %11325 = vmatprep.mubr.f32.mxu0 %v17720_v33  ;;  %11396 = vmatprep.mubr.f32.mxu1 %v17720_v33  ;;  %v11757_v42 = vld [vmem:[%s18418_s29 + $0x3a8] sm:$0xff]  ;;  %v11743_v31 = vld [vmem:[%s18418_s29 + $0x338] sm:$0xff] }
 0xa47   : > { %16231 = vmatpush1.bf16.msra.mxu0 %v16230_v19  ;;  %16247 = vmatpush1.bf16.msra.mxu1 %v16246_v55  ;;  %v16266_v19 = vpack.c.bf16 %v11720_v49, %v11704_v26  ;;  %v16282_v55 = vpack.c.bf16 %v11722_v63, %v11706_v43  ;;  %v16300_v26 = vpack.c.bf16 %v11757_v42, %v11741_v50  ;;  %v11740_v49 = vld [vmem:[%s18418_s29 + $0x320] sm:$0xff]  ;;  %v11762_v50 = vld [vmem:[%s18418_s29 + $0x3d0] sm:$0xff]  ;;  %v11653_v42 = vld [vmem:[%s18418_s29 + $0x68] sm:$0xff] }
 0xa48   : > { %16233 = vmatprep.subr.bf16.mxu0 %v16232_v40  ;;  %16249 = vmatprep.subr.bf16.mxu1 %v16248_v53  ;;  %v16268_v40 = vpack.c.bf16 %v11753_v2, %v11737_v16  ;;  %v16284_v53 = vpack.c.bf16 %v11755_v52, %v11739_v17  ;;  %v11756_v43 = vld [vmem:[%s18418_s29 + $0x3a0] sm:$0xff]  ;;  %v11758_v16 = vld [vmem:[%s18418_s29 + $0x3b0] sm:$0xff]  ;;  %v11649_v2 = vld [vmem:[%s18418_s29 + $0x48] sm:$0xff] }
 0xa49   : > { %v11665_v17 = vld [vmem:[%s18418_s29 + $0xc8] sm:$0xff]  ;;  %v11651_v52 = vld [vmem:[%s18418_s29 + $0x58] sm:$0xff] }
 0xa4b   : > { %16235 = vmatpush1.bf16.msra.mxu0 %v16234_v5  ;;  %16251 = vmatpush1.bf16.msra.mxu1 %v16250_v30  ;;  %v16270_v5 = vpack.c.bf16 %v11752_v61, %v11736_v20  ;;  %v16286_v30 = vpack.c.bf16 %v11754_v25, %v11738_v58  ;;  %v16320_v20 = vpack.c.bf16 %v11665_v17, %v11649_v2  ;;  %v11648_v61 = vld [vmem:[%s18418_s29 + $0x40] sm:$0xff]  ;;  %v11670_v2 = vld [vmem:[%s18418_s29 + $0xf0] sm:$0xff]  ;;  %v11685_v17 = vld [vmem:[%s18418_s29 + $0x168] sm:$0xff] }
 0xa4c   : > { %16237 = vmatprep.subr.bf16.mxu0 %v16236_v54  ;;  %16253 = vmatprep.subr.bf16.mxu1 %v16252_v34  ;;  %v16288_v54 = vpack.c.bf16 %v11661_v18, %v11645_v38  ;;  %v16304_v34 = vpack.c.bf16 %v11663_v6, %v11647_v45  ;;  %v11664_v58 = vld [vmem:[%s18418_s29 + $0xc0] sm:$0xff]  ;;  %v11666_v38 = vld [vmem:[%s18418_s29 + $0xd0] sm:$0xff]  ;;  %v11681_v18 = vld [vmem:[%s18418_s29 + $0x148] sm:$0xff] }
 0xa4d   : > { %v11697_v45 = vld [vmem:[%s18418_s29 + $0x1c8] sm:$0xff]  ;;  %v11683_v6 = vld [vmem:[%s18418_s29 + $0x158] sm:$0xff] }
 0xa4f   : > { %16239 = vmatpush1.bf16.msra.mxu0 %v16238_v3  ;;  %16255 = vmatpush1.bf16.msra.mxu1 %v16254_v41  ;;  %v20287_v3 = vld [vmem:[%s21765_s10] sm:$0x3]  ;;  %v16290_v41 = vpack.c.bf16 %v11660_v9, %v11644_v32  ;;  %v16324_v32 = vpack.c.bf16 %v11697_v45, %v11681_v18  ;;  %v11680_v9 = vld [vmem:[%s18418_s29 + $0x140] sm:$0xff]  ;;  %v11702_v18 = vld [vmem:[%s18418_s29 + $0x1f0] sm:$0xff] }
 0xa50   : > { %16257 = vmatprep.subr.bf16.mxu0 %v16256_v46  ;;  %16273 = vmatprep.subr.bf16.mxu1 %v16272_v56  ;;  %v16306_v46 = vpack.c.bf16 %v11662_v21, %v11646_v29  ;;  %v11678_v56 = vld [vmem:[%s18418_s29 + $0x130] sm:$0xff]  ;;  %v11696_v29 = vld [vmem:[%s18418_s29 + $0x1c0] sm:$0xff]  ;;  %v11717_v45 = vld [vmem:[%s18418_s29 + $0x268] sm:$0xff] }
 0xa52   : > { %15535 = vmatmul.mubr.msk.f32.vlgmr.msra.gmra.mrb[6].mxu0 %vm10831_vm2, %v20130_v22  ;;  %15536 = vmatmul.mubr.msk.f32.vlgmr.msra.gmra.mrb[6].mxu1 %vm10831_vm2, %v20130_v22 }
 0xa53   : > { %16259 = vmatpush1.bf16.msra.mxu0 %v16258_v24  ;;  %16275 = vmatpush1.bf16.msra.mxu1 %v16274_v28  ;;  %v11727_v24 = vld [vmem:[%s18418_s29 + $0x2b8] sm:$0xff]  ;;  %v16294_v28 = vpack.c.bf16 %v11692_v47, %v11676_v44  ;;  %v16328_v44 = vpack.c.bf16 %v11729_v0, %v11713_v23  ;;  %v11712_v47 = vld [vmem:[%s18418_s29 + $0x240] sm:$0xff]  ;;  %v11734_v23 = vld [vmem:[%s18418_s29 + $0x2f0] sm:$0xff] }
 0xa54   : > { %16261 = vmatprep.subr.bf16.mxu0 %v16260_v15  ;;  %16277 = vmatprep.subr.bf16.mxu1 %v16276_v57  ;;  %v16310_v15 = vpack.c.bf16 %v11694_v60, %v11678_v56  ;;  %v11710_v57 = vld [vmem:[%s18418_s29 + $0x230] sm:$0xff]  ;;  %v16312_v11 = vpack.c.bf16 %v11727_v24, %v11711_v51  ;;  %v11728_v56 = vld [vmem:[%s18418_s29 + $0x2c0] sm:$0xff]  ;;  %v11761_v51 = vld [vmem:[%s18418_s29 + $0x3c8] sm:$0xff] }
 0xa55   : > { %11919 = vmatprep.mubr.f32.mxu0 %v17720_v33  ;;  %11990 = vmatprep.mubr.f32.mxu1 %v17720_v33  ;;  %v11747_v24 = vld [vmem:[%s18418_s29 + $0x358] sm:$0xff]  ;;  %v11749_v0 = vld [vmem:[%s18418_s29 + $0x368] sm:$0xff] }
 0xa57   : > { %16263 = vmatpush1.bf16.msra.mxu0 %v16262_v13  ;;  %16279 = vmatpush1.bf16.msra.mxu1 %v16278_v27  ;;  %v11759_v13 = vld [vmem:[%s18418_s29 + $0x3b8] sm:$0xff]  ;;  %v16298_v27 = vpack.c.bf16 %v11724_v10, %v11708_v37  ;;  %v16332_v37 = vpack.c.bf16 %v11761_v51, %v11745_v39  ;;  %v11744_v10 = vld [vmem:[%s18418_s29 + $0x340] sm:$0xff]  ;;  %v11766_v39 = vld [vmem:[%s18418_s29 + $0x3f0] sm:$0xff] }
 0xa58   : > { %16265 = vmatprep.subr.bf16.mxu0 %v16264_v35  ;;  %16281 = vmatprep.subr.bf16.mxu1 %v16280_v14  ;;  %v16314_v35 = vpack.c.bf16 %v11726_v59, %v11710_v57  ;;  %v11742_v14 = vld [vmem:[%s18418_s29 + $0x330] sm:$0xff]  ;;  %v16316_v63 = vpack.c.bf16 %v11759_v13, %v11743_v31  ;;  %v11760_v57 = vld [vmem:[%s18418_s29 + $0x3c0] sm:$0xff]  ;;  %v11669_v31 = vld [vmem:[%s18418_s29 + $0xe8] sm:$0xff] }
 0xa59   : > { %v11655_v13 = vld [vmem:[%s18418_s29 + $0x78] sm:$0xff] }
 0xa5b   : > { %16267 = vmatpush1.bf16.msra.mxu0 %v16266_v19  ;;  %16283 = vmatpush1.bf16.msra.mxu1 %v16282_v55  ;;  %v11667_v19 = vld [vmem:[%s18418_s29 + $0xd8] sm:$0xff]  ;;  %v16302_v55 = vpack.c.bf16 %v11756_v43, %v11740_v49  ;;  %v16352_v49 = vpack.c.bf16 %v11669_v31, %v11653_v42  ;;  %v11652_v43 = vld [vmem:[%s18418_s29 + $0x60] sm:$0xff] }
 0xa5c   : > { %16269 = vmatprep.subr.bf16.mxu0 %v16268_v40  ;;  %16285 = vmatprep.subr.bf16.mxu1 %v16284_v53  ;;  %v16318_v40 = vpack.c.bf16 %v11758_v16, %v11742_v14  ;;  %v11650_v53 = vld [vmem:[%s18418_s29 + $0x50] sm:$0xff]  ;;  %v16336_v25 = vpack.c.bf16 %v11667_v19, %v11651_v52  ;;  %v11668_v14 = vld [vmem:[%s18418_s29 + $0xe0] sm:$0xff]  ;;  %v11701_v52 = vld [vmem:[%s18418_s29 + $0x1e8] sm:$0xff] }
 0xa5d   : > { %v11687_v19 = vld [vmem:[%s18418_s29 + $0x178] sm:$0xff] }
 0xa5f   : > { %16271 = vmatpush1.bf16.msra.mxu0 %v16270_v5  ;;  %16287 = vmatpush1.bf16.msra.mxu1 %v16286_v30  ;;  %v11699_v5 = vld [vmem:[%s18418_s29 + $0x1d8] sm:$0xff]  ;;  %v16322_v30 = vpack.c.bf16 %v11664_v58, %v11648_v61  ;;  %v16356_v61 = vpack.c.bf16 %v11701_v52, %v11685_v17  ;;  %v11684_v58 = vld [vmem:[%s18418_s29 + $0x160] sm:$0xff] }
 0xa60   : > { %16289 = vmatprep.subr.bf16.mxu0 %v16288_v54  ;;  %16305 = vmatprep.subr.bf16.mxu1 %v16304_v34  ;;  %v16338_v54 = vpack.c.bf16 %v11666_v38, %v11650_v53  ;;  %v11682_v34 = vld [vmem:[%s18418_s29 + $0x150] sm:$0xff]  ;;  %v16340_v21 = vpack.c.bf16 %v11699_v5, %v11683_v6  ;;  %v11700_v53 = vld [vmem:[%s18418_s29 + $0x1e0] sm:$0xff]  ;;  %v11733_v6 = vld [vmem:[%s18418_s29 + $0x2e8] sm:$0xff] }
 0xa61   : > { %v11719_v5 = vld [vmem:[%s18418_s29 + $0x278] sm:$0xff] }
 0xa62   : > { %15537 = vmatmul.mubr.msk.f32.vlgmr.msra.gmra.mrb[8].mxu0 %vm10831_vm2, %v20287_v3  ;;  %15538 = vmatmul.mubr.msk.f32.vlgmr.msra.gmra.mrb[8].mxu1 %vm10831_vm2, %v20287_v3 }
 0xa63   : > { %16291 = vmatpush1.bf16.msra.mxu0 %v16290_v41  ;;  %16307 = vmatpush1.bf16.msra.mxu1 %v16306_v46  ;;  %v11731_v41 = vld [vmem:[%s18418_s29 + $0x2d8] sm:$0xff]  ;;  %v16326_v46 = vpack.c.bf16 %v11696_v29, %v11680_v9  ;;  %v16360_v9 = vpack.c.bf16 %v11733_v6, %v11717_v45  ;;  %v11716_v29 = vld [vmem:[%s18418_s29 + $0x260] sm:$0xff]  ;;  %v20426_v45 = vsub.s32 0, %v18945_v12  ;;  %v20429_v6 = vsub.s32 1, %v18945_v12 }
 0xa64   : > { %16293 = vmatprep.subr.bf16.mxu0 %v16292_v8  ;;  %16309 = vmatprep.subr.bf16.mxu1 %v16308_v1  ;;  %v16342_v8 = vpack.c.bf16 %v11698_v62, %v11682_v34  ;;  %v11714_v1 = vld [vmem:[%s18418_s29 + $0x250] sm:$0xff]  ;;  %v16344_v60 = vpack.c.bf16 %v11731_v41, %v11715_v7  ;;  %v11732_v34 = vld [vmem:[%s18418_s29 + $0x2e0] sm:$0xff]  ;;  %v11765_v7 = vld [vmem:[%s18418_s29 + $0x3e8] sm:$0xff] }
 0xa65   : > { %12061 = vmatprep.mubr.f32.mxu0 %v17720_v33  ;;  %12132 = vmatprep.mubr.f32.mxu1 %v17720_v33  ;;  %v11751_v41 = vld [vmem:[%s18418_s29 + $0x378] sm:$0xff] }
 0xa67   : > { %16295 = vmatpush1.bf16.msra.mxu0 %v16294_v28  ;;  %16311 = vmatpush1.bf16.msra.mxu1 %v16310_v15  ;;  %v11763_v28 = vld [vmem:[%s18418_s29 + $0x3d8] sm:$0xff]  ;;  %v16330_v15 = vpack.c.bf16 %v11728_v56, %v11712_v47  ;;  %v16364_v47 = vpack.c.bf16 %v11765_v7, %v11749_v0  ;;  %v11748_v56 = vld [vmem:[%s18418_s29 + $0x360] sm:$0xff] }
 0xa68   : > { %16297 = vmatprep.subr.bf16.mxu0 %v16296_v48  ;;  %16313 = vmatprep.subr.bf16.mxu1 %v16312_v11  ;;  %v16346_v48 = vpack.c.bf16 %v11730_v4, %v11714_v1  ;;  %v11746_v11 = vld [vmem:[%s18418_s29 + $0x350] sm:$0xff]  ;;  %v16348_v59 = vpack.c.bf16 %v11763_v28, %v11747_v24  ;;  %v11764_v1 = vld [vmem:[%s18418_s29 + $0x3e0] sm:$0xff] }
 0xa69   : > { %v11750_v4 = vld [vmem:[%s18418_s29 + $0x370] sm:$0xff]  ;;  %v16366_v51 = vpack.c.bf16 %v11764_v1, %v11748_v56 }
 0xa6a   : > { %v16382_v24 = vpack.c.bf16 %v11766_v39, %v11750_v4 }
 0xa6b   : > { %16299 = vmatpush1.bf16.msra.mxu0 %v16298_v27  ;;  %16315 = vmatpush1.bf16.msra.mxu1 %v16314_v35  ;;  %v11671_v27 = vld [vmem:[%s18418_s29 + $0xf8] sm:$0xff]  ;;  %v16334_v35 = vpack.c.bf16 %v11760_v57, %v11744_v10 }
 0xa6c   : > { %16301 = vmatprep.subr.bf16.mxu0 %v16300_v26  ;;  %16317 = vmatprep.subr.bf16.mxu1 %v16316_v63  ;;  %v16350_v26 = vpack.c.bf16 %v11762_v50, %v11746_v11  ;;  %v11654_v63 = vld [vmem:[%s18418_s29 + $0x70] sm:$0xff]  ;;  %v16368_v16 = vpack.c.bf16 %v11671_v27, %v11655_v13 }
 0xa6f   : > { %16303 = vmatpush1.bf16.msra.mxu0 %v16302_v55  ;;  %16319 = vmatpush1.bf16.msra.mxu1 %v16318_v40  ;;  %v11703_v55 = vld [vmem:[%s18418_s29 + $0x1f8] sm:$0xff]  ;;  %v16354_v40 = vpack.c.bf16 %v11668_v14, %v11652_v43 }
 0xa70   : > { %16321 = vmatprep.subr.bf16.mxu0 %v16320_v20  ;;  %16337 = vmatprep.subr.bf16.mxu1 %v16336_v25  ;;  %v16370_v20 = vpack.c.bf16 %v11670_v2, %v11654_v63  ;;  %v11686_v25 = vld [vmem:[%s18418_s29 + $0x170] sm:$0xff]  ;;  %v16372_v38 = vpack.c.bf16 %v11703_v55, %v11687_v19 }
 0xa72   : > { %15539 = vmatmul.mubr.msk.f32.vlgmr.msra.gmra.mrb[10].mxu0 %vm10831_vm2, %v20287_v3  ;;  %15540 = vmatmul.mubr.msk.f32.vlgmr.msra.gmra.mrb[10].mxu1 %vm10831_vm2, %v20287_v3 }
 0xa73   : > { %16323 = vmatpush1.bf16.msra.mxu0 %v16322_v30  ;;  %16339 = vmatpush1.bf16.msra.mxu1 %v16338_v54  ;;  %v11735_v30 = vld [vmem:[%s18418_s29 + $0x2f8] sm:$0xff]  ;;  %v16358_v54 = vpack.c.bf16 %v11700_v53, %v11684_v58 }
 0xa74   : > { %16325 = vmatprep.subr.bf16.mxu0 %v16324_v32  ;;  %16341 = vmatprep.subr.bf16.mxu1 %v16340_v21  ;;  %v16374_v32 = vpack.c.bf16 %v11702_v18, %v11686_v25  ;;  %v11718_v21 = vld [vmem:[%s18418_s29 + $0x270] sm:$0xff]  ;;  %v16376_v62 = vpack.c.bf16 %v11735_v30, %v11719_v5  ;;  %v20432_v5 = vsub.s32 2, %v18945_v12  ;;  %v20435_v30 = vsub.s32 3, %v18945_v12 }
 0xa75   : > { %12203 = vmatprep.mubr.f32.mxu0 %v17720_v33  ;;  %12274 = vmatprep.mubr.f32.mxu1 %v17720_v33 }
 0xa77   : > { %16327 = vmatpush1.bf16.msra.mxu0 %v16326_v46  ;;  %16343 = vmatpush1.bf16.msra.mxu1 %v16342_v8  ;;  %v11767_v46 = vld [vmem:[%s18418_s29 + $0x3f8] sm:$0xff]  ;;  %v16362_v8 = vpack.c.bf16 %v11732_v34, %v11716_v29  ;;  %s21767_s29 = sld [smem:[#allocation72_spill]] (!%p15549_p5) }
 0xa78   : > { %16329 = vmatprep.subr.bf16.mxu0 %v16328_v44  ;;  %16345 = vmatprep.subr.bf16.mxu1 %v16344_v60  ;;  %v16378_v44 = vpack.c.bf16 %v11734_v23, %v11718_v21  ;;  %v16380_v60 = vpack.c.bf16 %v11767_v46, %v11751_v41 }
 0xa7b   : > { %16331 = vmatpush1.bf16.msra.mxu0 %v16330_v15  ;;  %16347 = vmatpush1.bf16.msra.mxu1 %v16346_v48 }
 0xa7c   : > { %16333 = vmatprep.subr.bf16.mxu0 %v16332_v37  ;;  %16349 = vmatprep.subr.bf16.mxu1 %v16348_v59 }
 0xa7f   : > { %16335 = vmatpush1.bf16.msra.mxu0 %v16334_v35  ;;  %16351 = vmatpush1.bf16.msra.mxu1 %v16350_v26 }
 0xa80   : > { %16353 = vmatprep.subr.bf16.mxu0 %v16352_v49  ;;  %16369 = vmatprep.subr.bf16.mxu1 %v16368_v16 }
 0xa82   : > { %15541 = vmatmul.mubr.msk.f32.vlgmr.msra.gmra.mrb[12].mxu0 %vm10831_vm2, %v20287_v3  ;;  %15542 = vmatmul.mubr.msk.f32.vlgmr.msra.gmra.mrb[12].mxu1 %vm10831_vm2, %v20287_v3 }
 0xa83   : > { %16355 = vmatpush1.bf16.msra.mxu0 %v16354_v40  ;;  %16371 = vmatpush1.bf16.msra.mxu1 %v16370_v20 }
 0xa84   : > { %16357 = vmatprep.subr.bf16.mxu0 %v16356_v61  ;;  %16373 = vmatprep.subr.bf16.mxu1 %v16372_v38 }
 0xa85   : > { %12345 = vmatprep.mubr.f32.mxu0 %v17720_v33  ;;  %12416 = vmatprep.mubr.f32.mxu1 %v17720_v33 }
 0xa87   : > { %16359 = vmatpush1.bf16.msra.mxu0 %v16358_v54  ;;  %16375 = vmatpush1.bf16.msra.mxu1 %v16374_v32  ;;  %v11495_v54 = vld [vmem:[%s828_s23] sm:$0xff] }
 0xa88   : > { %16361 = vmatprep.subr.bf16.mxu0 %v16360_v9  ;;  %16377 = vmatprep.subr.bf16.mxu1 %v16376_v62  ;;  %v11502_v9 = vrot.slane %v11495_v54, %v20426_v45  ;;  %v11506_v29 = vrot.slane %v11495_v54, %v20429_v6  ;;  %v11510_v34 = vrot.slane %v11495_v54, %v20432_v5  ;;  %v11768_v62 = vld [vmem:[%s837_s6] sm:$0xff] }
 0xa89   : > { %v11514_v21 = vrot.slane %v11495_v54, %v20435_v30  ;;  %v11775_v23 = vrot.slane %v11768_v62, %v20426_v45  ;;  %v11783_v41 = vrot.slane %v11768_v62, %v20432_v5  ;;  %v11779_v46 = vrot.slane %v11768_v62, %v20429_v6 }
 0xa8a   : > { %v11563_v0 = vcombine.low %v11502_v9, %v11506_v29 }
 0xa8b   : > { %16363 = vmatpush1.bf16.msra.mxu0 %v16362_v8  ;;  %16379 = vmatpush1.bf16.msra.mxu1 %v16378_v44  ;;  %v11564_v7 = vcombine.low %v11510_v34, %v11514_v21  ;;  %v11787_v8 = vrot.slane %v11768_v62, %v20435_v30 }
 0xa8c   : > { %16365 = vmatprep.subr.bf16.mxu0 %v16364_v47  ;;  %16381 = vmatprep.subr.bf16.mxu1 %v16380_v60  ;;  %v11571_v60 = vrot.slane %v11563_v0, %v18953_v36 }
 0xa8d   : > { %v11578_v4 = vrot.slane %v11564_v7, %v18953_v36 }
 0xa8f   : > { %16367 = vmatpush1.bf16.msra.mxu0 %v16366_v51  ;;  %16383 = vmatpush1.bf16.msra.mxu1 %v16382_v24 }
 0xa92   : > { %15543 = vmatmul.mubr.msk.f32.vlgmr.msra.gmra.mrb[14].mxu0 %vm10831_vm2, %v20287_v3  ;;  %15544 = vmatmul.mubr.msk.f32.vlgmr.msra.gmra.mrb[14].mxu1 %vm10831_vm2, %v20287_v3 }
 0xaf4   : > { %v10972_v28 = vpop.f32.mrb[0].mxu1 }
 0xaf5   : > { %v10901_v33 = vpop.f32.mrb[0].mxu0  ;;  %v10974_v37 = vpop.f32.mrb[1].mxu1 }
 0xaf6   : > { %v10903_v15 = vpop.f32.mrb[1].mxu0  ;;  %v11420_v10 = vcombine.low %v10972_v28, %v10974_v37 }
 0xaf7   : > { %v11419_v48 = vcombine.low %v10901_v33, %v10903_v15  ;;  %v10699_v15 = vld [vmem:[#allocation3] sm:$0xff] }
 0xaf8   : > { %v20399_v11 = vrot.slane %v11420_v10, %v18953_v36 }
 0xaf9   : > { %v20396_v57 = vrot.slane %v11419_v48, %v18953_v36 }
 0xafb   : > { %v11435_v59 = vcombine.low %v20396_v57, %v20399_v11 }
 0xb05   : > { %v11043_v50 = vpop.f32.mrb[2].mxu0  ;;  %v11114_v42 = vpop.f32.mrb[2].mxu1 }
 0xb06   : > { %v11045_v31 = vpop.f32.mrb[3].mxu0  ;;  %v11116_v3 = vpop.f32.mrb[3].mxu1 }
 0xb07   : > { %v11436_v13 = vcombine.low %v11043_v50, %v11045_v31  ;;  %v11437_v27 = vcombine.low %v11114_v42, %v11116_v3  ;;  %v11579_v50 = vcombine.low %v11571_v60, %v11578_v4  ;;  %v20454_v42 = vsub.s32 4, %v18945_v12  ;;  %v10700_v4 = vld [vmem:[#allocation3 + $0x8] sm:$0xff] }
 0xb08   : > { %v20457_v31 = vsub.s32 5, %v18945_v12  ;;  %v11491_v3 = vadd.f32 %v11435_v59, %v10699_v15 }
 0xb09   : > { %v20404_v35 = vrot.slane %v11436_v13, %v18953_v36  ;;  %v20407_v26 = vrot.slane %v11437_v27, %v18953_v36  ;;  %v20463_v27 = vsub.s32 6, %v18945_v12 }
 0xb0b   : > { %v11452_v49 = vcombine.low %v20404_v35, %v20407_v26 }
 0xb0d   : > { %v11492_v15 = vadd.f32 %v11452_v49, %v10700_v4  ;;  %v20507_v49 = vld [vmem:[%s837_s6 + $0x8] sm:$0xff] }
 0xb15   : > { %v11185_v43 = vpop.f32.mrb[4].mxu0  ;;  %v11256_v14 = vpop.f32.mrb[4].mxu1 }
 0xb16   : > { %v11187_v63 = vpop.f32.mrb[5].mxu0  ;;  %v11258_v2 = vpop.f32.mrb[5].mxu1 }
 0xb17   : > { %v11453_v16 = vcombine.low %v11185_v43, %v11187_v63  ;;  %v11454_v17 = vcombine.low %v11256_v14, %v11258_v2  ;;  %v20466_v43 = vsub.s32 7, %v18945_v12  ;;  %v11518_v2 = vrot.slane %v11495_v54, %v20454_v42 }
 0xb19   : > { %v20412_v52 = vrot.slane %v11453_v16, %v18953_v36  ;;  %v20415_v19 = vrot.slane %v11454_v17, %v18953_v36  ;;  %v11522_v17 = vrot.slane %v11495_v54, %v20457_v31  ;;  %v11530_v57 = vrot.slane %v11495_v54, %v20466_v43 }
 0xb1a   : > { %v11803_v34 = vrot.slane %v11768_v62, %v20466_v43 }
 0xb1b   : > { %v11469_v55 = vcombine.low %v20412_v52, %v20415_v19 }
 0xb25   : > { %v11327_v40 = vpop.f32.mrb[6].mxu0  ;;  %v11398_v20 = vpop.f32.mrb[6].mxu1 }
 0xb26   : > { %v11329_v61 = vpop.f32.mrb[7].mxu0  ;;  %v11400_v53 = vpop.f32.mrb[7].mxu1 }
 0xb27   : > { %v11470_v58 = vcombine.low %v11327_v40, %v11329_v61  ;;  %v11471_v25 = vcombine.low %v11398_v20, %v11400_v53  ;;  %v11635_v40 = vadd.f32 %v11579_v50, %v11491_v3  ;;  %v11526_v20 = vrot.slane %v11495_v54, %v20463_v27 }
 0xb28   : > { %v11791_v61 = vrot.slane %v11768_v62, %v20454_v42  ;;  %v11795_v53 = vrot.slane %v11768_v62, %v20457_v31 }
 0xb29   : > { %v20420_v38 = vrot.slane %v11470_v58, %v18953_v36  ;;  %v20423_v18 = vrot.slane %v11471_v25, %v18953_v36  ;;  %v11799_v58 = vrot.slane %v11768_v62, %v20463_v27  ;;  %v11580_v25 = vcombine.low %v11518_v2, %v11522_v17 }
 0xb2a   : > { %v11581_v9 = vcombine.low %v11526_v20, %v11530_v57  ;;  %v11807_v20 = vrot.slane %v20507_v49, %v20426_v45 }
 0xb2b   : > { %v11486_v32 = vcombine.low %v20420_v38, %v20423_v18 }
 0xb35   : > { %v11921_v44 = vpop.f32.mrb[8].mxu0  ;;  %v11992_v56 = vpop.f32.mrb[8].mxu1 }
 0xb36   : > { %v11922_v47 = vadd.f32 %v11921_v44, %v11775_v23  ;;  %v11923_v1 = vpop.f32.mrb[9].mxu0  ;;  %v11993_v39 = vadd.f32 %v11992_v56, %v11783_v41  ;;  %v11994_v24 = vpop.f32.mrb[9].mxu1  ;;  %v11595_v44 = vrot.slane %v11581_v9, %v18953_v36  ;;  %v11819_v9 = vrot.slane %v20507_v49, %v20435_v30 }
 0xb37   : > { %v11924_v51 = vadd.f32 %v11923_v1, %v11779_v46  ;;  %v11995_v28 = vadd.f32 %v11994_v24, %v11787_v8  ;;  %v11588_v8 = vrot.slane %v11580_v25, %v18953_v36  ;;  %v11811_v25 = vrot.slane %v20507_v49, %v20429_v6 }
 0xb38   : > { %v12423_v33 = vadd.f32 1.0, %v11922_v47  ;;  %v12425_v48 = vadd.f32 1.0, %v11993_v39  ;;  %v20486_v39 = vld [vmem:[%s828_s23 + $0x8] sm:$0xff]  ;;  %s21768_s23 = smov (!%p15549_p5), %s21767_s29 }
 0xb39   : > { %v12424_v37 = vadd.f32 1.0, %v11924_v51  ;;  %v12426_v10 = vadd.f32 1.0, %v11995_v28  ;;  %v11596_v28 = vcombine.low %v11588_v8, %v11595_v44  ;;  %v11538_v50 = vrot.slane %v20486_v39, %v20429_v6 }
 0xb3a   : > { %v11542_v3 = vrot.slane %v20486_v39, %v20432_v5  ;;  %v11558_v52 = vrot.slane %v20486_v39, %v20463_v27  ;;  %v11562_v19 = vrot.slane %v20486_v39, %v20466_v43 }
 0xb3b   : > { %v12455_v13 = vcombine.low %v12423_v33, %v12424_v37  ;;  %v12456_v14 = vcombine.low %v12425_v48, %v12426_v10  ;;  %v11534_v10 = vrot.slane %v20486_v39, %v20426_v45 }
 0xb3d   : > { %v12463_v63 = vrot.slane %v12455_v13, %v18953_v36  ;;  %v12470_v16 = vrot.slane %v12456_v14, %v18953_v36  ;;  %v11546_v14 = vrot.slane %v20486_v39, %v20435_v30 }
 0xb3f   : > { %v12471_v11 = vcombine.low %v12463_v63, %v12470_v16  ;;  %v11636_v16 = vadd.f32 %v11596_v28, %v11492_v15  ;;  %v11598_v57 = vcombine.low %v11542_v3, %v11546_v14 }
 0xb41   : > { %v20474_v59 = vmul.f32 %v12471_v11, %v11635_v40  ;;  %v11597_v40 = vcombine.low %v11534_v10, %v11538_v50 }
 0xb43   : > { %v12546_v21 = vrot.slane %v20474_v59, %v18953_v36  ;;  %v12539_v51 = vcombine.high %v20474_v59, %v20474_v59 }
 0xb45   : > { %v12063_v29 = vpop.f32.mrb[10].mxu0  ;;  %v12134_v54 = vpop.f32.mrb[10].mxu1  ;;  %v12554_v62 = vcombine.high %v12546_v21, %v12546_v21  ;;  %v12553_v35 = vrot.slane %v12539_v51, %v18953_v36  ;;  %v12624_v63 = vsel %vm12623_vm3, %v12546_v21, 0.0 }
 0xb46   : > { %v12064_v23 = vadd.f32 %v12063_v29, %v11791_v61  ;;  %v12065_v0 = vpop.f32.mrb[11].mxu0  ;;  %v12135_v7 = vadd.f32 %v12134_v54, %v11799_v58  ;;  %v12136_v46 = vpop.f32.mrb[11].mxu1  ;;  %v11815_v58 = vrot.slane %v20507_v49, %v20432_v5 }
 0xb47   : > { %v12066_v41 = vadd.f32 %v12065_v0, %v11795_v53  ;;  %v12137_v60 = vadd.f32 %v12136_v46, %v11803_v34  ;;  %v12625_v13 = vsel %vm12623_vm3, %v12554_v62, 0.0  ;;  %v12555_v11 = vcombine.high %v12553_v35, %v12553_v35  ;;  %v10701_v62 = vld [vmem:[#allocation3 + $0x10] sm:$0xff] }
 0xb48   : > { %v12427_v47 = vadd.f32 1.0, %v12064_v23  ;;  %v12429_v56 = vadd.f32 1.0, %v12135_v7  ;;  %v12626_v2 = vadd.f32 %v12625_v13, %v12624_v63  ;;  %v12627_v53 = vsel %vm12623_vm3, %v12553_v35, 0.0 }
 0xb49   : > { %v12428_v1 = vadd.f32 1.0, %v12066_v41  ;;  %v12430_v33 = vadd.f32 1.0, %v12137_v60  ;;  %v11605_v23 = vrot.slane %v11597_v40, %v18953_v36  ;;  %v11612_v41 = vrot.slane %v11598_v57, %v18953_v36 }
 0xb4a   : > { %v12628_v29 = vadd.f32 %v12627_v53, %v12626_v2  ;;  %v12629_v46 = vsel %vm12623_vm3, %v12555_v11, 0.0  ;;  %v11493_v10 = vadd.f32 %v11469_v55, %v10701_v62  ;;  %v11550_v63 = vrot.slane %v20486_v39, %v20454_v42 }
 0xb4b   : > { %v12472_v24 = vcombine.low %v12427_v47, %v12428_v1  ;;  %v12473_v37 = vcombine.low %v12429_v56, %v12430_v33  ;;  %v11823_v11 = vrot.slane %v20507_v49, %v20454_v42 }
 0xb4c   : > { %v12630_v51 = vadd.f32 %v12629_v46, %v12628_v29  ;;  %v11615_v29 = vcombine.low %v11558_v52, %v11562_v19 }
 0xb4d   : > { %v12480_v48 = vrot.slane %v12472_v24, %v18953_v36  ;;  %v12487_v26 = vrot.slane %v12473_v37, %v18953_v36 }
 0xb4f   : > { %v12488_v17 = vcombine.low %v12480_v48, %v12487_v26  ;;  %v11613_v48 = vcombine.low %v11605_v23, %v11612_v41 }
 0xb51   : > { %v20512_v61 = vmul.f32 %v12488_v17, %v11636_v16  ;;  %v11554_v16 = vrot.slane %v20486_v39, %v20457_v31  ;;  %v11637_v17 = vadd.f32 %v11613_v48, %v11493_v10 }
 0xb53   : > { %v12563_v34 = vrot.slane %v20512_v61, %v18953_v36  ;;  %v12556_v33 = vcombine.high %v20512_v61, %v20512_v61 }
 0xb55   : > { %v12205_v21 = vpop.f32.mrb[12].mxu0  ;;  %v12276_v0 = vpop.f32.mrb[12].mxu1  ;;  %v12571_v8 = vcombine.high %v12563_v34, %v12563_v34  ;;  %v12631_v56 = vsel %vm12623_vm3, %v12563_v34, 0.0  ;;  %v12570_v14 = vrot.slane %v12556_v33, %v18953_v36  ;;  %v11835_v34 = vrot.slane %v20507_v49, %v20466_v43 }
 0xb56   : > { %v12206_v54 = vadd.f32 %v12205_v21, %v11807_v20  ;;  %v12207_v7 = vpop.f32.mrb[13].mxu0  ;;  %v12277_v44 = vadd.f32 %v12276_v0, %v11815_v58  ;;  %v12278_v47 = vpop.f32.mrb[13].mxu1  ;;  %v12632_v37 = vadd.f32 %v12631_v56, %v12630_v51  ;;  %v11614_v58 = vcombine.low %v11550_v63, %v11554_v16  ;;  %v10702_v51 = vld [vmem:[#allocation3 + $0x18] sm:$0xff] }
 0xb57   : > { %v12208_v60 = vadd.f32 %v12207_v7, %v11811_v25  ;;  %v12279_v4 = vadd.f32 %v12278_v47, %v11819_v9  ;;  %v12633_v50 = vsel %vm12623_vm3, %v12571_v8, 0.0  ;;  %v12572_v40 = vcombine.high %v12570_v14, %v12570_v14 }
 0xb58   : > { %v12431_v1 = vadd.f32 1.0, %v12206_v54  ;;  %v12433_v24 = vadd.f32 1.0, %v12277_v44  ;;  %v12634_v2 = vadd.f32 %v12633_v50, %v12632_v37  ;;  %v12635_v20 = vsel %vm12623_vm3, %v12570_v14, 0.0 }
 0xb59   : > { %v12432_v28 = vadd.f32 1.0, %v12208_v60  ;;  %v12434_v15 = vadd.f32 1.0, %v12279_v4  ;;  %v11831_v25 = vrot.slane %v20507_v49, %v20463_v27  ;;  %v11827_v9 = vrot.slane %v20507_v49, %v20457_v31 }
 0xb5a   : > { %v12636_v53 = vadd.f32 %v12635_v20, %v12634_v2  ;;  %v12637_v23 = vsel %vm12623_vm3, %v12572_v40, 0.0  ;;  %v11622_v8 = vrot.slane %v11614_v58, %v18953_v36  ;;  %v11629_v60 = vrot.slane %v11615_v29, %v18953_v36 }
 0xb5b   : > { %v12489_v13 = vcombine.low %v12431_v1, %v12432_v28  ;;  %v12490_v3 = vcombine.low %v12433_v24, %v12434_v15  ;;  %v11494_v10 = vadd.f32 %v11486_v32, %v10702_v51 }
 0xb5c   : > { %v12638_v1 = vadd.f32 %v12637_v23, %v12636_v53  ;;  %v11630_v50 = vcombine.low %v11622_v8, %v11629_v60  ;;  %v17721_v23 = vmov 269488144  }
 0xb5d   : > { %v12497_v35 = vrot.slane %v12489_v13, %v18953_v36  ;;  %v12504_v26 = vrot.slane %v12490_v3, %v18953_v36 }
 0xb5e   : > { %v11638_v63 = vadd.f32 %v11630_v50, %v11494_v10 }
 0xb5f   : > { %v12505_v55 = vcombine.low %v12497_v35, %v12504_v26 }
 0xb61   : > { %v20545_v57 = vmul.f32 %v12505_v55, %v11637_v17 }
 0xb63   : > { %v12580_v39 = vrot.slane %v20545_v57, %v18953_v36  ;;  %v12573_v49 = vcombine.high %v20545_v57, %v20545_v57 }
 0xb65   : > { %v12347_v21 = vpop.f32.mrb[14].mxu0  ;;  %v12588_v54 = vcombine.high %v12580_v39, %v12580_v39  ;;  %v12639_v0 = vsel %vm12623_vm3, %v12580_v39, 0.0  ;;  %v12418_v41 = vpop.f32.mrb[14].mxu1  ;;  %v12587_v13 = vrot.slane %v12573_v49, %v18953_v36 }
 0xb66   : > { %v12348_v7 = vadd.f32 %v12347_v21, %v11823_v11  ;;  %v12349_v46 = vpop.f32.mrb[15].mxu0  ;;  %v12419_v44 = vadd.f32 %v12418_v41, %v11831_v25  ;;  %v12420_v56 = vpop.f32.mrb[15].mxu1  ;;  %v12640_v28 = vadd.f32 %v12639_v0, %v12638_v1 }
 0xb67   : > { %v12350_v47 = vadd.f32 %v12349_v46, %v11827_v9  ;;  %v12421_v62 = vadd.f32 %v12420_v56, %v11835_v34  ;;  %v12641_v48 = vsel %vm12623_vm3, %v12588_v54, 0.0  ;;  %v12589_v2 = vcombine.high %v12587_v13, %v12587_v13 }
 0xb68   : > { %v12435_v4 = vadd.f32 1.0, %v12348_v7  ;;  %v12437_v24 = vadd.f32 1.0, %v12419_v44  ;;  %v12642_v35 = vadd.f32 %v12641_v48, %v12640_v28  ;;  %v12643_v17 = vsel %vm12623_vm3, %v12587_v13, 0.0 }
 0xb69   : > { %v12436_v33 = vadd.f32 1.0, %v12350_v47  ;;  %v12438_v15 = vadd.f32 1.0, %v12421_v62  ;;  %v12645_v18 = vsel %vm12623_vm3, %v12589_v2, 0.0  ;;  %v12661_v54 = vunpack.c.l.s4 %v17721_v23 }
 0xb6a   : > { %v12644_v52 = vadd.f32 %v12643_v17, %v12642_v35 }
 0xb6b   : > { %v12506_v37 = vcombine.low %v12435_v4, %v12436_v33  ;;  %v12507_v3 = vcombine.low %v12437_v24, %v12438_v15  ;;  %v12662_v0 = vunpack.c.0.s8 %v12661_v54 }
 0xb6c   : > { %v12646_v32 = vadd.f32 %v12645_v18, %v12644_v52 }
 0xb6d   : > { %v12514_v14 = vrot.slane %v12506_v37, %v18953_v36  ;;  %v12521_v26 = vrot.slane %v12507_v3, %v18953_v36  ;;  %v20579_v7 = vsub.s32 %v12662_v0, %v18945_v12 }
 0xb6f   : > { %v12522_v16 = vcombine.low %v12514_v14, %v12521_v26 }
 0xb71   : > { %v12530_v19 = vmul.f32 %v12522_v16, %v11638_v63 }
 0xb73   : > { %v12590_v55 = vcombine.high %v12530_v19, %v12530_v19  ;;  %v12597_v38 = vrot.slane %v12530_v19, %v18953_v36 }
 0xb75   : > { %v12604_v40 = vrot.slane %v12590_v55, %v18953_v36  ;;  %v12605_v20 = vcombine.high %v12597_v38, %v12597_v38  ;;  %v12647_v11 = vsel %vm12623_vm3, %v12597_v38, 0.0 }
 0xb76   : > { %v12648_v58 = vadd.f32 %v12647_v11, %v12646_v32 }
 0xb77   : > { %v12606_v53 = vcombine.high %v12604_v40, %v12604_v40  ;;  %v12649_v25 = vsel %vm12623_vm3, %v12605_v20, 0.0  ;;  %v12651_v29 = vsel %vm12623_vm3, %v12604_v40, 0.0 }
 0xb78   : > { %v12650_v9 = vadd.f32 %v12649_v25, %v12648_v58 }
 0xb79   : > { %v12653_v34 = vsel %vm12623_vm3, %v12606_v53, 0.0 }
 0xb7a   : > { %v12652_v39 = vadd.f32 %v12651_v29, %v12650_v9 }
 0xb7c   : > { %v12654_v21 = vadd.f32 %v12653_v34, %v12652_v39 }
 0xb7e   : > { %12655 = vadd.xlane.f32.xlu0 %v12654_v21 }
 0xc0b   : > { %v12656_v41 = vpop.xlane.xlu0 %12655 }
 0xc0c   : > { %v12658_v46 = vmul.f32 0.00048828125, %v12656_v41 }
 0xc0e   : > { %v12666_v8 = vrot.slane %v12658_v46, %v20579_v7 }
 0xc10   : > { %v20583_v44 = vsub.f32 %v20474_v59, %v12666_v8  ;;  %v20586_v47 = vsub.f32 %v20512_v61, %v12666_v8  ;;  %v20595_v62 = vsub.f32 %v20545_v57, %v12666_v8  ;;  %v20606_v14 = vsub.f32 %v12530_v19, %v12666_v8 }
 0xc12   : > { %v12672_v56 = vmul.f32 %v20583_v44, %v20583_v44  ;;  %v12673_v1 = vmul.f32 %v20586_v47, %v20586_v47  ;;  %v12674_v37 = vmul.f32 %v20595_v62, %v20595_v62  ;;  %v12675_v38 = vmul.f32 %v20606_v14, %v20606_v14 }
 0xc14   : > { %v12680_v60 = vcombine.high %v12672_v56, %v12672_v56  ;;  %v12687_v12 = vrot.slane %v12672_v56, %v18953_v36  ;;  %v12697_v59 = vcombine.high %v12673_v1, %v12673_v1  ;;  %v12704_v61 = vrot.slane %v12673_v1, %v18953_v36 }
 0xc15   : > { %v12714_v63 = vcombine.high %v12674_v37, %v12674_v37  ;;  %v12721_v16 = vrot.slane %v12674_v37, %v18953_v36  ;;  %v12731_v53 = vcombine.high %v12675_v38, %v12675_v38  ;;  %v12738_v25 = vrot.slane %v12675_v38, %v18953_v36 }
 0xc16   : > { %v12694_v49 = vrot.slane %v12680_v60, %v18953_v36  ;;  %v12695_v4 = vcombine.high %v12687_v12, %v12687_v12  ;;  %v12764_v24 = vsel %vm12623_vm3, %v12687_v12, 0.0  ;;  %v12711_v10 = vrot.slane %v12697_v59, %v18953_v36  ;;  %v12531_v59 = vld [vmem:[%s846_s13] sm:$0xff] }
 0xc17   : > { %v12712_v50 = vcombine.high %v12704_v61, %v12704_v61  ;;  %v12771_v3 = vsel %vm12623_vm3, %v12704_v61, 0.0  ;;  %v12728_v18 = vrot.slane %v12714_v63, %v18953_v36  ;;  %v12729_v32 = vcombine.high %v12721_v16, %v12721_v16 }
 0xc18   : > { %v12696_v51 = vcombine.high %v12694_v49, %v12694_v49  ;;  %v12765_v33 = vsel %vm12623_vm3, %v12695_v4, 0.0  ;;  %v12767_v15 = vsel %vm12623_vm3, %v12694_v49, 0.0  ;;  %v12713_v26 = vcombine.high %v12711_v10, %v12711_v10 }
 0xc19   : > { %v12766_v28 = vadd.f32 %v12765_v33, %v12764_v24  ;;  %v12773_v2 = vsel %vm12623_vm3, %v12712_v50, 0.0  ;;  %v12775_v52 = vsel %vm12623_vm3, %v12711_v10, 0.0  ;;  %v12779_v20 = vsel %vm12623_vm3, %v12721_v16, 0.0 }
 0xc1a   : > { %v12769_v57 = vsel %vm12623_vm3, %v12696_v51, 0.0  ;;  %v12777_v19 = vsel %vm12623_vm3, %v12713_v26, 0.0  ;;  %v12730_v58 = vcombine.high %v12728_v18, %v12728_v18  ;;  %v12781_v9 = vsel %vm12623_vm3, %v12729_v32, 0.0  ;;  %v12532_v51 = vld [vmem:[%s846_s13 + $0x8] sm:$0xff] }
 0xc1b   : > { %v12768_v48 = vadd.f32 %v12767_v15, %v12766_v28  ;;  %v12783_v39 = vsel %vm12623_vm3, %v12728_v18, 0.0  ;;  %v12745_v21 = vrot.slane %v12731_v53, %v18953_v36  ;;  %v12746_v23 = vcombine.high %v12738_v25, %v12738_v25  ;;  %v12533_v28 = vld [vmem:[%s855_s7] sm:$0xff] }
 0xc1c   : > { %v12785_v54 = vsel %vm12623_vm3, %v12730_v58, 0.0  ;;  %v12787_v41 = vsel %vm12623_vm3, %v12738_v25, 0.0  ;;  %v12818_v61 = vrot.slane %v12531_v59, %v20426_v45  ;;  %v12822_v24 = vrot.slane %v12531_v59, %v20429_v6 }
 0xc1d   : > { %v12770_v13 = vadd.f32 %v12769_v57, %v12768_v48  ;;  %v12747_v8 = vcombine.high %v12745_v21, %v12745_v21  ;;  %v12789_v56 = vsel %vm12623_vm3, %v12746_v23, 0.0  ;;  %v12791_v60 = vsel %vm12623_vm3, %v12745_v21, 0.0 }
 0xc1e   : > { %v12826_v33 = vrot.slane %v12531_v59, %v20432_v5  ;;  %v12830_v15 = vrot.slane %v12531_v59, %v20435_v30  ;;  %v12834_v48 = vrot.slane %v12531_v59, %v20454_v42  ;;  %v12838_v37 = vrot.slane %v12531_v59, %v20457_v31 }
 0xc1f   : > { %v12772_v35 = vadd.f32 %v12771_v3, %v12770_v13  ;;  %v12793_v49 = vsel %vm12623_vm3, %v12747_v8, 0.0  ;;  %v12842_v10 = vrot.slane %v12531_v59, %v20463_v27  ;;  %v12846_v50 = vrot.slane %v12531_v59, %v20466_v43 }
 0xc20   : > { %v12850_v57 = vrot.slane %v12532_v51, %v20426_v45  ;;  %v12854_v13 = vrot.slane %v12532_v51, %v20429_v6  ;;  %v12858_v3 = vrot.slane %v12532_v51, %v20432_v5  ;;  %v12862_v26 = vrot.slane %v12532_v51, %v20435_v30 }
 0xc21   : > { %v12774_v17 = vadd.f32 %v12773_v2, %v12772_v35  ;;  %v12534_v35 = vld [vmem:[%s855_s7 + $0x8] sm:$0xff]  ;;  %v12866_v63 = vrot.slane %v12532_v51, %v20454_v42  ;;  %v12870_v16 = vrot.slane %v12532_v51, %v20457_v31  ;;  %v12874_v2 = vrot.slane %v12532_v51, %v20463_v27 }
 0xc22   : > { %v12964_v38 = vrot.slane %v12533_v28, %v20429_v6  ;;  %v12968_v32 = vrot.slane %v12533_v28, %v20432_v5  ;;  %v12988_v58 = vrot.slane %v12533_v28, %v20466_v43  ;;  %v12992_v53 = vrot.slane %v12534_v35, %v20426_v45 }
 0xc23   : > { %v12776_v55 = vadd.f32 %v12775_v52, %v12774_v17  ;;  %v12878_v52 = vrot.slane %v12532_v51, %v20466_v43  ;;  %v13012_v21 = vrot.slane %v12534_v35, %v20457_v31  ;;  %v13016_v23 = vrot.slane %v12534_v35, %v20463_v27 }
 0xc24   : > { %v12913_v8 = vcombine.low %v12850_v57, %v12854_v13 }
 0xc25   : > { %v12778_v40 = vadd.f32 %v12777_v19, %v12776_v55  ;;  %v12960_v55 = vrot.slane %v12533_v28, %v20426_v45  ;;  %v12972_v19 = vrot.slane %v12533_v28, %v20435_v30  ;;  %v12897_v45 = vcombine.low %v12842_v10, %v12846_v50 }
 0xc27   : > { %v12780_v11 = vadd.f32 %v12779_v20, %v12778_v40  ;;  %v12976_v40 = vrot.slane %v12533_v28, %v20454_v42  ;;  %v12980_v20 = vrot.slane %v12533_v28, %v20457_v31  ;;  %v12911_v51 = vrot.slane %v12897_v45, %v18953_v36 }
 0xc29   : > { %v12782_v29 = vadd.f32 %v12781_v9, %v12780_v11  ;;  %v12984_v11 = vrot.slane %v12533_v28, %v20463_v27  ;;  %v12996_v9 = vrot.slane %v12534_v35, %v20429_v6  ;;  %v12930_v6 = vcombine.low %v12866_v63, %v12870_v16 }
 0xc2b   : > { %v12784_v34 = vadd.f32 %v12783_v39, %v12782_v29  ;;  %v13000_v29 = vrot.slane %v12534_v35, %v20432_v5  ;;  %v13004_v39 = vrot.slane %v12534_v35, %v20435_v30  ;;  %v13021_v5 = vcombine.low %v12960_v55, %v12964_v38 }
 0xc2c   : > { %v13038_v30 = vcombine.low %v12976_v40, %v12980_v20 }
 0xc2d   : > { %v12786_v0 = vadd.f32 %v12785_v54, %v12784_v34  ;;  %v13008_v34 = vrot.slane %v12534_v35, %v20454_v42  ;;  %v13020_v54 = vrot.slane %v12534_v35, %v20466_v43  ;;  %v13055_v42 = vcombine.low %v12992_v53, %v12996_v9 }
 0xc2f   : > { %v12788_v46 = vadd.f32 %v12787_v41, %v12786_v0  ;;  %v12879_v0 = vcombine.low %v12818_v61, %v12822_v24  ;;  %v12880_v41 = vcombine.low %v12826_v33, %v12830_v15  ;;  %v13072_v31 = vcombine.low %v13008_v34, %v13012_v21 }
 0xc30   : > { %v12921_v61 = vrot.slane %v12913_v8, %v18953_v36  ;;  %v12938_v33 = vrot.slane %v12930_v6, %v18953_v36  ;;  %v13029_v15 = vrot.slane %v13021_v5, %v18953_v36  ;;  %v13063_v50 = vrot.slane %v13055_v42, %v18953_v36  ;;  %v13390_v42 = vld [vmem:[#allocation27] sm:$0xff] (!%p15549_p5) }
 0xc31   : > { %v12790_v1 = vadd.f32 %v12789_v56, %v12788_v46  ;;  %v12896_v46 = vcombine.low %v12834_v48, %v12838_v37  ;;  %v12914_v56 = vcombine.low %v12858_v3, %v12862_v26  ;;  %v12887_v27 = vrot.slane %v12879_v0, %v18953_v36 }
 0xc32   : > { %v12894_v43 = vrot.slane %v12880_v41, %v18953_v36  ;;  %v13046_v37 = vrot.slane %v13038_v30, %v18953_v36  ;;  %v13080_v13 = vrot.slane %v13072_v31, %v18953_v36  ;;  %v13150_v31 = vld [vmem:[%s21767_s29 + $0x80] sm:$0xff] (!%p15549_p5) }
 0xc33   : > { %v12792_v12 = vadd.f32 %v12791_v60, %v12790_v1  ;;  %v12931_v1 = vcombine.low %v12874_v2, %v12878_v52  ;;  %v13022_v60 = vcombine.low %v12968_v32, %v12972_v19  ;;  %v12904_v59 = vrot.slane %v12896_v46, %v18953_v36 }
 0xc34   : > { %v12928_v24 = vrot.slane %v12914_v56, %v18953_v36  ;;  %v12895_v26 = vcombine.low %v12887_v27, %v12894_v43  ;;  %v17722_v27 = vmov (!%p15549_p5), 0.0|0.0  }
 0xc35   : > { %v12794_v4 = vadd.f32 %v12793_v49, %v12792_v12  ;;  %v13039_v12 = vcombine.low %v12984_v11, %v12988_v58  ;;  %v13056_v49 = vcombine.low %v13000_v29, %v13004_v39  ;;  %v12945_v28 = vrot.slane %v12931_v1, %v18953_v36  ;;  %16384 = vmatprep.subr.bf16.mxu0 (!%p15549_p5), %v17722_v27 }
 0xc36   : > { %v13036_v48 = vrot.slane %v13022_v60, %v18953_v36  ;;  %v12912_v63 = vcombine.low %v12904_v59, %v12911_v51  ;;  %v12929_v16 = vcombine.low %v12921_v61, %v12928_v24  ;;  %v13151_v59 = vld [vmem:[%s21768_s23 + $0x88] sm:$0xff] (!%p15549_p5)  ;;  %v13134_v51 = vld [vmem:[%s21768_s23] sm:$0xff] (!%p15549_p5)  ;;  %v17724_v24 = vmov (!%p15549_p5), 0.0  }
 0xc37   : > { %12795 = vadd.xlane.f32.xlu0 %v12794_v4  ;;  %v13073_v4 = vcombine.low %v13016_v23, %v13020_v54  ;;  %v13053_v10 = vrot.slane %v13039_v12, %v18953_v36  ;;  %v13070_v57 = vrot.slane %v13056_v49, %v18953_v36  ;;  %v12946_v2 = vcombine.low %v12938_v33, %v12945_v28  ;;  %v13391_v49 = vld [vmem:[#allocation27 + $0x8] sm:$0xff] (!%p15549_p5) }
 0xc38   : > { %v13037_v52 = vcombine.low %v13029_v15, %v13036_v48  ;;  %v16385_v43 = vpack.c.bf16 (!%p15549_p5), %v13391_v49, %v13390_v42  ;;  %v13135_v61 = vld [vmem:[%s21768_s23 + $0x8] sm:$0xff] (!%p15549_p5)  ;;  %15869 = vmatprep.mubr.msk.f32.mxu0 (!%p15549_p5), %vm17723_vm4, %v17724_v24  ;;  %v16396_v33 = vpack.c.bf16 (!%p15549_p5), %v13151_v59, %v13150_v31  ;;  %v13392_v15 = vld [vmem:[#allocation27 + $0x10] sm:$0xff] (!%p15549_p5)  ;;  %v13393_v48 = vld [vmem:[#allocation27 + $0x18] sm:$0xff] (!%p15549_p5) }
 0xc39   : > { %v13087_v3 = vrot.slane %v13073_v4, %v18953_v36  ;;  %v13054_v55 = vcombine.low %v13046_v37, %v13053_v10  ;;  %v13071_v38 = vcombine.low %v13063_v50, %v13070_v57  ;;  %v16398_v28 = vpack.c.bf16 (!%p15549_p5), %v13135_v61, %v13134_v51  ;;  %v13152_v37 = vld [vmem:[%s21768_s23 + $0x90] sm:$0xff] (!%p15549_p5)  ;;  %v13153_v57 = vld [vmem:[%s21768_s23 + $0x98] sm:$0xff] (!%p15549_p5) }
 0xc3a   : > { %16386 = vmatpush3.bf16.msra.mxu0 (!%p15549_p5), %v16385_v43  ;;  %v16388_v50 = vpack.c.bf16 (!%p15549_p5), %v13393_v48, %v13392_v15  ;;  %16397 = vmatprep.subr.bf16.mxu1 (!%p15549_p5), %v16396_v33  ;;  %v13168_v42 = vld [vmem:[%s21768_s23 + $0x110] sm:$0xff] (!%p15549_p5)  ;;  %v13169_v49 = vld [vmem:[%s21768_s23 + $0x118] sm:$0xff] (!%p15549_p5)  ;;  %v13187_v43 = vld [vmem:[%s21768_s23 + $0x1a8] sm:$0xff] (!%p15549_p5) }
 0xc3b   : > { %16387 = vmatprep.subr.bf16.mxu0 (!%p15549_p5), %v17722_v27  ;;  %16399 = vmatpush3.bf16.msra.mxu1 (!%p15549_p5), %v16398_v28  ;;  %v13144_v51 = vld [vmem:[%s21768_s23 + $0x50] sm:$0xff] (!%p15549_p5)  ;;  %v13145_v61 = vld [vmem:[%s21768_s23 + $0x58] sm:$0xff] (!%p15549_p5)  ;;  %v16434_v24 = vpack.c.bf16 (!%p15549_p5), %v13169_v49, %v13168_v42  ;;  %v13162_v33 = vld [vmem:[%s21768_s23 + $0xe0] sm:$0xff] (!%p15549_p5) }
 0xc3c   : > { %v13170_v15 = vld [vmem:[%s21768_s23 + $0x120] sm:$0xff] (!%p15549_p5)  ;;  %v13171_v48 = vld [vmem:[%s21768_s23 + $0x128] sm:$0xff] (!%p15549_p5) }
 0xc3d   : > { %v13218_v49 = vld [vmem:[%s21768_s23 + $0x2a0] sm:$0xff] (!%p15549_p5) }
 0xc3e   : > { %16389 = vmatpush3.bf16.msra.mxu0 (!%p15549_p5), %v16388_v50  ;;  %v13189_v50 = vld [vmem:[%s21768_s23 + $0x1b8] sm:$0xff] (!%p15549_p5) }
 0xc3f   : > { %16390 = vmatprep.subr.bf16.mxu0 (!%p15549_p5), %v17722_v27 }
 0xcc4   : > { %v12796_v17 = vpop.xlane.xlu0 %12795 }
 0xcc5   : > { %v12797_v18 = vmul.f32 0.00048828125, %v12796_v17 }
 0xcc7   : > { %v12798_v25 = vadd.f32 1e-05, %v12797_v18  ;;  %v13088_v18 = vcombine.low %v13080_v13, %v13087_v3  ;;  %v13136_v13 = vld [vmem:[%s21768_s23 + $0x10] sm:$0xff] (!%p15549_p5)  ;;  %v13137_v3 = vld [vmem:[%s21768_s23 + $0x18] sm:$0xff] (!%p15549_p5) }
 0xcc9   : > { %17053 = vrsqrt.f32 %v12798_v25 }
 0xcd3   : > { %v17054_v35 = vpop.eup %17053 }
 0xcd4   : > { %v12807_v17 = vrot.slane %v17054_v35, %v20579_v7  ;;  %v16400_v35 = vpack.c.bf16 (!%p15549_p5), %v13153_v57, %v13152_v37  ;;  %v16418_v37 = vpack.c.bf16 (!%p15549_p5), %v13145_v61, %v13144_v51  ;;  %v13196_v61 = vld [vmem:[%s21768_s23 + $0x1f0] sm:$0xff] (!%p15549_p5) }
 0xcd6   : > { %v12809_v32 = vmul.f32 %v12807_v17, %v20583_v44  ;;  %v12810_v19 = vmul.f32 %v12807_v17, %v20586_v47  ;;  %v12811_v40 = vmul.f32 %v12807_v17, %v20595_v62  ;;  %v12812_v20 = vmul.f32 %v12807_v17, %v20606_v14  ;;  %v13155_v17 = vld [vmem:[%s21768_s23 + $0xa8] sm:$0xff] (!%p15549_p5)  ;;  %16401 = vmatprep.subr.bf16.mxu1 (!%p15549_p5), %v16400_v35 }
 0xcd7   : > { %v16438_v35 = vpack.c.bf16 (!%p15549_p5), %v13171_v48, %v13170_v15  ;;  %v13220_v15 = vld [vmem:[%s21768_s23 + $0x2b0] sm:$0xff] (!%p15549_p5)  ;;  %v13221_v48 = vld [vmem:[%s21768_s23 + $0x2b8] sm:$0xff] (!%p15549_p5) }
 0xcd8   : > { %v12951_v11 = vmul.f32 %v12895_v26, %v12809_v32  ;;  %v12952_v58 = vmul.f32 %v12912_v63, %v12810_v19  ;;  %v12953_v53 = vmul.f32 %v12929_v16, %v12811_v40  ;;  %v12954_v25 = vmul.f32 %v12946_v2, %v12812_v20  ;;  %v13394_v26 = vld [vmem:[#allocation27 + $0x20] sm:$0xff] (!%p15549_p5)  ;;  %v13395_v63 = vld [vmem:[#allocation27 + $0x28] sm:$0xff] (!%p15549_p5)  ;;  %v13157_v19 = vld [vmem:[%s21768_s23 + $0xb8] sm:$0xff] (!%p15549_p5) }
 0xcd9   : > { %v13154_v16 = vld [vmem:[%s21768_s23 + $0xa0] sm:$0xff] (!%p15549_p5)  ;;  %v16402_v2 = vpack.c.bf16 (!%p15549_p5), %v13137_v3, %v13136_v13  ;;  %v13156_v32 = vld [vmem:[%s21768_s23 + $0xb0] sm:$0xff] (!%p15549_p5)  ;;  %v13147_v3 = vld [vmem:[%s21768_s23 + $0x68] sm:$0xff] (!%p15549_p5) }
 0xcda   : > { %v13093_v9 = vadd.f32 %v13037_v52, %v12951_v11  ;;  %v13094_v29 = vadd.f32 %v13054_v55, %v12952_v58  ;;  %v13095_v39 = vadd.f32 %v13071_v38, %v12953_v53  ;;  %v13096_v7 = vadd.f32 %v13088_v18, %v12954_v25  ;;  %v13138_v55 = vld [vmem:[%s21768_s23 + $0x20] sm:$0xff] (!%p15549_p5)  ;;  %v13139_v38 = vld [vmem:[%s21768_s23 + $0x28] sm:$0xff] (!%p15549_p5)  ;;  %v13396_v20 = vld [vmem:[#allocation27 + $0x30] sm:$0xff] (!%p15549_p5) }
 0xcdb   : > { %v16404_v52 = vpack.c.bf16 (!%p15549_p5), %v13155_v17, %v13154_v16  ;;  %v16391_v18 = vpack.c.bf16 (!%p15549_p5), %v13395_v63, %v13394_v26  ;;  %v13397_v11 = vld [vmem:[#allocation27 + $0x38] sm:$0xff] (!%p15549_p5)  ;;  %16403 = vmatpush3.bf16.msra.mxu1 (!%p15549_p5), %v16402_v2  ;;  %v16406_v58 = vpack.c.bf16 (!%p15549_p5), %v13139_v38, %v13138_v55  ;;  %v13183_v25 = vld [vmem:[%s21768_s23 + $0x188] sm:$0xff] (!%p15549_p5)  ;;  %v13164_v26 = vld [vmem:[%s21768_s23 + $0xf0] sm:$0xff] (!%p15549_p5) }
 0xcdc   : > { %v15545_v34 = vmul.f32 -1.442695, %v13093_v9  ;;  %v15546_v21 = vmul.f32 -1.442695, %v13094_v29  ;;  %v15547_v23 = vmul.f32 -1.442695, %v13095_v39 }
 0xcdd   : > { %v15548_v54 = vmul.f32 -1.442695, %v13096_v7  ;;  %v13182_v53 = vld [vmem:[%s21768_s23 + $0x180] sm:$0xff] (!%p15549_p5)  ;;  %16405 = vmatprep.subr.bf16.mxu1 (!%p15549_p5), %v16404_v52  ;;  %16392 = vmatpush3.bf16.msra.mxu0 (!%p15549_p5), %v16391_v18  ;;  %v13165_v63 = vld [vmem:[%s21768_s23 + $0xf8] sm:$0xff] (!%p15549_p5)  ;;  %v13172_v2 = vld [vmem:[%s21768_s23 + $0x130] sm:$0xff] (!%p15549_p5) }
 0xcde   : > { %17055 = vpow2.f32 %v15545_v34  ;;  %v13158_v34 = vld [vmem:[%s21768_s23 + $0xc0] sm:$0xff] (!%p15549_p5)  ;;  %16393 = vmatprep.subr.bf16.mxu0 (!%p15549_p5), %v17722_v27  ;;  %v13173_v17 = vld [vmem:[%s21768_s23 + $0x138] sm:$0xff] (!%p15549_p5)  ;;  %v13191_v38 = vld [vmem:[%s21768_s23 + $0x1c8] sm:$0xff] (!%p15549_p5)  ;;  %v16424_v18 = vpack.c.bf16 (!%p15549_p5), %v13165_v63, %v13164_v26 }
 0xcdf   : > { %17057 = vpow2.f32 %v15546_v21  ;;  %v13159_v21 = vld [vmem:[%s21768_s23 + $0xc8] sm:$0xff] (!%p15549_p5)  ;;  %16407 = vmatpush3.bf16.msra.mxu1 (!%p15549_p5), %v16406_v58  ;;  %v13186_v27 = vld [vmem:[%s21768_s23 + $0x1a0] sm:$0xff] (!%p15549_p5)  ;;  %v13204_v26 = vld [vmem:[%s21768_s23 + $0x230] sm:$0xff] (!%p15549_p5) }
 0xce0   : > { %17059 = vpow2.f32 %v15547_v23  ;;  %v16436_v28 = vpack.c.bf16 (!%p15549_p5), %v13187_v43, %v13186_v27  ;;  %v13146_v13 = vld [vmem:[%s21768_s23 + $0x60] sm:$0xff] (!%p15549_p5)  ;;  %v13205_v63 = vld [vmem:[%s21768_s23 + $0x238] sm:$0xff] (!%p15549_p5) }
 0xce1   : > { %17061 = vpow2.f32 %v15548_v54  ;;  %v16428_v54 = vpack.c.bf16 (!%p15549_p5), %v13183_v25, %v13182_v53  ;;  %v16422_v52 = vpack.c.bf16 (!%p15549_p5), %v13147_v3, %v13146_v13  ;;  %v13190_v55 = vld [vmem:[%s21768_s23 + $0x1c0] sm:$0xff] (!%p15549_p5)  ;;  %v13175_v25 = vld [vmem:[%s21768_s23 + $0x148] sm:$0xff] (!%p15549_p5) }
 0xce2   : > { %v16444_v58 = vpack.c.bf16 (!%p15549_p5), %v13191_v38, %v13190_v55  ;;  %v13174_v53 = vld [vmem:[%s21768_s23 + $0x140] sm:$0xff] (!%p15549_p5) }
 0xce3   : > { %v13178_v43 = vld [vmem:[%s21768_s23 + $0x160] sm:$0xff] (!%p15549_p5) }
 0xce4   : > { %v13246_v3 = vld [vmem:[%s21768_s23 + $0x380] sm:$0xff] (!%p15549_p5) }
 0xce5   : > { %v13230_v38 = vld [vmem:[%s21768_s23 + $0x300] sm:$0xff] (!%p15549_p5) }
 0xce8   : > { %v17056_v44 = vpop.eup %17055 }
 0xce9   : > { %v17058_v47 = vpop.eup %17057  ;;  %v13109_v62 = vadd.f32 1.0, %v17056_v44  ;;  %v13166_v44 = vld [vmem:[%s21768_s23 + $0x100] sm:$0xff] (!%p15549_p5) }
 0xcea   : > { %v17060_v14 = vpop.eup %17059  ;;  %v13110_v0 = vadd.f32 1.0, %v17058_v47  ;;  %v13167_v47 = vld [vmem:[%s21768_s23 + $0x108] sm:$0xff] (!%p15549_p5) }
 0xceb   : > { %v17062_v41 = vpop.eup %17061  ;;  %v13111_v46 = vadd.f32 1.0, %v17060_v14  ;;  %17063 = vrcp.f32 %v13109_v62  ;;  %v13184_v14 = vld [vmem:[%s21768_s23 + $0x190] sm:$0xff] (!%p15549_p5) }
 0xcec   : > { %v13112_v45 = vadd.f32 1.0, %v17062_v41  ;;  %17065 = vrcp.f32 %v13110_v0  ;;  %v13185_v0 = vld [vmem:[%s21768_s23 + $0x198] sm:$0xff] (!%p15549_p5)  ;;  %v16412_v41 = vpack.c.bf16 (!%p15549_p5), %v13159_v21, %v13158_v34  ;;  %v13198_v21 = vld [vmem:[%s21768_s23 + $0x200] sm:$0xff] (!%p15549_p5) }
 0xced   : > { %17067 = vrcp.f32 %v13111_v46  ;;  %v13142_v46 = vld [vmem:[%s21768_s23 + $0x40] sm:$0xff] (!%p15549_p5) }
 0xcee   : > { %17069 = vrcp.f32 %v13112_v45  ;;  %v13143_v45 = vld [vmem:[%s21768_s23 + $0x48] sm:$0xff] (!%p15549_p5) }
 0xcef   : > { %v16414_v31 = vpack.c.bf16 (!%p15549_p5), %v13143_v45, %v13142_v46  ;;  %v13194_v45 = vld [vmem:[%s21768_s23 + $0x1e0] sm:$0xff] (!%p15549_p5) }
 0xcf5   : > { %v17064_v8 = vpop.eup %17063  ;;  %13133 = sbr.rel (%p15549_p5) target bundleno = 3674 (0xe5a), region = 172 }
 0xcf6   : > { %v17066_v56 = vpop.eup %17065  ;;  %v20686_v6 = vmul.f32 %v17064_v8, %v13093_v9  ;;  %v16408_v9 = vpack.c.bf16 (!%p15549_p5), %v13157_v19, %v13156_v32  ;;  %v16430_v8 = vpack.c.bf16 (!%p15549_p5), %v13167_v47, %v13166_v44  ;;  %v13148_v32 = vld [vmem:[%s21768_s23 + $0x70] sm:$0xff] (!%p15549_p5)  ;;  %v13149_v19 = vld [vmem:[%s21768_s23 + $0x78] sm:$0xff] (!%p15549_p5)  ;;  %v16446_v44 = vpack.c.bf16 (!%p15549_p5), %v13175_v25, %v13174_v53 }
 0xcf7   : > { %v17068_v1 = vpop.eup %17067  ;;  %v20688_v5 = vmul.f32 %v17066_v56, %v13094_v29  ;;  %v13140_v29 = vld [vmem:[%s21768_s23 + $0x30] sm:$0xff] (!%p15549_p5) }
 0xcf8   : > { %v17070_v60 = vpop.eup %17069  ;;  %v20690_v30 = vmul.f32 %v17068_v1, %v13095_v39  ;;  %13125 = vst [vmem:[#allocation2] sm:$0xff] %v20686_v6  ;;  %v20704_v4 = vrot.slane (!%p15549_p5), %v20686_v6, %v18953_v36  ;;  %v13472_v40 = vcombine.high (!%p15549_p5), %v20686_v6, %v20686_v6  ;;  %v13141_v39 = vld [vmem:[%s21768_s23 + $0x38] sm:$0xff] (!%p15549_p5)  ;;  %16409 = vmatprep.subr.bf16.mxu1 (!%p15549_p5), %v16408_v9  ;;  %v13160_v56 = vld [vmem:[%s21768_s23 + $0xd0] sm:$0xff] (!%p15549_p5) }
 0xcf9   : > { %v20693_v12 = vmul.f32 %v17070_v60, %v13096_v7  ;;  %13126 = vst [vmem:[#allocation2 + $0x8] sm:$0xff] %v20688_v5  ;;  %v16394_v7 = vpack.c.bf16 (!%p15549_p5), %v13397_v11, %v13396_v20  ;;  %v16410_v62 = vpack.c.bf16 (!%p15549_p5), %v13141_v39, %v13140_v29  ;;  %v13161_v6 = vld [vmem:[%s21768_s23 + $0xd8] sm:$0xff] (!%p15549_p5)  ;;  %v16432_v60 = vpack.c.bf16 (!%p15549_p5), %v13185_v0, %v13184_v14  ;;  %v13214_v20 = vld [vmem:[%s21768_s23 + $0x280] sm:$0xff] (!%p15549_p5)  ;;  %v13215_v11 = vld [vmem:[%s21768_s23 + $0x288] sm:$0xff] (!%p15549_p5) }
 0xcfa   : > { %13128 = vst [vmem:[#allocation2 + $0x10] sm:$0xff] %v20690_v30  ;;  %v13487_v10 = vcombine.high (!%p15549_p5), %v20704_v4, %v20704_v4  ;;  %v20768_v23 = vrot.slane (!%p15549_p5), %v13472_v40, %v18953_v36  ;;  %v16416_v59 = vpack.c.bf16 (!%p15549_p5), %v13161_v6, %v13160_v56  ;;  %v16442_v40 = vpack.c.bf16 (!%p15549_p5), %v13173_v17, %v13172_v2  ;;  %v13192_v29 = vld [vmem:[%s21768_s23 + $0x1d0] sm:$0xff] (!%p15549_p5)  ;;  %v13193_v39 = vld [vmem:[%s21768_s23 + $0x1d8] sm:$0xff] (!%p15549_p5)  ;;  %v13222_v2 = vld [vmem:[%s21768_s23 + $0x2c0] sm:$0xff] (!%p15549_p5) }
 0xcfb   : > { %13129 = vst [vmem:[#allocation2 + $0x18] sm:$0xff] %v20693_v12  ;;  %16395 = vmatpush3.bf16.msra.mxu0 (!%p15549_p5), %v16394_v7  ;;  %16411 = vmatpush3.bf16.msra.mxu1 (!%p15549_p5), %v16410_v62  ;;  %v16426_v9 = vpack.c.bf16 (!%p15549_p5), %v13149_v19, %v13148_v32  ;;  %v20884_v7 = vrot.slane (!%p15549_p5), %v20688_v5, %v18953_v36  ;;  %v13216_v47 = vld [vmem:[%s21768_s23 + $0x290] sm:$0xff] (!%p15549_p5)  ;;  %v13217_v62 = vld [vmem:[%s21768_s23 + $0x298] sm:$0xff] (!%p15549_p5)  ;;  %v13223_v17 = vld [vmem:[%s21768_s23 + $0x2c8] sm:$0xff] (!%p15549_p5) }
 0xcfc   : > { %13620 = vmatprep.mubr.f32.mxu1 %v13487_v10  ;;  %v13488_v1 = vcombine.high %v20768_v23, %v20768_v23  ;;  %16429 = vmatprep.subr.bf16.mxu0 %v16428_v54  ;;  %v13188_v10 = vld [vmem:[%s21768_s23 + $0x1b0] sm:$0xff]  ;;  %v16460_v34 = vpack.c.bf16 %v13215_v11, %v13214_v20  ;;  %v13199_v54 = vld [vmem:[%s21768_s23 + $0x208] sm:$0xff]  ;;  %v16448_v14 = vpack.c.bf16 %v13193_v39, %v13192_v29  ;;  %v13206_v11 = vld [vmem:[%s21768_s23 + $0x240] sm:$0xff] }
 0xcfd   : > { %16413 = vmatprep.subr.bf16.mxu1 %v16412_v41  ;;  %v16440_v16 = vpack.c.bf16 %v13189_v50, %v13188_v10  ;;  %v13176_v0 = vld [vmem:[%s21768_s23 + $0x150] sm:$0xff]  ;;  %v13177_v41 = vld [vmem:[%s21768_s23 + $0x158] sm:$0xff]  ;;  %v16462_v46 = vpack.c.bf16 %v13199_v54, %v13198_v21  ;;  %v13504_v56 = vcombine.high %v20884_v7, %v20884_v7  ;;  %v16464_v6 = vpack.c.bf16 %v13217_v62, %v13216_v47  ;;  %v13251_v47 = vld [vmem:[%s21768_s23 + $0x3a8] sm:$0xff] }
 0xcfe   : > { %15870 = vmatmul.mubr.msk.f32.vlgmr.msra.gmra.mrb[0].mxu0 %vm10831_vm2, %v20130_v22  ;;  %v13163_v22 = vld [vmem:[%s21768_s23 + $0xe8] sm:$0xff]  ;;  %v16450_v42 = vpack.c.bf16 %v13177_v41, %v13176_v0  ;;  %v13180_v50 = vld [vmem:[%s21768_s23 + $0x170] sm:$0xff]  ;;  %v16474_v32 = vpack.c.bf16 %v13205_v63, %v13204_v26  ;;  %v16476_v20 = vpack.c.bf16 %v13223_v17, %v13222_v2  ;;  %v13233_v21 = vld [vmem:[%s21768_s23 + $0x318] sm:$0xff]  ;;  %v21091_v63 = vrot.slane %v20690_v30, %v18953_v36 }
 0xcff   : > { %16431 = vmatpush3.bf16.msra.mxu0 %v16430_v8  ;;  %13690 = vmatprep.mubr.f32.mxu0 %v13488_v1  ;;  %v16420_v57 = vpack.c.bf16 %v13163_v22, %v13162_v33  ;;  %v13195_v8 = vld [vmem:[%s21768_s23 + $0x1e8] sm:$0xff]  ;;  %v13200_v1 = vld [vmem:[%s21768_s23 + $0x210] sm:$0xff]  ;;  %v13202_v33 = vld [vmem:[%s21768_s23 + $0x220] sm:$0xff] }
 0xd00   : > { %16433 = vmatprep.subr.bf16.mxu0 %v16432_v60  ;;  %16415 = vmatpush3.bf16.msra.mxu1 %v16414_v31  ;;  %v13201_v60 = vld [vmem:[%s21768_s23 + $0x218] sm:$0xff]  ;;  %v13219_v31 = vld [vmem:[%s21768_s23 + $0x2a8] sm:$0xff]  ;;  %v16452_v27 = vpack.c.bf16 %v13195_v8, %v13194_v45  ;;  %v13248_v19 = vld [vmem:[%s21768_s23 + $0x390] sm:$0xff] }
 0xd01   : > { %16417 = vmatprep.subr.bf16.mxu1 %v16416_v59  ;;  %v13179_v59 = vld [vmem:[%s21768_s23 + $0x168] sm:$0xff]  ;;  %v16466_v51 = vpack.c.bf16 %v13201_v60, %v13200_v1  ;;  %v13224_v25 = vld [vmem:[%s21768_s23 + $0x2d0] sm:$0xff]  ;;  %v13209_v0 = vld [vmem:[%s21768_s23 + $0x258] sm:$0xff] }
 0xd02   : > { %v13203_v22 = vld [vmem:[%s21768_s23 + $0x228] sm:$0xff]  ;;  %v13234_v8 = vld [vmem:[%s21768_s23 + $0x320] sm:$0xff]  ;;  %v13252_v1 = vld [vmem:[%s21768_s23 + $0x3b0] sm:$0xff] }
 0xd03   : > { %16435 = vmatpush3.bf16.msra.mxu0 %v16434_v24  ;;  %v16468_v24 = vpack.c.bf16 %v13219_v31, %v13218_v49  ;;  %v16470_v13 = vpack.c.bf16 %v13203_v22, %v13202_v33  ;;  %v13253_v60 = vld [vmem:[%s21768_s23 + $0x3b8] sm:$0xff]  ;;  %v13210_v49 = vld [vmem:[%s21768_s23 + $0x260] sm:$0xff]  ;;  %v13211_v31 = vld [vmem:[%s21768_s23 + $0x268] sm:$0xff] }
 0xd04   : > { %16437 = vmatprep.subr.bf16.mxu0 %v16436_v28  ;;  %16419 = vmatpush3.bf16.msra.mxu1 %v16418_v37  ;;  %v16454_v28 = vpack.c.bf16 %v13179_v59, %v13178_v43  ;;  %v13489_v37 = vcombine.high %v20688_v5, %v20688_v5  ;;  %v13247_v5 = vld [vmem:[%s21768_s23 + $0x388] sm:$0xff]  ;;  %v13228_v43 = vld [vmem:[%s21768_s23 + $0x2f0] sm:$0xff]  ;;  %v13229_v59 = vld [vmem:[%s21768_s23 + $0x2f8] sm:$0xff] }
 0xd05   : > { %16421 = vmatprep.subr.bf16.mxu1 %v16420_v57  ;;  %v13181_v57 = vld [vmem:[%s21768_s23 + $0x178] sm:$0xff]  ;;  %v16492_v55 = vpack.c.bf16 %v13247_v5, %v13246_v3  ;;  %v13254_v33 = vld [vmem:[%s21768_s23 + $0x3c0] sm:$0xff]  ;;  %v13255_v22 = vld [vmem:[%s21768_s23 + $0x3c8] sm:$0xff] }
 0xd06   : > { %v13239_v3 = vld [vmem:[%s21768_s23 + $0x348] sm:$0xff]  ;;  %v13257_v26 = vld [vmem:[%s21768_s23 + $0x3d8] sm:$0xff]  ;;  %v13262_v2 = vld [vmem:[%s21768_s23 + $0x400] sm:$0xff] }
 0xd07   : > { %16439 = vmatpush3.bf16.msra.mxu0 %v16438_v35  ;;  %v16472_v35 = vpack.c.bf16 %v13221_v48, %v13220_v15  ;;  %v13212_v15 = vld [vmem:[%s21768_s23 + $0x270] sm:$0xff]  ;;  %v13213_v48 = vld [vmem:[%s21768_s23 + $0x278] sm:$0xff]  ;;  %v13263_v17 = vld [vmem:[%s21768_s23 + $0x408] sm:$0xff] }
 0xd08   : > { %16441 = vmatprep.subr.bf16.mxu0 %v16440_v16  ;;  %16423 = vmatpush3.bf16.msra.mxu1 %v16422_v52  ;;  %v16458_v16 = vpack.c.bf16 %v13181_v57, %v13180_v50  ;;  %v20976_v52 = vrot.slane %v13489_v37, %v18953_v36  ;;  %v13279_v50 = vld [vmem:[%s21768_s23 + $0x488] sm:$0xff]  ;;  %v16508_v57 = vpack.c.bf16 %v13255_v22, %v13254_v33  ;;  %v13294_v33 = vld [vmem:[%s21768_s23 + $0x500] sm:$0xff] }
 0xd09   : > { %16425 = vmatprep.subr.bf16.mxu1 %v16424_v18  ;;  %v13231_v18 = vld [vmem:[%s21768_s23 + $0x308] sm:$0xff]  ;;  %v16490_v5 = vpack.c.bf16 %v13213_v48, %v13212_v15  ;;  %v13312_v15 = vld [vmem:[%s21768_s23 + $0x590] sm:$0xff]  ;;  %v13313_v48 = vld [vmem:[%s21768_s23 + $0x598] sm:$0xff] }
 0xd0a   : > { %v16494_v53 = vpack.c.bf16 %v13231_v18, %v13230_v38  ;;  %v13505_v29 = vcombine.high %v20976_v52, %v20976_v52  ;;  %v13280_v38 = vld [vmem:[%s21768_s23 + $0x490] sm:$0xff]  ;;  %v13281_v18 = vld [vmem:[%s21768_s23 + $0x498] sm:$0xff]  ;;  %v13295_v22 = vld [vmem:[%s21768_s23 + $0x508] sm:$0xff] }
 0xd0b   : > { %16443 = vmatpush3.bf16.msra.mxu0 %v16442_v40  ;;  %v13249_v40 = vld [vmem:[%s21768_s23 + $0x398] sm:$0xff] }
 0xd0c   : > { %16445 = vmatprep.subr.bf16.mxu0 %v16444_v58  ;;  %16427 = vmatpush3.bf16.msra.mxu1 %v16426_v9  ;;  %v13207_v58 = vld [vmem:[%s21768_s23 + $0x248] sm:$0xff]  ;;  %v13225_v9 = vld [vmem:[%s21768_s23 + $0x2d8] sm:$0xff]  ;;  %v16496_v39 = vpack.c.bf16 %v13249_v40, %v13248_v19  ;;  %v13240_v19 = vld [vmem:[%s21768_s23 + $0x350] sm:$0xff] }
 0xd0d   : > { %16461 = vmatprep.subr.bf16.mxu1 %v16460_v34  ;;  %v13232_v34 = vld [vmem:[%s21768_s23 + $0x310] sm:$0xff]  ;;  %v16478_v54 = vpack.c.bf16 %v13207_v58, %v13206_v11  ;;  %v16480_v62 = vpack.c.bf16 %v13225_v9, %v13224_v25  ;;  %v13241_v40 = vld [vmem:[%s21768_s23 + $0x358] sm:$0xff]  ;;  %v13258_v11 = vld [vmem:[%s21768_s23 + $0x3e0] sm:$0xff]  ;;  %v16528_v25 = vpack.c.bf16 %v13281_v18, %v13280_v38 }
 0xd0e   : > { %v16498_v41 = vpack.c.bf16 %v13233_v21, %v13232_v34  ;;  %v13259_v58 = vld [vmem:[%s21768_s23 + $0x3e8] sm:$0xff]  ;;  %v13264_v9 = vld [vmem:[%s21768_s23 + $0x410] sm:$0xff]  ;;  %v13282_v34 = vld [vmem:[%s21768_s23 + $0x4a0] sm:$0xff] }
 0xd0f   : > { %16447 = vmatpush3.bf16.msra.mxu0 %v16446_v44  ;;  %13621 = vmatmul.mubr.f32.vlgmr.msra.gmra.mrb[0].mxu1 %v20704_v4  ;;  %v13197_v4 = vld [vmem:[%s21768_s23 + $0x1f8] sm:$0xff]  ;;  %v13250_v44 = vld [vmem:[%s21768_s23 + $0x3a0] sm:$0xff]  ;;  %v13283_v21 = vld [vmem:[%s21768_s23 + $0x4a8] sm:$0xff] }
 0xd10   : > { %16449 = vmatprep.subr.bf16.mxu0 %v16448_v14  ;;  %16463 = vmatpush3.bf16.msra.mxu1 %v16462_v46  ;;  %v16456_v10 = vpack.c.bf16 %v13197_v4, %v13196_v61  ;;  %v13208_v14 = vld [vmem:[%s21768_s23 + $0x250] sm:$0xff]  ;;  %v13226_v46 = vld [vmem:[%s21768_s23 + $0x2e0] sm:$0xff]  ;;  %v16500_v45 = vpack.c.bf16 %v13251_v47, %v13250_v44  ;;  %v13237_v4 = vld [vmem:[%s21768_s23 + $0x338] sm:$0xff] }
 0xd11   : > { %13760 = vmatprep.mubr.f32.mxu1 %v13504_v56  ;;  %16465 = vmatprep.subr.bf16.mxu1 %v16464_v6  ;;  %v13235_v56 = vld [vmem:[%s21768_s23 + $0x328] sm:$0xff]  ;;  %v16482_v6 = vpack.c.bf16 %v13209_v0, %v13208_v14  ;;  %v13236_v61 = vld [vmem:[%s21768_s23 + $0x330] sm:$0xff]  ;;  %v13242_v44 = vld [vmem:[%s21768_s23 + $0x360] sm:$0xff]  ;;  %v16532_v0 = vpack.c.bf16 %v13283_v21, %v13282_v34 }
 0xd12   : > { %v16506_v37 = vpack.c.bf16 %v13237_v4, %v13236_v61  ;;  %v13243_v47 = vld [vmem:[%s21768_s23 + $0x368] sm:$0xff]  ;;  %v13260_v14 = vld [vmem:[%s21768_s23 + $0x3f0] sm:$0xff] }
 0xd13   : > { %16451 = vmatpush3.bf16.msra.mxu0 %v16450_v42  ;;  %v13287_v61 = vld [vmem:[%s21768_s23 + $0x4c8] sm:$0xff]  ;;  %v13272_v18 = vld [vmem:[%s21768_s23 + $0x450] sm:$0xff] }
 0xd14   : > { %16453 = vmatprep.subr.bf16.mxu0 %v16452_v27  ;;  %16467 = vmatpush3.bf16.msra.mxu1 %v16466_v51  ;;  %v16502_v27 = vpack.c.bf16 %v13235_v56, %v13234_v8  ;;  %v16504_v51 = vpack.c.bf16 %v13253_v60, %v13252_v1  ;;  %v13285_v8 = vld [vmem:[%s21768_s23 + $0x4b8] sm:$0xff]  ;;  %v13506_v56 = vcombine.high %v20690_v30, %v20690_v30  ;;  %v13244_v1 = vld [vmem:[%s21768_s23 + $0x370] sm:$0xff]  ;;  %v13311_v30 = vld [vmem:[%s21768_s23 + $0x588] sm:$0xff] }
 0xd15   : > { %16469 = vmatprep.subr.bf16.mxu1 %v16468_v24  ;;  %v16486_v24 = vpack.c.bf16 %v13211_v31, %v13210_v49  ;;  %v13245_v60 = vld [vmem:[%s21768_s23 + $0x378] sm:$0xff]  ;;  %v13310_v49 = vld [vmem:[%s21768_s23 + $0x580] sm:$0xff]  ;;  %v13275_v34 = vld [vmem:[%s21768_s23 + $0x468] sm:$0xff] }
 0xd16   : > { %v21183_v4 = vrot.slane %v13506_v56, %v18953_v36  ;;  %v13342_v56 = vld [vmem:[%s21768_s23 + $0x680] sm:$0xff] }
 0xd17   : > { %16455 = vmatpush3.bf16.msra.mxu0 %v16454_v28  ;;  %v16488_v28 = vpack.c.bf16 %v13229_v59, %v13228_v43  ;;  %v13269_v43 = vld [vmem:[%s21768_s23 + $0x438] sm:$0xff]  ;;  %v16522_v59 = vpack.c.bf16 %v13245_v60, %v13244_v1  ;;  %v13302_v60 = vld [vmem:[%s21768_s23 + $0x540] sm:$0xff] }
 0xd18   : > { %16457 = vmatprep.subr.bf16.mxu0 %v16456_v10  ;;  %16471 = vmatpush3.bf16.msra.mxu1 %v16470_v13  ;;  %v13278_v10 = vld [vmem:[%s21768_s23 + $0x480] sm:$0xff] }
 0xd19   : > { %16473 = vmatprep.subr.bf16.mxu1 %v16472_v35  ;;  %v13238_v13 = vld [vmem:[%s21768_s23 + $0x340] sm:$0xff]  ;;  %v13256_v35 = vld [vmem:[%s21768_s23 + $0x3d0] sm:$0xff] }
 0xd1b   : > { %16459 = vmatpush3.bf16.msra.mxu0 %v16458_v16  ;;  %v16524_v16 = vpack.c.bf16 %v13279_v50, %v13278_v10  ;;  %v13270_v10 = vld [vmem:[%s21768_s23 + $0x440] sm:$0xff]  ;;  %v13271_v50 = vld [vmem:[%s21768_s23 + $0x448] sm:$0xff] }
 0xd1c   : > { %16493 = vmatprep.subr.bf16.mxu0 %v16492_v55  ;;  %16475 = vmatpush3.bf16.msra.mxu1 %v16474_v32  ;;  %v16510_v55 = vpack.c.bf16 %v13239_v3, %v13238_v13  ;;  %v16512_v32 = vpack.c.bf16 %v13257_v26, %v13256_v35  ;;  %v13288_v13 = vld [vmem:[%s21768_s23 + $0x4d0] sm:$0xff]  ;;  %v13289_v3 = vld [vmem:[%s21768_s23 + $0x4d8] sm:$0xff]  ;;  %v16560_v35 = vpack.c.bf16 %v13313_v48, %v13312_v15 }
 0xd1d   : > { %16477 = vmatprep.subr.bf16.mxu1 %v16476_v20  ;;  %v16526_v20 = vpack.c.bf16 %v13263_v17, %v13262_v2  ;;  %v13296_v26 = vld [vmem:[%s21768_s23 + $0x510] sm:$0xff]  ;;  %v16542_v2 = vpack.c.bf16 %v13271_v50, %v13270_v10  ;;  %v13314_v17 = vld [vmem:[%s21768_s23 + $0x5a0] sm:$0xff]  ;;  %v16544_v38 = vpack.c.bf16 %v13289_v3, %v13288_v13  ;;  %v13305_v15 = vld [vmem:[%s21768_s23 + $0x558] sm:$0xff] }
 0xd1e   : > { %13691 = vmatmul.mubr.f32.vlgmr.msra.gmra.mrb[2].mxu0 %v20768_v23  ;;  %v13227_v23 = vld [vmem:[%s21768_s23 + $0x2e8] sm:$0xff]  ;;  %v13328_v13 = vld [vmem:[%s21768_s23 + $0x610] sm:$0xff]  ;;  %v13329_v3 = vld [vmem:[%s21768_s23 + $0x618] sm:$0xff] }
 0xd1f   : > { %16495 = vmatpush3.bf16.msra.mxu0 %v16494_v53  ;;  %13830 = vmatprep.mubr.f32.mxu0 %v13505_v29  ;;  %v16484_v42 = vpack.c.bf16 %v13227_v23, %v13226_v46  ;;  %v13521_v53 = vcombine.high %v21091_v63, %v21091_v63  ;;  %v13265_v29 = vld [vmem:[%s21768_s23 + $0x418] sm:$0xff]  ;;  %v13267_v46 = vld [vmem:[%s21768_s23 + $0x428] sm:$0xff]  ;;  %v16518_v23 = vpack.c.bf16 %v13243_v47, %v13242_v44 }
 0xd20   : > { %16497 = vmatprep.subr.bf16.mxu0 %v16496_v39  ;;  %16479 = vmatpush3.bf16.msra.mxu1 %v16478_v54  ;;  %v16514_v39 = vpack.c.bf16 %v13241_v40, %v13240_v19  ;;  %v16516_v54 = vpack.c.bf16 %v13259_v58, %v13258_v11  ;;  %v13290_v40 = vld [vmem:[%s21768_s23 + $0x4e0] sm:$0xff]  ;;  %v13299_v58 = vld [vmem:[%s21768_s23 + $0x528] sm:$0xff]  ;;  %v13293_v44 = vld [vmem:[%s21768_s23 + $0x4f8] sm:$0xff] }
 0xd21   : > { %16481 = vmatprep.subr.bf16.mxu1 %v16480_v62  ;;  %v16530_v62 = vpack.c.bf16 %v13265_v29, %v13264_v9  ;;  %v13298_v11 = vld [vmem:[%s21768_s23 + $0x520] sm:$0xff]  ;;  %v13317_v9 = vld [vmem:[%s21768_s23 + $0x5b8] sm:$0xff]  ;;  %v13323_v10 = vld [vmem:[%s21768_s23 + $0x5e8] sm:$0xff] }
 0xd22   : > { %v16566_v21 = vpack.c.bf16 %v13299_v58, %v13298_v11  ;;  %v13523_v11 = vcombine.high %v20693_v12, %v20693_v12 }
 0xd23   : > { %16499 = vmatpush3.bf16.msra.mxu0 %v16498_v41  ;;  %v13266_v41 = vld [vmem:[%s21768_s23 + $0x420] sm:$0xff] }
 0xd24   : > { %16501 = vmatprep.subr.bf16.mxu0 %v16500_v45  ;;  %16483 = vmatpush3.bf16.msra.mxu1 %v16482_v6  ;;  %v13284_v45 = vld [vmem:[%s21768_s23 + $0x4b0] sm:$0xff] }
 0xd25   : > { %16485 = vmatprep.subr.bf16.mxu1 %v16484_v42  ;;  %v16534_v42 = vpack.c.bf16 %v13267_v46, %v13266_v41  ;;  %v16536_v31 = vpack.c.bf16 %v13285_v8, %v13284_v45  ;;  %v13319_v41 = vld [vmem:[%s21768_s23 + $0x5c8] sm:$0xff]  ;;  %v13277_v45 = vld [vmem:[%s21768_s23 + $0x478] sm:$0xff] }
 0xd27   : > { %16503 = vmatpush3.bf16.msra.mxu0 %v16502_v27  ;;  %v13268_v27 = vld [vmem:[%s21768_s23 + $0x430] sm:$0xff] }
 0xd28   : > { %16505 = vmatprep.subr.bf16.mxu0 %v16504_v51  ;;  %16487 = vmatpush3.bf16.msra.mxu1 %v16486_v24  ;;  %v13286_v51 = vld [vmem:[%s21768_s23 + $0x4c0] sm:$0xff]  ;;  %v16556_v24 = vpack.c.bf16 %v13311_v30, %v13310_v49  ;;  %v13320_v30 = vld [vmem:[%s21768_s23 + $0x5d0] sm:$0xff] }
 0xd29   : > { %16489 = vmatprep.subr.bf16.mxu1 %v16488_v28  ;;  %v16538_v28 = vpack.c.bf16 %v13269_v43, %v13268_v27  ;;  %v21298_v27 = vrot.slane %v20693_v12, %v18953_v36  ;;  %v13375_v12 = vld [vmem:[%s21768_s23 + $0x788] sm:$0xff] }
 0xd2b   : > { %16507 = vmatpush3.bf16.msra.mxu0 %v16506_v37  ;;  %v16540_v37 = vpack.c.bf16 %v13287_v61, %v13286_v51  ;;  %v13327_v51 = vld [vmem:[%s21768_s23 + $0x608] sm:$0xff]  ;;  %v13538_v50 = vcombine.high %v21298_v27, %v21298_v27 }
 0xd2c   : > { %16509 = vmatprep.subr.bf16.mxu0 %v16508_v57  ;;  %16491 = vmatpush3.bf16.msra.mxu1 %v16490_v5  ;;  %v16558_v57 = vpack.c.bf16 %v13295_v22, %v13294_v33  ;;  %v13522_v5 = vcombine.high %v21183_v4, %v21183_v4  ;;  %v13345_v33 = vld [vmem:[%s21768_s23 + $0x698] sm:$0xff] }
 0xd2d   : > { %16525 = vmatprep.subr.bf16.mxu1 %v16524_v16  ;;  %v13297_v16 = vld [vmem:[%s21768_s23 + $0x518] sm:$0xff] }
 0xd2e   : > { %v16562_v19 = vpack.c.bf16 %v13297_v16, %v13296_v26  ;;  %v13347_v26 = vld [vmem:[%s21768_s23 + $0x6a8] sm:$0xff] }
 0xd2f   : > { %16511 = vmatpush3.bf16.msra.mxu0 %v16510_v55  ;;  %13761 = vmatmul.mubr.f32.vlgmr.msra.gmra.mrb[2].mxu1 %v20884_v7  ;;  %v13261_v7 = vld [vmem:[%s21768_s23 + $0x3f8] sm:$0xff]  ;;  %v13315_v55 = vld [vmem:[%s21768_s23 + $0x5a8] sm:$0xff] }
 0xd30   : > { %16513 = vmatprep.subr.bf16.mxu0 %v16512_v32  ;;  %16527 = vmatpush3.bf16.msra.mxu1 %v16526_v20  ;;  %v16520_v6 = vpack.c.bf16 %v13261_v7, %v13260_v14  ;;  %v13273_v32 = vld [vmem:[%s21768_s23 + $0x458] sm:$0xff]  ;;  %v16564_v20 = vpack.c.bf16 %v13315_v55, %v13314_v17  ;;  %v13307_v17 = vld [vmem:[%s21768_s23 + $0x568] sm:$0xff]  ;;  %v16594_v55 = vpack.c.bf16 %v13329_v3, %v13328_v13  ;;  %v13338_v13 = vld [vmem:[%s21768_s23 + $0x660] sm:$0xff] }
 0xd31   : > { %13900 = vmatprep.mubr.f32.mxu1 %v13521_v53  ;;  %16529 = vmatprep.subr.bf16.mxu1 %v16528_v25  ;;  %v16546_v53 = vpack.c.bf16 %v13273_v32, %v13272_v18  ;;  %v13316_v25 = vld [vmem:[%s21768_s23 + $0x5b0] sm:$0xff]  ;;  %v13301_v14 = vld [vmem:[%s21768_s23 + $0x538] sm:$0xff]  ;;  %v13330_v32 = vld [vmem:[%s21768_s23 + $0x620] sm:$0xff] }
 0xd32   : > { %v16568_v47 = vpack.c.bf16 %v13317_v9, %v13316_v25  ;;  %v13309_v25 = vld [vmem:[%s21768_s23 + $0x578] sm:$0xff]  ;;  %v13339_v3 = vld [vmem:[%s21768_s23 + $0x668] sm:$0xff] }
 0xd33   : > { %16515 = vmatpush3.bf16.msra.mxu0 %v16514_v39  ;;  %v13274_v39 = vld [vmem:[%s21768_s23 + $0x460] sm:$0xff] }
 0xd34   : > { %16517 = vmatprep.subr.bf16.mxu0 %v16516_v54  ;;  %16531 = vmatpush3.bf16.msra.mxu1 %v16530_v62  ;;  %v13292_v54 = vld [vmem:[%s21768_s23 + $0x4f0] sm:$0xff]  ;;  %v16550_v7 = vpack.c.bf16 %v13275_v34, %v13274_v39 }
 0xd35   : > { %16533 = vmatprep.subr.bf16.mxu1 %v16532_v0  ;;  %v13300_v62 = vld [vmem:[%s21768_s23 + $0x530] sm:$0xff]  ;;  %v13318_v0 = vld [vmem:[%s21768_s23 + $0x5c0] sm:$0xff]  ;;  %v16552_v46 = vpack.c.bf16 %v13293_v44, %v13292_v54 }
 0xd36   : > { %v16570_v8 = vpack.c.bf16 %v13301_v14, %v13300_v62  ;;  %v16572_v1 = vpack.c.bf16 %v13319_v41, %v13318_v0  ;;  %v13332_v34 = vld [vmem:[%s21768_s23 + $0x630] sm:$0xff]  ;;  %v13350_v44 = vld [vmem:[%s21768_s23 + $0x6c0] sm:$0xff]  ;;  %v21390_v62 = vrot.slane %v13523_v11, %v18953_v36  ;;  %v13359_v0 = vld [vmem:[%s21768_s23 + $0x708] sm:$0xff] }
 0xd37   : > { %16519 = vmatpush3.bf16.msra.mxu0 %v16518_v23  ;;  %v13276_v23 = vld [vmem:[%s21768_s23 + $0x470] sm:$0xff]  ;;  %v13377_v36 = vld [vmem:[%s21768_s23 + $0x798] sm:$0xff]  ;;  %v13367_v11 = vld [vmem:[%s21768_s23 + $0x748] sm:$0xff] }
 0xd38   : > { %16521 = vmatprep.subr.bf16.mxu0 %v16520_v6  ;;  %16535 = vmatpush3.bf16.msra.mxu1 %v16534_v42  ;;  %v13343_v6 = vld [vmem:[%s21768_s23 + $0x688] sm:$0xff]  ;;  %v16554_v49 = vpack.c.bf16 %v13277_v45, %v13276_v23  ;;  %v13334_v45 = vld [vmem:[%s21768_s23 + $0x640] sm:$0xff] }
 0xd39   : > { %16537 = vmatprep.subr.bf16.mxu1 %v16536_v31  ;;  %v13303_v42 = vld [vmem:[%s21768_s23 + $0x548] sm:$0xff]  ;;  %v13321_v31 = vld [vmem:[%s21768_s23 + $0x5d8] sm:$0xff]  ;;  %v16588_v43 = vpack.c.bf16 %v13343_v6, %v13342_v56  ;;  %v13352_v6 = vld [vmem:[%s21768_s23 + $0x6d0] sm:$0xff] }
 0xd3a   : > { %v16574_v61 = vpack.c.bf16 %v13303_v42, %v13302_v60  ;;  %v16576_v22 = vpack.c.bf16 %v13321_v31, %v13320_v30  ;;  %v13539_v60 = vcombine.high %v21390_v62, %v21390_v62  ;;  %v13361_v30 = vld [vmem:[%s21768_s23 + $0x718] sm:$0xff] }
 0xd3b   : > { %16523 = vmatpush3.bf16.msra.mxu0 %v16522_v59  ;;  %v13326_v59 = vld [vmem:[%s21768_s23 + $0x600] sm:$0xff] }
 0xd3c   : > { %16557 = vmatprep.subr.bf16.mxu0 %v16556_v24  ;;  %16539 = vmatpush3.bf16.msra.mxu1 %v16538_v28  ;;  %v13344_v24 = vld [vmem:[%s21768_s23 + $0x690] sm:$0xff]  ;;  %v16590_v48 = vpack.c.bf16 %v13327_v51, %v13326_v59  ;;  %v13379_v59 = vld [vmem:[%s21768_s23 + $0x7a8] sm:$0xff] }
 0xd3d   : > { %16541 = vmatprep.subr.bf16.mxu1 %v16540_v37  ;;  %v13304_v28 = vld [vmem:[%s21768_s23 + $0x550] sm:$0xff]  ;;  %v13322_v37 = vld [vmem:[%s21768_s23 + $0x5e0] sm:$0xff] }
 0xd3e   : > { %13831 = vmatmul.mubr.f32.vlgmr.msra.gmra.mrb[4].mxu0 %v20976_v52  ;;  %v13291_v52 = vld [vmem:[%s21768_s23 + $0x4e8] sm:$0xff]  ;;  %v16580_v16 = vpack.c.bf16 %v13323_v10, %v13322_v37  ;;  %v13380_v10 = vld [vmem:[%s21768_s23 + $0x7b0] sm:$0xff] }
 0xd3f   : > { %16559 = vmatpush3.bf16.msra.mxu0 %v16558_v57  ;;  %13970 = vmatprep.mubr.f32.mxu0 %v13522_v5  ;;  %v16548_v29 = vpack.c.bf16 %v13291_v52, %v13290_v40  ;;  %v16592_v57 = vpack.c.bf16 %v13345_v33, %v13344_v24  ;;  %v16578_v5 = vpack.c.bf16 %v13305_v15, %v13304_v28  ;;  %v13348_v52 = vld [vmem:[%s21768_s23 + $0x6b0] sm:$0xff]  ;;  %v13337_v24 = vld [vmem:[%s21768_s23 + $0x658] sm:$0xff]  ;;  %v13362_v15 = vld [vmem:[%s21768_s23 + $0x720] sm:$0xff] }
 0xd40   : > { %16561 = vmatprep.subr.bf16.mxu0 %v16560_v35  ;;  %16543 = vmatpush3.bf16.msra.mxu1 %v16542_v2  ;;  %v13346_v35 = vld [vmem:[%s21768_s23 + $0x6a0] sm:$0xff] }
 0xd41   : > { %16545 = vmatprep.subr.bf16.mxu1 %v16544_v38  ;;  %v13306_v2 = vld [vmem:[%s21768_s23 + $0x560] sm:$0xff]  ;;  %v13324_v38 = vld [vmem:[%s21768_s23 + $0x5f0] sm:$0xff]  ;;  %v16596_v18 = vpack.c.bf16 %v13347_v26, %v13346_v35  ;;  %v13357_v26 = vld [vmem:[%s21768_s23 + $0x6f8] sm:$0xff] }
 0xd42   : > { %v16582_v40 = vpack.c.bf16 %v13307_v17, %v13306_v2  ;;  %v13356_v35 = vld [vmem:[%s21768_s23 + $0x6f0] sm:$0xff]  ;;  %v13365_v17 = vld [vmem:[%s21768_s23 + $0x738] sm:$0xff] }
 0xd43   : > { %16563 = vmatpush3.bf16.msra.mxu0 %v16562_v19  ;;  %v13331_v19 = vld [vmem:[%s21768_s23 + $0x628] sm:$0xff]  ;;  %v13364_v2 = vld [vmem:[%s21768_s23 + $0x730] sm:$0xff] }
 0xd44   : > { %16565 = vmatprep.subr.bf16.mxu0 %v16564_v20  ;;  %16547 = vmatpush3.bf16.msra.mxu1 %v16546_v53  ;;  %v13349_v20 = vld [vmem:[%s21768_s23 + $0x6b8] sm:$0xff]  ;;  %v13308_v53 = vld [vmem:[%s21768_s23 + $0x570] sm:$0xff]  ;;  %v16598_v9 = vpack.c.bf16 %v13331_v19, %v13330_v32 }
 0xd45   : > { %16549 = vmatprep.subr.bf16.mxu1 %v16548_v29  ;;  %v13374_v29 = vld [vmem:[%s21768_s23 + $0x780] sm:$0xff]  ;;  %v16600_v39 = vpack.c.bf16 %v13349_v20, %v13348_v52  ;;  %v16586_v54 = vpack.c.bf16 %v13309_v25, %v13308_v53  ;;  %v13340_v32 = vld [vmem:[%s21768_s23 + $0x670] sm:$0xff]  ;;  %v13341_v19 = vld [vmem:[%s21768_s23 + $0x678] sm:$0xff] }
 0xd46   : > { %v16620_v14 = vpack.c.bf16 %v13375_v12, %v13374_v29  ;;  %v13366_v20 = vld [vmem:[%s21768_s23 + $0x740] sm:$0xff]  ;;  %v13384_v53 = vld [vmem:[%s21768_s23 + $0x7d0] sm:$0xff]  ;;  %v13385_v25 = vld [vmem:[%s21768_s23 + $0x7d8] sm:$0xff] }
 0xd47   : > { %16567 = vmatpush3.bf16.msra.mxu0 %v16566_v21  ;;  %v13333_v21 = vld [vmem:[%s21768_s23 + $0x638] sm:$0xff]  ;;  %v16640_v29 = vpack.c.bf16 %v13385_v25, %v13384_v53  ;;  %v13368_v12 = vld [vmem:[%s21768_s23 + $0x750] sm:$0xff] }
 0xd48   : > { %16569 = vmatprep.subr.bf16.mxu0 %v16568_v47  ;;  %16551 = vmatpush3.bf16.msra.mxu1 %v16550_v7  ;;  %v13351_v47 = vld [vmem:[%s21768_s23 + $0x6c8] sm:$0xff]  ;;  %v13358_v7 = vld [vmem:[%s21768_s23 + $0x700] sm:$0xff]  ;;  %v16602_v41 = vpack.c.bf16 %v13333_v21, %v13332_v34 }
 0xd49   : > { %16553 = vmatprep.subr.bf16.mxu1 %v16552_v46  ;;  %v13376_v46 = vld [vmem:[%s21768_s23 + $0x790] sm:$0xff]  ;;  %v16604_v23 = vpack.c.bf16 %v13351_v47, %v13350_v44  ;;  %v16622_v56 = vpack.c.bf16 %v13359_v0, %v13358_v7  ;;  %v13386_v34 = vld [vmem:[%s21768_s23 + $0x7e0] sm:$0xff]  ;;  %v13387_v21 = vld [vmem:[%s21768_s23 + $0x7e8] sm:$0xff] }
 0xd4a   : > { %v16624_v42 = vpack.c.bf16 %v13377_v36, %v13376_v46  ;;  %v16644_v44 = vpack.c.bf16 %v13387_v21, %v13386_v34  ;;  %v13370_v47 = vld [vmem:[%s21768_s23 + $0x760] sm:$0xff]  ;;  %v13388_v7 = vld [vmem:[%s21768_s23 + $0x7f0] sm:$0xff]  ;;  %v13389_v0 = vld [vmem:[%s21768_s23 + $0x7f8] sm:$0xff] }
 0xd4b   : > { %16571 = vmatpush3.bf16.msra.mxu0 %v16570_v8  ;;  %v13335_v8 = vld [vmem:[%s21768_s23 + $0x648] sm:$0xff]  ;;  %v13372_v46 = vld [vmem:[%s21768_s23 + $0x770] sm:$0xff]  ;;  %v13373_v36 = vld [vmem:[%s21768_s23 + $0x778] sm:$0xff] }
 0xd4c   : > { %16573 = vmatprep.subr.bf16.mxu0 %v16572_v1  ;;  %16555 = vmatpush3.bf16.msra.mxu1 %v16554_v49  ;;  %v13353_v1 = vld [vmem:[%s21768_s23 + $0x6d8] sm:$0xff]  ;;  %v13360_v49 = vld [vmem:[%s21768_s23 + $0x710] sm:$0xff]  ;;  %v16606_v31 = vpack.c.bf16 %v13335_v8, %v13334_v45 }
 0xd4d   : > { %16589 = vmatprep.subr.bf16.mxu1 %v16588_v43  ;;  %v13378_v43 = vld [vmem:[%s21768_s23 + $0x7a0] sm:$0xff]  ;;  %v16608_v51 = vpack.c.bf16 %v13353_v1, %v13352_v6  ;;  %v16626_v33 = vpack.c.bf16 %v13361_v30, %v13360_v49 }
 0xd4e   : > { %v16628_v28 = vpack.c.bf16 %v13379_v59, %v13378_v43 }
 0xd4f   : > { %16575 = vmatpush3.bf16.msra.mxu0 %v16574_v61  ;;  %13901 = vmatmul.mubr.f32.vlgmr.msra.gmra.mrb[4].mxu1 %v21091_v63  ;;  %v13325_v63 = vld [vmem:[%s21768_s23 + $0x5f8] sm:$0xff]  ;;  %v13336_v61 = vld [vmem:[%s21768_s23 + $0x650] sm:$0xff] }
 0xd50   : > { %16577 = vmatprep.subr.bf16.mxu0 %v16576_v22  ;;  %16591 = vmatpush3.bf16.msra.mxu1 %v16590_v48  ;;  %v16584_v58 = vpack.c.bf16 %v13325_v63, %v13324_v38  ;;  %v13354_v22 = vld [vmem:[%s21768_s23 + $0x6e0] sm:$0xff]  ;;  %v13363_v48 = vld [vmem:[%s21768_s23 + $0x728] sm:$0xff]  ;;  %v16610_v37 = vpack.c.bf16 %v13337_v24, %v13336_v61 }
 0xd51   : > { %14040 = vmatprep.mubr.f32.mxu1 %v13538_v50  ;;  %16593 = vmatprep.subr.bf16.mxu1 %v16592_v57  ;;  %v13381_v50 = vld [vmem:[%s21768_s23 + $0x7b8] sm:$0xff]  ;;  %v13382_v38 = vld [vmem:[%s21768_s23 + $0x7c0] sm:$0xff]  ;;  %v13383_v63 = vld [vmem:[%s21768_s23 + $0x7c8] sm:$0xff] }
 0xd52   : > { %v16636_v52 = vpack.c.bf16 %v13383_v63, %v13382_v38 }
 0xd53   : > { %16579 = vmatpush3.bf16.msra.mxu0 %v16578_v5  ;;  %v16630_v5 = vpack.c.bf16 %v13363_v48, %v13362_v15 }
 0xd54   : > { %16581 = vmatprep.subr.bf16.mxu0 %v16580_v16  ;;  %16595 = vmatpush3.bf16.msra.mxu1 %v16594_v55  ;;  %v16632_v16 = vpack.c.bf16 %v13381_v50, %v13380_v10  ;;  %v16614_v55 = vpack.c.bf16 %v13339_v3, %v13338_v13 }
 0xd55   : > { %16597 = vmatprep.subr.bf16.mxu1 %v16596_v18  ;;  %v16616_v18 = vpack.c.bf16 %v13357_v26, %v13356_v35 }
 0xd57   : > { %16583 = vmatpush3.bf16.msra.mxu0 %v16582_v40  ;;  %v16634_v40 = vpack.c.bf16 %v13365_v17, %v13364_v2  ;;  %v15551_v17 = vld [vmem:[#allocation28] ss:$0 sm:$0xff] }
 0xd58   : > { %16585 = vmatprep.subr.bf16.mxu0 %v16584_v58  ;;  %16599 = vmatpush3.bf16.msra.mxu1 %v16598_v9  ;;  %v16618_v58 = vpack.c.bf16 %v13341_v19, %v13340_v32  ;;  %v16638_v9 = vpack.c.bf16 %v13367_v11, %v13366_v20 }
 0xd59   : > { %16601 = vmatprep.subr.bf16.mxu1 %v16600_v39  ;;  %v13369_v39 = vld [vmem:[%s21768_s23 + $0x758] sm:$0xff] }
 0xd5b   : > { %16587 = vmatpush3.bf16.msra.mxu0 %v16586_v54  ;;  %v16642_v54 = vpack.c.bf16 %v13369_v39, %v13368_v12 }
 0xd5c   : > { %16621 = vmatprep.subr.bf16.mxu0 %v16620_v14  ;;  %16603 = vmatpush3.bf16.msra.mxu1 %v16602_v41  ;;  %v13371_v14 = vld [vmem:[%s21768_s23 + $0x768] sm:$0xff]  ;;  %v16648_v41 = vpack.c.bf16 %v13389_v0, %v13388_v7 }
 0xd5d   : > { %16605 = vmatprep.subr.bf16.mxu1 %v16604_v23  ;;  %v16650_v23 = vpack.c.bf16 %v13373_v36, %v13372_v46 }
 0xd5e   : > { %13971 = vmatmul.mubr.f32.vlgmr.msra.gmra.mrb[6].mxu0 %v21183_v4  ;;  %v13355_v4 = vld [vmem:[%s21768_s23 + $0x6e8] sm:$0xff] }
 0xd5f   : > { %16623 = vmatpush3.bf16.msra.mxu0 %v16622_v56  ;;  %14110 = vmatprep.mubr.f32.mxu0 %v13539_v60  ;;  %v16612_v57 = vpack.c.bf16 %v13355_v4, %v13354_v22 }
 0xd60   : > { %16625 = vmatprep.subr.bf16.mxu0 %v16624_v42  ;;  %16607 = vmatpush3.bf16.msra.mxu1 %v16606_v31 }
 0xd61   : > { %16609 = vmatprep.subr.bf16.mxu1 %v16608_v51 }
 0xd63   : > { %16627 = vmatpush3.bf16.msra.mxu0 %v16626_v33 }
 0xd64   : > { %16629 = vmatprep.subr.bf16.mxu0 %v16628_v28  ;;  %16611 = vmatpush3.bf16.msra.mxu1 %v16610_v37 }
 0xd65   : > { %16613 = vmatprep.subr.bf16.mxu1 %v16612_v57 }
 0xd67   : > { %16631 = vmatpush3.bf16.msra.mxu0 %v16630_v5 }
 0xd68   : > { %16633 = vmatprep.subr.bf16.mxu0 %v16632_v16  ;;  %16615 = vmatpush3.bf16.msra.mxu1 %v16614_v55 }
 0xd69   : > { %16617 = vmatprep.subr.bf16.mxu1 %v16616_v18 }
 0xd6b   : > { %16635 = vmatpush3.bf16.msra.mxu0 %v16634_v40 }
 0xd6c   : > { %16637 = vmatprep.subr.bf16.mxu0 %v16636_v52  ;;  %16619 = vmatpush3.bf16.msra.mxu1 %v16618_v58 }
 0xd6f   : > { %16639 = vmatpush3.bf16.msra.mxu0 %v16638_v9  ;;  %14041 = vmatmul.mubr.f32.vlgmr.msra.gmra.mrb[6].mxu1 %v21298_v27  ;;  %v16646_v27 = vpack.c.bf16 %v13371_v14, %v13370_v47 }
 0xd70   : > { %16641 = vmatprep.subr.bf16.mxu0 %v16640_v29 }
 0xd73   : > { %16643 = vmatpush3.bf16.msra.mxu0 %v16642_v54 }
 0xd74   : > { %16645 = vmatprep.subr.bf16.mxu0 %v16644_v44 }
 0xd77   : > { %16647 = vmatpush3.bf16.msra.mxu0 %v16646_v27 }
 0xd78   : > { %16649 = vmatprep.subr.bf16.mxu0 %v16648_v41 }
 0xd7b   : > { %16651 = vmatpush3.bf16.msra.mxu0 %v16650_v23 }
 0xd7e   : > { %14111 = vmatmul.mubr.f32.vlgmr.msra.gmra.mrb[8].mxu0 %v21390_v62 }
 0xdd1   : > { %v13464_v45 = vpop.f32.mrb[0].mxu0 }
 0xdd2   : > { %v15871_v8 = vpop.f32.mrb[1].mxu0 }
 0xde2   : > { %v15605_v56 = vpop.f32.mrb[0].mxu1 }
 0xde3   : > { %v15606_v6 = vpop.f32.mrb[1].mxu1 }
 0xde4   : > { %v15607_v1 = vadd.f32 %v15606_v6, %v15605_v56 }
 0xde6   : > { %v13623_v60 = vadd.f32 %v15607_v1, %v13464_v45 }
 0xdf1   : > { %v15640_v42 = vpop.f32.mrb[2].mxu0 }
 0xdf2   : > { %v15641_v49 = vpop.f32.mrb[3].mxu0 }
 0xdf3   : > { %v15642_v30 = vadd.f32 %v15641_v49, %v15640_v42 }
 0xdf5   : > { %v13693_v31 = vadd.f32 %v15642_v30, %v13623_v60 }
 0xe02   : > { %v15675_v43 = vpop.f32.mrb[2].mxu1 }
 0xe03   : > { %v15676_v59 = vpop.f32.mrb[3].mxu1 }
 0xe04   : > { %v15677_v51 = vadd.f32 %v15676_v59, %v15675_v43 }
 0xe06   : > { %v13763_v61 = vadd.f32 %v15677_v51, %v13693_v31 }
 0xe11   : > { %v15710_v24 = vpop.f32.mrb[4].mxu0 }
 0xe12   : > { %v15711_v33 = vpop.f32.mrb[5].mxu0 }
 0xe13   : > { %v15712_v22 = vadd.f32 %v15711_v33, %v15710_v24 }
 0xe15   : > { %v13833_v4 = vadd.f32 %v15712_v22, %v13763_v61 }
 0xe22   : > { %v15745_v28 = vpop.f32.mrb[4].mxu1 }
 0xe23   : > { %v15746_v62 = vpop.f32.mrb[5].mxu1 }
 0xe24   : > { %v15747_v15 = vadd.f32 %v15746_v62, %v15745_v28 }
 0xe26   : > { %v13903_v48 = vadd.f32 %v15747_v15, %v13833_v4 }
 0xe31   : > { %v15780_v37 = vpop.f32.mrb[6].mxu0 }
 0xe32   : > { %v15781_v10 = vpop.f32.mrb[7].mxu0 }
 0xe33   : > { %v15782_v50 = vadd.f32 %v15781_v10, %v15780_v37 }
 0xe35   : > { %v13973_v57 = vadd.f32 %v15782_v50, %v13903_v48 }
 0xe42   : > { %v15815_v13 = vpop.f32.mrb[6].mxu1 }
 0xe43   : > { %v15816_v3 = vpop.f32.mrb[7].mxu1 }
 0xe44   : > { %v15817_v5 = vadd.f32 %v15816_v3, %v15815_v13 }
 0xe46   : > { %v14043_v35 = vadd.f32 %v15817_v5, %v13973_v57 }
 0xe51   : > { %v15850_v26 = vpop.f32.mrb[8].mxu0 }
 0xe52   : > { %v15851_v16 = vpop.f32.mrb[9].mxu0 }
 0xe53   : > { %v15852_v2 = vadd.f32 %v15851_v16, %v15850_v26 }
 0xe55   : > { %v14113_v55 = vadd.f32 %v15852_v2, %v14043_v35 }
 0xe57   : > { %v14123_v38 = vadd.f32 %v15551_v17, %v14113_v55 }
 0xe59   : > { %14125 = vst.msk [vmem:[#allocation30] sm:$0x3] %vm14124_vm5, %v14123_v38 }
 0xe5a PF: > { %p16871_p8 = scmp.eq.s32.totalorder %s17877_s25, 35  ;;  %s17725_s8 = smov [#allocation30]  }
 0xe5b   : > { %s14133_s7 = sshll.u32 %s17725_s8, 4  ;;  %s14134_s7 = int_to_ptr.vmem [resolvable:$true] %s14133_s7 }
 0xe5c   : > { %s17533_s4 = scalar_lea.vmem %s14134_s7, 32  ;;  %p17540_p1 = scmp.lt.s32.totalorder %s14134_s7, %s14134_s7 }
 0xe5d   : > { %p17534_p2 = scmp.ne.s32.totalorder %s14134_s7, %s17533_s4  ;;  %p17541_p3 = scmp.lt.s32.totalorder %s17533_s4, %s17533_s4 }
 0xe5f   : > { %p17535_p7 = pnand %p17534_p2, %p16871_p8  ;;  %p17542_p6 = por %p17541_p3, %p17540_p1 }
 0xe61   : > { %p17536_p13 = pneg %p17535_p7 }
 0xe63   : > { %p17543_p9 = pnand %p17542_p6, %p17536_p13 }
 0xe65   : > { %17546 = shalt.err (!%p17543_p9)
}
 0xe66   : > { %s21769_s19 = sld [smem:[#allocation75_spill]] }
 0xe6c   : > { %s17547_s27 = scalar_lea.hbm %s21769_s19, 32 }
 0xe6d   : > { %p17548_p12 = scmp.ne.s32.totalorder %s21769_s19, %s17547_s27  ;;  %p17553_p0 = scmp.lt.u32.totalorder %s17547_s27, %s21769_s19 }
 0xe6f   : > { %p17549_p4 = pnand %p17548_p12, %p16871_p8 }
 0xe71   : > { %p17550_p10 = pneg %p17549_p4 }
 0xe73   : > { %p17555_p11 = pnand %p17553_p0, %p17550_p10 }
 0xe75   : > { %17558 = shalt.err (!%p17555_p11)
}
 0xe76   : > { %16799 = dma.vmem_to_hbm [thread:$0]  (%p16871_p8), %s14134_s7, 32, %s21769_s19, [#allocation6]  }
 0xe77   : > { %17648 = dma.done.wait (%p16871_p8), [#allocation6], 32  }
 0xe78   : > { %17650 = vsyncadd (%p16871_p8), [#allocation6], 4294967264 }
 0xe79 PF: > { %s21770_s10 = sld [smem:[#allocation50_spill]]  ;;  %s21771_s27 = sld [smem:[#allocation43_spill]] }
 0xe7a   : > { %s21772_s28 = sld [smem:[#allocation44_spill]]  ;;  %s21774_s3 = sld [smem:[#allocation45_spill]] }
 0xe7b   : > { %s21773_s29 = sld [smem:[#allocation55_spill]]  ;;  %s21775_s18 = sld [smem:[#allocation54_spill]] }
 0xe7c   : > { %s21776_s1 = sld [smem:[#allocation48_spill]]  ;;  %s21777_s20 = sld [smem:[#allocation49_spill]] }
 0xe7d   : > { %s21778_s21 = sld [smem:[#allocation52_spill]]  ;;  %s21779_s22 = sld [smem:[#allocation53_spill]] }
 0xe7e   : > { %s21780_s30 = smov %s17669_s0 }
 0xe7f   : > { %s46_s2 = sadd.s32 1, %s21770_s10  }
 0xe80   : > { %p43_p5 = scmp.ge.s32.totalorder %s46_s2, 38   ;;  %s21781_s0 = smov %s21774_s3 }
 0xe81   : > { %21782 = sst [smem:[#allocation43_spill]] %s21775_s18 }
 0xe82   :  { %45 = sbr.rel (!%p43_p5) target bundleno = 39 (0x27), region = 257 }
 0xe89   :  { %14146 = vsyncpa [#allocation5], 1 }
 0xe8a   :  { %14148 = vsyncpa [#allocation5 + $0x1], 1 }
 0xe8b   :  { %14149 = vsyncpa [#allocation8], 1 }
 0xe8c   :  { %14150 = vsyncpa [#allocation11], 1 }
 0xe8d   :  { %14151 = vsyncpa [#allocation14], 1 }
 0xe8e   :  { %14152 = vsyncpa [#allocation17], 1 }
 0xe8f   :  { %14154 = vsyncpa [#allocation17 + $0x1], 1 }
 0xe90   :  { %14155 = vsyncpa [#allocation20], 1 }
 0xe91   :  { %14157 = vsyncpa [#allocation20 + $0x1], 1 }
 0xe92   :  { %14158 = vsyncpa [#allocation23], 1 }
 0xe93   :  { %14160 = vsyncpa [#allocation23 + $0x1], 1 }
 0xe94   :  { %14161 = vsyncpa [#allocation26], 1 }
 0xe95   :  { %14163 = vsyncpa [#allocation26 + $0x1], 1 }
 0xe96   :  { %14164 = vsyncpa [#allocation29], 1 }
 0xe97   :  { %14165 = vsyncpa [#allocation6], 1 }
 0xe98   :  { %14167 = vsyncpa [#allocation6 + $0x1], 1 }

</bundles_post_ra>
